<compile_context>
chip_gen: v7x
topology: tpu7x:2x2x1
jax: 0.10.0
libtpu: 0.0.40
codegen_flags: <defaults>
</compile_context>

<pallas_src>
import numpy as np
import jax
import jax.numpy as jnp
from jax.experimental import pallas as pl
from jax.experimental.pallas import tpu as pltpu

_EPS = 1e-5


# ------------------------------------------------------------------ spec helper
def _fs(shape):
    """Full-array BlockSpec for a grid=(1,) pallas_call."""
    nd = len(shape)
    return pl.BlockSpec(tuple(shape), lambda i, _nd=nd: (0,) * _nd)


# ------------------------------------------------------------------ in-kernel math
def _silu(z):
    # exp and the approximate reciprocal both land on the EUP slot -> frees VALU.
    return z * pl.reciprocal(1.0 + jnp.exp(-z), approx=True)


def _bn(z, g, b):
    """Train-mode BatchNorm over the N*H*W axis of a (C, M) tile, as scale/bias."""
    mu = jnp.mean(z, axis=1, keepdims=True)
    ms = jnp.mean(z * z, axis=1, keepdims=True)
    var = jnp.maximum(ms - mu * mu, 0.0)
    scale = g * jax.lax.rsqrt(var + _EPS)
    return z * scale + (b - mu * scale)


def _pw_bn_silu(x, wt, g, b):
    """1x1 conv (Cout,Cin)@(Cin,M) + train BN + SiLU (conv bias cancelled by BN)."""
    z = jnp.dot(wt, x, preferred_element_type=jnp.float32)
    return _silu(_bn(z, g, b))


def _roll_lanes(x, s):
    """out[:, m] = x[:, (m + s) % M]; wrapped lanes are zeroed by the tap masks."""
    if s == 0:
        return x
    m = x.shape[1]
    return pltpu.roll(x, shift=(-s) % m, axis=1)


def _dw3x3_bn(x, w9, g, b, masks, wdt):
    """Depthwise 3x3 conv (padding=1) + train BN on a (C, N*H*W) lane-dense view."""
    acc = jnp.zeros(x.shape, jnp.float32)
    k = 0
    for dy in (-1, 0, 1):
        for dx in (-1, 0, 1):
            xs = _roll_lanes(x, dy * wdt + dx)
            acc = acc + (w9[:, k:k + 1] * xs) * masks[k:k + 1, :]
            k += 1
    return _bn(acc, g, b)


def _rb_stage(x1, x2, dwg, pw, obn, masks, wdt, ch, oh):
    """ShuffleNet-v2 basic unit on (ch, M) branch views -> (b1, b2) branch outputs.

    dwg: (ch, 24) = [b1 dw taps | b2 dw taps | 6 BN gamma/beta columns]
    pw : (ch+2*oh, ch) = [b2_pw1 ; b1_pw ; b2_pw2] (column order already matches
         the physical channel order of x1/x2 via host-side permutation).
    obn: (oh, 4) = per-output-channel BN gamma/beta for the two branch-final BNs.
    """
    b1_dw_w, b2_dw_w = dwg[:, 0:9], dwg[:, 9:18]
    b1_dw_g, b1_dw_b = dwg[:, 18:19], dwg[:, 19:20]
    b2_pw1_g, b2_pw1_b = dwg[:, 20:21], dwg[:, 21:22]
    b2_dw_g, b2_dw_b = dwg[:, 22:23], dwg[:, 23:24]
    b2_pw1_w = pw[0:ch]
    b1_pw_w = pw[ch:ch + oh]
    b2_pw2_w = pw[ch + oh:ch + 2 * oh]
    b1_pw_g, b1_pw_b = obn[:, 0:1], obn[:, 1:2]
    b2_pw2_g, b2_pw2_b = obn[:, 2:3], obn[:, 3:4]

    # branch1: dw3x3 + BN -> 1x1 conv + BN + SiLU
    b1 = _dw3x3_bn(x1, b1_dw_w, b1_dw_g, b1_dw_b, masks, wdt)
    b1 = _pw_bn_silu(b1, b1_pw_w, b1_pw_g, b1_pw_b)
    # branch2: 1x1 conv + BN + SiLU -> dw3x3 + BN -> 1x1 conv + BN + SiLU
    b2 = _pw_bn_silu(x2, b2_pw1_w, b2_pw1_g, b2_pw1_b)
    b2 = _dw3x3_bn(b2, b2_dw_w, b2_dw_g, b2_dw_b, masks, wdt)
    b2 = _pw_bn_silu(b2, b2_pw2_w, b2_pw2_g, b2_pw2_b)
    return b1, b2


# ------------------------------------------------------------------ fused kernel
def _build_kernel(stage_dims, wdt, with_time):
    n_time = 4 if with_time else 0
    nstages = len(stage_dims)

    def kernel(*refs):
        xs_ref, up_ref, sc_ref, masks_ref = refs[0:4]
        time_refs = refs[4:4 + n_time]
        prm = refs[4 + n_time:-1]
        o_ref = refs[-1]
        masks = masks_ref[...]

        # Stage-0 branch inputs: bilinear 2x upsample = ONE lane-dense MXU matmul;
        # torch.cat([up, shortcut]) followed by chunk(2) is the identity split.
        x1 = jnp.dot(xs_ref[...], up_ref[...], preferred_element_type=jnp.float32)
        x2 = sc_ref[...]

        b1 = b2 = None
        for i, (ch, oh) in enumerate(stage_dims):
            if with_time and i == nstages - 1:
                # TimeMLP: silu(W1 t + b1) -> W2 . + b2, broadcast over H*W, add, SiLU.
                tT_ref, w1b_ref, w2b_ref, bsel_ref = time_refs
                w1b, w2b = w1b_ref[...], w2b_ref[...]
                td, hd = w1b.shape[1] - 1, w2b.shape[1] - 1
                h1 = _silu(jnp.dot(w1b[:, :td], tT_ref[...],
                                   preferred_element_type=jnp.float32) + w1b[:, td:])
                e = jnp.dot(w2b[:, :hd], h1,
                            preferred_element_type=jnp.float32) + w2b[:, hd:]   # (C, N)
                eb = jnp.dot(e, bsel_ref[...], preferred_element_type=jnp.float32)  # (C, M)
                x1 = _silu(x1 + eb[:ch])
                x2 = _silu(x2 + eb[ch:])
            dwg, pw, obn = prm[3 * i][...], prm[3 * i + 1][...], prm[3 * i + 2][...]
            b1, b2 = _rb_stage(x1, x2, dwg, pw, obn, masks, wdt, ch, oh)
            if i < nstages - 1:
                # ChannelShuffle(2) folded into the next stage's host-permuted params:
                # only regroup branch halves into two contiguous slabs (no interleave).
                q = oh // 2
                x1 = jnp.concatenate([b1[:q], b2[:q]], axis=0)
                x2 = jnp.concatenate([b1[q:], b2[q:]], axis=0)
        # Final ChannelShuffle happens in the wrapper (fused into the NCHW transpose);
        # store the two branches as contiguous full-lane-width slabs.
        o_ref[...] = jnp.concatenate([b1, b2], axis=0)

    return kernel


# ------------------------------------------------------------------ host constants
def _bilinear_matrix(n_in):
    """(2*n_in, n_in) interpolation matrix matching nn.Upsample(2,'bilinear',False)."""
    n_out = 2 * n_in
    m = np.zeros((n_out, n_in), np.float32)
    for i in range(n_out):
        src = max((i + 0.5) / 2.0 - 0.5, 0.0)
        i0 = min(int(np.floor(src)), n_in - 1)
        i1 = min(i0 + 1, n_in - 1)
        frac = src - i0
        m[i, i0] += 1.0 - frac
        m[i, i1] += frac
    return m


def _upsample_matrix(n, h, w):
    """Block-diag over batch of kron(A_h, A_w)^T: (N*H*W, N*2H*2W)."""
    u = np.kron(_bilinear_matrix(h), _bilinear_matrix(w))        # (4hw, hw)
    return jnp.asarray(np.kron(np.eye(n, dtype=np.float32), u.T.astype(np.float32)))


def _batch_broadcast_matrix(n, hw):
    """(N, N*H*W) selector so that e(C,N) @ S broadcasts e over each image."""
    return jnp.asarray(np.kron(np.eye(n, dtype=np.float32), np.ones((1, hw), np.float32)))


def _tap_masks(n, h, w):
    """(9, N*H*W) validity masks for the 3x3 taps (zero-padding at image borders)."""
    hh, ww = np.meshgrid(np.arange(h), np.arange(w), indexing="ij")
    rows = []
    for dy in (-1, 0, 1):
        for dx in (-1, 0, 1):
            valid = ((hh + dy >= 0) & (hh + dy < h) & (ww + dx >= 0) & (ww + dx < w))
            rows.append(np.tile(valid.reshape(-1), n))
    return jnp.asarray(np.stack(rows).astype(np.float32))


def _half_perm(ch):
    """perm[j] = logical channel held at physical row j after the slab regrouping."""
    q = ch // 2
    return np.array([2 * j if j < q else 2 * (j - q) + 1 for j in range(ch)], np.int32)


def _pack_stage(p, perm):
    """Pack 15 per-bottleneck arrays into 3 lane-dense slabs; fold the channel
    shuffle of the previous stage into the per-input-channel params via `perm`."""
    dwg = jnp.concatenate([p["b1_dw_w"][perm], p["b2_dw_w"],
                           p["b1_dw_g"][perm], p["b1_dw_b"][perm],
                           p["b2_pw1_g"], p["b2_pw1_b"],
                           p["b2_dw_g"], p["b2_dw_b"]], axis=1)          # (ch, 24)
    pw = jnp.concatenate([p["b2_pw1_w"][:, perm], p["b1_pw_w"][:, perm],
                          p["b2_pw2_w"]], axis=0)                       # (ch+2oh, ch)
    obn = jnp.concatenate([p["b1_pw_g"], p["b1_pw_b"],
                           p["b2_pw2_g"], p["b2_pw2_b"]], axis=1)       # (oh, 4)
    return [dwg, pw, obn]


# ------------------------------------------------------------------ forward
def decoder_block_forward(params, x, x_shortcut, t):
    # Module-level I/O is NCHW (PyTorch); the kernel runs on channel-major (C, N*H*W).
    n, c1, h0, w0 = x.shape
    ns, c1s, h1, w1 = x_shortcut.shape
    assert ns == n and c1 == c1s, "concat split assumes equal channels on both paths"
    assert h1 == 2 * h0 and w1 == 2 * w0, "shortcut must be the 2x-resolution map"
    m = n * h1 * w1
    assert m % 128 == 0, "N*H*W must be a multiple of 128 for lane-dense stores"
    cin = c1 + c1s

    oh_last = params["conv1"]["b1_pw_w"].shape[0]
    stage_dims = [(cin // 2, cin // 2)] * 3 + [(cin // 2, cin // 4), (cin // 4, oh_last)]
    for ch, oh in stage_dims:
        assert ch % 2 == 0 and oh % 2 == 0, "shuffle folding needs even branch widths"
    cout = 2 * oh_last

    # layout plumbing: NCHW -> channel-major lane-dense (C, N*H*W)
    xs = jnp.transpose(x, (1, 0, 2, 3)).reshape(c1, n * h0 * w0)
    sc = jnp.transpose(x_shortcut, (1, 0, 2, 3)).reshape(c1s, m)
    up = _upsample_matrix(n, h0, w0)
    masks = _tap_masks(n, h1, w1)

    rbs = params["conv0"] + [params["conv1"]]
    packed = []
    for i, (p, (ch, oh)) in enumerate(zip(rbs, stage_dims)):
        perm = np.arange(ch, dtype=np.int32) if i == 0 else _half_perm(ch)
        packed += _pack_stage(p, perm)

    with_time = t is not None
    inputs = [xs, up, sc, masks]
    if with_time:
        tm = params["time_mlp"]
        ch4 = stage_dims[-1][0]
        full_perm = np.concatenate([_half_perm(ch4), ch4 + _half_perm(ch4)])
        w1b = jnp.concatenate([tm["w1"], tm["b1"]], axis=1)                 # (hid, T+1)
        w2b = jnp.concatenate([tm["w2"], tm["b2"]], axis=1)[full_perm]      # (C4, hid+1)
        inputs += [jnp.transpose(t), w1b, w2b, _batch_broadcast_matrix(n, h1 * w1)]
    inputs += packed

    # rough cost hint for the XLA scheduler
    flops = 2 * c1 * (n * h0 * w0) * m
    trans = 0
    for ch, oh in stage_dims:
        flops += 2 * m * (ch * ch + 2 * ch * oh) + 36 * ch * m + 40 * (ch + oh) * m
        trans += (ch + 2 * oh) * m
    if with_time:
        flops += 4 * (cin // 2) * m
        trans += (cin // 2) * m
    bytes_acc = (sum(int(np.prod(a.shape)) for a in inputs) + cout * m) * 4

    kernel = _build_kernel(stage_dims, w1, with_time)
    h = pl.pallas_call(
        kernel,
        grid=(1,),
        in_specs=[_fs(a.shape) for a in inputs],
        out_specs=_fs((cout, m)),
        out_shape=jax.ShapeDtypeStruct((cout, m), jnp.float32),
        compiler_params=pltpu.CompilerParams(dimension_semantics=("arbitrary",)),
        cost_estimate=pl.CostEstimate(flops=int(flops), transcendentals=int(trans),
                                      bytes_accessed=int(bytes_acc)),
    )(*inputs)

    # Final ChannelShuffle(groups=2): channel gather, fused into the NCHW transpose.
    out_perm = np.array([(l // 2) if l % 2 == 0 else (oh_last + l // 2)
                         for l in range(cout)], np.int32)
    h = h[out_perm]
    return jnp.transpose(h.reshape(cout, n, h1, w1), (1, 0, 2, 3))


# ------------------------------------------------------------------ params
def _init_rb_params(key, cin, cout):
    ch, oh = cin // 2, cout // 2
    ks = jax.random.split(key, 5)
    w = lambda k, s: 0.1 * jax.random.normal(k, s, jnp.float32)
    ones = lambda c: jnp.ones((c, 1), jnp.float32)
    zeros = lambda c: jnp.zeros((c, 1), jnp.float32)
    # Conv biases omitted: each conv feeds a train-mode BatchNorm which exactly
    # cancels any per-channel additive constant (identical forward semantics).
    return {
        "b1_dw_w": w(ks[0], (ch, 9)), "b1_dw_g": ones(ch), "b1_dw_b": zeros(ch),
        "b1_pw_w": w(ks[1], (oh, ch)), "b1_pw_g": ones(oh), "b1_pw_b": zeros(oh),
        "b2_pw1_w": w(ks[2], (ch, ch)), "b2_pw1_g": ones(ch), "b2_pw1_b": zeros(ch),
        "b2_dw_w": w(ks[3], (ch, 9)), "b2_dw_g": ones(ch), "b2_dw_b": zeros(ch),
        "b2_pw2_w": w(ks[4], (oh, ch)), "b2_pw2_g": ones(oh), "b2_pw2_b": zeros(oh),
    }


def init_decoder_params(key, in_ch, out_ch, t_dim):
    ks = jax.random.split(key, 9)
    conv0 = [
        _init_rb_params(ks[0], in_ch, in_ch),
        _init_rb_params(ks[1], in_ch, in_ch),
        _init_rb_params(ks[2], in_ch, in_ch),
        _init_rb_params(ks[3], in_ch, in_ch // 2),
    ]
    w = lambda k, s: 0.1 * jax.random.normal(k, s, jnp.float32)
    time_mlp = {   # PyTorch Linear layouts: W1 (hidden, T), W2 (out, hidden)
        "w1": w(ks[4], (in_ch, t_dim)), "b1": w(ks[5], (in_ch, 1)),
        "w2": w(ks[6], (in_ch // 2, in_ch)), "b2": w(ks[7], (in_ch // 2, 1)),
    }
    conv1 = _init_rb_params(ks[8], in_ch // 2, out_ch // 2)
    return {"conv0": conv0, "time_mlp": time_mlp, "conv1": conv1}


# ------------------------------------------------------------------ main
if __name__ == "__main__":
    in_channels, out_channels, time_embedding_dim = 16, 16, 16
    N, H, W = 2, 8, 8

    key = jax.random.PRNGKey(0)
    kx, ks, kt, kp = jax.random.split(key, 4)
    # x (pre-upsample) and the skip each carry in_channels//2 channels so the concat
    # after the 2x upsample has exactly `in_channels` channels.
    x = jax.random.normal(kx, (N, in_channels // 2, H, W), jnp.float32)
    x_shortcut = jax.random.normal(ks, (N, in_channels // 2, 2 * H, 2 * W), jnp.float32)
    t = jax.random.normal(kt, (N, time_embedding_dim), jnp.float32)

    params = init_decoder_params(kp, in_channels, out_channels, time_embedding_dim)

    fwd = jax.jit(decoder_block_forward)
    out = jax.block_until_ready(fwd(params, x, x_shortcut, t))

    assert out.shape == (N, out_channels // 2, 2 * H, 2 * W), out.shape
    assert bool(jnp.all(jnp.isfinite(out)))
    print("KERNEL_OK")
</pallas_src>

<mosaic_0001>
module attributes {stable_mosaic.version = 11 : i64} {
  func.func @kernel(%arg0: i32, %arg1: memref<8x128xf32, #tpu.memory_space<vmem>>, %arg2: memref<128x512xf32, #tpu.memory_space<vmem>>, %arg3: memref<8x512xf32, #tpu.memory_space<vmem>>, %arg4: memref<9x512xf32, #tpu.memory_space<vmem>>, %arg5: memref<16x2xf32, #tpu.memory_space<vmem>>, %arg6: memref<16x17xf32, #tpu.memory_space<vmem>>, %arg7: memref<8x17xf32, #tpu.memory_space<vmem>>, %arg8: memref<2x512xf32, #tpu.memory_space<vmem>>, %arg9: memref<8x24xf32, #tpu.memory_space<vmem>>, %arg10: memref<24x8xf32, #tpu.memory_space<vmem>>, %arg11: memref<8x4xf32, #tpu.memory_space<vmem>>, %arg12: memref<8x24xf32, #tpu.memory_space<vmem>>, %arg13: memref<24x8xf32, #tpu.memory_space<vmem>>, %arg14: memref<8x4xf32, #tpu.memory_space<vmem>>, %arg15: memref<8x24xf32, #tpu.memory_space<vmem>>, %arg16: memref<24x8xf32, #tpu.memory_space<vmem>>, %arg17: memref<8x4xf32, #tpu.memory_space<vmem>>, %arg18: memref<8x24xf32, #tpu.memory_space<vmem>>, %arg19: memref<16x8xf32, #tpu.memory_space<vmem>>, %arg20: memref<4x4xf32, #tpu.memory_space<vmem>>, %arg21: memref<4x24xf32, #tpu.memory_space<vmem>>, %arg22: memref<12x4xf32, #tpu.memory_space<vmem>>, %arg23: memref<4x4xf32, #tpu.memory_space<vmem>>, %arg24: memref<8x512xf32, #tpu.memory_space<vmem>>) attributes {dimension_semantics = [#tpu.dimension_semantics<arbitrary>], iteration_bounds = array<i64: 1>, scalar_prefetch = 0 : i64, scratch_operands = 0 : i64, tpu.core_type = #tpu.core_type<tc>, window_params = [{pipeline_mode = #tpu.pipeline_mode<synchronous>, transform_indices = @transform_0, window_bounds = array<i64: 8, 128>}, {pipeline_mode = #tpu.pipeline_mode<synchronous>, transform_indices = @transform_1, window_bounds = array<i64: 128, 512>}, {pipeline_mode = #tpu.pipeline_mode<synchronous>, transform_indices = @transform_2, window_bounds = array<i64: 8, 512>}, {pipeline_mode = #tpu.pipeline_mode<synchronous>, transform_indices = @transform_3, window_bounds = array<i64: 9, 512>}, {pipeline_mode = #tpu.pipeline_mode<synchronous>, transform_indices = @transform_4, window_bounds = array<i64: 16, 2>}, {pipeline_mode = #tpu.pipeline_mode<synchronous>, transform_indices = @transform_5, window_bounds = array<i64: 16, 17>}, {pipeline_mode = #tpu.pipeline_mode<synchronous>, transform_indices = @transform_6, window_bounds = array<i64: 8, 17>}, {pipeline_mode = #tpu.pipeline_mode<synchronous>, transform_indices = @transform_7, window_bounds = array<i64: 2, 512>}, {pipeline_mode = #tpu.pipeline_mode<synchronous>, transform_indices = @transform_8, window_bounds = array<i64: 8, 24>}, {pipeline_mode = #tpu.pipeline_mode<synchronous>, transform_indices = @transform_9, window_bounds = array<i64: 24, 8>}, {pipeline_mode = #tpu.pipeline_mode<synchronous>, transform_indices = @transform_10, window_bounds = array<i64: 8, 4>}, {pipeline_mode = #tpu.pipeline_mode<synchronous>, transform_indices = @transform_11, window_bounds = array<i64: 8, 24>}, {pipeline_mode = #tpu.pipeline_mode<synchronous>, transform_indices = @transform_12, window_bounds = array<i64: 24, 8>}, {pipeline_mode = #tpu.pipeline_mode<synchronous>, transform_indices = @transform_13, window_bounds = array<i64: 8, 4>}, {pipeline_mode = #tpu.pipeline_mode<synchronous>, transform_indices = @transform_14, window_bounds = array<i64: 8, 24>}, {pipeline_mode = #tpu.pipeline_mode<synchronous>, transform_indices = @transform_15, window_bounds = array<i64: 24, 8>}, {pipeline_mode = #tpu.pipeline_mode<synchronous>, transform_indices = @transform_16, window_bounds = array<i64: 8, 4>}, {pipeline_mode = #tpu.pipeline_mode<synchronous>, transform_indices = @transform_17, window_bounds = array<i64: 8, 24>}, {pipeline_mode = #tpu.pipeline_mode<synchronous>, transform_indices = @transform_18, window_bounds = array<i64: 16, 8>}, {pipeline_mode = #tpu.pipeline_mode<synchronous>, transform_indices = @transform_19, window_bounds = array<i64: 4, 4>}, {pipeline_mode = #tpu.pipeline_mode<synchronous>, transform_indices = @transform_20, window_bounds = array<i64: 4, 24>}, {pipeline_mode = #tpu.pipeline_mode<synchronous>, transform_indices = @transform_21, window_bounds = array<i64: 12, 4>}, {pipeline_mode = #tpu.pipeline_mode<synchronous>, transform_indices = @transform_22, window_bounds = array<i64: 4, 4>}, {pipeline_mode = #tpu.pipeline_mode<synchronous>, transform_indices = @transform_23, window_bounds = array<i64: 8, 512>}]} {
    %c0 = arith.constant 0 : index
    %c0_0 = arith.constant 0 : index
    %0 = vector.load %arg4[%c0, %c0_0] : memref<9x512xf32, #tpu.memory_space<vmem>>, vector<9x512xf32>
    %c0_1 = arith.constant 0 : index
    %c0_2 = arith.constant 0 : index
    %1 = vector.load %arg1[%c0_1, %c0_2] : memref<8x128xf32, #tpu.memory_space<vmem>>, vector<8x128xf32>
    %c0_3 = arith.constant 0 : index
    %c0_4 = arith.constant 0 : index
    %2 = vector.load %arg2[%c0_3, %c0_4] : memref<128x512xf32, #tpu.memory_space<vmem>>, vector<128x512xf32>
    %cst = arith.constant dense<0.000000e+00> : vector<8x512xf32>
    %3 = tpu.matmul %1, %2, %cst {dimension_numbers = #tpu.dot_dimension_numbers<[1], [0], [0], [1], [0, 0, 1, 1], [], []>} : vector<8x128xf32>, vector<128x512xf32>, vector<8x512xf32> -> vector<8x512xf32>
    %c0_5 = arith.constant 0 : index
    %c0_6 = arith.constant 0 : index
    %4 = vector.load %arg3[%c0_5, %c0_6] : memref<8x512xf32, #tpu.memory_space<vmem>>, vector<8x512xf32>
    %c0_7 = arith.constant 0 : index
    %c0_8 = arith.constant 0 : index
    %5 = vector.load %arg9[%c0_7, %c0_8] : memref<8x24xf32, #tpu.memory_space<vmem>>, vector<8x24xf32>
    %c0_9 = arith.constant 0 : index
    %c0_10 = arith.constant 0 : index
    %6 = vector.load %arg10[%c0_9, %c0_10] : memref<24x8xf32, #tpu.memory_space<vmem>>, vector<24x8xf32>
    %c0_11 = arith.constant 0 : index
    %c0_12 = arith.constant 0 : index
    %7 = vector.load %arg11[%c0_11, %c0_12] : memref<8x4xf32, #tpu.memory_space<vmem>>, vector<8x4xf32>
    %8 = vector.extract_strided_slice %5 {offsets = [0, 0], sizes = [8, 9], strides = [1, 1]} : vector<8x24xf32> to vector<8x9xf32>
    %9 = vector.extract_strided_slice %5 {offsets = [0, 9], sizes = [8, 9], strides = [1, 1]} : vector<8x24xf32> to vector<8x9xf32>
    %10 = vector.extract_strided_slice %5 {offsets = [0, 18], sizes = [8, 1], strides = [1, 1]} : vector<8x24xf32> to vector<8x1xf32>
    %11 = vector.extract_strided_slice %5 {offsets = [0, 19], sizes = [8, 1], strides = [1, 1]} : vector<8x24xf32> to vector<8x1xf32>
    %12 = vector.extract_strided_slice %5 {offsets = [0, 20], sizes = [8, 1], strides = [1, 1]} : vector<8x24xf32> to vector<8x1xf32>
    %13 = vector.extract_strided_slice %5 {offsets = [0, 21], sizes = [8, 1], strides = [1, 1]} : vector<8x24xf32> to vector<8x1xf32>
    %14 = vector.extract_strided_slice %5 {offsets = [0, 22], sizes = [8, 1], strides = [1, 1]} : vector<8x24xf32> to vector<8x1xf32>
    %15 = vector.extract_strided_slice %5 {offsets = [0, 23], sizes = [8, 1], strides = [1, 1]} : vector<8x24xf32> to vector<8x1xf32>
    %16 = vector.extract_strided_slice %6 {offsets = [0, 0], sizes = [8, 8], strides = [1, 1]} : vector<24x8xf32> to vector<8x8xf32>
    %17 = vector.extract_strided_slice %6 {offsets = [8, 0], sizes = [8, 8], strides = [1, 1]} : vector<24x8xf32> to vector<8x8xf32>
    %18 = vector.extract_strided_slice %6 {offsets = [16, 0], sizes = [8, 8], strides = [1, 1]} : vector<24x8xf32> to vector<8x8xf32>
    %19 = vector.extract_strided_slice %7 {offsets = [0, 0], sizes = [8, 1], strides = [1, 1]} : vector<8x4xf32> to vector<8x1xf32>
    %20 = vector.extract_strided_slice %7 {offsets = [0, 1], sizes = [8, 1], strides = [1, 1]} : vector<8x4xf32> to vector<8x1xf32>
    %21 = vector.extract_strided_slice %7 {offsets = [0, 2], sizes = [8, 1], strides = [1, 1]} : vector<8x4xf32> to vector<8x1xf32>
    %22 = vector.extract_strided_slice %7 {offsets = [0, 3], sizes = [8, 1], strides = [1, 1]} : vector<8x4xf32> to vector<8x1xf32>
    %cst_13 = arith.constant 0.000000e+00 : f32
    %23 = vector.broadcast %cst_13 : f32 to vector<8x512xf32>
    %c17_i32 = arith.constant 17 : i32
    %24 = tpu.dynamic_rotate %3 by %c17_i32 dim 1 : vector<8x512xf32>, i32 -> vector<8x512xf32>
    %25 = vector.extract_strided_slice %8 {offsets = [0, 0], sizes = [8, 1], strides = [1, 1]} : vector<8x9xf32> to vector<8x1xf32>
    %26 = vector.broadcast %25 : vector<8x1xf32> to vector<8x512xf32>
    %27 = arith.mulf %26, %24 : vector<8x512xf32>
    %28 = vector.extract_strided_slice %0 {offsets = [0, 0], sizes = [1, 512], strides = [1, 1]} : vector<9x512xf32> to vector<1x512xf32>
    %29 = vector.broadcast %28 : vector<1x512xf32> to vector<8x512xf32>
    %30 = arith.mulf %27, %29 : vector<8x512xf32>
    %31 = arith.addf %23, %30 : vector<8x512xf32>
    %c16_i32 = arith.constant 16 : i32
    %32 = tpu.dynamic_rotate %3 by %c16_i32 dim 1 : vector<8x512xf32>, i32 -> vector<8x512xf32>
    %33 = vector.extract_strided_slice %8 {offsets = [0, 1], sizes = [8, 1], strides = [1, 1]} : vector<8x9xf32> to vector<8x1xf32>
    %34 = vector.broadcast %33 : vector<8x1xf32> to vector<8x512xf32>
    %35 = arith.mulf %34, %32 : vector<8x512xf32>
    %36 = vector.extract_strided_slice %0 {offsets = [1, 0], sizes = [1, 512], strides = [1, 1]} : vector<9x512xf32> to vector<1x512xf32>
    %37 = vector.broadcast %36 : vector<1x512xf32> to vector<8x512xf32>
    %38 = arith.mulf %35, %37 : vector<8x512xf32>
    %39 = arith.addf %31, %38 : vector<8x512xf32>
    %c15_i32 = arith.constant 15 : i32
    %40 = tpu.dynamic_rotate %3 by %c15_i32 dim 1 : vector<8x512xf32>, i32 -> vector<8x512xf32>
    %41 = vector.extract_strided_slice %8 {offsets = [0, 2], sizes = [8, 1], strides = [1, 1]} : vector<8x9xf32> to vector<8x1xf32>
    %42 = vector.broadcast %41 : vector<8x1xf32> to vector<8x512xf32>
    %43 = arith.mulf %42, %40 : vector<8x512xf32>
    %44 = vector.extract_strided_slice %0 {offsets = [2, 0], sizes = [1, 512], strides = [1, 1]} : vector<9x512xf32> to vector<1x512xf32>
    %45 = vector.broadcast %44 : vector<1x512xf32> to vector<8x512xf32>
    %46 = arith.mulf %43, %45 : vector<8x512xf32>
    %47 = arith.addf %39, %46 : vector<8x512xf32>
    %c1_i32 = arith.constant 1 : i32
    %48 = tpu.dynamic_rotate %3 by %c1_i32 dim 1 : vector<8x512xf32>, i32 -> vector<8x512xf32>
    %49 = vector.extract_strided_slice %8 {offsets = [0, 3], sizes = [8, 1], strides = [1, 1]} : vector<8x9xf32> to vector<8x1xf32>
    %50 = vector.broadcast %49 : vector<8x1xf32> to vector<8x512xf32>
    %51 = arith.mulf %50, %48 : vector<8x512xf32>
    %52 = vector.extract_strided_slice %0 {offsets = [3, 0], sizes = [1, 512], strides = [1, 1]} : vector<9x512xf32> to vector<1x512xf32>
    %53 = vector.broadcast %52 : vector<1x512xf32> to vector<8x512xf32>
    %54 = arith.mulf %51, %53 : vector<8x512xf32>
    %55 = arith.addf %47, %54 : vector<8x512xf32>
    %56 = vector.extract_strided_slice %8 {offsets = [0, 4], sizes = [8, 1], strides = [1, 1]} : vector<8x9xf32> to vector<8x1xf32>
    %57 = vector.broadcast %56 : vector<8x1xf32> to vector<8x512xf32>
    %58 = arith.mulf %57, %3 : vector<8x512xf32>
    %59 = vector.extract_strided_slice %0 {offsets = [4, 0], sizes = [1, 512], strides = [1, 1]} : vector<9x512xf32> to vector<1x512xf32>
    %60 = vector.broadcast %59 : vector<1x512xf32> to vector<8x512xf32>
    %61 = arith.mulf %58, %60 : vector<8x512xf32>
    %62 = arith.addf %55, %61 : vector<8x512xf32>
    %c511_i32 = arith.constant 511 : i32
    %63 = tpu.dynamic_rotate %3 by %c511_i32 dim 1 : vector<8x512xf32>, i32 -> vector<8x512xf32>
    %64 = vector.extract_strided_slice %8 {offsets = [0, 5], sizes = [8, 1], strides = [1, 1]} : vector<8x9xf32> to vector<8x1xf32>
    %65 = vector.broadcast %64 : vector<8x1xf32> to vector<8x512xf32>
    %66 = arith.mulf %65, %63 : vector<8x512xf32>
    %67 = vector.extract_strided_slice %0 {offsets = [5, 0], sizes = [1, 512], strides = [1, 1]} : vector<9x512xf32> to vector<1x512xf32>
    %68 = vector.broadcast %67 : vector<1x512xf32> to vector<8x512xf32>
    %69 = arith.mulf %66, %68 : vector<8x512xf32>
    %70 = arith.addf %62, %69 : vector<8x512xf32>
    %c497_i32 = arith.constant 497 : i32
    %71 = tpu.dynamic_rotate %3 by %c497_i32 dim 1 : vector<8x512xf32>, i32 -> vector<8x512xf32>
    %72 = vector.extract_strided_slice %8 {offsets = [0, 6], sizes = [8, 1], strides = [1, 1]} : vector<8x9xf32> to vector<8x1xf32>
    %73 = vector.broadcast %72 : vector<8x1xf32> to vector<8x512xf32>
    %74 = arith.mulf %73, %71 : vector<8x512xf32>
    %75 = vector.extract_strided_slice %0 {offsets = [6, 0], sizes = [1, 512], strides = [1, 1]} : vector<9x512xf32> to vector<1x512xf32>
    %76 = vector.broadcast %75 : vector<1x512xf32> to vector<8x512xf32>
    %77 = arith.mulf %74, %76 : vector<8x512xf32>
    %78 = arith.addf %70, %77 : vector<8x512xf32>
    %c496_i32 = arith.constant 496 : i32
    %79 = tpu.dynamic_rotate %3 by %c496_i32 dim 1 : vector<8x512xf32>, i32 -> vector<8x512xf32>
    %80 = vector.extract_strided_slice %8 {offsets = [0, 7], sizes = [8, 1], strides = [1, 1]} : vector<8x9xf32> to vector<8x1xf32>
    %81 = vector.broadcast %80 : vector<8x1xf32> to vector<8x512xf32>
    %82 = arith.mulf %81, %79 : vector<8x512xf32>
    %83 = vector.extract_strided_slice %0 {offsets = [7, 0], sizes = [1, 512], strides = [1, 1]} : vector<9x512xf32> to vector<1x512xf32>
    %84 = vector.broadcast %83 : vector<1x512xf32> to vector<8x512xf32>
    %85 = arith.mulf %82, %84 : vector<8x512xf32>
    %86 = arith.addf %78, %85 : vector<8x512xf32>
    %c495_i32 = arith.constant 495 : i32
    %87 = tpu.dynamic_rotate %3 by %c495_i32 dim 1 : vector<8x512xf32>, i32 -> vector<8x512xf32>
    %88 = vector.extract_strided_slice %8 {offsets = [0, 8], sizes = [8, 1], strides = [1, 1]} : vector<8x9xf32> to vector<8x1xf32>
    %89 = vector.broadcast %88 : vector<8x1xf32> to vector<8x512xf32>
    %90 = arith.mulf %89, %87 : vector<8x512xf32>
    %91 = vector.extract_strided_slice %0 {offsets = [8, 0], sizes = [1, 512], strides = [1, 1]} : vector<9x512xf32> to vector<1x512xf32>
    %92 = vector.broadcast %91 : vector<1x512xf32> to vector<8x512xf32>
    %93 = arith.mulf %90, %92 : vector<8x512xf32>
    %94 = arith.addf %86, %93 : vector<8x512xf32>
    %cst_14 = arith.constant dense<0.000000e+00> : vector<8xf32>
    %95 = vector.multi_reduction <add>, %94, %cst_14 [1] : vector<8x512xf32> to vector<8xf32>
    %96 = vector.shape_cast %95 : vector<8xf32> to vector<8x1xf32>
    %cst_15 = arith.constant 5.120000e+02 : f32
    %97 = vector.broadcast %cst_15 : f32 to vector<8x1xf32>
    %98 = arith.divf %96, %97 : vector<8x1xf32>
    %99 = arith.mulf %94, %94 : vector<8x512xf32>
    %cst_16 = arith.constant dense<0.000000e+00> : vector<8xf32>
    %100 = vector.multi_reduction <add>, %99, %cst_16 [1] : vector<8x512xf32> to vector<8xf32>
    %101 = vector.shape_cast %100 : vector<8xf32> to vector<8x1xf32>
    %cst_17 = arith.constant 5.120000e+02 : f32
    %102 = vector.broadcast %cst_17 : f32 to vector<8x1xf32>
    %103 = arith.divf %101, %102 : vector<8x1xf32>
    %104 = arith.mulf %98, %98 : vector<8x1xf32>
    %105 = arith.subf %103, %104 : vector<8x1xf32>
    %cst_18 = arith.constant 0.000000e+00 : f32
    %106 = vector.broadcast %cst_18 : f32 to vector<8x1xf32>
    %107 = arith.maximumf %105, %106 : vector<8x1xf32>
    %cst_19 = arith.constant 9.99999974E-6 : f32
    %108 = vector.broadcast %cst_19 : f32 to vector<8x1xf32>
    %109 = arith.addf %107, %108 : vector<8x1xf32>
    %110 = math.rsqrt %109 : vector<8x1xf32>
    %111 = arith.mulf %10, %110 : vector<8x1xf32>
    %112 = vector.broadcast %111 : vector<8x1xf32> to vector<8x512xf32>
    %113 = arith.mulf %94, %112 : vector<8x512xf32>
    %114 = arith.mulf %98, %111 : vector<8x1xf32>
    %115 = arith.subf %11, %114 : vector<8x1xf32>
    %116 = vector.broadcast %115 : vector<8x1xf32> to vector<8x512xf32>
    %117 = arith.addf %113, %116 : vector<8x512xf32>
    %cst_20 = arith.constant dense<0.000000e+00> : vector<8x512xf32>
    %118 = tpu.matmul %17, %117, %cst_20 {dimension_numbers = #tpu.dot_dimension_numbers<[1], [0], [0], [1], [0, 0, 1, 1], [], []>} : vector<8x8xf32>, vector<8x512xf32>, vector<8x512xf32> -> vector<8x512xf32>
    %cst_21 = arith.constant dense<0.000000e+00> : vector<8xf32>
    %119 = vector.multi_reduction <add>, %118, %cst_21 [1] : vector<8x512xf32> to vector<8xf32>
    %120 = vector.shape_cast %119 : vector<8xf32> to vector<8x1xf32>
    %cst_22 = arith.constant 5.120000e+02 : f32
    %121 = vector.broadcast %cst_22 : f32 to vector<8x1xf32>
    %122 = arith.divf %120, %121 : vector<8x1xf32>
    %123 = arith.mulf %118, %118 : vector<8x512xf32>
    %cst_23 = arith.constant dense<0.000000e+00> : vector<8xf32>
    %124 = vector.multi_reduction <add>, %123, %cst_23 [1] : vector<8x512xf32> to vector<8xf32>
    %125 = vector.shape_cast %124 : vector<8xf32> to vector<8x1xf32>
    %cst_24 = arith.constant 5.120000e+02 : f32
    %126 = vector.broadcast %cst_24 : f32 to vector<8x1xf32>
    %127 = arith.divf %125, %126 : vector<8x1xf32>
    %128 = arith.mulf %122, %122 : vector<8x1xf32>
    %129 = arith.subf %127, %128 : vector<8x1xf32>
    %cst_25 = arith.constant 0.000000e+00 : f32
    %130 = vector.broadcast %cst_25 : f32 to vector<8x1xf32>
    %131 = arith.maximumf %129, %130 : vector<8x1xf32>
    %cst_26 = arith.constant 9.99999974E-6 : f32
    %132 = vector.broadcast %cst_26 : f32 to vector<8x1xf32>
    %133 = arith.addf %131, %132 : vector<8x1xf32>
    %134 = math.rsqrt %133 : vector<8x1xf32>
    %135 = arith.mulf %19, %134 : vector<8x1xf32>
    %136 = vector.broadcast %135 : vector<8x1xf32> to vector<8x512xf32>
    %137 = arith.mulf %118, %136 : vector<8x512xf32>
    %138 = arith.mulf %122, %135 : vector<8x1xf32>
    %139 = arith.subf %20, %138 : vector<8x1xf32>
    %140 = vector.broadcast %139 : vector<8x1xf32> to vector<8x512xf32>
    %141 = arith.addf %137, %140 : vector<8x512xf32>
    %cst_27 = arith.constant 0.000000e+00 : f32
    %142 = vector.broadcast %cst_27 : f32 to vector<8x512xf32>
    %143 = arith.subf %142, %141 : vector<8x512xf32>
    %144 = math.exp %143 : vector<8x512xf32>
    %cst_28 = arith.constant 1.000000e+00 : f32
    %145 = vector.broadcast %cst_28 : f32 to vector<8x512xf32>
    %146 = arith.addf %145, %144 : vector<8x512xf32>
    %147 = tpu.reciprocal %146 {approx = true} : vector<8x512xf32> -> vector<8x512xf32>
    %148 = arith.mulf %141, %147 : vector<8x512xf32>
    %cst_29 = arith.constant dense<0.000000e+00> : vector<8x512xf32>
    %149 = tpu.matmul %16, %4, %cst_29 {dimension_numbers = #tpu.dot_dimension_numbers<[1], [0], [0], [1], [0, 0, 1, 1], [], []>} : vector<8x8xf32>, vector<8x512xf32>, vector<8x512xf32> -> vector<8x512xf32>
    %cst_30 = arith.constant dense<0.000000e+00> : vector<8xf32>
    %150 = vector.multi_reduction <add>, %149, %cst_30 [1] : vector<8x512xf32> to vector<8xf32>
    %151 = vector.shape_cast %150 : vector<8xf32> to vector<8x1xf32>
    %cst_31 = arith.constant 5.120000e+02 : f32
    %152 = vector.broadcast %cst_31 : f32 to vector<8x1xf32>
    %153 = arith.divf %151, %152 : vector<8x1xf32>
    %154 = arith.mulf %149, %149 : vector<8x512xf32>
    %cst_32 = arith.constant dense<0.000000e+00> : vector<8xf32>
    %155 = vector.multi_reduction <add>, %154, %cst_32 [1] : vector<8x512xf32> to vector<8xf32>
    %156 = vector.shape_cast %155 : vector<8xf32> to vector<8x1xf32>
    %cst_33 = arith.constant 5.120000e+02 : f32
    %157 = vector.broadcast %cst_33 : f32 to vector<8x1xf32>
    %158 = arith.divf %156, %157 : vector<8x1xf32>
    %159 = arith.mulf %153, %153 : vector<8x1xf32>
    %160 = arith.subf %158, %159 : vector<8x1xf32>
    %cst_34 = arith.constant 0.000000e+00 : f32
    %161 = vector.broadcast %cst_34 : f32 to vector<8x1xf32>
    %162 = arith.maximumf %160, %161 : vector<8x1xf32>
    %cst_35 = arith.constant 9.99999974E-6 : f32
    %163 = vector.broadcast %cst_35 : f32 to vector<8x1xf32>
    %164 = arith.addf %162, %163 : vector<8x1xf32>
    %165 = math.rsqrt %164 : vector<8x1xf32>
    %166 = arith.mulf %12, %165 : vector<8x1xf32>
    %167 = vector.broadcast %166 : vector<8x1xf32> to vector<8x512xf32>
    %168 = arith.mulf %149, %167 : vector<8x512xf32>
    %169 = arith.mulf %153, %166 : vector<8x1xf32>
    %170 = arith.subf %13, %169 : vector<8x1xf32>
    %171 = vector.broadcast %170 : vector<8x1xf32> to vector<8x512xf32>
    %172 = arith.addf %168, %171 : vector<8x512xf32>
    %cst_36 = arith.constant 0.000000e+00 : f32
    %173 = vector.broadcast %cst_36 : f32 to vector<8x512xf32>
    %174 = arith.subf %173, %172 : vector<8x512xf32>
    %175 = math.exp %174 : vector<8x512xf32>
    %cst_37 = arith.constant 1.000000e+00 : f32
    %176 = vector.broadcast %cst_37 : f32 to vector<8x512xf32>
    %177 = arith.addf %176, %175 : vector<8x512xf32>
    %178 = tpu.reciprocal %177 {approx = true} : vector<8x512xf32> -> vector<8x512xf32>
    %179 = arith.mulf %172, %178 : vector<8x512xf32>
    %cst_38 = arith.constant 0.000000e+00 : f32
    %180 = vector.broadcast %cst_38 : f32 to vector<8x512xf32>
    %c17_i32_39 = arith.constant 17 : i32
    %181 = tpu.dynamic_rotate %179 by %c17_i32_39 dim 1 : vector<8x512xf32>, i32 -> vector<8x512xf32>
    %182 = vector.extract_strided_slice %9 {offsets = [0, 0], sizes = [8, 1], strides = [1, 1]} : vector<8x9xf32> to vector<8x1xf32>
    %183 = vector.broadcast %182 : vector<8x1xf32> to vector<8x512xf32>
    %184 = arith.mulf %183, %181 : vector<8x512xf32>
    %185 = vector.extract_strided_slice %0 {offsets = [0, 0], sizes = [1, 512], strides = [1, 1]} : vector<9x512xf32> to vector<1x512xf32>
    %186 = vector.broadcast %185 : vector<1x512xf32> to vector<8x512xf32>
    %187 = arith.mulf %184, %186 : vector<8x512xf32>
    %188 = arith.addf %180, %187 : vector<8x512xf32>
    %c16_i32_40 = arith.constant 16 : i32
    %189 = tpu.dynamic_rotate %179 by %c16_i32_40 dim 1 : vector<8x512xf32>, i32 -> vector<8x512xf32>
    %190 = vector.extract_strided_slice %9 {offsets = [0, 1], sizes = [8, 1], strides = [1, 1]} : vector<8x9xf32> to vector<8x1xf32>
    %191 = vector.broadcast %190 : vector<8x1xf32> to vector<8x512xf32>
    %192 = arith.mulf %191, %189 : vector<8x512xf32>
    %193 = vector.extract_strided_slice %0 {offsets = [1, 0], sizes = [1, 512], strides = [1, 1]} : vector<9x512xf32> to vector<1x512xf32>
    %194 = vector.broadcast %193 : vector<1x512xf32> to vector<8x512xf32>
    %195 = arith.mulf %192, %194 : vector<8x512xf32>
    %196 = arith.addf %188, %195 : vector<8x512xf32>
    %c15_i32_41 = arith.constant 15 : i32
    %197 = tpu.dynamic_rotate %179 by %c15_i32_41 dim 1 : vector<8x512xf32>, i32 -> vector<8x512xf32>
    %198 = vector.extract_strided_slice %9 {offsets = [0, 2], sizes = [8, 1], strides = [1, 1]} : vector<8x9xf32> to vector<8x1xf32>
    %199 = vector.broadcast %198 : vector<8x1xf32> to vector<8x512xf32>
    %200 = arith.mulf %199, %197 : vector<8x512xf32>
    %201 = vector.extract_strided_slice %0 {offsets = [2, 0], sizes = [1, 512], strides = [1, 1]} : vector<9x512xf32> to vector<1x512xf32>
    %202 = vector.broadcast %201 : vector<1x512xf32> to vector<8x512xf32>
    %203 = arith.mulf %200, %202 : vector<8x512xf32>
    %204 = arith.addf %196, %203 : vector<8x512xf32>
    %c1_i32_42 = arith.constant 1 : i32
    %205 = tpu.dynamic_rotate %179 by %c1_i32_42 dim 1 : vector<8x512xf32>, i32 -> vector<8x512xf32>
    %206 = vector.extract_strided_slice %9 {offsets = [0, 3], sizes = [8, 1], strides = [1, 1]} : vector<8x9xf32> to vector<8x1xf32>
    %207 = vector.broadcast %206 : vector<8x1xf32> to vector<8x512xf32>
    %208 = arith.mulf %207, %205 : vector<8x512xf32>
    %209 = vector.extract_strided_slice %0 {offsets = [3, 0], sizes = [1, 512], strides = [1, 1]} : vector<9x512xf32> to vector<1x512xf32>
    %210 = vector.broadcast %209 : vector<1x512xf32> to vector<8x512xf32>
    %211 = arith.mulf %208, %210 : vector<8x512xf32>
    %212 = arith.addf %204, %211 : vector<8x512xf32>
    %213 = vector.extract_strided_slice %9 {offsets = [0, 4], sizes = [8, 1], strides = [1, 1]} : vector<8x9xf32> to vector<8x1xf32>
    %214 = vector.broadcast %213 : vector<8x1xf32> to vector<8x512xf32>
    %215 = arith.mulf %214, %179 : vector<8x512xf32>
    %216 = vector.extract_strided_slice %0 {offsets = [4, 0], sizes = [1, 512], strides = [1, 1]} : vector<9x512xf32> to vector<1x512xf32>
    %217 = vector.broadcast %216 : vector<1x512xf32> to vector<8x512xf32>
    %218 = arith.mulf %215, %217 : vector<8x512xf32>
    %219 = arith.addf %212, %218 : vector<8x512xf32>
    %c511_i32_43 = arith.constant 511 : i32
    %220 = tpu.dynamic_rotate %179 by %c511_i32_43 dim 1 : vector<8x512xf32>, i32 -> vector<8x512xf32>
    %221 = vector.extract_strided_slice %9 {offsets = [0, 5], sizes = [8, 1], strides = [1, 1]} : vector<8x9xf32> to vector<8x1xf32>
    %222 = vector.broadcast %221 : vector<8x1xf32> to vector<8x512xf32>
    %223 = arith.mulf %222, %220 : vector<8x512xf32>
    %224 = vector.extract_strided_slice %0 {offsets = [5, 0], sizes = [1, 512], strides = [1, 1]} : vector<9x512xf32> to vector<1x512xf32>
    %225 = vector.broadcast %224 : vector<1x512xf32> to vector<8x512xf32>
    %226 = arith.mulf %223, %225 : vector<8x512xf32>
    %227 = arith.addf %219, %226 : vector<8x512xf32>
    %c497_i32_44 = arith.constant 497 : i32
    %228 = tpu.dynamic_rotate %179 by %c497_i32_44 dim 1 : vector<8x512xf32>, i32 -> vector<8x512xf32>
    %229 = vector.extract_strided_slice %9 {offsets = [0, 6], sizes = [8, 1], strides = [1, 1]} : vector<8x9xf32> to vector<8x1xf32>
    %230 = vector.broadcast %229 : vector<8x1xf32> to vector<8x512xf32>
    %231 = arith.mulf %230, %228 : vector<8x512xf32>
    %232 = vector.extract_strided_slice %0 {offsets = [6, 0], sizes = [1, 512], strides = [1, 1]} : vector<9x512xf32> to vector<1x512xf32>
    %233 = vector.broadcast %232 : vector<1x512xf32> to vector<8x512xf32>
    %234 = arith.mulf %231, %233 : vector<8x512xf32>
    %235 = arith.addf %227, %234 : vector<8x512xf32>
    %c496_i32_45 = arith.constant 496 : i32
    %236 = tpu.dynamic_rotate %179 by %c496_i32_45 dim 1 : vector<8x512xf32>, i32 -> vector<8x512xf32>
    %237 = vector.extract_strided_slice %9 {offsets = [0, 7], sizes = [8, 1], strides = [1, 1]} : vector<8x9xf32> to vector<8x1xf32>
    %238 = vector.broadcast %237 : vector<8x1xf32> to vector<8x512xf32>
    %239 = arith.mulf %238, %236 : vector<8x512xf32>
    %240 = vector.extract_strided_slice %0 {offsets = [7, 0], sizes = [1, 512], strides = [1, 1]} : vector<9x512xf32> to vector<1x512xf32>
    %241 = vector.broadcast %240 : vector<1x512xf32> to vector<8x512xf32>
    %242 = arith.mulf %239, %241 : vector<8x512xf32>
    %243 = arith.addf %235, %242 : vector<8x512xf32>
    %c495_i32_46 = arith.constant 495 : i32
    %244 = tpu.dynamic_rotate %179 by %c495_i32_46 dim 1 : vector<8x512xf32>, i32 -> vector<8x512xf32>
    %245 = vector.extract_strided_slice %9 {offsets = [0, 8], sizes = [8, 1], strides = [1, 1]} : vector<8x9xf32> to vector<8x1xf32>
    %246 = vector.broadcast %245 : vector<8x1xf32> to vector<8x512xf32>
    %247 = arith.mulf %246, %244 : vector<8x512xf32>
    %248 = vector.extract_strided_slice %0 {offsets = [8, 0], sizes = [1, 512], strides = [1, 1]} : vector<9x512xf32> to vector<1x512xf32>
    %249 = vector.broadcast %248 : vector<1x512xf32> to vector<8x512xf32>
    %250 = arith.mulf %247, %249 : vector<8x512xf32>
    %251 = arith.addf %243, %250 : vector<8x512xf32>
    %cst_47 = arith.constant dense<0.000000e+00> : vector<8xf32>
    %252 = vector.multi_reduction <add>, %251, %cst_47 [1] : vector<8x512xf32> to vector<8xf32>
    %253 = vector.shape_cast %252 : vector<8xf32> to vector<8x1xf32>
    %cst_48 = arith.constant 5.120000e+02 : f32
    %254 = vector.broadcast %cst_48 : f32 to vector<8x1xf32>
    %255 = arith.divf %253, %254 : vector<8x1xf32>
    %256 = arith.mulf %251, %251 : vector<8x512xf32>
    %cst_49 = arith.constant dense<0.000000e+00> : vector<8xf32>
    %257 = vector.multi_reduction <add>, %256, %cst_49 [1] : vector<8x512xf32> to vector<8xf32>
    %258 = vector.shape_cast %257 : vector<8xf32> to vector<8x1xf32>
    %cst_50 = arith.constant 5.120000e+02 : f32
    %259 = vector.broadcast %cst_50 : f32 to vector<8x1xf32>
    %260 = arith.divf %258, %259 : vector<8x1xf32>
    %261 = arith.mulf %255, %255 : vector<8x1xf32>
    %262 = arith.subf %260, %261 : vector<8x1xf32>
    %cst_51 = arith.constant 0.000000e+00 : f32
    %263 = vector.broadcast %cst_51 : f32 to vector<8x1xf32>
    %264 = arith.maximumf %262, %263 : vector<8x1xf32>
    %cst_52 = arith.constant 9.99999974E-6 : f32
    %265 = vector.broadcast %cst_52 : f32 to vector<8x1xf32>
    %266 = arith.addf %264, %265 : vector<8x1xf32>
    %267 = math.rsqrt %266 : vector<8x1xf32>
    %268 = arith.mulf %14, %267 : vector<8x1xf32>
    %269 = vector.broadcast %268 : vector<8x1xf32> to vector<8x512xf32>
    %270 = arith.mulf %251, %269 : vector<8x512xf32>
    %271 = arith.mulf %255, %268 : vector<8x1xf32>
    %272 = arith.subf %15, %271 : vector<8x1xf32>
    %273 = vector.broadcast %272 : vector<8x1xf32> to vector<8x512xf32>
    %274 = arith.addf %270, %273 : vector<8x512xf32>
    %cst_53 = arith.constant dense<0.000000e+00> : vector<8x512xf32>
    %275 = tpu.matmul %18, %274, %cst_53 {dimension_numbers = #tpu.dot_dimension_numbers<[1], [0], [0], [1], [0, 0, 1, 1], [], []>} : vector<8x8xf32>, vector<8x512xf32>, vector<8x512xf32> -> vector<8x512xf32>
    %cst_54 = arith.constant dense<0.000000e+00> : vector<8xf32>
    %276 = vector.multi_reduction <add>, %275, %cst_54 [1] : vector<8x512xf32> to vector<8xf32>
    %277 = vector.shape_cast %276 : vector<8xf32> to vector<8x1xf32>
    %cst_55 = arith.constant 5.120000e+02 : f32
    %278 = vector.broadcast %cst_55 : f32 to vector<8x1xf32>
    %279 = arith.divf %277, %278 : vector<8x1xf32>
    %280 = arith.mulf %275, %275 : vector<8x512xf32>
    %cst_56 = arith.constant dense<0.000000e+00> : vector<8xf32>
    %281 = vector.multi_reduction <add>, %280, %cst_56 [1] : vector<8x512xf32> to vector<8xf32>
    %282 = vector.shape_cast %281 : vector<8xf32> to vector<8x1xf32>
    %cst_57 = arith.constant 5.120000e+02 : f32
    %283 = vector.broadcast %cst_57 : f32 to vector<8x1xf32>
    %284 = arith.divf %282, %283 : vector<8x1xf32>
    %285 = arith.mulf %279, %279 : vector<8x1xf32>
    %286 = arith.subf %284, %285 : vector<8x1xf32>
    %cst_58 = arith.constant 0.000000e+00 : f32
    %287 = vector.broadcast %cst_58 : f32 to vector<8x1xf32>
    %288 = arith.maximumf %286, %287 : vector<8x1xf32>
    %cst_59 = arith.constant 9.99999974E-6 : f32
    %289 = vector.broadcast %cst_59 : f32 to vector<8x1xf32>
    %290 = arith.addf %288, %289 : vector<8x1xf32>
    %291 = math.rsqrt %290 : vector<8x1xf32>
    %292 = arith.mulf %21, %291 : vector<8x1xf32>
    %293 = vector.broadcast %292 : vector<8x1xf32> to vector<8x512xf32>
    %294 = arith.mulf %275, %293 : vector<8x512xf32>
    %295 = arith.mulf %279, %292 : vector<8x1xf32>
    %296 = arith.subf %22, %295 : vector<8x1xf32>
    %297 = vector.broadcast %296 : vector<8x1xf32> to vector<8x512xf32>
    %298 = arith.addf %294, %297 : vector<8x512xf32>
    %cst_60 = arith.constant 0.000000e+00 : f32
    %299 = vector.broadcast %cst_60 : f32 to vector<8x512xf32>
    %300 = arith.subf %299, %298 : vector<8x512xf32>
    %301 = math.exp %300 : vector<8x512xf32>
    %cst_61 = arith.constant 1.000000e+00 : f32
    %302 = vector.broadcast %cst_61 : f32 to vector<8x512xf32>
    %303 = arith.addf %302, %301 : vector<8x512xf32>
    %304 = tpu.reciprocal %303 {approx = true} : vector<8x512xf32> -> vector<8x512xf32>
    %305 = arith.mulf %298, %304 : vector<8x512xf32>
    %306 = vector.extract_strided_slice %148 {offsets = [0, 0], sizes = [4, 512], strides = [1, 1]} : vector<8x512xf32> to vector<4x512xf32>
    %307 = vector.extract_strided_slice %305 {offsets = [0, 0], sizes = [4, 512], strides = [1, 1]} : vector<8x512xf32> to vector<4x512xf32>
    %308 = tpu.concatenate %306, %307 in 0 : vector<4x512xf32>, vector<4x512xf32> -> vector<8x512xf32>
    %309 = vector.extract_strided_slice %148 {offsets = [4, 0], sizes = [4, 512], strides = [1, 1]} : vector<8x512xf32> to vector<4x512xf32>
    %310 = vector.extract_strided_slice %305 {offsets = [4, 0], sizes = [4, 512], strides = [1, 1]} : vector<8x512xf32> to vector<4x512xf32>
    %311 = tpu.concatenate %309, %310 in 0 : vector<4x512xf32>, vector<4x512xf32> -> vector<8x512xf32>
    %c0_62 = arith.constant 0 : index
    %c0_63 = arith.constant 0 : index
    %312 = vector.load %arg12[%c0_62, %c0_63] : memref<8x24xf32, #tpu.memory_space<vmem>>, vector<8x24xf32>
    %c0_64 = arith.constant 0 : index
    %c0_65 = arith.constant 0 : index
    %313 = vector.load %arg13[%c0_64, %c0_65] : memref<24x8xf32, #tpu.memory_space<vmem>>, vector<24x8xf32>
    %c0_66 = arith.constant 0 : index
    %c0_67 = arith.constant 0 : index
    %314 = vector.load %arg14[%c0_66, %c0_67] : memref<8x4xf32, #tpu.memory_space<vmem>>, vector<8x4xf32>
    %315 = vector.extract_strided_slice %312 {offsets = [0, 0], sizes = [8, 9], strides = [1, 1]} : vector<8x24xf32> to vector<8x9xf32>
    %316 = vector.extract_strided_slice %312 {offsets = [0, 9], sizes = [8, 9], strides = [1, 1]} : vector<8x24xf32> to vector<8x9xf32>
    %317 = vector.extract_strided_slice %312 {offsets = [0, 18], sizes = [8, 1], strides = [1, 1]} : vector<8x24xf32> to vector<8x1xf32>
    %318 = vector.extract_strided_slice %312 {offsets = [0, 19], sizes = [8, 1], strides = [1, 1]} : vector<8x24xf32> to vector<8x1xf32>
    %319 = vector.extract_strided_slice %312 {offsets = [0, 20], sizes = [8, 1], strides = [1, 1]} : vector<8x24xf32> to vector<8x1xf32>
    %320 = vector.extract_strided_slice %312 {offsets = [0, 21], sizes = [8, 1], strides = [1, 1]} : vector<8x24xf32> to vector<8x1xf32>
    %321 = vector.extract_strided_slice %312 {offsets = [0, 22], sizes = [8, 1], strides = [1, 1]} : vector<8x24xf32> to vector<8x1xf32>
    %322 = vector.extract_strided_slice %312 {offsets = [0, 23], sizes = [8, 1], strides = [1, 1]} : vector<8x24xf32> to vector<8x1xf32>
    %323 = vector.extract_strided_slice %313 {offsets = [0, 0], sizes = [8, 8], strides = [1, 1]} : vector<24x8xf32> to vector<8x8xf32>
    %324 = vector.extract_strided_slice %313 {offsets = [8, 0], sizes = [8, 8], strides = [1, 1]} : vector<24x8xf32> to vector<8x8xf32>
    %325 = vector.extract_strided_slice %313 {offsets = [16, 0], sizes = [8, 8], strides = [1, 1]} : vector<24x8xf32> to vector<8x8xf32>
    %326 = vector.extract_strided_slice %314 {offsets = [0, 0], sizes = [8, 1], strides = [1, 1]} : vector<8x4xf32> to vector<8x1xf32>
    %327 = vector.extract_strided_slice %314 {offsets = [0, 1], sizes = [8, 1], strides = [1, 1]} : vector<8x4xf32> to vector<8x1xf32>
    %328 = vector.extract_strided_slice %314 {offsets = [0, 2], sizes = [8, 1], strides = [1, 1]} : vector<8x4xf32> to vector<8x1xf32>
    %329 = vector.extract_strided_slice %314 {offsets = [0, 3], sizes = [8, 1], strides = [1, 1]} : vector<8x4xf32> to vector<8x1xf32>
    %cst_68 = arith.constant 0.000000e+00 : f32
    %330 = vector.broadcast %cst_68 : f32 to vector<8x512xf32>
    %c17_i32_69 = arith.constant 17 : i32
    %331 = tpu.dynamic_rotate %308 by %c17_i32_69 dim 1 : vector<8x512xf32>, i32 -> vector<8x512xf32>
    %332 = vector.extract_strided_slice %315 {offsets = [0, 0], sizes = [8, 1], strides = [1, 1]} : vector<8x9xf32> to vector<8x1xf32>
    %333 = vector.broadcast %332 : vector<8x1xf32> to vector<8x512xf32>
    %334 = arith.mulf %333, %331 : vector<8x512xf32>
    %335 = vector.extract_strided_slice %0 {offsets = [0, 0], sizes = [1, 512], strides = [1, 1]} : vector<9x512xf32> to vector<1x512xf32>
    %336 = vector.broadcast %335 : vector<1x512xf32> to vector<8x512xf32>
    %337 = arith.mulf %334, %336 : vector<8x512xf32>
    %338 = arith.addf %330, %337 : vector<8x512xf32>
    %c16_i32_70 = arith.constant 16 : i32
    %339 = tpu.dynamic_rotate %308 by %c16_i32_70 dim 1 : vector<8x512xf32>, i32 -> vector<8x512xf32>
    %340 = vector.extract_strided_slice %315 {offsets = [0, 1], sizes = [8, 1], strides = [1, 1]} : vector<8x9xf32> to vector<8x1xf32>
    %341 = vector.broadcast %340 : vector<8x1xf32> to vector<8x512xf32>
    %342 = arith.mulf %341, %339 : vector<8x512xf32>
    %343 = vector.extract_strided_slice %0 {offsets = [1, 0], sizes = [1, 512], strides = [1, 1]} : vector<9x512xf32> to vector<1x512xf32>
    %344 = vector.broadcast %343 : vector<1x512xf32> to vector<8x512xf32>
    %345 = arith.mulf %342, %344 : vector<8x512xf32>
    %346 = arith.addf %338, %345 : vector<8x512xf32>
    %c15_i32_71 = arith.constant 15 : i32
    %347 = tpu.dynamic_rotate %308 by %c15_i32_71 dim 1 : vector<8x512xf32>, i32 -> vector<8x512xf32>
    %348 = vector.extract_strided_slice %315 {offsets = [0, 2], sizes = [8, 1], strides = [1, 1]} : vector<8x9xf32> to vector<8x1xf32>
    %349 = vector.broadcast %348 : vector<8x1xf32> to vector<8x512xf32>
    %350 = arith.mulf %349, %347 : vector<8x512xf32>
    %351 = vector.extract_strided_slice %0 {offsets = [2, 0], sizes = [1, 512], strides = [1, 1]} : vector<9x512xf32> to vector<1x512xf32>
    %352 = vector.broadcast %351 : vector<1x512xf32> to vector<8x512xf32>
    %353 = arith.mulf %350, %352 : vector<8x512xf32>
    %354 = arith.addf %346, %353 : vector<8x512xf32>
    %c1_i32_72 = arith.constant 1 : i32
    %355 = tpu.dynamic_rotate %308 by %c1_i32_72 dim 1 : vector<8x512xf32>, i32 -> vector<8x512xf32>
    %356 = vector.extract_strided_slice %315 {offsets = [0, 3], sizes = [8, 1], strides = [1, 1]} : vector<8x9xf32> to vector<8x1xf32>
    %357 = vector.broadcast %356 : vector<8x1xf32> to vector<8x512xf32>
    %358 = arith.mulf %357, %355 : vector<8x512xf32>
    %359 = vector.extract_strided_slice %0 {offsets = [3, 0], sizes = [1, 512], strides = [1, 1]} : vector<9x512xf32> to vector<1x512xf32>
    %360 = vector.broadcast %359 : vector<1x512xf32> to vector<8x512xf32>
    %361 = arith.mulf %358, %360 : vector<8x512xf32>
    %362 = arith.addf %354, %361 : vector<8x512xf32>
    %363 = vector.extract_strided_slice %315 {offsets = [0, 4], sizes = [8, 1], strides = [1, 1]} : vector<8x9xf32> to vector<8x1xf32>
    %364 = vector.broadcast %363 : vector<8x1xf32> to vector<8x512xf32>
    %365 = arith.mulf %364, %308 : vector<8x512xf32>
    %366 = vector.extract_strided_slice %0 {offsets = [4, 0], sizes = [1, 512], strides = [1, 1]} : vector<9x512xf32> to vector<1x512xf32>
    %367 = vector.broadcast %366 : vector<1x512xf32> to vector<8x512xf32>
    %368 = arith.mulf %365, %367 : vector<8x512xf32>
    %369 = arith.addf %362, %368 : vector<8x512xf32>
    %c511_i32_73 = arith.constant 511 : i32
    %370 = tpu.dynamic_rotate %308 by %c511_i32_73 dim 1 : vector<8x512xf32>, i32 -> vector<8x512xf32>
    %371 = vector.extract_strided_slice %315 {offsets = [0, 5], sizes = [8, 1], strides = [1, 1]} : vector<8x9xf32> to vector<8x1xf32>
    %372 = vector.broadcast %371 : vector<8x1xf32> to vector<8x512xf32>
    %373 = arith.mulf %372, %370 : vector<8x512xf32>
    %374 = vector.extract_strided_slice %0 {offsets = [5, 0], sizes = [1, 512], strides = [1, 1]} : vector<9x512xf32> to vector<1x512xf32>
    %375 = vector.broadcast %374 : vector<1x512xf32> to vector<8x512xf32>
    %376 = arith.mulf %373, %375 : vector<8x512xf32>
    %377 = arith.addf %369, %376 : vector<8x512xf32>
    %c497_i32_74 = arith.constant 497 : i32
    %378 = tpu.dynamic_rotate %308 by %c497_i32_74 dim 1 : vector<8x512xf32>, i32 -> vector<8x512xf32>
    %379 = vector.extract_strided_slice %315 {offsets = [0, 6], sizes = [8, 1], strides = [1, 1]} : vector<8x9xf32> to vector<8x1xf32>
    %380 = vector.broadcast %379 : vector<8x1xf32> to vector<8x512xf32>
    %381 = arith.mulf %380, %378 : vector<8x512xf32>
    %382 = vector.extract_strided_slice %0 {offsets = [6, 0], sizes = [1, 512], strides = [1, 1]} : vector<9x512xf32> to vector<1x512xf32>
    %383 = vector.broadcast %382 : vector<1x512xf32> to vector<8x512xf32>
    %384 = arith.mulf %381, %383 : vector<8x512xf32>
    %385 = arith.addf %377, %384 : vector<8x512xf32>
    %c496_i32_75 = arith.constant 496 : i32
    %386 = tpu.dynamic_rotate %308 by %c496_i32_75 dim 1 : vector<8x512xf32>, i32 -> vector<8x512xf32>
    %387 = vector.extract_strided_slice %315 {offsets = [0, 7], sizes = [8, 1], strides = [1, 1]} : vector<8x9xf32> to vector<8x1xf32>
    %388 = vector.broadcast %387 : vector<8x1xf32> to vector<8x512xf32>
    %389 = arith.mulf %388, %386 : vector<8x512xf32>
    %390 = vector.extract_strided_slice %0 {offsets = [7, 0], sizes = [1, 512], strides = [1, 1]} : vector<9x512xf32> to vector<1x512xf32>
    %391 = vector.broadcast %390 : vector<1x512xf32> to vector<8x512xf32>
    %392 = arith.mulf %389, %391 : vector<8x512xf32>
    %393 = arith.addf %385, %392 : vector<8x512xf32>
    %c495_i32_76 = arith.constant 495 : i32
    %394 = tpu.dynamic_rotate %308 by %c495_i32_76 dim 1 : vector<8x512xf32>, i32 -> vector<8x512xf32>
    %395 = vector.extract_strided_slice %315 {offsets = [0, 8], sizes = [8, 1], strides = [1, 1]} : vector<8x9xf32> to vector<8x1xf32>
    %396 = vector.broadcast %395 : vector<8x1xf32> to vector<8x512xf32>
    %397 = arith.mulf %396, %394 : vector<8x512xf32>
    %398 = vector.extract_strided_slice %0 {offsets = [8, 0], sizes = [1, 512], strides = [1, 1]} : vector<9x512xf32> to vector<1x512xf32>
    %399 = vector.broadcast %398 : vector<1x512xf32> to vector<8x512xf32>
    %400 = arith.mulf %397, %399 : vector<8x512xf32>
    %401 = arith.addf %393, %400 : vector<8x512xf32>
    %cst_77 = arith.constant dense<0.000000e+00> : vector<8xf32>
    %402 = vector.multi_reduction <add>, %401, %cst_77 [1] : vector<8x512xf32> to vector<8xf32>
    %403 = vector.shape_cast %402 : vector<8xf32> to vector<8x1xf32>
    %cst_78 = arith.constant 5.120000e+02 : f32
    %404 = vector.broadcast %cst_78 : f32 to vector<8x1xf32>
    %405 = arith.divf %403, %404 : vector<8x1xf32>
    %406 = arith.mulf %401, %401 : vector<8x512xf32>
    %cst_79 = arith.constant dense<0.000000e+00> : vector<8xf32>
    %407 = vector.multi_reduction <add>, %406, %cst_79 [1] : vector<8x512xf32> to vector<8xf32>
    %408 = vector.shape_cast %407 : vector<8xf32> to vector<8x1xf32>
    %cst_80 = arith.constant 5.120000e+02 : f32
    %409 = vector.broadcast %cst_80 : f32 to vector<8x1xf32>
    %410 = arith.divf %408, %409 : vector<8x1xf32>
    %411 = arith.mulf %405, %405 : vector<8x1xf32>
    %412 = arith.subf %410, %411 : vector<8x1xf32>
    %cst_81 = arith.constant 0.000000e+00 : f32
    %413 = vector.broadcast %cst_81 : f32 to vector<8x1xf32>
    %414 = arith.maximumf %412, %413 : vector<8x1xf32>
    %cst_82 = arith.constant 9.99999974E-6 : f32
    %415 = vector.broadcast %cst_82 : f32 to vector<8x1xf32>
    %416 = arith.addf %414, %415 : vector<8x1xf32>
    %417 = math.rsqrt %416 : vector<8x1xf32>
    %418 = arith.mulf %317, %417 : vector<8x1xf32>
    %419 = vector.broadcast %418 : vector<8x1xf32> to vector<8x512xf32>
    %420 = arith.mulf %401, %419 : vector<8x512xf32>
    %421 = arith.mulf %405, %418 : vector<8x1xf32>
    %422 = arith.subf %318, %421 : vector<8x1xf32>
    %423 = vector.broadcast %422 : vector<8x1xf32> to vector<8x512xf32>
    %424 = arith.addf %420, %423 : vector<8x512xf32>
    %cst_83 = arith.constant dense<0.000000e+00> : vector<8x512xf32>
    %425 = tpu.matmul %324, %424, %cst_83 {dimension_numbers = #tpu.dot_dimension_numbers<[1], [0], [0], [1], [0, 0, 1, 1], [], []>} : vector<8x8xf32>, vector<8x512xf32>, vector<8x512xf32> -> vector<8x512xf32>
    %cst_84 = arith.constant dense<0.000000e+00> : vector<8xf32>
    %426 = vector.multi_reduction <add>, %425, %cst_84 [1] : vector<8x512xf32> to vector<8xf32>
    %427 = vector.shape_cast %426 : vector<8xf32> to vector<8x1xf32>
    %cst_85 = arith.constant 5.120000e+02 : f32
    %428 = vector.broadcast %cst_85 : f32 to vector<8x1xf32>
    %429 = arith.divf %427, %428 : vector<8x1xf32>
    %430 = arith.mulf %425, %425 : vector<8x512xf32>
    %cst_86 = arith.constant dense<0.000000e+00> : vector<8xf32>
    %431 = vector.multi_reduction <add>, %430, %cst_86 [1] : vector<8x512xf32> to vector<8xf32>
    %432 = vector.shape_cast %431 : vector<8xf32> to vector<8x1xf32>
    %cst_87 = arith.constant 5.120000e+02 : f32
    %433 = vector.broadcast %cst_87 : f32 to vector<8x1xf32>
    %434 = arith.divf %432, %433 : vector<8x1xf32>
    %435 = arith.mulf %429, %429 : vector<8x1xf32>
    %436 = arith.subf %434, %435 : vector<8x1xf32>
    %cst_88 = arith.constant 0.000000e+00 : f32
    %437 = vector.broadcast %cst_88 : f32 to vector<8x1xf32>
    %438 = arith.maximumf %436, %437 : vector<8x1xf32>
    %cst_89 = arith.constant 9.99999974E-6 : f32
    %439 = vector.broadcast %cst_89 : f32 to vector<8x1xf32>
    %440 = arith.addf %438, %439 : vector<8x1xf32>
    %441 = math.rsqrt %440 : vector<8x1xf32>
    %442 = arith.mulf %326, %441 : vector<8x1xf32>
    %443 = vector.broadcast %442 : vector<8x1xf32> to vector<8x512xf32>
    %444 = arith.mulf %425, %443 : vector<8x512xf32>
    %445 = arith.mulf %429, %442 : vector<8x1xf32>
    %446 = arith.subf %327, %445 : vector<8x1xf32>
    %447 = vector.broadcast %446 : vector<8x1xf32> to vector<8x512xf32>
    %448 = arith.addf %444, %447 : vector<8x512xf32>
    %cst_90 = arith.constant 0.000000e+00 : f32
    %449 = vector.broadcast %cst_90 : f32 to vector<8x512xf32>
    %450 = arith.subf %449, %448 : vector<8x512xf32>
    %451 = math.exp %450 : vector<8x512xf32>
    %cst_91 = arith.constant 1.000000e+00 : f32
    %452 = vector.broadcast %cst_91 : f32 to vector<8x512xf32>
    %453 = arith.addf %452, %451 : vector<8x512xf32>
    %454 = tpu.reciprocal %453 {approx = true} : vector<8x512xf32> -> vector<8x512xf32>
    %455 = arith.mulf %448, %454 : vector<8x512xf32>
    %cst_92 = arith.constant dense<0.000000e+00> : vector<8x512xf32>
    %456 = tpu.matmul %323, %311, %cst_92 {dimension_numbers = #tpu.dot_dimension_numbers<[1], [0], [0], [1], [0, 0, 1, 1], [], []>} : vector<8x8xf32>, vector<8x512xf32>, vector<8x512xf32> -> vector<8x512xf32>
    %cst_93 = arith.constant dense<0.000000e+00> : vector<8xf32>
    %457 = vector.multi_reduction <add>, %456, %cst_93 [1] : vector<8x512xf32> to vector<8xf32>
    %458 = vector.shape_cast %457 : vector<8xf32> to vector<8x1xf32>
    %cst_94 = arith.constant 5.120000e+02 : f32
    %459 = vector.broadcast %cst_94 : f32 to vector<8x1xf32>
    %460 = arith.divf %458, %459 : vector<8x1xf32>
    %461 = arith.mulf %456, %456 : vector<8x512xf32>
    %cst_95 = arith.constant dense<0.000000e+00> : vector<8xf32>
    %462 = vector.multi_reduction <add>, %461, %cst_95 [1] : vector<8x512xf32> to vector<8xf32>
    %463 = vector.shape_cast %462 : vector<8xf32> to vector<8x1xf32>
    %cst_96 = arith.constant 5.120000e+02 : f32
    %464 = vector.broadcast %cst_96 : f32 to vector<8x1xf32>
    %465 = arith.divf %463, %464 : vector<8x1xf32>
    %466 = arith.mulf %460, %460 : vector<8x1xf32>
    %467 = arith.subf %465, %466 : vector<8x1xf32>
    %cst_97 = arith.constant 0.000000e+00 : f32
    %468 = vector.broadcast %cst_97 : f32 to vector<8x1xf32>
    %469 = arith.maximumf %467, %468 : vector<8x1xf32>
    %cst_98 = arith.constant 9.99999974E-6 : f32
    %470 = vector.broadcast %cst_98 : f32 to vector<8x1xf32>
    %471 = arith.addf %469, %470 : vector<8x1xf32>
    %472 = math.rsqrt %471 : vector<8x1xf32>
    %473 = arith.mulf %319, %472 : vector<8x1xf32>
    %474 = vector.broadcast %473 : vector<8x1xf32> to vector<8x512xf32>
    %475 = arith.mulf %456, %474 : vector<8x512xf32>
    %476 = arith.mulf %460, %473 : vector<8x1xf32>
    %477 = arith.subf %320, %476 : vector<8x1xf32>
    %478 = vector.broadcast %477 : vector<8x1xf32> to vector<8x512xf32>
    %479 = arith.addf %475, %478 : vector<8x512xf32>
    %cst_99 = arith.constant 0.000000e+00 : f32
    %480 = vector.broadcast %cst_99 : f32 to vector<8x512xf32>
    %481 = arith.subf %480, %479 : vector<8x512xf32>
    %482 = math.exp %481 : vector<8x512xf32>
    %cst_100 = arith.constant 1.000000e+00 : f32
    %483 = vector.broadcast %cst_100 : f32 to vector<8x512xf32>
    %484 = arith.addf %483, %482 : vector<8x512xf32>
    %485 = tpu.reciprocal %484 {approx = true} : vector<8x512xf32> -> vector<8x512xf32>
    %486 = arith.mulf %479, %485 : vector<8x512xf32>
    %cst_101 = arith.constant 0.000000e+00 : f32
    %487 = vector.broadcast %cst_101 : f32 to vector<8x512xf32>
    %c17_i32_102 = arith.constant 17 : i32
    %488 = tpu.dynamic_rotate %486 by %c17_i32_102 dim 1 : vector<8x512xf32>, i32 -> vector<8x512xf32>
    %489 = vector.extract_strided_slice %316 {offsets = [0, 0], sizes = [8, 1], strides = [1, 1]} : vector<8x9xf32> to vector<8x1xf32>
    %490 = vector.broadcast %489 : vector<8x1xf32> to vector<8x512xf32>
    %491 = arith.mulf %490, %488 : vector<8x512xf32>
    %492 = vector.extract_strided_slice %0 {offsets = [0, 0], sizes = [1, 512], strides = [1, 1]} : vector<9x512xf32> to vector<1x512xf32>
    %493 = vector.broadcast %492 : vector<1x512xf32> to vector<8x512xf32>
    %494 = arith.mulf %491, %493 : vector<8x512xf32>
    %495 = arith.addf %487, %494 : vector<8x512xf32>
    %c16_i32_103 = arith.constant 16 : i32
    %496 = tpu.dynamic_rotate %486 by %c16_i32_103 dim 1 : vector<8x512xf32>, i32 -> vector<8x512xf32>
    %497 = vector.extract_strided_slice %316 {offsets = [0, 1], sizes = [8, 1], strides = [1, 1]} : vector<8x9xf32> to vector<8x1xf32>
    %498 = vector.broadcast %497 : vector<8x1xf32> to vector<8x512xf32>
    %499 = arith.mulf %498, %496 : vector<8x512xf32>
    %500 = vector.extract_strided_slice %0 {offsets = [1, 0], sizes = [1, 512], strides = [1, 1]} : vector<9x512xf32> to vector<1x512xf32>
    %501 = vector.broadcast %500 : vector<1x512xf32> to vector<8x512xf32>
    %502 = arith.mulf %499, %501 : vector<8x512xf32>
    %503 = arith.addf %495, %502 : vector<8x512xf32>
    %c15_i32_104 = arith.constant 15 : i32
    %504 = tpu.dynamic_rotate %486 by %c15_i32_104 dim 1 : vector<8x512xf32>, i32 -> vector<8x512xf32>
    %505 = vector.extract_strided_slice %316 {offsets = [0, 2], sizes = [8, 1], strides = [1, 1]} : vector<8x9xf32> to vector<8x1xf32>
    %506 = vector.broadcast %505 : vector<8x1xf32> to vector<8x512xf32>
    %507 = arith.mulf %506, %504 : vector<8x512xf32>
    %508 = vector.extract_strided_slice %0 {offsets = [2, 0], sizes = [1, 512], strides = [1, 1]} : vector<9x512xf32> to vector<1x512xf32>
    %509 = vector.broadcast %508 : vector<1x512xf32> to vector<8x512xf32>
    %510 = arith.mulf %507, %509 : vector<8x512xf32>
    %511 = arith.addf %503, %510 : vector<8x512xf32>
    %c1_i32_105 = arith.constant 1 : i32
    %512 = tpu.dynamic_rotate %486 by %c1_i32_105 dim 1 : vector<8x512xf32>, i32 -> vector<8x512xf32>
    %513 = vector.extract_strided_slice %316 {offsets = [0, 3], sizes = [8, 1], strides = [1, 1]} : vector<8x9xf32> to vector<8x1xf32>
    %514 = vector.broadcast %513 : vector<8x1xf32> to vector<8x512xf32>
    %515 = arith.mulf %514, %512 : vector<8x512xf32>
    %516 = vector.extract_strided_slice %0 {offsets = [3, 0], sizes = [1, 512], strides = [1, 1]} : vector<9x512xf32> to vector<1x512xf32>
    %517 = vector.broadcast %516 : vector<1x512xf32> to vector<8x512xf32>
    %518 = arith.mulf %515, %517 : vector<8x512xf32>
    %519 = arith.addf %511, %518 : vector<8x512xf32>
    %520 = vector.extract_strided_slice %316 {offsets = [0, 4], sizes = [8, 1], strides = [1, 1]} : vector<8x9xf32> to vector<8x1xf32>
    %521 = vector.broadcast %520 : vector<8x1xf32> to vector<8x512xf32>
    %522 = arith.mulf %521, %486 : vector<8x512xf32>
    %523 = vector.extract_strided_slice %0 {offsets = [4, 0], sizes = [1, 512], strides = [1, 1]} : vector<9x512xf32> to vector<1x512xf32>
    %524 = vector.broadcast %523 : vector<1x512xf32> to vector<8x512xf32>
    %525 = arith.mulf %522, %524 : vector<8x512xf32>
    %526 = arith.addf %519, %525 : vector<8x512xf32>
    %c511_i32_106 = arith.constant 511 : i32
    %527 = tpu.dynamic_rotate %486 by %c511_i32_106 dim 1 : vector<8x512xf32>, i32 -> vector<8x512xf32>
    %528 = vector.extract_strided_slice %316 {offsets = [0, 5], sizes = [8, 1], strides = [1, 1]} : vector<8x9xf32> to vector<8x1xf32>
    %529 = vector.broadcast %528 : vector<8x1xf32> to vector<8x512xf32>
    %530 = arith.mulf %529, %527 : vector<8x512xf32>
    %531 = vector.extract_strided_slice %0 {offsets = [5, 0], sizes = [1, 512], strides = [1, 1]} : vector<9x512xf32> to vector<1x512xf32>
    %532 = vector.broadcast %531 : vector<1x512xf32> to vector<8x512xf32>
    %533 = arith.mulf %530, %532 : vector<8x512xf32>
    %534 = arith.addf %526, %533 : vector<8x512xf32>
    %c497_i32_107 = arith.constant 497 : i32
    %535 = tpu.dynamic_rotate %486 by %c497_i32_107 dim 1 : vector<8x512xf32>, i32 -> vector<8x512xf32>
    %536 = vector.extract_strided_slice %316 {offsets = [0, 6], sizes = [8, 1], strides = [1, 1]} : vector<8x9xf32> to vector<8x1xf32>
    %537 = vector.broadcast %536 : vector<8x1xf32> to vector<8x512xf32>
    %538 = arith.mulf %537, %535 : vector<8x512xf32>
    %539 = vector.extract_strided_slice %0 {offsets = [6, 0], sizes = [1, 512], strides = [1, 1]} : vector<9x512xf32> to vector<1x512xf32>
    %540 = vector.broadcast %539 : vector<1x512xf32> to vector<8x512xf32>
    %541 = arith.mulf %538, %540 : vector<8x512xf32>
    %542 = arith.addf %534, %541 : vector<8x512xf32>
    %c496_i32_108 = arith.constant 496 : i32
    %543 = tpu.dynamic_rotate %486 by %c496_i32_108 dim 1 : vector<8x512xf32>, i32 -> vector<8x512xf32>
    %544 = vector.extract_strided_slice %316 {offsets = [0, 7], sizes = [8, 1], strides = [1, 1]} : vector<8x9xf32> to vector<8x1xf32>
    %545 = vector.broadcast %544 : vector<8x1xf32> to vector<8x512xf32>
    %546 = arith.mulf %545, %543 : vector<8x512xf32>
    %547 = vector.extract_strided_slice %0 {offsets = [7, 0], sizes = [1, 512], strides = [1, 1]} : vector<9x512xf32> to vector<1x512xf32>
    %548 = vector.broadcast %547 : vector<1x512xf32> to vector<8x512xf32>
    %549 = arith.mulf %546, %548 : vector<8x512xf32>
    %550 = arith.addf %542, %549 : vector<8x512xf32>
    %c495_i32_109 = arith.constant 495 : i32
    %551 = tpu.dynamic_rotate %486 by %c495_i32_109 dim 1 : vector<8x512xf32>, i32 -> vector<8x512xf32>
    %552 = vector.extract_strided_slice %316 {offsets = [0, 8], sizes = [8, 1], strides = [1, 1]} : vector<8x9xf32> to vector<8x1xf32>
    %553 = vector.broadcast %552 : vector<8x1xf32> to vector<8x512xf32>
    %554 = arith.mulf %553, %551 : vector<8x512xf32>
    %555 = vector.extract_strided_slice %0 {offsets = [8, 0], sizes = [1, 512], strides = [1, 1]} : vector<9x512xf32> to vector<1x512xf32>
    %556 = vector.broadcast %555 : vector<1x512xf32> to vector<8x512xf32>
    %557 = arith.mulf %554, %556 : vector<8x512xf32>
    %558 = arith.addf %550, %557 : vector<8x512xf32>
    %cst_110 = arith.constant dense<0.000000e+00> : vector<8xf32>
    %559 = vector.multi_reduction <add>, %558, %cst_110 [1] : vector<8x512xf32> to vector<8xf32>
    %560 = vector.shape_cast %559 : vector<8xf32> to vector<8x1xf32>
    %cst_111 = arith.constant 5.120000e+02 : f32
    %561 = vector.broadcast %cst_111 : f32 to vector<8x1xf32>
    %562 = arith.divf %560, %561 : vector<8x1xf32>
    %563 = arith.mulf %558, %558 : vector<8x512xf32>
    %cst_112 = arith.constant dense<0.000000e+00> : vector<8xf32>
    %564 = vector.multi_reduction <add>, %563, %cst_112 [1] : vector<8x512xf32> to vector<8xf32>
    %565 = vector.shape_cast %564 : vector<8xf32> to vector<8x1xf32>
    %cst_113 = arith.constant 5.120000e+02 : f32
    %566 = vector.broadcast %cst_113 : f32 to vector<8x1xf32>
    %567 = arith.divf %565, %566 : vector<8x1xf32>
    %568 = arith.mulf %562, %562 : vector<8x1xf32>
    %569 = arith.subf %567, %568 : vector<8x1xf32>
    %cst_114 = arith.constant 0.000000e+00 : f32
    %570 = vector.broadcast %cst_114 : f32 to vector<8x1xf32>
    %571 = arith.maximumf %569, %570 : vector<8x1xf32>
    %cst_115 = arith.constant 9.99999974E-6 : f32
    %572 = vector.broadcast %cst_115 : f32 to vector<8x1xf32>
    %573 = arith.addf %571, %572 : vector<8x1xf32>
    %574 = math.rsqrt %573 : vector<8x1xf32>
    %575 = arith.mulf %321, %574 : vector<8x1xf32>
    %576 = vector.broadcast %575 : vector<8x1xf32> to vector<8x512xf32>
    %577 = arith.mulf %558, %576 : vector<8x512xf32>
    %578 = arith.mulf %562, %575 : vector<8x1xf32>
    %579 = arith.subf %322, %578 : vector<8x1xf32>
    %580 = vector.broadcast %579 : vector<8x1xf32> to vector<8x512xf32>
    %581 = arith.addf %577, %580 : vector<8x512xf32>
    %cst_116 = arith.constant dense<0.000000e+00> : vector<8x512xf32>
    %582 = tpu.matmul %325, %581, %cst_116 {dimension_numbers = #tpu.dot_dimension_numbers<[1], [0], [0], [1], [0, 0, 1, 1], [], []>} : vector<8x8xf32>, vector<8x512xf32>, vector<8x512xf32> -> vector<8x512xf32>
    %cst_117 = arith.constant dense<0.000000e+00> : vector<8xf32>
    %583 = vector.multi_reduction <add>, %582, %cst_117 [1] : vector<8x512xf32> to vector<8xf32>
    %584 = vector.shape_cast %583 : vector<8xf32> to vector<8x1xf32>
    %cst_118 = arith.constant 5.120000e+02 : f32
    %585 = vector.broadcast %cst_118 : f32 to vector<8x1xf32>
    %586 = arith.divf %584, %585 : vector<8x1xf32>
    %587 = arith.mulf %582, %582 : vector<8x512xf32>
    %cst_119 = arith.constant dense<0.000000e+00> : vector<8xf32>
    %588 = vector.multi_reduction <add>, %587, %cst_119 [1] : vector<8x512xf32> to vector<8xf32>
    %589 = vector.shape_cast %588 : vector<8xf32> to vector<8x1xf32>
    %cst_120 = arith.constant 5.120000e+02 : f32
    %590 = vector.broadcast %cst_120 : f32 to vector<8x1xf32>
    %591 = arith.divf %589, %590 : vector<8x1xf32>
    %592 = arith.mulf %586, %586 : vector<8x1xf32>
    %593 = arith.subf %591, %592 : vector<8x1xf32>
    %cst_121 = arith.constant 0.000000e+00 : f32
    %594 = vector.broadcast %cst_121 : f32 to vector<8x1xf32>
    %595 = arith.maximumf %593, %594 : vector<8x1xf32>
    %cst_122 = arith.constant 9.99999974E-6 : f32
    %596 = vector.broadcast %cst_122 : f32 to vector<8x1xf32>
    %597 = arith.addf %595, %596 : vector<8x1xf32>
    %598 = math.rsqrt %597 : vector<8x1xf32>
    %599 = arith.mulf %328, %598 : vector<8x1xf32>
    %600 = vector.broadcast %599 : vector<8x1xf32> to vector<8x512xf32>
    %601 = arith.mulf %582, %600 : vector<8x512xf32>
    %602 = arith.mulf %586, %599 : vector<8x1xf32>
    %603 = arith.subf %329, %602 : vector<8x1xf32>
    %604 = vector.broadcast %603 : vector<8x1xf32> to vector<8x512xf32>
    %605 = arith.addf %601, %604 : vector<8x512xf32>
    %cst_123 = arith.constant 0.000000e+00 : f32
    %606 = vector.broadcast %cst_123 : f32 to vector<8x512xf32>
    %607 = arith.subf %606, %605 : vector<8x512xf32>
    %608 = math.exp %607 : vector<8x512xf32>
    %cst_124 = arith.constant 1.000000e+00 : f32
    %609 = vector.broadcast %cst_124 : f32 to vector<8x512xf32>
    %610 = arith.addf %609, %608 : vector<8x512xf32>
    %611 = tpu.reciprocal %610 {approx = true} : vector<8x512xf32> -> vector<8x512xf32>
    %612 = arith.mulf %605, %611 : vector<8x512xf32>
    %613 = vector.extract_strided_slice %455 {offsets = [0, 0], sizes = [4, 512], strides = [1, 1]} : vector<8x512xf32> to vector<4x512xf32>
    %614 = vector.extract_strided_slice %612 {offsets = [0, 0], sizes = [4, 512], strides = [1, 1]} : vector<8x512xf32> to vector<4x512xf32>
    %615 = tpu.concatenate %613, %614 in 0 : vector<4x512xf32>, vector<4x512xf32> -> vector<8x512xf32>
    %616 = vector.extract_strided_slice %455 {offsets = [4, 0], sizes = [4, 512], strides = [1, 1]} : vector<8x512xf32> to vector<4x512xf32>
    %617 = vector.extract_strided_slice %612 {offsets = [4, 0], sizes = [4, 512], strides = [1, 1]} : vector<8x512xf32> to vector<4x512xf32>
    %618 = tpu.concatenate %616, %617 in 0 : vector<4x512xf32>, vector<4x512xf32> -> vector<8x512xf32>
    %c0_125 = arith.constant 0 : index
    %c0_126 = arith.constant 0 : index
    %619 = vector.load %arg15[%c0_125, %c0_126] : memref<8x24xf32, #tpu.memory_space<vmem>>, vector<8x24xf32>
    %c0_127 = arith.constant 0 : index
    %c0_128 = arith.constant 0 : index
    %620 = vector.load %arg16[%c0_127, %c0_128] : memref<24x8xf32, #tpu.memory_space<vmem>>, vector<24x8xf32>
    %c0_129 = arith.constant 0 : index
    %c0_130 = arith.constant 0 : index
    %621 = vector.load %arg17[%c0_129, %c0_130] : memref<8x4xf32, #tpu.memory_space<vmem>>, vector<8x4xf32>
    %622 = vector.extract_strided_slice %619 {offsets = [0, 0], sizes = [8, 9], strides = [1, 1]} : vector<8x24xf32> to vector<8x9xf32>
    %623 = vector.extract_strided_slice %619 {offsets = [0, 9], sizes = [8, 9], strides = [1, 1]} : vector<8x24xf32> to vector<8x9xf32>
    %624 = vector.extract_strided_slice %619 {offsets = [0, 18], sizes = [8, 1], strides = [1, 1]} : vector<8x24xf32> to vector<8x1xf32>
    %625 = vector.extract_strided_slice %619 {offsets = [0, 19], sizes = [8, 1], strides = [1, 1]} : vector<8x24xf32> to vector<8x1xf32>
    %626 = vector.extract_strided_slice %619 {offsets = [0, 20], sizes = [8, 1], strides = [1, 1]} : vector<8x24xf32> to vector<8x1xf32>
    %627 = vector.extract_strided_slice %619 {offsets = [0, 21], sizes = [8, 1], strides = [1, 1]} : vector<8x24xf32> to vector<8x1xf32>
    %628 = vector.extract_strided_slice %619 {offsets = [0, 22], sizes = [8, 1], strides = [1, 1]} : vector<8x24xf32> to vector<8x1xf32>
    %629 = vector.extract_strided_slice %619 {offsets = [0, 23], sizes = [8, 1], strides = [1, 1]} : vector<8x24xf32> to vector<8x1xf32>
    %630 = vector.extract_strided_slice %620 {offsets = [0, 0], sizes = [8, 8], strides = [1, 1]} : vector<24x8xf32> to vector<8x8xf32>
    %631 = vector.extract_strided_slice %620 {offsets = [8, 0], sizes = [8, 8], strides = [1, 1]} : vector<24x8xf32> to vector<8x8xf32>
    %632 = vector.extract_strided_slice %620 {offsets = [16, 0], sizes = [8, 8], strides = [1, 1]} : vector<24x8xf32> to vector<8x8xf32>
    %633 = vector.extract_strided_slice %621 {offsets = [0, 0], sizes = [8, 1], strides = [1, 1]} : vector<8x4xf32> to vector<8x1xf32>
    %634 = vector.extract_strided_slice %621 {offsets = [0, 1], sizes = [8, 1], strides = [1, 1]} : vector<8x4xf32> to vector<8x1xf32>
    %635 = vector.extract_strided_slice %621 {offsets = [0, 2], sizes = [8, 1], strides = [1, 1]} : vector<8x4xf32> to vector<8x1xf32>
    %636 = vector.extract_strided_slice %621 {offsets = [0, 3], sizes = [8, 1], strides = [1, 1]} : vector<8x4xf32> to vector<8x1xf32>
    %cst_131 = arith.constant 0.000000e+00 : f32
    %637 = vector.broadcast %cst_131 : f32 to vector<8x512xf32>
    %c17_i32_132 = arith.constant 17 : i32
    %638 = tpu.dynamic_rotate %615 by %c17_i32_132 dim 1 : vector<8x512xf32>, i32 -> vector<8x512xf32>
    %639 = vector.extract_strided_slice %622 {offsets = [0, 0], sizes = [8, 1], strides = [1, 1]} : vector<8x9xf32> to vector<8x1xf32>
    %640 = vector.broadcast %639 : vector<8x1xf32> to vector<8x512xf32>
    %641 = arith.mulf %640, %638 : vector<8x512xf32>
    %642 = vector.extract_strided_slice %0 {offsets = [0, 0], sizes = [1, 512], strides = [1, 1]} : vector<9x512xf32> to vector<1x512xf32>
    %643 = vector.broadcast %642 : vector<1x512xf32> to vector<8x512xf32>
    %644 = arith.mulf %641, %643 : vector<8x512xf32>
    %645 = arith.addf %637, %644 : vector<8x512xf32>
    %c16_i32_133 = arith.constant 16 : i32
    %646 = tpu.dynamic_rotate %615 by %c16_i32_133 dim 1 : vector<8x512xf32>, i32 -> vector<8x512xf32>
    %647 = vector.extract_strided_slice %622 {offsets = [0, 1], sizes = [8, 1], strides = [1, 1]} : vector<8x9xf32> to vector<8x1xf32>
    %648 = vector.broadcast %647 : vector<8x1xf32> to vector<8x512xf32>
    %649 = arith.mulf %648, %646 : vector<8x512xf32>
    %650 = vector.extract_strided_slice %0 {offsets = [1, 0], sizes = [1, 512], strides = [1, 1]} : vector<9x512xf32> to vector<1x512xf32>
    %651 = vector.broadcast %650 : vector<1x512xf32> to vector<8x512xf32>
    %652 = arith.mulf %649, %651 : vector<8x512xf32>
    %653 = arith.addf %645, %652 : vector<8x512xf32>
    %c15_i32_134 = arith.constant 15 : i32
    %654 = tpu.dynamic_rotate %615 by %c15_i32_134 dim 1 : vector<8x512xf32>, i32 -> vector<8x512xf32>
    %655 = vector.extract_strided_slice %622 {offsets = [0, 2], sizes = [8, 1], strides = [1, 1]} : vector<8x9xf32> to vector<8x1xf32>
    %656 = vector.broadcast %655 : vector<8x1xf32> to vector<8x512xf32>
    %657 = arith.mulf %656, %654 : vector<8x512xf32>
    %658 = vector.extract_strided_slice %0 {offsets = [2, 0], sizes = [1, 512], strides = [1, 1]} : vector<9x512xf32> to vector<1x512xf32>
    %659 = vector.broadcast %658 : vector<1x512xf32> to vector<8x512xf32>
    %660 = arith.mulf %657, %659 : vector<8x512xf32>
    %661 = arith.addf %653, %660 : vector<8x512xf32>
    %c1_i32_135 = arith.constant 1 : i32
    %662 = tpu.dynamic_rotate %615 by %c1_i32_135 dim 1 : vector<8x512xf32>, i32 -> vector<8x512xf32>
    %663 = vector.extract_strided_slice %622 {offsets = [0, 3], sizes = [8, 1], strides = [1, 1]} : vector<8x9xf32> to vector<8x1xf32>
    %664 = vector.broadcast %663 : vector<8x1xf32> to vector<8x512xf32>
    %665 = arith.mulf %664, %662 : vector<8x512xf32>
    %666 = vector.extract_strided_slice %0 {offsets = [3, 0], sizes = [1, 512], strides = [1, 1]} : vector<9x512xf32> to vector<1x512xf32>
    %667 = vector.broadcast %666 : vector<1x512xf32> to vector<8x512xf32>
    %668 = arith.mulf %665, %667 : vector<8x512xf32>
    %669 = arith.addf %661, %668 : vector<8x512xf32>
    %670 = vector.extract_strided_slice %622 {offsets = [0, 4], sizes = [8, 1], strides = [1, 1]} : vector<8x9xf32> to vector<8x1xf32>
    %671 = vector.broadcast %670 : vector<8x1xf32> to vector<8x512xf32>
    %672 = arith.mulf %671, %615 : vector<8x512xf32>
    %673 = vector.extract_strided_slice %0 {offsets = [4, 0], sizes = [1, 512], strides = [1, 1]} : vector<9x512xf32> to vector<1x512xf32>
    %674 = vector.broadcast %673 : vector<1x512xf32> to vector<8x512xf32>
    %675 = arith.mulf %672, %674 : vector<8x512xf32>
    %676 = arith.addf %669, %675 : vector<8x512xf32>
    %c511_i32_136 = arith.constant 511 : i32
    %677 = tpu.dynamic_rotate %615 by %c511_i32_136 dim 1 : vector<8x512xf32>, i32 -> vector<8x512xf32>
    %678 = vector.extract_strided_slice %622 {offsets = [0, 5], sizes = [8, 1], strides = [1, 1]} : vector<8x9xf32> to vector<8x1xf32>
    %679 = vector.broadcast %678 : vector<8x1xf32> to vector<8x512xf32>
    %680 = arith.mulf %679, %677 : vector<8x512xf32>
    %681 = vector.extract_strided_slice %0 {offsets = [5, 0], sizes = [1, 512], strides = [1, 1]} : vector<9x512xf32> to vector<1x512xf32>
    %682 = vector.broadcast %681 : vector<1x512xf32> to vector<8x512xf32>
    %683 = arith.mulf %680, %682 : vector<8x512xf32>
    %684 = arith.addf %676, %683 : vector<8x512xf32>
    %c497_i32_137 = arith.constant 497 : i32
    %685 = tpu.dynamic_rotate %615 by %c497_i32_137 dim 1 : vector<8x512xf32>, i32 -> vector<8x512xf32>
    %686 = vector.extract_strided_slice %622 {offsets = [0, 6], sizes = [8, 1], strides = [1, 1]} : vector<8x9xf32> to vector<8x1xf32>
    %687 = vector.broadcast %686 : vector<8x1xf32> to vector<8x512xf32>
    %688 = arith.mulf %687, %685 : vector<8x512xf32>
    %689 = vector.extract_strided_slice %0 {offsets = [6, 0], sizes = [1, 512], strides = [1, 1]} : vector<9x512xf32> to vector<1x512xf32>
    %690 = vector.broadcast %689 : vector<1x512xf32> to vector<8x512xf32>
    %691 = arith.mulf %688, %690 : vector<8x512xf32>
    %692 = arith.addf %684, %691 : vector<8x512xf32>
    %c496_i32_138 = arith.constant 496 : i32
    %693 = tpu.dynamic_rotate %615 by %c496_i32_138 dim 1 : vector<8x512xf32>, i32 -> vector<8x512xf32>
    %694 = vector.extract_strided_slice %622 {offsets = [0, 7], sizes = [8, 1], strides = [1, 1]} : vector<8x9xf32> to vector<8x1xf32>
    %695 = vector.broadcast %694 : vector<8x1xf32> to vector<8x512xf32>
    %696 = arith.mulf %695, %693 : vector<8x512xf32>
    %697 = vector.extract_strided_slice %0 {offsets = [7, 0], sizes = [1, 512], strides = [1, 1]} : vector<9x512xf32> to vector<1x512xf32>
    %698 = vector.broadcast %697 : vector<1x512xf32> to vector<8x512xf32>
    %699 = arith.mulf %696, %698 : vector<8x512xf32>
    %700 = arith.addf %692, %699 : vector<8x512xf32>
    %c495_i32_139 = arith.constant 495 : i32
    %701 = tpu.dynamic_rotate %615 by %c495_i32_139 dim 1 : vector<8x512xf32>, i32 -> vector<8x512xf32>
    %702 = vector.extract_strided_slice %622 {offsets = [0, 8], sizes = [8, 1], strides = [1, 1]} : vector<8x9xf32> to vector<8x1xf32>
    %703 = vector.broadcast %702 : vector<8x1xf32> to vector<8x512xf32>
    %704 = arith.mulf %703, %701 : vector<8x512xf32>
    %705 = vector.extract_strided_slice %0 {offsets = [8, 0], sizes = [1, 512], strides = [1, 1]} : vector<9x512xf32> to vector<1x512xf32>
    %706 = vector.broadcast %705 : vector<1x512xf32> to vector<8x512xf32>
    %707 = arith.mulf %704, %706 : vector<8x512xf32>
    %708 = arith.addf %700, %707 : vector<8x512xf32>
    %cst_140 = arith.constant dense<0.000000e+00> : vector<8xf32>
    %709 = vector.multi_reduction <add>, %708, %cst_140 [1] : vector<8x512xf32> to vector<8xf32>
    %710 = vector.shape_cast %709 : vector<8xf32> to vector<8x1xf32>
    %cst_141 = arith.constant 5.120000e+02 : f32
    %711 = vector.broadcast %cst_141 : f32 to vector<8x1xf32>
    %712 = arith.divf %710, %711 : vector<8x1xf32>
    %713 = arith.mulf %708, %708 : vector<8x512xf32>
    %cst_142 = arith.constant dense<0.000000e+00> : vector<8xf32>
    %714 = vector.multi_reduction <add>, %713, %cst_142 [1] : vector<8x512xf32> to vector<8xf32>
    %715 = vector.shape_cast %714 : vector<8xf32> to vector<8x1xf32>
    %cst_143 = arith.constant 5.120000e+02 : f32
    %716 = vector.broadcast %cst_143 : f32 to vector<8x1xf32>
    %717 = arith.divf %715, %716 : vector<8x1xf32>
    %718 = arith.mulf %712, %712 : vector<8x1xf32>
    %719 = arith.subf %717, %718 : vector<8x1xf32>
    %cst_144 = arith.constant 0.000000e+00 : f32
    %720 = vector.broadcast %cst_144 : f32 to vector<8x1xf32>
    %721 = arith.maximumf %719, %720 : vector<8x1xf32>
    %cst_145 = arith.constant 9.99999974E-6 : f32
    %722 = vector.broadcast %cst_145 : f32 to vector<8x1xf32>
    %723 = arith.addf %721, %722 : vector<8x1xf32>
    %724 = math.rsqrt %723 : vector<8x1xf32>
    %725 = arith.mulf %624, %724 : vector<8x1xf32>
    %726 = vector.broadcast %725 : vector<8x1xf32> to vector<8x512xf32>
    %727 = arith.mulf %708, %726 : vector<8x512xf32>
    %728 = arith.mulf %712, %725 : vector<8x1xf32>
    %729 = arith.subf %625, %728 : vector<8x1xf32>
    %730 = vector.broadcast %729 : vector<8x1xf32> to vector<8x512xf32>
    %731 = arith.addf %727, %730 : vector<8x512xf32>
    %cst_146 = arith.constant dense<0.000000e+00> : vector<8x512xf32>
    %732 = tpu.matmul %631, %731, %cst_146 {dimension_numbers = #tpu.dot_dimension_numbers<[1], [0], [0], [1], [0, 0, 1, 1], [], []>} : vector<8x8xf32>, vector<8x512xf32>, vector<8x512xf32> -> vector<8x512xf32>
    %cst_147 = arith.constant dense<0.000000e+00> : vector<8xf32>
    %733 = vector.multi_reduction <add>, %732, %cst_147 [1] : vector<8x512xf32> to vector<8xf32>
    %734 = vector.shape_cast %733 : vector<8xf32> to vector<8x1xf32>
    %cst_148 = arith.constant 5.120000e+02 : f32
    %735 = vector.broadcast %cst_148 : f32 to vector<8x1xf32>
    %736 = arith.divf %734, %735 : vector<8x1xf32>
    %737 = arith.mulf %732, %732 : vector<8x512xf32>
    %cst_149 = arith.constant dense<0.000000e+00> : vector<8xf32>
    %738 = vector.multi_reduction <add>, %737, %cst_149 [1] : vector<8x512xf32> to vector<8xf32>
    %739 = vector.shape_cast %738 : vector<8xf32> to vector<8x1xf32>
    %cst_150 = arith.constant 5.120000e+02 : f32
    %740 = vector.broadcast %cst_150 : f32 to vector<8x1xf32>
    %741 = arith.divf %739, %740 : vector<8x1xf32>
    %742 = arith.mulf %736, %736 : vector<8x1xf32>
    %743 = arith.subf %741, %742 : vector<8x1xf32>
    %cst_151 = arith.constant 0.000000e+00 : f32
    %744 = vector.broadcast %cst_151 : f32 to vector<8x1xf32>
    %745 = arith.maximumf %743, %744 : vector<8x1xf32>
    %cst_152 = arith.constant 9.99999974E-6 : f32
    %746 = vector.broadcast %cst_152 : f32 to vector<8x1xf32>
    %747 = arith.addf %745, %746 : vector<8x1xf32>
    %748 = math.rsqrt %747 : vector<8x1xf32>
    %749 = arith.mulf %633, %748 : vector<8x1xf32>
    %750 = vector.broadcast %749 : vector<8x1xf32> to vector<8x512xf32>
    %751 = arith.mulf %732, %750 : vector<8x512xf32>
    %752 = arith.mulf %736, %749 : vector<8x1xf32>
    %753 = arith.subf %634, %752 : vector<8x1xf32>
    %754 = vector.broadcast %753 : vector<8x1xf32> to vector<8x512xf32>
    %755 = arith.addf %751, %754 : vector<8x512xf32>
    %cst_153 = arith.constant 0.000000e+00 : f32
    %756 = vector.broadcast %cst_153 : f32 to vector<8x512xf32>
    %757 = arith.subf %756, %755 : vector<8x512xf32>
    %758 = math.exp %757 : vector<8x512xf32>
    %cst_154 = arith.constant 1.000000e+00 : f32
    %759 = vector.broadcast %cst_154 : f32 to vector<8x512xf32>
    %760 = arith.addf %759, %758 : vector<8x512xf32>
    %761 = tpu.reciprocal %760 {approx = true} : vector<8x512xf32> -> vector<8x512xf32>
    %762 = arith.mulf %755, %761 : vector<8x512xf32>
    %cst_155 = arith.constant dense<0.000000e+00> : vector<8x512xf32>
    %763 = tpu.matmul %630, %618, %cst_155 {dimension_numbers = #tpu.dot_dimension_numbers<[1], [0], [0], [1], [0, 0, 1, 1], [], []>} : vector<8x8xf32>, vector<8x512xf32>, vector<8x512xf32> -> vector<8x512xf32>
    %cst_156 = arith.constant dense<0.000000e+00> : vector<8xf32>
    %764 = vector.multi_reduction <add>, %763, %cst_156 [1] : vector<8x512xf32> to vector<8xf32>
    %765 = vector.shape_cast %764 : vector<8xf32> to vector<8x1xf32>
    %cst_157 = arith.constant 5.120000e+02 : f32
    %766 = vector.broadcast %cst_157 : f32 to vector<8x1xf32>
    %767 = arith.divf %765, %766 : vector<8x1xf32>
    %768 = arith.mulf %763, %763 : vector<8x512xf32>
    %cst_158 = arith.constant dense<0.000000e+00> : vector<8xf32>
    %769 = vector.multi_reduction <add>, %768, %cst_158 [1] : vector<8x512xf32> to vector<8xf32>
    %770 = vector.shape_cast %769 : vector<8xf32> to vector<8x1xf32>
    %cst_159 = arith.constant 5.120000e+02 : f32
    %771 = vector.broadcast %cst_159 : f32 to vector<8x1xf32>
    %772 = arith.divf %770, %771 : vector<8x1xf32>
    %773 = arith.mulf %767, %767 : vector<8x1xf32>
    %774 = arith.subf %772, %773 : vector<8x1xf32>
    %cst_160 = arith.constant 0.000000e+00 : f32
    %775 = vector.broadcast %cst_160 : f32 to vector<8x1xf32>
    %776 = arith.maximumf %774, %775 : vector<8x1xf32>
    %cst_161 = arith.constant 9.99999974E-6 : f32
    %777 = vector.broadcast %cst_161 : f32 to vector<8x1xf32>
    %778 = arith.addf %776, %777 : vector<8x1xf32>
    %779 = math.rsqrt %778 : vector<8x1xf32>
    %780 = arith.mulf %626, %779 : vector<8x1xf32>
    %781 = vector.broadcast %780 : vector<8x1xf32> to vector<8x512xf32>
    %782 = arith.mulf %763, %781 : vector<8x512xf32>
    %783 = arith.mulf %767, %780 : vector<8x1xf32>
    %784 = arith.subf %627, %783 : vector<8x1xf32>
    %785 = vector.broadcast %784 : vector<8x1xf32> to vector<8x512xf32>
    %786 = arith.addf %782, %785 : vector<8x512xf32>
    %cst_162 = arith.constant 0.000000e+00 : f32
    %787 = vector.broadcast %cst_162 : f32 to vector<8x512xf32>
    %788 = arith.subf %787, %786 : vector<8x512xf32>
    %789 = math.exp %788 : vector<8x512xf32>
    %cst_163 = arith.constant 1.000000e+00 : f32
    %790 = vector.broadcast %cst_163 : f32 to vector<8x512xf32>
    %791 = arith.addf %790, %789 : vector<8x512xf32>
    %792 = tpu.reciprocal %791 {approx = true} : vector<8x512xf32> -> vector<8x512xf32>
    %793 = arith.mulf %786, %792 : vector<8x512xf32>
    %cst_164 = arith.constant 0.000000e+00 : f32
    %794 = vector.broadcast %cst_164 : f32 to vector<8x512xf32>
    %c17_i32_165 = arith.constant 17 : i32
    %795 = tpu.dynamic_rotate %793 by %c17_i32_165 dim 1 : vector<8x512xf32>, i32 -> vector<8x512xf32>
    %796 = vector.extract_strided_slice %623 {offsets = [0, 0], sizes = [8, 1], strides = [1, 1]} : vector<8x9xf32> to vector<8x1xf32>
    %797 = vector.broadcast %796 : vector<8x1xf32> to vector<8x512xf32>
    %798 = arith.mulf %797, %795 : vector<8x512xf32>
    %799 = vector.extract_strided_slice %0 {offsets = [0, 0], sizes = [1, 512], strides = [1, 1]} : vector<9x512xf32> to vector<1x512xf32>
    %800 = vector.broadcast %799 : vector<1x512xf32> to vector<8x512xf32>
    %801 = arith.mulf %798, %800 : vector<8x512xf32>
    %802 = arith.addf %794, %801 : vector<8x512xf32>
    %c16_i32_166 = arith.constant 16 : i32
    %803 = tpu.dynamic_rotate %793 by %c16_i32_166 dim 1 : vector<8x512xf32>, i32 -> vector<8x512xf32>
    %804 = vector.extract_strided_slice %623 {offsets = [0, 1], sizes = [8, 1], strides = [1, 1]} : vector<8x9xf32> to vector<8x1xf32>
    %805 = vector.broadcast %804 : vector<8x1xf32> to vector<8x512xf32>
    %806 = arith.mulf %805, %803 : vector<8x512xf32>
    %807 = vector.extract_strided_slice %0 {offsets = [1, 0], sizes = [1, 512], strides = [1, 1]} : vector<9x512xf32> to vector<1x512xf32>
    %808 = vector.broadcast %807 : vector<1x512xf32> to vector<8x512xf32>
    %809 = arith.mulf %806, %808 : vector<8x512xf32>
    %810 = arith.addf %802, %809 : vector<8x512xf32>
    %c15_i32_167 = arith.constant 15 : i32
    %811 = tpu.dynamic_rotate %793 by %c15_i32_167 dim 1 : vector<8x512xf32>, i32 -> vector<8x512xf32>
    %812 = vector.extract_strided_slice %623 {offsets = [0, 2], sizes = [8, 1], strides = [1, 1]} : vector<8x9xf32> to vector<8x1xf32>
    %813 = vector.broadcast %812 : vector<8x1xf32> to vector<8x512xf32>
    %814 = arith.mulf %813, %811 : vector<8x512xf32>
    %815 = vector.extract_strided_slice %0 {offsets = [2, 0], sizes = [1, 512], strides = [1, 1]} : vector<9x512xf32> to vector<1x512xf32>
    %816 = vector.broadcast %815 : vector<1x512xf32> to vector<8x512xf32>
    %817 = arith.mulf %814, %816 : vector<8x512xf32>
    %818 = arith.addf %810, %817 : vector<8x512xf32>
    %c1_i32_168 = arith.constant 1 : i32
    %819 = tpu.dynamic_rotate %793 by %c1_i32_168 dim 1 : vector<8x512xf32>, i32 -> vector<8x512xf32>
    %820 = vector.extract_strided_slice %623 {offsets = [0, 3], sizes = [8, 1], strides = [1, 1]} : vector<8x9xf32> to vector<8x1xf32>
    %821 = vector.broadcast %820 : vector<8x1xf32> to vector<8x512xf32>
    %822 = arith.mulf %821, %819 : vector<8x512xf32>
    %823 = vector.extract_strided_slice %0 {offsets = [3, 0], sizes = [1, 512], strides = [1, 1]} : vector<9x512xf32> to vector<1x512xf32>
    %824 = vector.broadcast %823 : vector<1x512xf32> to vector<8x512xf32>
    %825 = arith.mulf %822, %824 : vector<8x512xf32>
    %826 = arith.addf %818, %825 : vector<8x512xf32>
    %827 = vector.extract_strided_slice %623 {offsets = [0, 4], sizes = [8, 1], strides = [1, 1]} : vector<8x9xf32> to vector<8x1xf32>
    %828 = vector.broadcast %827 : vector<8x1xf32> to vector<8x512xf32>
    %829 = arith.mulf %828, %793 : vector<8x512xf32>
    %830 = vector.extract_strided_slice %0 {offsets = [4, 0], sizes = [1, 512], strides = [1, 1]} : vector<9x512xf32> to vector<1x512xf32>
    %831 = vector.broadcast %830 : vector<1x512xf32> to vector<8x512xf32>
    %832 = arith.mulf %829, %831 : vector<8x512xf32>
    %833 = arith.addf %826, %832 : vector<8x512xf32>
    %c511_i32_169 = arith.constant 511 : i32
    %834 = tpu.dynamic_rotate %793 by %c511_i32_169 dim 1 : vector<8x512xf32>, i32 -> vector<8x512xf32>
    %835 = vector.extract_strided_slice %623 {offsets = [0, 5], sizes = [8, 1], strides = [1, 1]} : vector<8x9xf32> to vector<8x1xf32>
    %836 = vector.broadcast %835 : vector<8x1xf32> to vector<8x512xf32>
    %837 = arith.mulf %836, %834 : vector<8x512xf32>
    %838 = vector.extract_strided_slice %0 {offsets = [5, 0], sizes = [1, 512], strides = [1, 1]} : vector<9x512xf32> to vector<1x512xf32>
    %839 = vector.broadcast %838 : vector<1x512xf32> to vector<8x512xf32>
    %840 = arith.mulf %837, %839 : vector<8x512xf32>
    %841 = arith.addf %833, %840 : vector<8x512xf32>
    %c497_i32_170 = arith.constant 497 : i32
    %842 = tpu.dynamic_rotate %793 by %c497_i32_170 dim 1 : vector<8x512xf32>, i32 -> vector<8x512xf32>
    %843 = vector.extract_strided_slice %623 {offsets = [0, 6], sizes = [8, 1], strides = [1, 1]} : vector<8x9xf32> to vector<8x1xf32>
    %844 = vector.broadcast %843 : vector<8x1xf32> to vector<8x512xf32>
    %845 = arith.mulf %844, %842 : vector<8x512xf32>
    %846 = vector.extract_strided_slice %0 {offsets = [6, 0], sizes = [1, 512], strides = [1, 1]} : vector<9x512xf32> to vector<1x512xf32>
    %847 = vector.broadcast %846 : vector<1x512xf32> to vector<8x512xf32>
    %848 = arith.mulf %845, %847 : vector<8x512xf32>
    %849 = arith.addf %841, %848 : vector<8x512xf32>
    %c496_i32_171 = arith.constant 496 : i32
    %850 = tpu.dynamic_rotate %793 by %c496_i32_171 dim 1 : vector<8x512xf32>, i32 -> vector<8x512xf32>
    %851 = vector.extract_strided_slice %623 {offsets = [0, 7], sizes = [8, 1], strides = [1, 1]} : vector<8x9xf32> to vector<8x1xf32>
    %852 = vector.broadcast %851 : vector<8x1xf32> to vector<8x512xf32>
    %853 = arith.mulf %852, %850 : vector<8x512xf32>
    %854 = vector.extract_strided_slice %0 {offsets = [7, 0], sizes = [1, 512], strides = [1, 1]} : vector<9x512xf32> to vector<1x512xf32>
    %855 = vector.broadcast %854 : vector<1x512xf32> to vector<8x512xf32>
    %856 = arith.mulf %853, %855 : vector<8x512xf32>
    %857 = arith.addf %849, %856 : vector<8x512xf32>
    %c495_i32_172 = arith.constant 495 : i32
    %858 = tpu.dynamic_rotate %793 by %c495_i32_172 dim 1 : vector<8x512xf32>, i32 -> vector<8x512xf32>
    %859 = vector.extract_strided_slice %623 {offsets = [0, 8], sizes = [8, 1], strides = [1, 1]} : vector<8x9xf32> to vector<8x1xf32>
    %860 = vector.broadcast %859 : vector<8x1xf32> to vector<8x512xf32>
    %861 = arith.mulf %860, %858 : vector<8x512xf32>
    %862 = vector.extract_strided_slice %0 {offsets = [8, 0], sizes = [1, 512], strides = [1, 1]} : vector<9x512xf32> to vector<1x512xf32>
    %863 = vector.broadcast %862 : vector<1x512xf32> to vector<8x512xf32>
    %864 = arith.mulf %861, %863 : vector<8x512xf32>
    %865 = arith.addf %857, %864 : vector<8x512xf32>
    %cst_173 = arith.constant dense<0.000000e+00> : vector<8xf32>
    %866 = vector.multi_reduction <add>, %865, %cst_173 [1] : vector<8x512xf32> to vector<8xf32>
    %867 = vector.shape_cast %866 : vector<8xf32> to vector<8x1xf32>
    %cst_174 = arith.constant 5.120000e+02 : f32
    %868 = vector.broadcast %cst_174 : f32 to vector<8x1xf32>
    %869 = arith.divf %867, %868 : vector<8x1xf32>
    %870 = arith.mulf %865, %865 : vector<8x512xf32>
    %cst_175 = arith.constant dense<0.000000e+00> : vector<8xf32>
    %871 = vector.multi_reduction <add>, %870, %cst_175 [1] : vector<8x512xf32> to vector<8xf32>
    %872 = vector.shape_cast %871 : vector<8xf32> to vector<8x1xf32>
    %cst_176 = arith.constant 5.120000e+02 : f32
    %873 = vector.broadcast %cst_176 : f32 to vector<8x1xf32>
    %874 = arith.divf %872, %873 : vector<8x1xf32>
    %875 = arith.mulf %869, %869 : vector<8x1xf32>
    %876 = arith.subf %874, %875 : vector<8x1xf32>
    %cst_177 = arith.constant 0.000000e+00 : f32
    %877 = vector.broadcast %cst_177 : f32 to vector<8x1xf32>
    %878 = arith.maximumf %876, %877 : vector<8x1xf32>
    %cst_178 = arith.constant 9.99999974E-6 : f32
    %879 = vector.broadcast %cst_178 : f32 to vector<8x1xf32>
    %880 = arith.addf %878, %879 : vector<8x1xf32>
    %881 = math.rsqrt %880 : vector<8x1xf32>
    %882 = arith.mulf %628, %881 : vector<8x1xf32>
    %883 = vector.broadcast %882 : vector<8x1xf32> to vector<8x512xf32>
    %884 = arith.mulf %865, %883 : vector<8x512xf32>
    %885 = arith.mulf %869, %882 : vector<8x1xf32>
    %886 = arith.subf %629, %885 : vector<8x1xf32>
    %887 = vector.broadcast %886 : vector<8x1xf32> to vector<8x512xf32>
    %888 = arith.addf %884, %887 : vector<8x512xf32>
    %cst_179 = arith.constant dense<0.000000e+00> : vector<8x512xf32>
    %889 = tpu.matmul %632, %888, %cst_179 {dimension_numbers = #tpu.dot_dimension_numbers<[1], [0], [0], [1], [0, 0, 1, 1], [], []>} : vector<8x8xf32>, vector<8x512xf32>, vector<8x512xf32> -> vector<8x512xf32>
    %cst_180 = arith.constant dense<0.000000e+00> : vector<8xf32>
    %890 = vector.multi_reduction <add>, %889, %cst_180 [1] : vector<8x512xf32> to vector<8xf32>
    %891 = vector.shape_cast %890 : vector<8xf32> to vector<8x1xf32>
    %cst_181 = arith.constant 5.120000e+02 : f32
    %892 = vector.broadcast %cst_181 : f32 to vector<8x1xf32>
    %893 = arith.divf %891, %892 : vector<8x1xf32>
    %894 = arith.mulf %889, %889 : vector<8x512xf32>
    %cst_182 = arith.constant dense<0.000000e+00> : vector<8xf32>
    %895 = vector.multi_reduction <add>, %894, %cst_182 [1] : vector<8x512xf32> to vector<8xf32>
    %896 = vector.shape_cast %895 : vector<8xf32> to vector<8x1xf32>
    %cst_183 = arith.constant 5.120000e+02 : f32
    %897 = vector.broadcast %cst_183 : f32 to vector<8x1xf32>
    %898 = arith.divf %896, %897 : vector<8x1xf32>
    %899 = arith.mulf %893, %893 : vector<8x1xf32>
    %900 = arith.subf %898, %899 : vector<8x1xf32>
    %cst_184 = arith.constant 0.000000e+00 : f32
    %901 = vector.broadcast %cst_184 : f32 to vector<8x1xf32>
    %902 = arith.maximumf %900, %901 : vector<8x1xf32>
    %cst_185 = arith.constant 9.99999974E-6 : f32
    %903 = vector.broadcast %cst_185 : f32 to vector<8x1xf32>
    %904 = arith.addf %902, %903 : vector<8x1xf32>
    %905 = math.rsqrt %904 : vector<8x1xf32>
    %906 = arith.mulf %635, %905 : vector<8x1xf32>
    %907 = vector.broadcast %906 : vector<8x1xf32> to vector<8x512xf32>
    %908 = arith.mulf %889, %907 : vector<8x512xf32>
    %909 = arith.mulf %893, %906 : vector<8x1xf32>
    %910 = arith.subf %636, %909 : vector<8x1xf32>
    %911 = vector.broadcast %910 : vector<8x1xf32> to vector<8x512xf32>
    %912 = arith.addf %908, %911 : vector<8x512xf32>
    %cst_186 = arith.constant 0.000000e+00 : f32
    %913 = vector.broadcast %cst_186 : f32 to vector<8x512xf32>
    %914 = arith.subf %913, %912 : vector<8x512xf32>
    %915 = math.exp %914 : vector<8x512xf32>
    %cst_187 = arith.constant 1.000000e+00 : f32
    %916 = vector.broadcast %cst_187 : f32 to vector<8x512xf32>
    %917 = arith.addf %916, %915 : vector<8x512xf32>
    %918 = tpu.reciprocal %917 {approx = true} : vector<8x512xf32> -> vector<8x512xf32>
    %919 = arith.mulf %912, %918 : vector<8x512xf32>
    %920 = vector.extract_strided_slice %762 {offsets = [0, 0], sizes = [4, 512], strides = [1, 1]} : vector<8x512xf32> to vector<4x512xf32>
    %921 = vector.extract_strided_slice %919 {offsets = [0, 0], sizes = [4, 512], strides = [1, 1]} : vector<8x512xf32> to vector<4x512xf32>
    %922 = tpu.concatenate %920, %921 in 0 : vector<4x512xf32>, vector<4x512xf32> -> vector<8x512xf32>
    %923 = vector.extract_strided_slice %762 {offsets = [4, 0], sizes = [4, 512], strides = [1, 1]} : vector<8x512xf32> to vector<4x512xf32>
    %924 = vector.extract_strided_slice %919 {offsets = [4, 0], sizes = [4, 512], strides = [1, 1]} : vector<8x512xf32> to vector<4x512xf32>
    %925 = tpu.concatenate %923, %924 in 0 : vector<4x512xf32>, vector<4x512xf32> -> vector<8x512xf32>
    %c0_188 = arith.constant 0 : index
    %c0_189 = arith.constant 0 : index
    %926 = vector.load %arg18[%c0_188, %c0_189] : memref<8x24xf32, #tpu.memory_space<vmem>>, vector<8x24xf32>
    %c0_190 = arith.constant 0 : index
    %c0_191 = arith.constant 0 : index
    %927 = vector.load %arg19[%c0_190, %c0_191] : memref<16x8xf32, #tpu.memory_space<vmem>>, vector<16x8xf32>
    %c0_192 = arith.constant 0 : index
    %c0_193 = arith.constant 0 : index
    %928 = vector.load %arg20[%c0_192, %c0_193] : memref<4x4xf32, #tpu.memory_space<vmem>>, vector<4x4xf32>
    %929 = vector.extract_strided_slice %926 {offsets = [0, 0], sizes = [8, 9], strides = [1, 1]} : vector<8x24xf32> to vector<8x9xf32>
    %930 = vector.extract_strided_slice %926 {offsets = [0, 9], sizes = [8, 9], strides = [1, 1]} : vector<8x24xf32> to vector<8x9xf32>
    %931 = vector.extract_strided_slice %926 {offsets = [0, 18], sizes = [8, 1], strides = [1, 1]} : vector<8x24xf32> to vector<8x1xf32>
    %932 = vector.extract_strided_slice %926 {offsets = [0, 19], sizes = [8, 1], strides = [1, 1]} : vector<8x24xf32> to vector<8x1xf32>
    %933 = vector.extract_strided_slice %926 {offsets = [0, 20], sizes = [8, 1], strides = [1, 1]} : vector<8x24xf32> to vector<8x1xf32>
    %934 = vector.extract_strided_slice %926 {offsets = [0, 21], sizes = [8, 1], strides = [1, 1]} : vector<8x24xf32> to vector<8x1xf32>
    %935 = vector.extract_strided_slice %926 {offsets = [0, 22], sizes = [8, 1], strides = [1, 1]} : vector<8x24xf32> to vector<8x1xf32>
    %936 = vector.extract_strided_slice %926 {offsets = [0, 23], sizes = [8, 1], strides = [1, 1]} : vector<8x24xf32> to vector<8x1xf32>
    %937 = vector.extract_strided_slice %927 {offsets = [0, 0], sizes = [8, 8], strides = [1, 1]} : vector<16x8xf32> to vector<8x8xf32>
    %938 = vector.extract_strided_slice %927 {offsets = [8, 0], sizes = [4, 8], strides = [1, 1]} : vector<16x8xf32> to vector<4x8xf32>
    %939 = vector.extract_strided_slice %927 {offsets = [12, 0], sizes = [4, 8], strides = [1, 1]} : vector<16x8xf32> to vector<4x8xf32>
    %940 = vector.extract_strided_slice %928 {offsets = [0, 0], sizes = [4, 1], strides = [1, 1]} : vector<4x4xf32> to vector<4x1xf32>
    %941 = vector.extract_strided_slice %928 {offsets = [0, 1], sizes = [4, 1], strides = [1, 1]} : vector<4x4xf32> to vector<4x1xf32>
    %942 = vector.extract_strided_slice %928 {offsets = [0, 2], sizes = [4, 1], strides = [1, 1]} : vector<4x4xf32> to vector<4x1xf32>
    %943 = vector.extract_strided_slice %928 {offsets = [0, 3], sizes = [4, 1], strides = [1, 1]} : vector<4x4xf32> to vector<4x1xf32>
    %cst_194 = arith.constant 0.000000e+00 : f32
    %944 = vector.broadcast %cst_194 : f32 to vector<8x512xf32>
    %c17_i32_195 = arith.constant 17 : i32
    %945 = tpu.dynamic_rotate %922 by %c17_i32_195 dim 1 : vector<8x512xf32>, i32 -> vector<8x512xf32>
    %946 = vector.extract_strided_slice %929 {offsets = [0, 0], sizes = [8, 1], strides = [1, 1]} : vector<8x9xf32> to vector<8x1xf32>
    %947 = vector.broadcast %946 : vector<8x1xf32> to vector<8x512xf32>
    %948 = arith.mulf %947, %945 : vector<8x512xf32>
    %949 = vector.extract_strided_slice %0 {offsets = [0, 0], sizes = [1, 512], strides = [1, 1]} : vector<9x512xf32> to vector<1x512xf32>
    %950 = vector.broadcast %949 : vector<1x512xf32> to vector<8x512xf32>
    %951 = arith.mulf %948, %950 : vector<8x512xf32>
    %952 = arith.addf %944, %951 : vector<8x512xf32>
    %c16_i32_196 = arith.constant 16 : i32
    %953 = tpu.dynamic_rotate %922 by %c16_i32_196 dim 1 : vector<8x512xf32>, i32 -> vector<8x512xf32>
    %954 = vector.extract_strided_slice %929 {offsets = [0, 1], sizes = [8, 1], strides = [1, 1]} : vector<8x9xf32> to vector<8x1xf32>
    %955 = vector.broadcast %954 : vector<8x1xf32> to vector<8x512xf32>
    %956 = arith.mulf %955, %953 : vector<8x512xf32>
    %957 = vector.extract_strided_slice %0 {offsets = [1, 0], sizes = [1, 512], strides = [1, 1]} : vector<9x512xf32> to vector<1x512xf32>
    %958 = vector.broadcast %957 : vector<1x512xf32> to vector<8x512xf32>
    %959 = arith.mulf %956, %958 : vector<8x512xf32>
    %960 = arith.addf %952, %959 : vector<8x512xf32>
    %c15_i32_197 = arith.constant 15 : i32
    %961 = tpu.dynamic_rotate %922 by %c15_i32_197 dim 1 : vector<8x512xf32>, i32 -> vector<8x512xf32>
    %962 = vector.extract_strided_slice %929 {offsets = [0, 2], sizes = [8, 1], strides = [1, 1]} : vector<8x9xf32> to vector<8x1xf32>
    %963 = vector.broadcast %962 : vector<8x1xf32> to vector<8x512xf32>
    %964 = arith.mulf %963, %961 : vector<8x512xf32>
    %965 = vector.extract_strided_slice %0 {offsets = [2, 0], sizes = [1, 512], strides = [1, 1]} : vector<9x512xf32> to vector<1x512xf32>
    %966 = vector.broadcast %965 : vector<1x512xf32> to vector<8x512xf32>
    %967 = arith.mulf %964, %966 : vector<8x512xf32>
    %968 = arith.addf %960, %967 : vector<8x512xf32>
    %c1_i32_198 = arith.constant 1 : i32
    %969 = tpu.dynamic_rotate %922 by %c1_i32_198 dim 1 : vector<8x512xf32>, i32 -> vector<8x512xf32>
    %970 = vector.extract_strided_slice %929 {offsets = [0, 3], sizes = [8, 1], strides = [1, 1]} : vector<8x9xf32> to vector<8x1xf32>
    %971 = vector.broadcast %970 : vector<8x1xf32> to vector<8x512xf32>
    %972 = arith.mulf %971, %969 : vector<8x512xf32>
    %973 = vector.extract_strided_slice %0 {offsets = [3, 0], sizes = [1, 512], strides = [1, 1]} : vector<9x512xf32> to vector<1x512xf32>
    %974 = vector.broadcast %973 : vector<1x512xf32> to vector<8x512xf32>
    %975 = arith.mulf %972, %974 : vector<8x512xf32>
    %976 = arith.addf %968, %975 : vector<8x512xf32>
    %977 = vector.extract_strided_slice %929 {offsets = [0, 4], sizes = [8, 1], strides = [1, 1]} : vector<8x9xf32> to vector<8x1xf32>
    %978 = vector.broadcast %977 : vector<8x1xf32> to vector<8x512xf32>
    %979 = arith.mulf %978, %922 : vector<8x512xf32>
    %980 = vector.extract_strided_slice %0 {offsets = [4, 0], sizes = [1, 512], strides = [1, 1]} : vector<9x512xf32> to vector<1x512xf32>
    %981 = vector.broadcast %980 : vector<1x512xf32> to vector<8x512xf32>
    %982 = arith.mulf %979, %981 : vector<8x512xf32>
    %983 = arith.addf %976, %982 : vector<8x512xf32>
    %c511_i32_199 = arith.constant 511 : i32
    %984 = tpu.dynamic_rotate %922 by %c511_i32_199 dim 1 : vector<8x512xf32>, i32 -> vector<8x512xf32>
    %985 = vector.extract_strided_slice %929 {offsets = [0, 5], sizes = [8, 1], strides = [1, 1]} : vector<8x9xf32> to vector<8x1xf32>
    %986 = vector.broadcast %985 : vector<8x1xf32> to vector<8x512xf32>
    %987 = arith.mulf %986, %984 : vector<8x512xf32>
    %988 = vector.extract_strided_slice %0 {offsets = [5, 0], sizes = [1, 512], strides = [1, 1]} : vector<9x512xf32> to vector<1x512xf32>
    %989 = vector.broadcast %988 : vector<1x512xf32> to vector<8x512xf32>
    %990 = arith.mulf %987, %989 : vector<8x512xf32>
    %991 = arith.addf %983, %990 : vector<8x512xf32>
    %c497_i32_200 = arith.constant 497 : i32
    %992 = tpu.dynamic_rotate %922 by %c497_i32_200 dim 1 : vector<8x512xf32>, i32 -> vector<8x512xf32>
    %993 = vector.extract_strided_slice %929 {offsets = [0, 6], sizes = [8, 1], strides = [1, 1]} : vector<8x9xf32> to vector<8x1xf32>
    %994 = vector.broadcast %993 : vector<8x1xf32> to vector<8x512xf32>
    %995 = arith.mulf %994, %992 : vector<8x512xf32>
    %996 = vector.extract_strided_slice %0 {offsets = [6, 0], sizes = [1, 512], strides = [1, 1]} : vector<9x512xf32> to vector<1x512xf32>
    %997 = vector.broadcast %996 : vector<1x512xf32> to vector<8x512xf32>
    %998 = arith.mulf %995, %997 : vector<8x512xf32>
    %999 = arith.addf %991, %998 : vector<8x512xf32>
    %c496_i32_201 = arith.constant 496 : i32
    %1000 = tpu.dynamic_rotate %922 by %c496_i32_201 dim 1 : vector<8x512xf32>, i32 -> vector<8x512xf32>
    %1001 = vector.extract_strided_slice %929 {offsets = [0, 7], sizes = [8, 1], strides = [1, 1]} : vector<8x9xf32> to vector<8x1xf32>
    %1002 = vector.broadcast %1001 : vector<8x1xf32> to vector<8x512xf32>
    %1003 = arith.mulf %1002, %1000 : vector<8x512xf32>
    %1004 = vector.extract_strided_slice %0 {offsets = [7, 0], sizes = [1, 512], strides = [1, 1]} : vector<9x512xf32> to vector<1x512xf32>
    %1005 = vector.broadcast %1004 : vector<1x512xf32> to vector<8x512xf32>
    %1006 = arith.mulf %1003, %1005 : vector<8x512xf32>
    %1007 = arith.addf %999, %1006 : vector<8x512xf32>
    %c495_i32_202 = arith.constant 495 : i32
    %1008 = tpu.dynamic_rotate %922 by %c495_i32_202 dim 1 : vector<8x512xf32>, i32 -> vector<8x512xf32>
    %1009 = vector.extract_strided_slice %929 {offsets = [0, 8], sizes = [8, 1], strides = [1, 1]} : vector<8x9xf32> to vector<8x1xf32>
    %1010 = vector.broadcast %1009 : vector<8x1xf32> to vector<8x512xf32>
    %1011 = arith.mulf %1010, %1008 : vector<8x512xf32>
    %1012 = vector.extract_strided_slice %0 {offsets = [8, 0], sizes = [1, 512], strides = [1, 1]} : vector<9x512xf32> to vector<1x512xf32>
    %1013 = vector.broadcast %1012 : vector<1x512xf32> to vector<8x512xf32>
    %1014 = arith.mulf %1011, %1013 : vector<8x512xf32>
    %1015 = arith.addf %1007, %1014 : vector<8x512xf32>
    %cst_203 = arith.constant dense<0.000000e+00> : vector<8xf32>
    %1016 = vector.multi_reduction <add>, %1015, %cst_203 [1] : vector<8x512xf32> to vector<8xf32>
    %1017 = vector.shape_cast %1016 : vector<8xf32> to vector<8x1xf32>
    %cst_204 = arith.constant 5.120000e+02 : f32
    %1018 = vector.broadcast %cst_204 : f32 to vector<8x1xf32>
    %1019 = arith.divf %1017, %1018 : vector<8x1xf32>
    %1020 = arith.mulf %1015, %1015 : vector<8x512xf32>
    %cst_205 = arith.constant dense<0.000000e+00> : vector<8xf32>
    %1021 = vector.multi_reduction <add>, %1020, %cst_205 [1] : vector<8x512xf32> to vector<8xf32>
    %1022 = vector.shape_cast %1021 : vector<8xf32> to vector<8x1xf32>
    %cst_206 = arith.constant 5.120000e+02 : f32
    %1023 = vector.broadcast %cst_206 : f32 to vector<8x1xf32>
    %1024 = arith.divf %1022, %1023 : vector<8x1xf32>
    %1025 = arith.mulf %1019, %1019 : vector<8x1xf32>
    %1026 = arith.subf %1024, %1025 : vector<8x1xf32>
    %cst_207 = arith.constant 0.000000e+00 : f32
    %1027 = vector.broadcast %cst_207 : f32 to vector<8x1xf32>
    %1028 = arith.maximumf %1026, %1027 : vector<8x1xf32>
    %cst_208 = arith.constant 9.99999974E-6 : f32
    %1029 = vector.broadcast %cst_208 : f32 to vector<8x1xf32>
    %1030 = arith.addf %1028, %1029 : vector<8x1xf32>
    %1031 = math.rsqrt %1030 : vector<8x1xf32>
    %1032 = arith.mulf %931, %1031 : vector<8x1xf32>
    %1033 = vector.broadcast %1032 : vector<8x1xf32> to vector<8x512xf32>
    %1034 = arith.mulf %1015, %1033 : vector<8x512xf32>
    %1035 = arith.mulf %1019, %1032 : vector<8x1xf32>
    %1036 = arith.subf %932, %1035 : vector<8x1xf32>
    %1037 = vector.broadcast %1036 : vector<8x1xf32> to vector<8x512xf32>
    %1038 = arith.addf %1034, %1037 : vector<8x512xf32>
    %cst_209 = arith.constant dense<0.000000e+00> : vector<4x512xf32>
    %1039 = tpu.matmul %938, %1038, %cst_209 {dimension_numbers = #tpu.dot_dimension_numbers<[1], [0], [0], [1], [0, 0, 1, 1], [], []>} : vector<4x8xf32>, vector<8x512xf32>, vector<4x512xf32> -> vector<4x512xf32>
    %cst_210 = arith.constant dense<0.000000e+00> : vector<4xf32>
    %1040 = vector.multi_reduction <add>, %1039, %cst_210 [1] : vector<4x512xf32> to vector<4xf32>
    %1041 = vector.shape_cast %1040 : vector<4xf32> to vector<4x1xf32>
    %cst_211 = arith.constant 5.120000e+02 : f32
    %1042 = vector.broadcast %cst_211 : f32 to vector<4x1xf32>
    %1043 = arith.divf %1041, %1042 : vector<4x1xf32>
    %1044 = arith.mulf %1039, %1039 : vector<4x512xf32>
    %cst_212 = arith.constant dense<0.000000e+00> : vector<4xf32>
    %1045 = vector.multi_reduction <add>, %1044, %cst_212 [1] : vector<4x512xf32> to vector<4xf32>
    %1046 = vector.shape_cast %1045 : vector<4xf32> to vector<4x1xf32>
    %cst_213 = arith.constant 5.120000e+02 : f32
    %1047 = vector.broadcast %cst_213 : f32 to vector<4x1xf32>
    %1048 = arith.divf %1046, %1047 : vector<4x1xf32>
    %1049 = arith.mulf %1043, %1043 : vector<4x1xf32>
    %1050 = arith.subf %1048, %1049 : vector<4x1xf32>
    %cst_214 = arith.constant 0.000000e+00 : f32
    %1051 = vector.broadcast %cst_214 : f32 to vector<4x1xf32>
    %1052 = arith.maximumf %1050, %1051 : vector<4x1xf32>
    %cst_215 = arith.constant 9.99999974E-6 : f32
    %1053 = vector.broadcast %cst_215 : f32 to vector<4x1xf32>
    %1054 = arith.addf %1052, %1053 : vector<4x1xf32>
    %1055 = math.rsqrt %1054 : vector<4x1xf32>
    %1056 = arith.mulf %940, %1055 : vector<4x1xf32>
    %1057 = vector.broadcast %1056 : vector<4x1xf32> to vector<4x512xf32>
    %1058 = arith.mulf %1039, %1057 : vector<4x512xf32>
    %1059 = arith.mulf %1043, %1056 : vector<4x1xf32>
    %1060 = arith.subf %941, %1059 : vector<4x1xf32>
    %1061 = vector.broadcast %1060 : vector<4x1xf32> to vector<4x512xf32>
    %1062 = arith.addf %1058, %1061 : vector<4x512xf32>
    %cst_216 = arith.constant 0.000000e+00 : f32
    %1063 = vector.broadcast %cst_216 : f32 to vector<4x512xf32>
    %1064 = arith.subf %1063, %1062 : vector<4x512xf32>
    %1065 = math.exp %1064 : vector<4x512xf32>
    %cst_217 = arith.constant 1.000000e+00 : f32
    %1066 = vector.broadcast %cst_217 : f32 to vector<4x512xf32>
    %1067 = arith.addf %1066, %1065 : vector<4x512xf32>
    %1068 = tpu.reciprocal %1067 {approx = true} : vector<4x512xf32> -> vector<4x512xf32>
    %1069 = arith.mulf %1062, %1068 : vector<4x512xf32>
    %cst_218 = arith.constant dense<0.000000e+00> : vector<8x512xf32>
    %1070 = tpu.matmul %937, %925, %cst_218 {dimension_numbers = #tpu.dot_dimension_numbers<[1], [0], [0], [1], [0, 0, 1, 1], [], []>} : vector<8x8xf32>, vector<8x512xf32>, vector<8x512xf32> -> vector<8x512xf32>
    %cst_219 = arith.constant dense<0.000000e+00> : vector<8xf32>
    %1071 = vector.multi_reduction <add>, %1070, %cst_219 [1] : vector<8x512xf32> to vector<8xf32>
    %1072 = vector.shape_cast %1071 : vector<8xf32> to vector<8x1xf32>
    %cst_220 = arith.constant 5.120000e+02 : f32
    %1073 = vector.broadcast %cst_220 : f32 to vector<8x1xf32>
    %1074 = arith.divf %1072, %1073 : vector<8x1xf32>
    %1075 = arith.mulf %1070, %1070 : vector<8x512xf32>
    %cst_221 = arith.constant dense<0.000000e+00> : vector<8xf32>
    %1076 = vector.multi_reduction <add>, %1075, %cst_221 [1] : vector<8x512xf32> to vector<8xf32>
    %1077 = vector.shape_cast %1076 : vector<8xf32> to vector<8x1xf32>
    %cst_222 = arith.constant 5.120000e+02 : f32
    %1078 = vector.broadcast %cst_222 : f32 to vector<8x1xf32>
    %1079 = arith.divf %1077, %1078 : vector<8x1xf32>
    %1080 = arith.mulf %1074, %1074 : vector<8x1xf32>
    %1081 = arith.subf %1079, %1080 : vector<8x1xf32>
    %cst_223 = arith.constant 0.000000e+00 : f32
    %1082 = vector.broadcast %cst_223 : f32 to vector<8x1xf32>
    %1083 = arith.maximumf %1081, %1082 : vector<8x1xf32>
    %cst_224 = arith.constant 9.99999974E-6 : f32
    %1084 = vector.broadcast %cst_224 : f32 to vector<8x1xf32>
    %1085 = arith.addf %1083, %1084 : vector<8x1xf32>
    %1086 = math.rsqrt %1085 : vector<8x1xf32>
    %1087 = arith.mulf %933, %1086 : vector<8x1xf32>
    %1088 = vector.broadcast %1087 : vector<8x1xf32> to vector<8x512xf32>
    %1089 = arith.mulf %1070, %1088 : vector<8x512xf32>
    %1090 = arith.mulf %1074, %1087 : vector<8x1xf32>
    %1091 = arith.subf %934, %1090 : vector<8x1xf32>
    %1092 = vector.broadcast %1091 : vector<8x1xf32> to vector<8x512xf32>
    %1093 = arith.addf %1089, %1092 : vector<8x512xf32>
    %cst_225 = arith.constant 0.000000e+00 : f32
    %1094 = vector.broadcast %cst_225 : f32 to vector<8x512xf32>
    %1095 = arith.subf %1094, %1093 : vector<8x512xf32>
    %1096 = math.exp %1095 : vector<8x512xf32>
    %cst_226 = arith.constant 1.000000e+00 : f32
    %1097 = vector.broadcast %cst_226 : f32 to vector<8x512xf32>
    %1098 = arith.addf %1097, %1096 : vector<8x512xf32>
    %1099 = tpu.reciprocal %1098 {approx = true} : vector<8x512xf32> -> vector<8x512xf32>
    %1100 = arith.mulf %1093, %1099 : vector<8x512xf32>
    %cst_227 = arith.constant 0.000000e+00 : f32
    %1101 = vector.broadcast %cst_227 : f32 to vector<8x512xf32>
    %c17_i32_228 = arith.constant 17 : i32
    %1102 = tpu.dynamic_rotate %1100 by %c17_i32_228 dim 1 : vector<8x512xf32>, i32 -> vector<8x512xf32>
    %1103 = vector.extract_strided_slice %930 {offsets = [0, 0], sizes = [8, 1], strides = [1, 1]} : vector<8x9xf32> to vector<8x1xf32>
    %1104 = vector.broadcast %1103 : vector<8x1xf32> to vector<8x512xf32>
    %1105 = arith.mulf %1104, %1102 : vector<8x512xf32>
    %1106 = vector.extract_strided_slice %0 {offsets = [0, 0], sizes = [1, 512], strides = [1, 1]} : vector<9x512xf32> to vector<1x512xf32>
    %1107 = vector.broadcast %1106 : vector<1x512xf32> to vector<8x512xf32>
    %1108 = arith.mulf %1105, %1107 : vector<8x512xf32>
    %1109 = arith.addf %1101, %1108 : vector<8x512xf32>
    %c16_i32_229 = arith.constant 16 : i32
    %1110 = tpu.dynamic_rotate %1100 by %c16_i32_229 dim 1 : vector<8x512xf32>, i32 -> vector<8x512xf32>
    %1111 = vector.extract_strided_slice %930 {offsets = [0, 1], sizes = [8, 1], strides = [1, 1]} : vector<8x9xf32> to vector<8x1xf32>
    %1112 = vector.broadcast %1111 : vector<8x1xf32> to vector<8x512xf32>
    %1113 = arith.mulf %1112, %1110 : vector<8x512xf32>
    %1114 = vector.extract_strided_slice %0 {offsets = [1, 0], sizes = [1, 512], strides = [1, 1]} : vector<9x512xf32> to vector<1x512xf32>
    %1115 = vector.broadcast %1114 : vector<1x512xf32> to vector<8x512xf32>
    %1116 = arith.mulf %1113, %1115 : vector<8x512xf32>
    %1117 = arith.addf %1109, %1116 : vector<8x512xf32>
    %c15_i32_230 = arith.constant 15 : i32
    %1118 = tpu.dynamic_rotate %1100 by %c15_i32_230 dim 1 : vector<8x512xf32>, i32 -> vector<8x512xf32>
    %1119 = vector.extract_strided_slice %930 {offsets = [0, 2], sizes = [8, 1], strides = [1, 1]} : vector<8x9xf32> to vector<8x1xf32>
    %1120 = vector.broadcast %1119 : vector<8x1xf32> to vector<8x512xf32>
    %1121 = arith.mulf %1120, %1118 : vector<8x512xf32>
    %1122 = vector.extract_strided_slice %0 {offsets = [2, 0], sizes = [1, 512], strides = [1, 1]} : vector<9x512xf32> to vector<1x512xf32>
    %1123 = vector.broadcast %1122 : vector<1x512xf32> to vector<8x512xf32>
    %1124 = arith.mulf %1121, %1123 : vector<8x512xf32>
    %1125 = arith.addf %1117, %1124 : vector<8x512xf32>
    %c1_i32_231 = arith.constant 1 : i32
    %1126 = tpu.dynamic_rotate %1100 by %c1_i32_231 dim 1 : vector<8x512xf32>, i32 -> vector<8x512xf32>
    %1127 = vector.extract_strided_slice %930 {offsets = [0, 3], sizes = [8, 1], strides = [1, 1]} : vector<8x9xf32> to vector<8x1xf32>
    %1128 = vector.broadcast %1127 : vector<8x1xf32> to vector<8x512xf32>
    %1129 = arith.mulf %1128, %1126 : vector<8x512xf32>
    %1130 = vector.extract_strided_slice %0 {offsets = [3, 0], sizes = [1, 512], strides = [1, 1]} : vector<9x512xf32> to vector<1x512xf32>
    %1131 = vector.broadcast %1130 : vector<1x512xf32> to vector<8x512xf32>
    %1132 = arith.mulf %1129, %1131 : vector<8x512xf32>
    %1133 = arith.addf %1125, %1132 : vector<8x512xf32>
    %1134 = vector.extract_strided_slice %930 {offsets = [0, 4], sizes = [8, 1], strides = [1, 1]} : vector<8x9xf32> to vector<8x1xf32>
    %1135 = vector.broadcast %1134 : vector<8x1xf32> to vector<8x512xf32>
    %1136 = arith.mulf %1135, %1100 : vector<8x512xf32>
    %1137 = vector.extract_strided_slice %0 {offsets = [4, 0], sizes = [1, 512], strides = [1, 1]} : vector<9x512xf32> to vector<1x512xf32>
    %1138 = vector.broadcast %1137 : vector<1x512xf32> to vector<8x512xf32>
    %1139 = arith.mulf %1136, %1138 : vector<8x512xf32>
    %1140 = arith.addf %1133, %1139 : vector<8x512xf32>
    %c511_i32_232 = arith.constant 511 : i32
    %1141 = tpu.dynamic_rotate %1100 by %c511_i32_232 dim 1 : vector<8x512xf32>, i32 -> vector<8x512xf32>
    %1142 = vector.extract_strided_slice %930 {offsets = [0, 5], sizes = [8, 1], strides = [1, 1]} : vector<8x9xf32> to vector<8x1xf32>
    %1143 = vector.broadcast %1142 : vector<8x1xf32> to vector<8x512xf32>
    %1144 = arith.mulf %1143, %1141 : vector<8x512xf32>
    %1145 = vector.extract_strided_slice %0 {offsets = [5, 0], sizes = [1, 512], strides = [1, 1]} : vector<9x512xf32> to vector<1x512xf32>
    %1146 = vector.broadcast %1145 : vector<1x512xf32> to vector<8x512xf32>
    %1147 = arith.mulf %1144, %1146 : vector<8x512xf32>
    %1148 = arith.addf %1140, %1147 : vector<8x512xf32>
    %c497_i32_233 = arith.constant 497 : i32
    %1149 = tpu.dynamic_rotate %1100 by %c497_i32_233 dim 1 : vector<8x512xf32>, i32 -> vector<8x512xf32>
    %1150 = vector.extract_strided_slice %930 {offsets = [0, 6], sizes = [8, 1], strides = [1, 1]} : vector<8x9xf32> to vector<8x1xf32>
    %1151 = vector.broadcast %1150 : vector<8x1xf32> to vector<8x512xf32>
    %1152 = arith.mulf %1151, %1149 : vector<8x512xf32>
    %1153 = vector.extract_strided_slice %0 {offsets = [6, 0], sizes = [1, 512], strides = [1, 1]} : vector<9x512xf32> to vector<1x512xf32>
    %1154 = vector.broadcast %1153 : vector<1x512xf32> to vector<8x512xf32>
    %1155 = arith.mulf %1152, %1154 : vector<8x512xf32>
    %1156 = arith.addf %1148, %1155 : vector<8x512xf32>
    %c496_i32_234 = arith.constant 496 : i32
    %1157 = tpu.dynamic_rotate %1100 by %c496_i32_234 dim 1 : vector<8x512xf32>, i32 -> vector<8x512xf32>
    %1158 = vector.extract_strided_slice %930 {offsets = [0, 7], sizes = [8, 1], strides = [1, 1]} : vector<8x9xf32> to vector<8x1xf32>
    %1159 = vector.broadcast %1158 : vector<8x1xf32> to vector<8x512xf32>
    %1160 = arith.mulf %1159, %1157 : vector<8x512xf32>
    %1161 = vector.extract_strided_slice %0 {offsets = [7, 0], sizes = [1, 512], strides = [1, 1]} : vector<9x512xf32> to vector<1x512xf32>
    %1162 = vector.broadcast %1161 : vector<1x512xf32> to vector<8x512xf32>
    %1163 = arith.mulf %1160, %1162 : vector<8x512xf32>
    %1164 = arith.addf %1156, %1163 : vector<8x512xf32>
    %c495_i32_235 = arith.constant 495 : i32
    %1165 = tpu.dynamic_rotate %1100 by %c495_i32_235 dim 1 : vector<8x512xf32>, i32 -> vector<8x512xf32>
    %1166 = vector.extract_strided_slice %930 {offsets = [0, 8], sizes = [8, 1], strides = [1, 1]} : vector<8x9xf32> to vector<8x1xf32>
    %1167 = vector.broadcast %1166 : vector<8x1xf32> to vector<8x512xf32>
    %1168 = arith.mulf %1167, %1165 : vector<8x512xf32>
    %1169 = vector.extract_strided_slice %0 {offsets = [8, 0], sizes = [1, 512], strides = [1, 1]} : vector<9x512xf32> to vector<1x512xf32>
    %1170 = vector.broadcast %1169 : vector<1x512xf32> to vector<8x512xf32>
    %1171 = arith.mulf %1168, %1170 : vector<8x512xf32>
    %1172 = arith.addf %1164, %1171 : vector<8x512xf32>
    %cst_236 = arith.constant dense<0.000000e+00> : vector<8xf32>
    %1173 = vector.multi_reduction <add>, %1172, %cst_236 [1] : vector<8x512xf32> to vector<8xf32>
    %1174 = vector.shape_cast %1173 : vector<8xf32> to vector<8x1xf32>
    %cst_237 = arith.constant 5.120000e+02 : f32
    %1175 = vector.broadcast %cst_237 : f32 to vector<8x1xf32>
    %1176 = arith.divf %1174, %1175 : vector<8x1xf32>
    %1177 = arith.mulf %1172, %1172 : vector<8x512xf32>
    %cst_238 = arith.constant dense<0.000000e+00> : vector<8xf32>
    %1178 = vector.multi_reduction <add>, %1177, %cst_238 [1] : vector<8x512xf32> to vector<8xf32>
    %1179 = vector.shape_cast %1178 : vector<8xf32> to vector<8x1xf32>
    %cst_239 = arith.constant 5.120000e+02 : f32
    %1180 = vector.broadcast %cst_239 : f32 to vector<8x1xf32>
    %1181 = arith.divf %1179, %1180 : vector<8x1xf32>
    %1182 = arith.mulf %1176, %1176 : vector<8x1xf32>
    %1183 = arith.subf %1181, %1182 : vector<8x1xf32>
    %cst_240 = arith.constant 0.000000e+00 : f32
    %1184 = vector.broadcast %cst_240 : f32 to vector<8x1xf32>
    %1185 = arith.maximumf %1183, %1184 : vector<8x1xf32>
    %cst_241 = arith.constant 9.99999974E-6 : f32
    %1186 = vector.broadcast %cst_241 : f32 to vector<8x1xf32>
    %1187 = arith.addf %1185, %1186 : vector<8x1xf32>
    %1188 = math.rsqrt %1187 : vector<8x1xf32>
    %1189 = arith.mulf %935, %1188 : vector<8x1xf32>
    %1190 = vector.broadcast %1189 : vector<8x1xf32> to vector<8x512xf32>
    %1191 = arith.mulf %1172, %1190 : vector<8x512xf32>
    %1192 = arith.mulf %1176, %1189 : vector<8x1xf32>
    %1193 = arith.subf %936, %1192 : vector<8x1xf32>
    %1194 = vector.broadcast %1193 : vector<8x1xf32> to vector<8x512xf32>
    %1195 = arith.addf %1191, %1194 : vector<8x512xf32>
    %cst_242 = arith.constant dense<0.000000e+00> : vector<4x512xf32>
    %1196 = tpu.matmul %939, %1195, %cst_242 {dimension_numbers = #tpu.dot_dimension_numbers<[1], [0], [0], [1], [0, 0, 1, 1], [], []>} : vector<4x8xf32>, vector<8x512xf32>, vector<4x512xf32> -> vector<4x512xf32>
    %cst_243 = arith.constant dense<0.000000e+00> : vector<4xf32>
    %1197 = vector.multi_reduction <add>, %1196, %cst_243 [1] : vector<4x512xf32> to vector<4xf32>
    %1198 = vector.shape_cast %1197 : vector<4xf32> to vector<4x1xf32>
    %cst_244 = arith.constant 5.120000e+02 : f32
    %1199 = vector.broadcast %cst_244 : f32 to vector<4x1xf32>
    %1200 = arith.divf %1198, %1199 : vector<4x1xf32>
    %1201 = arith.mulf %1196, %1196 : vector<4x512xf32>
    %cst_245 = arith.constant dense<0.000000e+00> : vector<4xf32>
    %1202 = vector.multi_reduction <add>, %1201, %cst_245 [1] : vector<4x512xf32> to vector<4xf32>
    %1203 = vector.shape_cast %1202 : vector<4xf32> to vector<4x1xf32>
    %cst_246 = arith.constant 5.120000e+02 : f32
    %1204 = vector.broadcast %cst_246 : f32 to vector<4x1xf32>
    %1205 = arith.divf %1203, %1204 : vector<4x1xf32>
    %1206 = arith.mulf %1200, %1200 : vector<4x1xf32>
    %1207 = arith.subf %1205, %1206 : vector<4x1xf32>
    %cst_247 = arith.constant 0.000000e+00 : f32
    %1208 = vector.broadcast %cst_247 : f32 to vector<4x1xf32>
    %1209 = arith.maximumf %1207, %1208 : vector<4x1xf32>
    %cst_248 = arith.constant 9.99999974E-6 : f32
    %1210 = vector.broadcast %cst_248 : f32 to vector<4x1xf32>
    %1211 = arith.addf %1209, %1210 : vector<4x1xf32>
    %1212 = math.rsqrt %1211 : vector<4x1xf32>
    %1213 = arith.mulf %942, %1212 : vector<4x1xf32>
    %1214 = vector.broadcast %1213 : vector<4x1xf32> to vector<4x512xf32>
    %1215 = arith.mulf %1196, %1214 : vector<4x512xf32>
    %1216 = arith.mulf %1200, %1213 : vector<4x1xf32>
    %1217 = arith.subf %943, %1216 : vector<4x1xf32>
    %1218 = vector.broadcast %1217 : vector<4x1xf32> to vector<4x512xf32>
    %1219 = arith.addf %1215, %1218 : vector<4x512xf32>
    %cst_249 = arith.constant 0.000000e+00 : f32
    %1220 = vector.broadcast %cst_249 : f32 to vector<4x512xf32>
    %1221 = arith.subf %1220, %1219 : vector<4x512xf32>
    %1222 = math.exp %1221 : vector<4x512xf32>
    %cst_250 = arith.constant 1.000000e+00 : f32
    %1223 = vector.broadcast %cst_250 : f32 to vector<4x512xf32>
    %1224 = arith.addf %1223, %1222 : vector<4x512xf32>
    %1225 = tpu.reciprocal %1224 {approx = true} : vector<4x512xf32> -> vector<4x512xf32>
    %1226 = arith.mulf %1219, %1225 : vector<4x512xf32>
    %1227 = vector.extract_strided_slice %1069 {offsets = [0, 0], sizes = [2, 512], strides = [1, 1]} : vector<4x512xf32> to vector<2x512xf32>
    %1228 = vector.extract_strided_slice %1226 {offsets = [0, 0], sizes = [2, 512], strides = [1, 1]} : vector<4x512xf32> to vector<2x512xf32>
    %1229 = tpu.concatenate %1227, %1228 in 0 : vector<2x512xf32>, vector<2x512xf32> -> vector<4x512xf32>
    %1230 = vector.extract_strided_slice %1069 {offsets = [2, 0], sizes = [2, 512], strides = [1, 1]} : vector<4x512xf32> to vector<2x512xf32>
    %1231 = vector.extract_strided_slice %1226 {offsets = [2, 0], sizes = [2, 512], strides = [1, 1]} : vector<4x512xf32> to vector<2x512xf32>
    %1232 = tpu.concatenate %1230, %1231 in 0 : vector<2x512xf32>, vector<2x512xf32> -> vector<4x512xf32>
    %c0_251 = arith.constant 0 : index
    %c0_252 = arith.constant 0 : index
    %1233 = vector.load %arg6[%c0_251, %c0_252] : memref<16x17xf32, #tpu.memory_space<vmem>>, vector<16x17xf32>
    %c0_253 = arith.constant 0 : index
    %c0_254 = arith.constant 0 : index
    %1234 = vector.load %arg7[%c0_253, %c0_254] : memref<8x17xf32, #tpu.memory_space<vmem>>, vector<8x17xf32>
    %1235 = vector.extract_strided_slice %1233 {offsets = [0, 0], sizes = [16, 16], strides = [1, 1]} : vector<16x17xf32> to vector<16x16xf32>
    %c0_255 = arith.constant 0 : index
    %c0_256 = arith.constant 0 : index
    %1236 = vector.load %arg5[%c0_255, %c0_256] : memref<16x2xf32, #tpu.memory_space<vmem>>, vector<16x2xf32>
    %cst_257 = arith.constant dense<0.000000e+00> : vector<16x2xf32>
    %1237 = tpu.matmul %1235, %1236, %cst_257 {dimension_numbers = #tpu.dot_dimension_numbers<[1], [0], [0], [1], [0, 0, 1, 1], [], []>} : vector<16x16xf32>, vector<16x2xf32>, vector<16x2xf32> -> vector<16x2xf32>
    %1238 = vector.extract_strided_slice %1233 {offsets = [0, 16], sizes = [16, 1], strides = [1, 1]} : vector<16x17xf32> to vector<16x1xf32>
    %1239 = vector.broadcast %1238 : vector<16x1xf32> to vector<16x2xf32>
    %1240 = arith.addf %1237, %1239 : vector<16x2xf32>
    %cst_258 = arith.constant 0.000000e+00 : f32
    %1241 = vector.broadcast %cst_258 : f32 to vector<16x2xf32>
    %1242 = arith.subf %1241, %1240 : vector<16x2xf32>
    %1243 = math.exp %1242 : vector<16x2xf32>
    %cst_259 = arith.constant 1.000000e+00 : f32
    %1244 = vector.broadcast %cst_259 : f32 to vector<16x2xf32>
    %1245 = arith.addf %1244, %1243 : vector<16x2xf32>
    %1246 = tpu.reciprocal %1245 {approx = true} : vector<16x2xf32> -> vector<16x2xf32>
    %1247 = arith.mulf %1240, %1246 : vector<16x2xf32>
    %1248 = vector.extract_strided_slice %1234 {offsets = [0, 0], sizes = [8, 16], strides = [1, 1]} : vector<8x17xf32> to vector<8x16xf32>
    %cst_260 = arith.constant dense<0.000000e+00> : vector<8x2xf32>
    %1249 = tpu.matmul %1248, %1247, %cst_260 {dimension_numbers = #tpu.dot_dimension_numbers<[1], [0], [0], [1], [0, 0, 1, 1], [], []>} : vector<8x16xf32>, vector<16x2xf32>, vector<8x2xf32> -> vector<8x2xf32>
    %1250 = vector.extract_strided_slice %1234 {offsets = [0, 16], sizes = [8, 1], strides = [1, 1]} : vector<8x17xf32> to vector<8x1xf32>
    %1251 = vector.broadcast %1250 : vector<8x1xf32> to vector<8x2xf32>
    %1252 = arith.addf %1249, %1251 : vector<8x2xf32>
    %c0_261 = arith.constant 0 : index
    %c0_262 = arith.constant 0 : index
    %1253 = vector.load %arg8[%c0_261, %c0_262] : memref<2x512xf32, #tpu.memory_space<vmem>>, vector<2x512xf32>
    %cst_263 = arith.constant dense<0.000000e+00> : vector<8x512xf32>
    %1254 = tpu.matmul %1252, %1253, %cst_263 {dimension_numbers = #tpu.dot_dimension_numbers<[1], [0], [0], [1], [0, 0, 1, 1], [], []>} : vector<8x2xf32>, vector<2x512xf32>, vector<8x512xf32> -> vector<8x512xf32>
    %1255 = vector.extract_strided_slice %1254 {offsets = [0, 0], sizes = [4, 512], strides = [1, 1]} : vector<8x512xf32> to vector<4x512xf32>
    %1256 = arith.addf %1229, %1255 : vector<4x512xf32>
    %cst_264 = arith.constant 0.000000e+00 : f32
    %1257 = vector.broadcast %cst_264 : f32 to vector<4x512xf32>
    %1258 = arith.subf %1257, %1256 : vector<4x512xf32>
    %1259 = math.exp %1258 : vector<4x512xf32>
    %cst_265 = arith.constant 1.000000e+00 : f32
    %1260 = vector.broadcast %cst_265 : f32 to vector<4x512xf32>
    %1261 = arith.addf %1260, %1259 : vector<4x512xf32>
    %1262 = tpu.reciprocal %1261 {approx = true} : vector<4x512xf32> -> vector<4x512xf32>
    %1263 = arith.mulf %1256, %1262 : vector<4x512xf32>
    %1264 = vector.extract_strided_slice %1254 {offsets = [4, 0], sizes = [4, 512], strides = [1, 1]} : vector<8x512xf32> to vector<4x512xf32>
    %1265 = arith.addf %1232, %1264 : vector<4x512xf32>
    %cst_266 = arith.constant 0.000000e+00 : f32
    %1266 = vector.broadcast %cst_266 : f32 to vector<4x512xf32>
    %1267 = arith.subf %1266, %1265 : vector<4x512xf32>
    %1268 = math.exp %1267 : vector<4x512xf32>
    %cst_267 = arith.constant 1.000000e+00 : f32
    %1269 = vector.broadcast %cst_267 : f32 to vector<4x512xf32>
    %1270 = arith.addf %1269, %1268 : vector<4x512xf32>
    %1271 = tpu.reciprocal %1270 {approx = true} : vector<4x512xf32> -> vector<4x512xf32>
    %1272 = arith.mulf %1265, %1271 : vector<4x512xf32>
    %c0_268 = arith.constant 0 : index
    %c0_269 = arith.constant 0 : index
    %1273 = vector.load %arg21[%c0_268, %c0_269] : memref<4x24xf32, #tpu.memory_space<vmem>>, vector<4x24xf32>
    %c0_270 = arith.constant 0 : index
    %c0_271 = arith.constant 0 : index
    %1274 = vector.load %arg22[%c0_270, %c0_271] : memref<12x4xf32, #tpu.memory_space<vmem>>, vector<12x4xf32>
    %c0_272 = arith.constant 0 : index
    %c0_273 = arith.constant 0 : index
    %1275 = vector.load %arg23[%c0_272, %c0_273] : memref<4x4xf32, #tpu.memory_space<vmem>>, vector<4x4xf32>
    %1276 = vector.extract_strided_slice %1273 {offsets = [0, 0], sizes = [4, 9], strides = [1, 1]} : vector<4x24xf32> to vector<4x9xf32>
    %1277 = vector.extract_strided_slice %1273 {offsets = [0, 9], sizes = [4, 9], strides = [1, 1]} : vector<4x24xf32> to vector<4x9xf32>
    %1278 = vector.extract_strided_slice %1273 {offsets = [0, 18], sizes = [4, 1], strides = [1, 1]} : vector<4x24xf32> to vector<4x1xf32>
    %1279 = vector.extract_strided_slice %1273 {offsets = [0, 19], sizes = [4, 1], strides = [1, 1]} : vector<4x24xf32> to vector<4x1xf32>
    %1280 = vector.extract_strided_slice %1273 {offsets = [0, 20], sizes = [4, 1], strides = [1, 1]} : vector<4x24xf32> to vector<4x1xf32>
    %1281 = vector.extract_strided_slice %1273 {offsets = [0, 21], sizes = [4, 1], strides = [1, 1]} : vector<4x24xf32> to vector<4x1xf32>
    %1282 = vector.extract_strided_slice %1273 {offsets = [0, 22], sizes = [4, 1], strides = [1, 1]} : vector<4x24xf32> to vector<4x1xf32>
    %1283 = vector.extract_strided_slice %1273 {offsets = [0, 23], sizes = [4, 1], strides = [1, 1]} : vector<4x24xf32> to vector<4x1xf32>
    %1284 = vector.extract_strided_slice %1274 {offsets = [0, 0], sizes = [4, 4], strides = [1, 1]} : vector<12x4xf32> to vector<4x4xf32>
    %1285 = vector.extract_strided_slice %1274 {offsets = [4, 0], sizes = [4, 4], strides = [1, 1]} : vector<12x4xf32> to vector<4x4xf32>
    %1286 = vector.extract_strided_slice %1274 {offsets = [8, 0], sizes = [4, 4], strides = [1, 1]} : vector<12x4xf32> to vector<4x4xf32>
    %1287 = vector.extract_strided_slice %1275 {offsets = [0, 0], sizes = [4, 1], strides = [1, 1]} : vector<4x4xf32> to vector<4x1xf32>
    %1288 = vector.extract_strided_slice %1275 {offsets = [0, 1], sizes = [4, 1], strides = [1, 1]} : vector<4x4xf32> to vector<4x1xf32>
    %1289 = vector.extract_strided_slice %1275 {offsets = [0, 2], sizes = [4, 1], strides = [1, 1]} : vector<4x4xf32> to vector<4x1xf32>
    %1290 = vector.extract_strided_slice %1275 {offsets = [0, 3], sizes = [4, 1], strides = [1, 1]} : vector<4x4xf32> to vector<4x1xf32>
    %cst_274 = arith.constant 0.000000e+00 : f32
    %1291 = vector.broadcast %cst_274 : f32 to vector<4x512xf32>
    %c17_i32_275 = arith.constant 17 : i32
    %1292 = tpu.dynamic_rotate %1263 by %c17_i32_275 dim 1 : vector<4x512xf32>, i32 -> vector<4x512xf32>
    %1293 = vector.extract_strided_slice %1276 {offsets = [0, 0], sizes = [4, 1], strides = [1, 1]} : vector<4x9xf32> to vector<4x1xf32>
    %1294 = vector.broadcast %1293 : vector<4x1xf32> to vector<4x512xf32>
    %1295 = arith.mulf %1294, %1292 : vector<4x512xf32>
    %1296 = vector.extract_strided_slice %0 {offsets = [0, 0], sizes = [1, 512], strides = [1, 1]} : vector<9x512xf32> to vector<1x512xf32>
    %1297 = vector.broadcast %1296 : vector<1x512xf32> to vector<4x512xf32>
    %1298 = arith.mulf %1295, %1297 : vector<4x512xf32>
    %1299 = arith.addf %1291, %1298 : vector<4x512xf32>
    %c16_i32_276 = arith.constant 16 : i32
    %1300 = tpu.dynamic_rotate %1263 by %c16_i32_276 dim 1 : vector<4x512xf32>, i32 -> vector<4x512xf32>
    %1301 = vector.extract_strided_slice %1276 {offsets = [0, 1], sizes = [4, 1], strides = [1, 1]} : vector<4x9xf32> to vector<4x1xf32>
    %1302 = vector.broadcast %1301 : vector<4x1xf32> to vector<4x512xf32>
    %1303 = arith.mulf %1302, %1300 : vector<4x512xf32>
    %1304 = vector.extract_strided_slice %0 {offsets = [1, 0], sizes = [1, 512], strides = [1, 1]} : vector<9x512xf32> to vector<1x512xf32>
    %1305 = vector.broadcast %1304 : vector<1x512xf32> to vector<4x512xf32>
    %1306 = arith.mulf %1303, %1305 : vector<4x512xf32>
    %1307 = arith.addf %1299, %1306 : vector<4x512xf32>
    %c15_i32_277 = arith.constant 15 : i32
    %1308 = tpu.dynamic_rotate %1263 by %c15_i32_277 dim 1 : vector<4x512xf32>, i32 -> vector<4x512xf32>
    %1309 = vector.extract_strided_slice %1276 {offsets = [0, 2], sizes = [4, 1], strides = [1, 1]} : vector<4x9xf32> to vector<4x1xf32>
    %1310 = vector.broadcast %1309 : vector<4x1xf32> to vector<4x512xf32>
    %1311 = arith.mulf %1310, %1308 : vector<4x512xf32>
    %1312 = vector.extract_strided_slice %0 {offsets = [2, 0], sizes = [1, 512], strides = [1, 1]} : vector<9x512xf32> to vector<1x512xf32>
    %1313 = vector.broadcast %1312 : vector<1x512xf32> to vector<4x512xf32>
    %1314 = arith.mulf %1311, %1313 : vector<4x512xf32>
    %1315 = arith.addf %1307, %1314 : vector<4x512xf32>
    %c1_i32_278 = arith.constant 1 : i32
    %1316 = tpu.dynamic_rotate %1263 by %c1_i32_278 dim 1 : vector<4x512xf32>, i32 -> vector<4x512xf32>
    %1317 = vector.extract_strided_slice %1276 {offsets = [0, 3], sizes = [4, 1], strides = [1, 1]} : vector<4x9xf32> to vector<4x1xf32>
    %1318 = vector.broadcast %1317 : vector<4x1xf32> to vector<4x512xf32>
    %1319 = arith.mulf %1318, %1316 : vector<4x512xf32>
    %1320 = vector.extract_strided_slice %0 {offsets = [3, 0], sizes = [1, 512], strides = [1, 1]} : vector<9x512xf32> to vector<1x512xf32>
    %1321 = vector.broadcast %1320 : vector<1x512xf32> to vector<4x512xf32>
    %1322 = arith.mulf %1319, %1321 : vector<4x512xf32>
    %1323 = arith.addf %1315, %1322 : vector<4x512xf32>
    %1324 = vector.extract_strided_slice %1276 {offsets = [0, 4], sizes = [4, 1], strides = [1, 1]} : vector<4x9xf32> to vector<4x1xf32>
    %1325 = vector.broadcast %1324 : vector<4x1xf32> to vector<4x512xf32>
    %1326 = arith.mulf %1325, %1263 : vector<4x512xf32>
    %1327 = vector.extract_strided_slice %0 {offsets = [4, 0], sizes = [1, 512], strides = [1, 1]} : vector<9x512xf32> to vector<1x512xf32>
    %1328 = vector.broadcast %1327 : vector<1x512xf32> to vector<4x512xf32>
    %1329 = arith.mulf %1326, %1328 : vector<4x512xf32>
    %1330 = arith.addf %1323, %1329 : vector<4x512xf32>
    %c511_i32_279 = arith.constant 511 : i32
    %1331 = tpu.dynamic_rotate %1263 by %c511_i32_279 dim 1 : vector<4x512xf32>, i32 -> vector<4x512xf32>
    %1332 = vector.extract_strided_slice %1276 {offsets = [0, 5], sizes = [4, 1], strides = [1, 1]} : vector<4x9xf32> to vector<4x1xf32>
    %1333 = vector.broadcast %1332 : vector<4x1xf32> to vector<4x512xf32>
    %1334 = arith.mulf %1333, %1331 : vector<4x512xf32>
    %1335 = vector.extract_strided_slice %0 {offsets = [5, 0], sizes = [1, 512], strides = [1, 1]} : vector<9x512xf32> to vector<1x512xf32>
    %1336 = vector.broadcast %1335 : vector<1x512xf32> to vector<4x512xf32>
    %1337 = arith.mulf %1334, %1336 : vector<4x512xf32>
    %1338 = arith.addf %1330, %1337 : vector<4x512xf32>
    %c497_i32_280 = arith.constant 497 : i32
    %1339 = tpu.dynamic_rotate %1263 by %c497_i32_280 dim 1 : vector<4x512xf32>, i32 -> vector<4x512xf32>
    %1340 = vector.extract_strided_slice %1276 {offsets = [0, 6], sizes = [4, 1], strides = [1, 1]} : vector<4x9xf32> to vector<4x1xf32>
    %1341 = vector.broadcast %1340 : vector<4x1xf32> to vector<4x512xf32>
    %1342 = arith.mulf %1341, %1339 : vector<4x512xf32>
    %1343 = vector.extract_strided_slice %0 {offsets = [6, 0], sizes = [1, 512], strides = [1, 1]} : vector<9x512xf32> to vector<1x512xf32>
    %1344 = vector.broadcast %1343 : vector<1x512xf32> to vector<4x512xf32>
    %1345 = arith.mulf %1342, %1344 : vector<4x512xf32>
    %1346 = arith.addf %1338, %1345 : vector<4x512xf32>
    %c496_i32_281 = arith.constant 496 : i32
    %1347 = tpu.dynamic_rotate %1263 by %c496_i32_281 dim 1 : vector<4x512xf32>, i32 -> vector<4x512xf32>
    %1348 = vector.extract_strided_slice %1276 {offsets = [0, 7], sizes = [4, 1], strides = [1, 1]} : vector<4x9xf32> to vector<4x1xf32>
    %1349 = vector.broadcast %1348 : vector<4x1xf32> to vector<4x512xf32>
    %1350 = arith.mulf %1349, %1347 : vector<4x512xf32>
    %1351 = vector.extract_strided_slice %0 {offsets = [7, 0], sizes = [1, 512], strides = [1, 1]} : vector<9x512xf32> to vector<1x512xf32>
    %1352 = vector.broadcast %1351 : vector<1x512xf32> to vector<4x512xf32>
    %1353 = arith.mulf %1350, %1352 : vector<4x512xf32>
    %1354 = arith.addf %1346, %1353 : vector<4x512xf32>
    %c495_i32_282 = arith.constant 495 : i32
    %1355 = tpu.dynamic_rotate %1263 by %c495_i32_282 dim 1 : vector<4x512xf32>, i32 -> vector<4x512xf32>
    %1356 = vector.extract_strided_slice %1276 {offsets = [0, 8], sizes = [4, 1], strides = [1, 1]} : vector<4x9xf32> to vector<4x1xf32>
    %1357 = vector.broadcast %1356 : vector<4x1xf32> to vector<4x512xf32>
    %1358 = arith.mulf %1357, %1355 : vector<4x512xf32>
    %1359 = vector.extract_strided_slice %0 {offsets = [8, 0], sizes = [1, 512], strides = [1, 1]} : vector<9x512xf32> to vector<1x512xf32>
    %1360 = vector.broadcast %1359 : vector<1x512xf32> to vector<4x512xf32>
    %1361 = arith.mulf %1358, %1360 : vector<4x512xf32>
    %1362 = arith.addf %1354, %1361 : vector<4x512xf32>
    %cst_283 = arith.constant dense<0.000000e+00> : vector<4xf32>
    %1363 = vector.multi_reduction <add>, %1362, %cst_283 [1] : vector<4x512xf32> to vector<4xf32>
    %1364 = vector.shape_cast %1363 : vector<4xf32> to vector<4x1xf32>
    %cst_284 = arith.constant 5.120000e+02 : f32
    %1365 = vector.broadcast %cst_284 : f32 to vector<4x1xf32>
    %1366 = arith.divf %1364, %1365 : vector<4x1xf32>
    %1367 = arith.mulf %1362, %1362 : vector<4x512xf32>
    %cst_285 = arith.constant dense<0.000000e+00> : vector<4xf32>
    %1368 = vector.multi_reduction <add>, %1367, %cst_285 [1] : vector<4x512xf32> to vector<4xf32>
    %1369 = vector.shape_cast %1368 : vector<4xf32> to vector<4x1xf32>
    %cst_286 = arith.constant 5.120000e+02 : f32
    %1370 = vector.broadcast %cst_286 : f32 to vector<4x1xf32>
    %1371 = arith.divf %1369, %1370 : vector<4x1xf32>
    %1372 = arith.mulf %1366, %1366 : vector<4x1xf32>
    %1373 = arith.subf %1371, %1372 : vector<4x1xf32>
    %cst_287 = arith.constant 0.000000e+00 : f32
    %1374 = vector.broadcast %cst_287 : f32 to vector<4x1xf32>
    %1375 = arith.maximumf %1373, %1374 : vector<4x1xf32>
    %cst_288 = arith.constant 9.99999974E-6 : f32
    %1376 = vector.broadcast %cst_288 : f32 to vector<4x1xf32>
    %1377 = arith.addf %1375, %1376 : vector<4x1xf32>
    %1378 = math.rsqrt %1377 : vector<4x1xf32>
    %1379 = arith.mulf %1278, %1378 : vector<4x1xf32>
    %1380 = vector.broadcast %1379 : vector<4x1xf32> to vector<4x512xf32>
    %1381 = arith.mulf %1362, %1380 : vector<4x512xf32>
    %1382 = arith.mulf %1366, %1379 : vector<4x1xf32>
    %1383 = arith.subf %1279, %1382 : vector<4x1xf32>
    %1384 = vector.broadcast %1383 : vector<4x1xf32> to vector<4x512xf32>
    %1385 = arith.addf %1381, %1384 : vector<4x512xf32>
    %cst_289 = arith.constant dense<0.000000e+00> : vector<4x512xf32>
    %1386 = tpu.matmul %1285, %1385, %cst_289 {dimension_numbers = #tpu.dot_dimension_numbers<[1], [0], [0], [1], [0, 0, 1, 1], [], []>} : vector<4x4xf32>, vector<4x512xf32>, vector<4x512xf32> -> vector<4x512xf32>
    %cst_290 = arith.constant dense<0.000000e+00> : vector<4xf32>
    %1387 = vector.multi_reduction <add>, %1386, %cst_290 [1] : vector<4x512xf32> to vector<4xf32>
    %1388 = vector.shape_cast %1387 : vector<4xf32> to vector<4x1xf32>
    %cst_291 = arith.constant 5.120000e+02 : f32
    %1389 = vector.broadcast %cst_291 : f32 to vector<4x1xf32>
    %1390 = arith.divf %1388, %1389 : vector<4x1xf32>
    %1391 = arith.mulf %1386, %1386 : vector<4x512xf32>
    %cst_292 = arith.constant dense<0.000000e+00> : vector<4xf32>
    %1392 = vector.multi_reduction <add>, %1391, %cst_292 [1] : vector<4x512xf32> to vector<4xf32>
    %1393 = vector.shape_cast %1392 : vector<4xf32> to vector<4x1xf32>
    %cst_293 = arith.constant 5.120000e+02 : f32
    %1394 = vector.broadcast %cst_293 : f32 to vector<4x1xf32>
    %1395 = arith.divf %1393, %1394 : vector<4x1xf32>
    %1396 = arith.mulf %1390, %1390 : vector<4x1xf32>
    %1397 = arith.subf %1395, %1396 : vector<4x1xf32>
    %cst_294 = arith.constant 0.000000e+00 : f32
    %1398 = vector.broadcast %cst_294 : f32 to vector<4x1xf32>
    %1399 = arith.maximumf %1397, %1398 : vector<4x1xf32>
    %cst_295 = arith.constant 9.99999974E-6 : f32
    %1400 = vector.broadcast %cst_295 : f32 to vector<4x1xf32>
    %1401 = arith.addf %1399, %1400 : vector<4x1xf32>
    %1402 = math.rsqrt %1401 : vector<4x1xf32>
    %1403 = arith.mulf %1287, %1402 : vector<4x1xf32>
    %1404 = vector.broadcast %1403 : vector<4x1xf32> to vector<4x512xf32>
    %1405 = arith.mulf %1386, %1404 : vector<4x512xf32>
    %1406 = arith.mulf %1390, %1403 : vector<4x1xf32>
    %1407 = arith.subf %1288, %1406 : vector<4x1xf32>
    %1408 = vector.broadcast %1407 : vector<4x1xf32> to vector<4x512xf32>
    %1409 = arith.addf %1405, %1408 : vector<4x512xf32>
    %cst_296 = arith.constant 0.000000e+00 : f32
    %1410 = vector.broadcast %cst_296 : f32 to vector<4x512xf32>
    %1411 = arith.subf %1410, %1409 : vector<4x512xf32>
    %1412 = math.exp %1411 : vector<4x512xf32>
    %cst_297 = arith.constant 1.000000e+00 : f32
    %1413 = vector.broadcast %cst_297 : f32 to vector<4x512xf32>
    %1414 = arith.addf %1413, %1412 : vector<4x512xf32>
    %1415 = tpu.reciprocal %1414 {approx = true} : vector<4x512xf32> -> vector<4x512xf32>
    %1416 = arith.mulf %1409, %1415 : vector<4x512xf32>
    %cst_298 = arith.constant dense<0.000000e+00> : vector<4x512xf32>
    %1417 = tpu.matmul %1284, %1272, %cst_298 {dimension_numbers = #tpu.dot_dimension_numbers<[1], [0], [0], [1], [0, 0, 1, 1], [], []>} : vector<4x4xf32>, vector<4x512xf32>, vector<4x512xf32> -> vector<4x512xf32>
    %cst_299 = arith.constant dense<0.000000e+00> : vector<4xf32>
    %1418 = vector.multi_reduction <add>, %1417, %cst_299 [1] : vector<4x512xf32> to vector<4xf32>
    %1419 = vector.shape_cast %1418 : vector<4xf32> to vector<4x1xf32>
    %cst_300 = arith.constant 5.120000e+02 : f32
    %1420 = vector.broadcast %cst_300 : f32 to vector<4x1xf32>
    %1421 = arith.divf %1419, %1420 : vector<4x1xf32>
    %1422 = arith.mulf %1417, %1417 : vector<4x512xf32>
    %cst_301 = arith.constant dense<0.000000e+00> : vector<4xf32>
    %1423 = vector.multi_reduction <add>, %1422, %cst_301 [1] : vector<4x512xf32> to vector<4xf32>
    %1424 = vector.shape_cast %1423 : vector<4xf32> to vector<4x1xf32>
    %cst_302 = arith.constant 5.120000e+02 : f32
    %1425 = vector.broadcast %cst_302 : f32 to vector<4x1xf32>
    %1426 = arith.divf %1424, %1425 : vector<4x1xf32>
    %1427 = arith.mulf %1421, %1421 : vector<4x1xf32>
    %1428 = arith.subf %1426, %1427 : vector<4x1xf32>
    %cst_303 = arith.constant 0.000000e+00 : f32
    %1429 = vector.broadcast %cst_303 : f32 to vector<4x1xf32>
    %1430 = arith.maximumf %1428, %1429 : vector<4x1xf32>
    %cst_304 = arith.constant 9.99999974E-6 : f32
    %1431 = vector.broadcast %cst_304 : f32 to vector<4x1xf32>
    %1432 = arith.addf %1430, %1431 : vector<4x1xf32>
    %1433 = math.rsqrt %1432 : vector<4x1xf32>
    %1434 = arith.mulf %1280, %1433 : vector<4x1xf32>
    %1435 = vector.broadcast %1434 : vector<4x1xf32> to vector<4x512xf32>
    %1436 = arith.mulf %1417, %1435 : vector<4x512xf32>
    %1437 = arith.mulf %1421, %1434 : vector<4x1xf32>
    %1438 = arith.subf %1281, %1437 : vector<4x1xf32>
    %1439 = vector.broadcast %1438 : vector<4x1xf32> to vector<4x512xf32>
    %1440 = arith.addf %1436, %1439 : vector<4x512xf32>
    %cst_305 = arith.constant 0.000000e+00 : f32
    %1441 = vector.broadcast %cst_305 : f32 to vector<4x512xf32>
    %1442 = arith.subf %1441, %1440 : vector<4x512xf32>
    %1443 = math.exp %1442 : vector<4x512xf32>
    %cst_306 = arith.constant 1.000000e+00 : f32
    %1444 = vector.broadcast %cst_306 : f32 to vector<4x512xf32>
    %1445 = arith.addf %1444, %1443 : vector<4x512xf32>
    %1446 = tpu.reciprocal %1445 {approx = true} : vector<4x512xf32> -> vector<4x512xf32>
    %1447 = arith.mulf %1440, %1446 : vector<4x512xf32>
    %cst_307 = arith.constant 0.000000e+00 : f32
    %1448 = vector.broadcast %cst_307 : f32 to vector<4x512xf32>
    %c17_i32_308 = arith.constant 17 : i32
    %1449 = tpu.dynamic_rotate %1447 by %c17_i32_308 dim 1 : vector<4x512xf32>, i32 -> vector<4x512xf32>
    %1450 = vector.extract_strided_slice %1277 {offsets = [0, 0], sizes = [4, 1], strides = [1, 1]} : vector<4x9xf32> to vector<4x1xf32>
    %1451 = vector.broadcast %1450 : vector<4x1xf32> to vector<4x512xf32>
    %1452 = arith.mulf %1451, %1449 : vector<4x512xf32>
    %1453 = vector.extract_strided_slice %0 {offsets = [0, 0], sizes = [1, 512], strides = [1, 1]} : vector<9x512xf32> to vector<1x512xf32>
    %1454 = vector.broadcast %1453 : vector<1x512xf32> to vector<4x512xf32>
    %1455 = arith.mulf %1452, %1454 : vector<4x512xf32>
    %1456 = arith.addf %1448, %1455 : vector<4x512xf32>
    %c16_i32_309 = arith.constant 16 : i32
    %1457 = tpu.dynamic_rotate %1447 by %c16_i32_309 dim 1 : vector<4x512xf32>, i32 -> vector<4x512xf32>
    %1458 = vector.extract_strided_slice %1277 {offsets = [0, 1], sizes = [4, 1], strides = [1, 1]} : vector<4x9xf32> to vector<4x1xf32>
    %1459 = vector.broadcast %1458 : vector<4x1xf32> to vector<4x512xf32>
    %1460 = arith.mulf %1459, %1457 : vector<4x512xf32>
    %1461 = vector.extract_strided_slice %0 {offsets = [1, 0], sizes = [1, 512], strides = [1, 1]} : vector<9x512xf32> to vector<1x512xf32>
    %1462 = vector.broadcast %1461 : vector<1x512xf32> to vector<4x512xf32>
    %1463 = arith.mulf %1460, %1462 : vector<4x512xf32>
    %1464 = arith.addf %1456, %1463 : vector<4x512xf32>
    %c15_i32_310 = arith.constant 15 : i32
    %1465 = tpu.dynamic_rotate %1447 by %c15_i32_310 dim 1 : vector<4x512xf32>, i32 -> vector<4x512xf32>
    %1466 = vector.extract_strided_slice %1277 {offsets = [0, 2], sizes = [4, 1], strides = [1, 1]} : vector<4x9xf32> to vector<4x1xf32>
    %1467 = vector.broadcast %1466 : vector<4x1xf32> to vector<4x512xf32>
    %1468 = arith.mulf %1467, %1465 : vector<4x512xf32>
    %1469 = vector.extract_strided_slice %0 {offsets = [2, 0], sizes = [1, 512], strides = [1, 1]} : vector<9x512xf32> to vector<1x512xf32>
    %1470 = vector.broadcast %1469 : vector<1x512xf32> to vector<4x512xf32>
    %1471 = arith.mulf %1468, %1470 : vector<4x512xf32>
    %1472 = arith.addf %1464, %1471 : vector<4x512xf32>
    %c1_i32_311 = arith.constant 1 : i32
    %1473 = tpu.dynamic_rotate %1447 by %c1_i32_311 dim 1 : vector<4x512xf32>, i32 -> vector<4x512xf32>
    %1474 = vector.extract_strided_slice %1277 {offsets = [0, 3], sizes = [4, 1], strides = [1, 1]} : vector<4x9xf32> to vector<4x1xf32>
    %1475 = vector.broadcast %1474 : vector<4x1xf32> to vector<4x512xf32>
    %1476 = arith.mulf %1475, %1473 : vector<4x512xf32>
    %1477 = vector.extract_strided_slice %0 {offsets = [3, 0], sizes = [1, 512], strides = [1, 1]} : vector<9x512xf32> to vector<1x512xf32>
    %1478 = vector.broadcast %1477 : vector<1x512xf32> to vector<4x512xf32>
    %1479 = arith.mulf %1476, %1478 : vector<4x512xf32>
    %1480 = arith.addf %1472, %1479 : vector<4x512xf32>
    %1481 = vector.extract_strided_slice %1277 {offsets = [0, 4], sizes = [4, 1], strides = [1, 1]} : vector<4x9xf32> to vector<4x1xf32>
    %1482 = vector.broadcast %1481 : vector<4x1xf32> to vector<4x512xf32>
    %1483 = arith.mulf %1482, %1447 : vector<4x512xf32>
    %1484 = vector.extract_strided_slice %0 {offsets = [4, 0], sizes = [1, 512], strides = [1, 1]} : vector<9x512xf32> to vector<1x512xf32>
    %1485 = vector.broadcast %1484 : vector<1x512xf32> to vector<4x512xf32>
    %1486 = arith.mulf %1483, %1485 : vector<4x512xf32>
    %1487 = arith.addf %1480, %1486 : vector<4x512xf32>
    %c511_i32_312 = arith.constant 511 : i32
    %1488 = tpu.dynamic_rotate %1447 by %c511_i32_312 dim 1 : vector<4x512xf32>, i32 -> vector<4x512xf32>
    %1489 = vector.extract_strided_slice %1277 {offsets = [0, 5], sizes = [4, 1], strides = [1, 1]} : vector<4x9xf32> to vector<4x1xf32>
    %1490 = vector.broadcast %1489 : vector<4x1xf32> to vector<4x512xf32>
    %1491 = arith.mulf %1490, %1488 : vector<4x512xf32>
    %1492 = vector.extract_strided_slice %0 {offsets = [5, 0], sizes = [1, 512], strides = [1, 1]} : vector<9x512xf32> to vector<1x512xf32>
    %1493 = vector.broadcast %1492 : vector<1x512xf32> to vector<4x512xf32>
    %1494 = arith.mulf %1491, %1493 : vector<4x512xf32>
    %1495 = arith.addf %1487, %1494 : vector<4x512xf32>
    %c497_i32_313 = arith.constant 497 : i32
    %1496 = tpu.dynamic_rotate %1447 by %c497_i32_313 dim 1 : vector<4x512xf32>, i32 -> vector<4x512xf32>
    %1497 = vector.extract_strided_slice %1277 {offsets = [0, 6], sizes = [4, 1], strides = [1, 1]} : vector<4x9xf32> to vector<4x1xf32>
    %1498 = vector.broadcast %1497 : vector<4x1xf32> to vector<4x512xf32>
    %1499 = arith.mulf %1498, %1496 : vector<4x512xf32>
    %1500 = vector.extract_strided_slice %0 {offsets = [6, 0], sizes = [1, 512], strides = [1, 1]} : vector<9x512xf32> to vector<1x512xf32>
    %1501 = vector.broadcast %1500 : vector<1x512xf32> to vector<4x512xf32>
    %1502 = arith.mulf %1499, %1501 : vector<4x512xf32>
    %1503 = arith.addf %1495, %1502 : vector<4x512xf32>
    %c496_i32_314 = arith.constant 496 : i32
    %1504 = tpu.dynamic_rotate %1447 by %c496_i32_314 dim 1 : vector<4x512xf32>, i32 -> vector<4x512xf32>
    %1505 = vector.extract_strided_slice %1277 {offsets = [0, 7], sizes = [4, 1], strides = [1, 1]} : vector<4x9xf32> to vector<4x1xf32>
    %1506 = vector.broadcast %1505 : vector<4x1xf32> to vector<4x512xf32>
    %1507 = arith.mulf %1506, %1504 : vector<4x512xf32>
    %1508 = vector.extract_strided_slice %0 {offsets = [7, 0], sizes = [1, 512], strides = [1, 1]} : vector<9x512xf32> to vector<1x512xf32>
    %1509 = vector.broadcast %1508 : vector<1x512xf32> to vector<4x512xf32>
    %1510 = arith.mulf %1507, %1509 : vector<4x512xf32>
    %1511 = arith.addf %1503, %1510 : vector<4x512xf32>
    %c495_i32_315 = arith.constant 495 : i32
    %1512 = tpu.dynamic_rotate %1447 by %c495_i32_315 dim 1 : vector<4x512xf32>, i32 -> vector<4x512xf32>
    %1513 = vector.extract_strided_slice %1277 {offsets = [0, 8], sizes = [4, 1], strides = [1, 1]} : vector<4x9xf32> to vector<4x1xf32>
    %1514 = vector.broadcast %1513 : vector<4x1xf32> to vector<4x512xf32>
    %1515 = arith.mulf %1514, %1512 : vector<4x512xf32>
    %1516 = vector.extract_strided_slice %0 {offsets = [8, 0], sizes = [1, 512], strides = [1, 1]} : vector<9x512xf32> to vector<1x512xf32>
    %1517 = vector.broadcast %1516 : vector<1x512xf32> to vector<4x512xf32>
    %1518 = arith.mulf %1515, %1517 : vector<4x512xf32>
    %1519 = arith.addf %1511, %1518 : vector<4x512xf32>
    %cst_316 = arith.constant dense<0.000000e+00> : vector<4xf32>
    %1520 = vector.multi_reduction <add>, %1519, %cst_316 [1] : vector<4x512xf32> to vector<4xf32>
    %1521 = vector.shape_cast %1520 : vector<4xf32> to vector<4x1xf32>
    %cst_317 = arith.constant 5.120000e+02 : f32
    %1522 = vector.broadcast %cst_317 : f32 to vector<4x1xf32>
    %1523 = arith.divf %1521, %1522 : vector<4x1xf32>
    %1524 = arith.mulf %1519, %1519 : vector<4x512xf32>
    %cst_318 = arith.constant dense<0.000000e+00> : vector<4xf32>
    %1525 = vector.multi_reduction <add>, %1524, %cst_318 [1] : vector<4x512xf32> to vector<4xf32>
    %1526 = vector.shape_cast %1525 : vector<4xf32> to vector<4x1xf32>
    %cst_319 = arith.constant 5.120000e+02 : f32
    %1527 = vector.broadcast %cst_319 : f32 to vector<4x1xf32>
    %1528 = arith.divf %1526, %1527 : vector<4x1xf32>
    %1529 = arith.mulf %1523, %1523 : vector<4x1xf32>
    %1530 = arith.subf %1528, %1529 : vector<4x1xf32>
    %cst_320 = arith.constant 0.000000e+00 : f32
    %1531 = vector.broadcast %cst_320 : f32 to vector<4x1xf32>
    %1532 = arith.maximumf %1530, %1531 : vector<4x1xf32>
    %cst_321 = arith.constant 9.99999974E-6 : f32
    %1533 = vector.broadcast %cst_321 : f32 to vector<4x1xf32>
    %1534 = arith.addf %1532, %1533 : vector<4x1xf32>
    %1535 = math.rsqrt %1534 : vector<4x1xf32>
    %1536 = arith.mulf %1282, %1535 : vector<4x1xf32>
    %1537 = vector.broadcast %1536 : vector<4x1xf32> to vector<4x512xf32>
    %1538 = arith.mulf %1519, %1537 : vector<4x512xf32>
    %1539 = arith.mulf %1523, %1536 : vector<4x1xf32>
    %1540 = arith.subf %1283, %1539 : vector<4x1xf32>
    %1541 = vector.broadcast %1540 : vector<4x1xf32> to vector<4x512xf32>
    %1542 = arith.addf %1538, %1541 : vector<4x512xf32>
    %cst_322 = arith.constant dense<0.000000e+00> : vector<4x512xf32>
    %1543 = tpu.matmul %1286, %1542, %cst_322 {dimension_numbers = #tpu.dot_dimension_numbers<[1], [0], [0], [1], [0, 0, 1, 1], [], []>} : vector<4x4xf32>, vector<4x512xf32>, vector<4x512xf32> -> vector<4x512xf32>
    %cst_323 = arith.constant dense<0.000000e+00> : vector<4xf32>
    %1544 = vector.multi_reduction <add>, %1543, %cst_323 [1] : vector<4x512xf32> to vector<4xf32>
    %1545 = vector.shape_cast %1544 : vector<4xf32> to vector<4x1xf32>
    %cst_324 = arith.constant 5.120000e+02 : f32
    %1546 = vector.broadcast %cst_324 : f32 to vector<4x1xf32>
    %1547 = arith.divf %1545, %1546 : vector<4x1xf32>
    %1548 = arith.mulf %1543, %1543 : vector<4x512xf32>
    %cst_325 = arith.constant dense<0.000000e+00> : vector<4xf32>
    %1549 = vector.multi_reduction <add>, %1548, %cst_325 [1] : vector<4x512xf32> to vector<4xf32>
    %1550 = vector.shape_cast %1549 : vector<4xf32> to vector<4x1xf32>
    %cst_326 = arith.constant 5.120000e+02 : f32
    %1551 = vector.broadcast %cst_326 : f32 to vector<4x1xf32>
    %1552 = arith.divf %1550, %1551 : vector<4x1xf32>
    %1553 = arith.mulf %1547, %1547 : vector<4x1xf32>
    %1554 = arith.subf %1552, %1553 : vector<4x1xf32>
    %cst_327 = arith.constant 0.000000e+00 : f32
    %1555 = vector.broadcast %cst_327 : f32 to vector<4x1xf32>
    %1556 = arith.maximumf %1554, %1555 : vector<4x1xf32>
    %cst_328 = arith.constant 9.99999974E-6 : f32
    %1557 = vector.broadcast %cst_328 : f32 to vector<4x1xf32>
    %1558 = arith.addf %1556, %1557 : vector<4x1xf32>
    %1559 = math.rsqrt %1558 : vector<4x1xf32>
    %1560 = arith.mulf %1289, %1559 : vector<4x1xf32>
    %1561 = vector.broadcast %1560 : vector<4x1xf32> to vector<4x512xf32>
    %1562 = arith.mulf %1543, %1561 : vector<4x512xf32>
    %1563 = arith.mulf %1547, %1560 : vector<4x1xf32>
    %1564 = arith.subf %1290, %1563 : vector<4x1xf32>
    %1565 = vector.broadcast %1564 : vector<4x1xf32> to vector<4x512xf32>
    %1566 = arith.addf %1562, %1565 : vector<4x512xf32>
    %cst_329 = arith.constant 0.000000e+00 : f32
    %1567 = vector.broadcast %cst_329 : f32 to vector<4x512xf32>
    %1568 = arith.subf %1567, %1566 : vector<4x512xf32>
    %1569 = math.exp %1568 : vector<4x512xf32>
    %cst_330 = arith.constant 1.000000e+00 : f32
    %1570 = vector.broadcast %cst_330 : f32 to vector<4x512xf32>
    %1571 = arith.addf %1570, %1569 : vector<4x512xf32>
    %1572 = tpu.reciprocal %1571 {approx = true} : vector<4x512xf32> -> vector<4x512xf32>
    %1573 = arith.mulf %1566, %1572 : vector<4x512xf32>
    %1574 = tpu.concatenate %1416, %1573 in 0 : vector<4x512xf32>, vector<4x512xf32> -> vector<8x512xf32>
    %c0_331 = arith.constant 0 : index
    %c0_332 = arith.constant 0 : index
    %1575 = vector.load %arg24[%c0_331, %c0_332] : memref<8x512xf32, #tpu.memory_space<vmem>>, vector<8x512xf32>
    tpu.vector_store %arg24[%c0_331, %c0_332], %1574 {strides = array<i32>} : memref<8x512xf32, #tpu.memory_space<vmem>>, vector<8x512xf32>,
    return
  }
  func.func @transform_0(%arg0: i32) -> (i32, i32) {
    %c0_i32 = arith.constant 0 : i32
    %c0_i32_0 = arith.constant 0 : i32
    %c0_i32_1 = arith.constant 0 : i32
    return %c0_i32, %c0_i32_0 : i32, i32
  }
  func.func @transform_1(%arg0: i32) -> (i32, i32) {
    %c0_i32 = arith.constant 0 : i32
    %c0_i32_0 = arith.constant 0 : i32
    %c0_i32_1 = arith.constant 0 : i32
    return %c0_i32, %c0_i32_0 : i32, i32
  }
  func.func @transform_2(%arg0: i32) -> (i32, i32) {
    %c0_i32 = arith.constant 0 : i32
    %c0_i32_0 = arith.constant 0 : i32
    %c0_i32_1 = arith.constant 0 : i32
    return %c0_i32, %c0_i32_0 : i32, i32
  }
  func.func @transform_3(%arg0: i32) -> (i32, i32) {
    %c0_i32 = arith.constant 0 : i32
    %c0_i32_0 = arith.constant 0 : i32
    %c0_i32_1 = arith.constant 0 : i32
    return %c0_i32, %c0_i32_0 : i32, i32
  }
  func.func @transform_4(%arg0: i32) -> (i32, i32) {
    %c0_i32 = arith.constant 0 : i32
    %c0_i32_0 = arith.constant 0 : i32
    %c0_i32_1 = arith.constant 0 : i32
    return %c0_i32, %c0_i32_0 : i32, i32
  }
  func.func @transform_5(%arg0: i32) -> (i32, i32) {
    %c0_i32 = arith.constant 0 : i32
    %c0_i32_0 = arith.constant 0 : i32
    %c0_i32_1 = arith.constant 0 : i32
    return %c0_i32, %c0_i32_0 : i32, i32
  }
  func.func @transform_6(%arg0: i32) -> (i32, i32) {
    %c0_i32 = arith.constant 0 : i32
    %c0_i32_0 = arith.constant 0 : i32
    %c0_i32_1 = arith.constant 0 : i32
    return %c0_i32, %c0_i32_0 : i32, i32
  }
  func.func @transform_7(%arg0: i32) -> (i32, i32) {
    %c0_i32 = arith.constant 0 : i32
    %c0_i32_0 = arith.constant 0 : i32
    %c0_i32_1 = arith.constant 0 : i32
    return %c0_i32, %c0_i32_0 : i32, i32
  }
  func.func @transform_8(%arg0: i32) -> (i32, i32) {
    %c0_i32 = arith.constant 0 : i32
    %c0_i32_0 = arith.constant 0 : i32
    %c0_i32_1 = arith.constant 0 : i32
    return %c0_i32, %c0_i32_0 : i32, i32
  }
  func.func @transform_9(%arg0: i32) -> (i32, i32) {
    %c0_i32 = arith.constant 0 : i32
    %c0_i32_0 = arith.constant 0 : i32
    %c0_i32_1 = arith.constant 0 : i32
    return %c0_i32, %c0_i32_0 : i32, i32
  }
  func.func @transform_10(%arg0: i32) -> (i32, i32) {
    %c0_i32 = arith.constant 0 : i32
    %c0_i32_0 = arith.constant 0 : i32
    %c0_i32_1 = arith.constant 0 : i32
    return %c0_i32, %c0_i32_0 : i32, i32
  }
  func.func @transform_11(%arg0: i32) -> (i32, i32) {
    %c0_i32 = arith.constant 0 : i32
    %c0_i32_0 = arith.constant 0 : i32
    %c0_i32_1 = arith.constant 0 : i32
    return %c0_i32, %c0_i32_0 : i32, i32
  }
  func.func @transform_12(%arg0: i32) -> (i32, i32) {
    %c0_i32 = arith.constant 0 : i32
    %c0_i32_0 = arith.constant 0 : i32
    %c0_i32_1 = arith.constant 0 : i32
    return %c0_i32, %c0_i32_0 : i32, i32
  }
  func.func @transform_13(%arg0: i32) -> (i32, i32) {
    %c0_i32 = arith.constant 0 : i32
    %c0_i32_0 = arith.constant 0 : i32
    %c0_i32_1 = arith.constant 0 : i32
    return %c0_i32, %c0_i32_0 : i32, i32
  }
  func.func @transform_14(%arg0: i32) -> (i32, i32) {
    %c0_i32 = arith.constant 0 : i32
    %c0_i32_0 = arith.constant 0 : i32
    %c0_i32_1 = arith.constant 0 : i32
    return %c0_i32, %c0_i32_0 : i32, i32
  }
  func.func @transform_15(%arg0: i32) -> (i32, i32) {
    %c0_i32 = arith.constant 0 : i32
    %c0_i32_0 = arith.constant 0 : i32
    %c0_i32_1 = arith.constant 0 : i32
    return %c0_i32, %c0_i32_0 : i32, i32
  }
  func.func @transform_16(%arg0: i32) -> (i32, i32) {
    %c0_i32 = arith.constant 0 : i32
    %c0_i32_0 = arith.constant 0 : i32
    %c0_i32_1 = arith.constant 0 : i32
    return %c0_i32, %c0_i32_0 : i32, i32
  }
  func.func @transform_17(%arg0: i32) -> (i32, i32) {
    %c0_i32 = arith.constant 0 : i32
    %c0_i32_0 = arith.constant 0 : i32
    %c0_i32_1 = arith.constant 0 : i32
    return %c0_i32, %c0_i32_0 : i32, i32
  }
  func.func @transform_18(%arg0: i32) -> (i32, i32) {
    %c0_i32 = arith.constant 0 : i32
    %c0_i32_0 = arith.constant 0 : i32
    %c0_i32_1 = arith.constant 0 : i32
    return %c0_i32, %c0_i32_0 : i32, i32
  }
  func.func @transform_19(%arg0: i32) -> (i32, i32) {
    %c0_i32 = arith.constant 0 : i32
    %c0_i32_0 = arith.constant 0 : i32
    %c0_i32_1 = arith.constant 0 : i32
    return %c0_i32, %c0_i32_0 : i32, i32
  }
  func.func @transform_20(%arg0: i32) -> (i32, i32) {
    %c0_i32 = arith.constant 0 : i32
    %c0_i32_0 = arith.constant 0 : i32
    %c0_i32_1 = arith.constant 0 : i32
    return %c0_i32, %c0_i32_0 : i32, i32
  }
  func.func @transform_21(%arg0: i32) -> (i32, i32) {
    %c0_i32 = arith.constant 0 : i32
    %c0_i32_0 = arith.constant 0 : i32
    %c0_i32_1 = arith.constant 0 : i32
    return %c0_i32, %c0_i32_0 : i32, i32
  }
  func.func @transform_22(%arg0: i32) -> (i32, i32) {
    %c0_i32 = arith.constant 0 : i32
    %c0_i32_0 = arith.constant 0 : i32
    %c0_i32_1 = arith.constant 0 : i32
    return %c0_i32, %c0_i32_0 : i32, i32
  }
  func.func @transform_23(%arg0: i32) -> (i32, i32) {
    %c0_i32 = arith.constant 0 : i32
    %c0_i32_0 = arith.constant 0 : i32
    %c0_i32_1 = arith.constant 0 : i32
    return %c0_i32, %c0_i32_0 : i32, i32
  }
}

</mosaic_0001>

<bundles_post_ra>
// kernel: decoder_block_forward.1
= control target key start
LH: loop header
LB: loop body
LE: loop exit
PB: predicated region body
PF: predicated region fallthrough
CT: control target
= control target key end

     0   :  { %v12014_v3 = vmov 0.0   ;;  %v12010_v8 = vmov 2   ;;  %v12008_v9 = vmov 0   ;;  %s12101_s27 = smov 16   ;;  %s12038_s28 = smov 15   ;;  %vm740_vm8 = vcmask 64512   ;;  %s11960_s1 = inlined_call_operand.vmem [shape: f32[128,512], index: 1, kind: input, shape index: {}]   ;;  %s11961_s8 = inlined_call_operand.vmem [shape: f32[8,24], index: 8, kind: input, shape index: {}]   ;;  %s11962_s0 = inlined_call_operand.vmem [shape: f32[8,128], index: 0, kind: input, shape index: {}]   ;;  %s11963_s3 = inlined_call_operand.vmem [shape: f32[9,512], index: 3, kind: input, shape index: {}]   ;;  %s11964_s9 = inlined_call_operand.vmem [shape: f32[24,8], index: 9, kind: input, shape index: {}]   ;;  %s11965_s2 = inlined_call_operand.vmem [shape: f32[8,512], index: 2, kind: input, shape index: {}]   ;;  %s11966_s10 = inlined_call_operand.vmem [shape: f32[8,4], index: 10, kind: input, shape index: {}]   ;;  %s11967_s11 = inlined_call_operand.vmem [shape: f32[8,24], index: 11, kind: input, shape index: {}]   ;;  %s11968_s12 = inlined_call_operand.vmem [shape: f32[24,8], index: 12, kind: input, shape index: {}]   ;;  %s11969_s13 = inlined_call_operand.vmem [shape: f32[8,4], index: 13, kind: input, shape index: {}]   ;;  %s11970_s14 = inlined_call_operand.vmem [shape: f32[8,24], index: 14, kind: input, shape index: {}]   ;;  %s11971_s15 = inlined_call_operand.vmem [shape: f32[24,8], index: 15, kind: input, shape index: {}]   ;;  %s11972_s16 = inlined_call_operand.vmem [shape: f32[8,4], index: 16, kind: input, shape index: {}]   ;;  %s11973_s17 = inlined_call_operand.vmem [shape: f32[8,24], index: 17, kind: input, shape index: {}]   ;;  %s11974_s18 = inlined_call_operand.vmem [shape: f32[16,8], index: 18, kind: input, shape index: {}]   ;;  %s11975_s5 = inlined_call_operand.vmem [shape: f32[16,17], index: 5, kind: input, shape index: {}]   ;;  %s11976_s6 = inlined_call_operand.vmem [shape: f32[8,17], index: 6, kind: input, shape index: {}]   ;;  %s11977_s4 = inlined_call_operand.vmem [shape: f32[16,2], index: 4, kind: input, shape index: {}]   ;;  %s11978_s7 = inlined_call_operand.vmem [shape: f32[2,512], index: 7, kind: input, shape index: {}]   ;;  %s11979_s19 = inlined_call_operand.vmem [shape: f32[4,4], index: 19, kind: input, shape index: {}]   ;;  %s11980_s20 = inlined_call_operand.vmem [shape: f32[4,24], index: 20, kind: input, shape index: {}]   ;;  %s11981_s21 = inlined_call_operand.vmem [shape: f32[12,4], index: 21, kind: input, shape index: {}]   ;;  %s11982_s22 = inlined_call_operand.vmem [shape: f32[4,4], index: 22, kind: input, shape index: {}]   ;;  %s11983_s23 = inlined_call_operand.vmem [shape: f32[8,512], index: 23, kind: output, shape index: {}]  }
   0x1   :  { %12210 = sst [smem:[#allocation40_spill]] %s11960_s1  ;;  %211 = vmatprep.mubr.f32.mxu0 %v12014_v3  ;;  %282 = vmatprep.mubr.f32.mxu1 %v12014_v3  ;;  %s7925_s29 = smov 1   ;;  %vm1684_vm9 = vcmask 1043456   ;;  %vm5501_vm10 = vcmask 130048   ;;  %vm7946_vm11 = vmmov 0   ;;  %vm5465_vm12 = vcmask 1041408  }
   0x2   :  { %12211 = sst [smem:[#allocation41_spill]] %s11961_s8  ;;  %s12218_s24 = sld [smem:[#allocation40_spill]]  ;;  %7419 = vset.pattern.permute.xlu1 %v12010_v8  ;;  %7417 = vset.pattern.permute.xlu0 %v12008_v9  ;;  %vm5689_vm13 = vcmask 15360   ;;  %vm6212_vm14 = vcmask 31744  }
   0x3   :  { %12212 = sst [smem:[#allocation42_spill]] %s11962_s0  ;;  %s12036_s1 = smov 127  }
   0x4   :  { %12213 = sst [smem:[#allocation43_spill]] %s11963_s3  ;;  %s12219_s3 = sld [smem:[#allocation41_spill]] }
   0x5   :  { %12214 = sst [smem:[#allocation44_spill]] %s11964_s9  ;;  %s11994_s9 = smov 113  }
   0x6   :  { %12215 = sst [smem:[#allocation45_spill]] %s11965_s2  ;;  %s11992_s30 = smov 112  }
   0x7   :  { %12216 = sst [smem:[#allocation46_spill]] %s11966_s10  ;;  %s11990_s25 = smov 111  }
   0x8   :  { %12217 = sst [smem:[#allocation47_spill]] %s11967_s11  ;;  %v84_v0 = vld [vmem:[%s12218_s24 + $0x8] sm:$0xff]  ;;  %v83_v2 = vld [vmem:[%s12218_s24] sm:$0xff]  ;;  %v86_v6 = vld [vmem:[%s12218_s24 + $0x18] sm:$0xff]  ;;  %s7923_s11 = smov 17  }
   0x9   :  { %v88_v1 = vld [vmem:[%s12218_s24 + $0x28] sm:$0xff]  ;;  %v87_v5 = vld [vmem:[%s12218_s24 + $0x20] sm:$0xff]  ;;  %v90_v7 = vld [vmem:[%s12218_s24 + $0x38] sm:$0xff]  ;;  %s12224_s26 = sld [smem:[#allocation43_spill]]  ;;  %s12266_s0 = sld [smem:[#allocation45_spill]] }
   0xa   :  { %v7310_v4 = vpack.c.bf16 %v88_v1, %v84_v0  ;;  %v7312_v10 = vpack.c.bf16 %v87_v5, %v83_v2  ;;  %v7342_v11 = vpack.c.bf16 %v90_v7, %v86_v6  ;;  %v92_v12 = vld [vmem:[%s12218_s24 + $0x48] sm:$0xff]  ;;  %v85_v14 = vld [vmem:[%s12218_s24 + $0x10] sm:$0xff]  ;;  %v91_v17 = vld [vmem:[%s12218_s24 + $0x40] sm:$0xff]  ;;  %s12278_s10 = smov 112   ;;  %s12309_s2 = sld [smem:[#allocation47_spill]] }
   0xb   :  { %v96_v13 = vld [vmem:[%s12218_s24 + $0x68] sm:$0xff]  ;;  %v89_v16 = vld [vmem:[%s12218_s24 + $0x30] sm:$0xff]  ;;  %v95_v18 = vld [vmem:[%s12218_s24 + $0x60] sm:$0xff] }
   0xc   :  { %7311 = vmatprep.subr.bf16.mxu0 %v7310_v4  ;;  %v7314_v15 = vpack.c.bf16 %v96_v13, %v92_v12  ;;  %7343 = vmatprep.subr.bf16.mxu1 %v7342_v11  ;;  %v7344_v19 = vpack.c.bf16 %v89_v16, %v85_v14  ;;  %v7316_v20 = vpack.c.bf16 %v95_v18, %v91_v17  ;;  %v94_v21 = vld [vmem:[%s12218_s24 + $0x58] sm:$0xff]  ;;  %v100_v23 = vld [vmem:[%s12218_s24 + $0x88] sm:$0xff]  ;;  %v93_v26 = vld [vmem:[%s12218_s24 + $0x50] sm:$0xff] }
   0xd   :  { %7313 = vmatpush1.bf16.msra.mxu0 %v7312_v10  ;;  %v98_v22 = vld [vmem:[%s12218_s24 + $0x78] sm:$0xff]  ;;  %v104_v25 = vld [vmem:[%s12218_s24 + $0xa8] sm:$0xff]  ;;  %v97_v27 = vld [vmem:[%s12218_s24 + $0x70] sm:$0xff] }
   0xe   :  { %7315 = vmatprep.subr.bf16.mxu0 %v7314_v15  ;;  %v7346_v24 = vpack.c.bf16 %v98_v22, %v94_v21  ;;  %7345 = vmatpush1.bf16.msra.mxu1 %v7344_v19  ;;  %v7318_v28 = vpack.c.bf16 %v104_v25, %v100_v23  ;;  %v7348_v29 = vpack.c.bf16 %v97_v27, %v93_v26  ;;  %v99_v30 = vld [vmem:[%s12218_s24 + $0x80] sm:$0xff]  ;;  %v102_v32 = vld [vmem:[%s12218_s24 + $0x98] sm:$0xff]  ;;  %v108_v34 = vld [vmem:[%s12218_s24 + $0xc8] sm:$0xff] }
   0xf   :  { %v103_v31 = vld [vmem:[%s12218_s24 + $0xa0] sm:$0xff]  ;;  %v106_v33 = vld [vmem:[%s12218_s24 + $0xb8] sm:$0xff]  ;;  %v112_v35 = vld [vmem:[%s12218_s24 + $0xe8] sm:$0xff] }
  0x10   :  { %7347 = vmatprep.subr.bf16.mxu1 %v7346_v24  ;;  %v7320_v36 = vpack.c.bf16 %v103_v31, %v99_v30  ;;  %v7350_v37 = vpack.c.bf16 %v106_v33, %v102_v32  ;;  %v101_v38 = vld [vmem:[%s12218_s24 + $0x90] sm:$0xff]  ;;  %v107_v40 = vld [vmem:[%s12218_s24 + $0xc0] sm:$0xff]  ;;  %v7322_v41 = vpack.c.bf16 %v112_v35, %v108_v34  ;;  %v110_v43 = vld [vmem:[%s12218_s24 + $0xd8] sm:$0xff]  ;;  %v12012_v34 = vmov 3  }
  0x11   :  { %7317 = vmatpush1.bf16.msra.mxu0 %v7316_v20  ;;  %v105_v39 = vld [vmem:[%s12218_s24 + $0xb0] sm:$0xff]  ;;  %v111_v42 = vld [vmem:[%s12218_s24 + $0xe0] sm:$0xff]  ;;  %v114_v44 = vld [vmem:[%s12218_s24 + $0xf8] sm:$0xff] }
  0x12   :  { %7319 = vmatprep.subr.bf16.mxu0 %v7318_v28  ;;  %7349 = vmatpush1.bf16.msra.mxu1 %v7348_v29  ;;  %v7352_v45 = vpack.c.bf16 %v105_v39, %v101_v38  ;;  %v116_v46 = vld [vmem:[%s12218_s24 + $0x108] sm:$0xff]  ;;  %v7354_v48 = vpack.c.bf16 %v114_v44, %v110_v43  ;;  %v109_v49 = vld [vmem:[%s12218_s24 + $0xd0] sm:$0xff]  ;;  %v7324_v51 = vpack.c.bf16 %v111_v42, %v107_v40  ;;  %v118_v52 = vld [vmem:[%s12218_s24 + $0x118] sm:$0xff]  ;;  %v12006_v39 = vmov 1  }
  0x13   :  { %v120_v47 = vld [vmem:[%s12218_s24 + $0x128] sm:$0xff]  ;;  %7351 = vmatprep.subr.bf16.mxu1 %v7350_v37  ;;  %v113_v50 = vld [vmem:[%s12218_s24 + $0xf0] sm:$0xff]  ;;  %v122_v53 = vld [vmem:[%s12218_s24 + $0x138] sm:$0xff]  ;;  %v12002_v43 = vmov 6   ;;  %v12000_v44 = vmov 5  }
  0x14   :  { %v7326_v54 = vpack.c.bf16 %v120_v47, %v116_v46  ;;  %v115_v55 = vld [vmem:[%s12218_s24 + $0x100] sm:$0xff]  ;;  %v7356_v57 = vpack.c.bf16 %v113_v50, %v109_v49  ;;  %v124_v58 = vld [vmem:[%s12218_s24 + $0x148] sm:$0xff]  ;;  %v7358_v60 = vpack.c.bf16 %v122_v53, %v118_v52  ;;  %v117_v61 = vld [vmem:[%s12218_s24 + $0x110] sm:$0xff]  ;;  %v11996_v46 = vmov 8  }
  0x15   :  { %7321 = vmatpush1.bf16.msra.mxu0 %v7320_v36  ;;  %v119_v56 = vld [vmem:[%s12218_s24 + $0x120] sm:$0xff]  ;;  %v128_v59 = vld [vmem:[%s12218_s24 + $0x168] sm:$0xff]  ;;  %v121_v62 = vld [vmem:[%s12218_s24 + $0x130] sm:$0xff] }
  0x16   :  { %7323 = vmatprep.subr.bf16.mxu0 %v7322_v41  ;;  %7353 = vmatpush1.bf16.msra.mxu1 %v7352_v45  ;;  %v7328_v63 = vpack.c.bf16 %v119_v56, %v115_v55  ;;  %v126_v0 = vld [vmem:[%s12218_s24 + $0x158] sm:$0xff]  ;;  %v7330_v2 = vpack.c.bf16 %v128_v59, %v124_v58  ;;  %v123_v4 = vld [vmem:[%s12218_s24 + $0x140] sm:$0xff]  ;;  %v7360_v6 = vpack.c.bf16 %v121_v62, %v117_v61  ;;  %v132_v7 = vld [vmem:[%s12218_s24 + $0x188] sm:$0xff]  ;;  %v12004_v41 = vmov 4  }
  0x17   :  { %7355 = vmatprep.subr.bf16.mxu1 %v7354_v48  ;;  %v130_v1 = vld [vmem:[%s12218_s24 + $0x178] sm:$0xff]  ;;  %v127_v5 = vld [vmem:[%s12218_s24 + $0x160] sm:$0xff]  ;;  %v136_v10 = vld [vmem:[%s12218_s24 + $0x1a8] sm:$0xff]  ;;  %v11998_v45 = vmov 7  }
  0x18   :  { %v7362_v11 = vpack.c.bf16 %v130_v1, %v126_v0  ;;  %v125_v12 = vld [vmem:[%s12218_s24 + $0x150] sm:$0xff]  ;;  %v7332_v14 = vpack.c.bf16 %v127_v5, %v123_v4  ;;  %v134_v15 = vld [vmem:[%s12218_s24 + $0x198] sm:$0xff]  ;;  %v7334_v17 = vpack.c.bf16 %v136_v10, %v132_v7  ;;  %v131_v18 = vld [vmem:[%s12218_s24 + $0x180] sm:$0xff] }
  0x19   :  { %7325 = vmatpush1.bf16.msra.mxu0 %v7324_v51  ;;  %v129_v13 = vld [vmem:[%s12218_s24 + $0x170] sm:$0xff]  ;;  %v138_v16 = vld [vmem:[%s12218_s24 + $0x1b8] sm:$0xff]  ;;  %v135_v19 = vld [vmem:[%s12218_s24 + $0x1a0] sm:$0xff] }
  0x1a   :  { %7327 = vmatprep.subr.bf16.mxu0 %v7326_v54  ;;  %7357 = vmatpush1.bf16.msra.mxu1 %v7356_v57  ;;  %v8237_v20 = vld [vmem:[%s12219_s3] sm:$0xff]  ;;  %v7364_v21 = vpack.c.bf16 %v129_v13, %v125_v12  ;;  %v140_v22 = vld [vmem:[%s12218_s24 + $0x1c8] sm:$0xff]  ;;  %v7366_v24 = vpack.c.bf16 %v138_v16, %v134_v15  ;;  %v133_v25 = vld [vmem:[%s12218_s24 + $0x190] sm:$0xff]  ;;  %v7336_v27 = vpack.c.bf16 %v135_v19, %v131_v18 }
  0x1b   :  { %7359 = vmatprep.subr.bf16.mxu1 %v7358_v60  ;;  %12220 = vst [vmem:[#allocation2_spill] sm:$0xff] %v8237_v20  ;;  %v144_v23 = vld [vmem:[%s12218_s24 + $0x1e8] sm:$0xff]  ;;  %405 = vperm.xlu1 %7419, %v8237_v20   ;;  %v137_v26 = vld [vmem:[%s12218_s24 + $0x1b0] sm:$0xff]  ;;  %v142_v28 = vld [vmem:[%s12218_s24 + $0x1d8] sm:$0xff] }
  0x1c   :  { %315 = vperm.xlu0 %7417, %v8237_v20   ;;  %v146_v29 = vld [vmem:[%s12218_s24 + $0x1f8] sm:$0xff]  ;;  %v7338_v30 = vpack.c.bf16 %v144_v23, %v140_v22  ;;  %v139_v31 = vld [vmem:[%s12218_s24 + $0x1c0] sm:$0xff]  ;;  %v7368_v33 = vpack.c.bf16 %v137_v26, %v133_v25  ;;  %v141_v36 = vld [vmem:[%s12218_s24 + $0x1d0] sm:$0xff] }
  0x1d   :  { %7329 = vmatpush1.bf16.msra.mxu0 %v7328_v63  ;;  %v143_v32 = vld [vmem:[%s12218_s24 + $0x1e0] sm:$0xff]  ;;  %v7370_v35 = vpack.c.bf16 %v146_v29, %v142_v28  ;;  %v145_v37 = vld [vmem:[%s12218_s24 + $0x1f0] sm:$0xff]  ;;  %s12221_s24 = sld [smem:[#allocation42_spill]]  ;;  %v8409_v13 = vld [vmem:[%s12224_s26 + $0x8] sm:$0xff] }
  0x1e   :  { %7331 = vmatprep.subr.bf16.mxu0 %v7330_v2  ;;  %7361 = vmatpush1.bf16.msra.mxu1 %v7360_v6  ;;  %v7340_v38 = vpack.c.bf16 %v143_v32, %v139_v31  ;;  %v7372_v40 = vpack.c.bf16 %v145_v37, %v141_v36  ;;  %v306_v2 = vlaneseq  ;;  %v8419_v15 = vld [vmem:[%s12224_s26 + $0x18] sm:$0xff] }
  0x1f   :  { %7363 = vmatprep.subr.bf16.mxu1 %v7362_v11  ;;  %7420 = vset.pattern.permute.xlu1 %v12012_v34  ;;  %v8403_v11 = vld [vmem:[%s12224_s26] sm:$0xff] }
  0x20   :  { %450 = vperm.xlu1 %7420, %v8237_v20   ;;  %7418 = vset.pattern.permute.xlu0 %v12006_v39  ;;  %v8394_v6 = vshrl.u32 %v306_v2, 7 }
  0x21   :  { %7333 = vmatpush1.bf16.msra.mxu0 %v7332_v14  ;;  %360 = vperm.xlu0 %7418, %v8237_v20   ;;  %v8414_v14 = vld [vmem:[%s12224_s26 + $0x10] sm:$0xff] }
  0x22   :  { %7335 = vmatprep.subr.bf16.mxu0 %v7334_v17  ;;  %7365 = vmatpush1.bf16.msra.mxu1 %v7364_v21  ;;  %12223 = vst [vmem:[#allocation4_spill] sm:$0xff] %v8394_v6  ;;  %v491_v12 = vsub.s32 4, %v8394_v6  ;;  %v324_v29 = vsub.s32 0, %v8394_v6  ;;  %v369_v31 = vsub.s32 1, %v8394_v6  ;;  %v414_v32 = vsub.s32 2, %v8394_v6 }
  0x23   :  { %7367 = vmatprep.subr.bf16.mxu1 %v7366_v24  ;;  %v82_v42 = vld [vmem:[%s12221_s24] sm:$0xff]  ;;  %s12279_s24 = smov 111  }
  0x24   :  { %7421 = vset.pattern.permute.xlu1 %v12004_v41  ;;  %v8426_v18 = vrot.slane %v8414_v14, %v491_v12  ;;  %v8429_v19 = vrot.slane %v8419_v15, %v491_v12  ;;  %v8432_v21 = vrot.slane %v8403_v11, %v491_v12  ;;  %v8435_v22 = vrot.slane %v8409_v13, %v491_v12 }
  0x25   :  { %7337 = vmatpush1.bf16.msra.mxu0 %v7336_v27  ;;  %482 = vperm.xlu1 %7421, %v8237_v20   ;;  %v8441_v27 = vand.u32 127, %v306_v2  ;;  %v8480_v2 = vrot.slane %v8403_v11, %v324_v29  ;;  %v8483_v12 = vrot.slane %v8419_v15, %v324_v29 }
  0x26   :  { %7339 = vmatprep.subr.bf16.mxu0 %v7338_v30  ;;  %7369 = vmatpush1.bf16.msra.mxu1 %v7368_v33  ;;  %12225 = vst [vmem:[#allocation5_spill] sm:$0xff] %v8426_v18  ;;  %12226 = vst [vmem:[#allocation6_spill] sm:$0xff] %v8429_v19 }
  0x27   :  { %7371 = vmatprep.subr.bf16.mxu1 %v7370_v35  ;;  %7423 = vset.pattern.permute.xlu0 %v12002_v43  ;;  %12227 = vst [vmem:[#allocation7_spill] sm:$0xff] %v8432_v21  ;;  %12228 = vst [vmem:[#allocation8_spill] sm:$0xff] %v8435_v22  ;;  %vm308_vm0 = vcmp.lt.s32.totalorder %v8441_v27, 17  ;;  %vm354_vm1 = vcmp.lt.s32.totalorder %v8441_v27, 16  ;;  %vm399_vm2 = vcmp.lt.s32.totalorder %v8441_v27, 15  ;;  %vm444_vm3 = vcmp.lt.s32.totalorder %v8441_v27, 1 }
  0x28   :  { %572 = vperm.xlu0 %7423, %v8237_v20   ;;  %12232 = vst [vmem:[#allocation12_spill] sm:$0xff] %v8480_v2  ;;  %12233 = vst [vmem:[#allocation13_spill] sm:$0xff] %v8483_v12  ;;  %v8509_v43 = vrot.slane %v8414_v14, %v414_v32  ;;  %vm521_vm4 = vcmp.lt.s32.totalorder %v8441_v27, 127  ;;  %vm566_vm5 = vcmp.lt.s32.totalorder %v8441_v27, 113  ;;  %vm611_vm6 = vcmp.lt.s32.totalorder %v8441_v27, 112 }
  0x29   :  { %7341 = vmatpush1.bf16.msra.mxu0 %v7340_v38  ;;  %7422 = vset.pattern.permute.xlu1 %v12000_v44  ;;  %v459_v38 = vsub.s32 3, %v8394_v6  ;;  %v8506_v44 = vrot.slane %v8409_v13, %v414_v32  ;;  %vm656_vm7 = vcmp.lt.s32.totalorder %v8441_v27, 111 }
  0x2a   :  { %7373 = vmatpush1.bf16.msra.mxu1 %v7372_v40  ;;  %527 = vperm.xlu1 %7422, %v8237_v20   ;;  %v8465_v40 = vrot.slane %v8409_v13, %v324_v29 }
  0x2b   :  { %v8518_v8 = vrot.slane %v8403_v11, %v459_v38  ;;  %v8521_v34 = vrot.slane %v8419_v15, %v459_v38 }
  0x2c   :  { %212 = vmatmul.mubr.f32.vlgmr.msra.gmra.mrb[0].mxu0 %v82_v42  ;;  %12231 = vst [vmem:[#allocation11_spill] sm:$0xff] %v8465_v40 }
  0x2d   :  { %808 = vmatprep.mubr.f32.mxu0 %v12014_v3  ;;  %283 = vmatmul.mubr.f32.vlgmr.msra.gmra.mrb[0].mxu1 %v82_v42  ;;  %v8468_v42 = vrot.slane %v8414_v14, %v324_v29  ;;  %v8503_v29 = vrot.slane %v8414_v14, %v459_v38  ;;  %12239 = vst [vmem:[#allocation19_spill] sm:$0xff] %v8518_v8  ;;  %12240 = vst [vmem:[#allocation20_spill] sm:$0xff] %v8521_v34 }
  0x2e   :  { %879 = vmatprep.mubr.f32.mxu1 %v12014_v3  ;;  %7424 = vset.pattern.permute.xlu1 %v11998_v45  ;;  %v8500_v45 = vrot.slane %v8409_v13, %v459_v38 }
  0x2f   :  { %617 = vperm.xlu1 %7424, %v8237_v20  }
  0x30   :  { %12236 = vst [vmem:[#allocation16_spill] sm:$0xff] %v8500_v45 }
  0x33   :  { %7425 = vset.pattern.permute.xlu1 %v11996_v46  ;;  %v581_v46 = vsub.s32 6, %v8394_v6 }
  0x34   :  { %662 = vperm.xlu1 %7425, %v8237_v20  }
  0x35   :  { %v8539_v38 = vrot.slane %v8409_v13, %v581_v46 }
  0x37   :  { %12242 = vst [vmem:[#allocation22_spill] sm:$0xff] %v8539_v38 }
  0x9a   :  { %v8362_v51 = vpop.permute.xlu1 %405 }
  0x9b   :  { %v8366_v54 = vpop.permute.xlu0 %315 }
  0x9f   :  { %v8364_v52 = vpop.permute.xlu1 %450 }
  0xa0   :  { %v8370_v56 = vpop.permute.xlu0 %360 }
  0xa4   :  { %v483_v53 = vpop.permute.xlu1 %482 }
  0xa7   :  { %v8376_v59 = vpop.permute.xlu0 %572 }
  0xa9   :  { %v8368_v55 = vpop.permute.xlu1 %527 }
  0xae   :  { %v8372_v57 = vpop.permute.xlu1 %617 }
  0xb3   :  { %v8374_v58 = vpop.permute.xlu1 %662 }
  0xb4   :  { %12222 = vst [vmem:[#allocation3_spill] sm:$0xff] %v8374_v58 }
  0xff   :  { %v8290_v47 = vpop.f32.mrb[0].mxu0 }
 0x100   :  { %346 = vrot.lane.b32.xlu0 %v8290_v47, %s12101_s27  ;;  %298 = vrot.lane.b32.xlu1 %v8290_v47, %s7923_s11  ;;  %v8296_v48 = vpop.f32.mrb[1].mxu0  ;;  %v8298_v49 = vpop.f32.mrb[0].mxu1  ;;  %v485_v25 = vmul.f32 %v483_v53, %v8290_v47 }
 0x101   :  { %v8300_v50 = vpop.f32.mrb[1].mxu1  ;;  %v487_v23 = vmul.f32 %v483_v53, %v8298_v49  ;;  %v486_v26 = vmul.f32 %v483_v53, %v8296_v48 }
 0x102   :  { %v488_v24 = vmul.f32 %v483_v53, %v8300_v50  ;;  %v8455_v36 = vmul.f32 %v8432_v21, %v485_v25  ;;  %v8477_v53 = vrot.slane %v8419_v15, %v369_v31  ;;  %v8493_v25 = vrot.slane %v8409_v13, %v369_v31 }
 0x103   :  { %v8449_v33 = vmul.f32 %v8426_v18, %v487_v23  ;;  %v8458_v37 = vmul.f32 %v8435_v22, %v486_v26  ;;  %v8486_v23 = vrot.slane %v8403_v11, %v414_v32  ;;  %v8496_v26 = vrot.slane %v8414_v14, %v369_v31 }
 0x104   :  { %302 = vrot.lane.b32.xlu0 %v8298_v49, %s7923_s11  ;;  %350 = vrot.lane.b32.xlu1 %v8298_v49, %s12101_s27  ;;  %v8452_v35 = vmul.f32 %v8429_v19, %v488_v24  ;;  %v8490_v24 = vrot.slane %v8419_v15, %v414_v32  ;;  %12235 = vst [vmem:[#allocation15_spill] sm:$0xff] %v8493_v25 }
 0x105   :  { %12229 = vst [vmem:[#allocation9_spill] sm:$0xff] %v8449_v33  ;;  %12234 = vst [vmem:[#allocation14_spill] sm:$0xff] %v8486_v23  ;;  %v8536_v22 = vrot.slane %v8403_v11, %v581_v46  ;;  %v8561_v33 = vrot.slane %v8414_v14, %v581_v46 }
 0x106   :  { %12230 = vst [vmem:[#allocation10_spill] sm:$0xff] %v8452_v35 }
 0x107   :  { %12241 = vst [vmem:[#allocation21_spill] sm:$0xff] %v8536_v22  ;;  %12245 = vst [vmem:[#allocation25_spill] sm:$0xff] %v8561_v33 }
 0x108   :  { %391 = vrot.lane.b32.xlu0 %v8290_v47, %s12038_s28  ;;  %436 = vrot.lane.b32.xlu1 %v8290_v47, %s7925_s29 }
 0x10c   :  { %395 = vrot.lane.b32.xlu0 %v8298_v49, %s12038_s28  ;;  %440 = vrot.lane.b32.xlu1 %v8298_v49, %s7925_s29 }
 0x110   :  { %513 = vrot.lane.b32.xlu0 %v8290_v47, %s12036_s1  ;;  %558 = vrot.lane.b32.xlu1 %v8290_v47, %s11994_s9 }
 0x114   :  { %517 = vrot.lane.b32.xlu0 %v8298_v49, %s12036_s1  ;;  %562 = vrot.lane.b32.xlu1 %v8298_v49, %s11994_s9 }
 0x118   :  { %603 = vrot.lane.b32.xlu1 %v8290_v47, %s11992_s30  ;;  %300 = vrot.lane.b32.xlu0 %v8296_v48, %s7923_s11 }
 0x11c   :  { %607 = vrot.lane.b32.xlu1 %v8298_v49, %s11992_s30  ;;  %352 = vrot.lane.b32.xlu0 %v8300_v50, %s12101_s27 }
 0x120   :  { %304 = vrot.lane.b32.xlu1 %v8300_v50, %s7923_s11  ;;  %397 = vrot.lane.b32.xlu0 %v8300_v50, %s12038_s28 }
 0x124   :  { %348 = vrot.lane.b32.xlu1 %v8296_v48, %s12101_s27  ;;  %438 = vrot.lane.b32.xlu0 %v8296_v48, %s7925_s29 }
 0x128   :  { %393 = vrot.lane.b32.xlu1 %v8296_v48, %s12038_s28  ;;  %519 = vrot.lane.b32.xlu0 %v8300_v50, %s12036_s1  ;;  %s12275_s28 = smov 15  }
 0x12c   :  { %442 = vrot.lane.b32.xlu1 %v8300_v50, %s7925_s29  ;;  %560 = vrot.lane.b32.xlu0 %v8296_v48, %s11994_s9 }
 0x130   :  { %515 = vrot.lane.b32.xlu1 %v8296_v48, %s12036_s1  ;;  %564 = vrot.lane.b32.xlu0 %v8300_v50, %s11994_s9  ;;  %s12276_s1 = smov 127   ;;  %s12306_s9 = sld [smem:[#allocation46_spill]] }
 0x134   :  { %648 = vrot.lane.b32.xlu1 %v8290_v47, %s11990_s25  ;;  %605 = vrot.lane.b32.xlu0 %v8296_v48, %s11992_s30 }
 0x138   :  { %652 = vrot.lane.b32.xlu1 %v8298_v49, %s11990_s25  ;;  %609 = vrot.lane.b32.xlu0 %v8300_v50, %s11992_s30 }
 0x13c   :  { %650 = vrot.lane.b32.xlu0 %v8296_v48, %s11990_s25  ;;  %v8473_v48 = vrot.slane %v8403_v11, %v369_v31 }
 0x140   :  { %654 = vrot.lane.b32.xlu0 %v8300_v50, %s11990_s25  ;;  %v536_v50 = vsub.s32 5, %v8394_v6  ;;  %s12265_s25 = sld [smem:[#allocation44_spill]] }
 0x142   :  { %v8512_v9 = vrot.slane %v8414_v14, %v536_v50  ;;  %v8515_v31 = vrot.slane %v8419_v15, %v536_v50  ;;  %v8542_v21 = vrot.slane %v8403_v11, %v536_v50  ;;  %v8545_v20 = vrot.slane %v8409_v13, %v536_v50 }
 0x144   :  { %12237 = vst [vmem:[#allocation17_spill] sm:$0xff] %v8512_v9  ;;  %12238 = vst [vmem:[#allocation18_spill] sm:$0xff] %v8515_v31  ;;  %v8553_v31 = vsub.s32 7, %v8394_v6 }
 0x145   :  { %12243 = vst [vmem:[#allocation23_spill] sm:$0xff] %v8542_v21  ;;  %12244 = vst [vmem:[#allocation24_spill] sm:$0xff] %v8545_v20 }
 0x172   :  { %v8378_v60 = vpop.permute.xlu0 %346  ;;  %v8380_v61 = vpop.permute.xlu1 %298 }
 0x176   :  { %v8382_v62 = vpop.permute.xlu0 %302  ;;  %v8384_v63 = vpop.permute.xlu1 %350 }
 0x17a   :  { %v8386_v0 = vpop.permute.xlu0 %391  ;;  %v8388_v1 = vpop.permute.xlu1 %436 }
 0x17e   :  { %v8390_v4 = vpop.permute.xlu0 %395  ;;  %v8392_v5 = vpop.permute.xlu1 %440 }
 0x182   :  { %v8396_v7 = vpop.permute.xlu0 %513  ;;  %v8398_v10 = vpop.permute.xlu1 %558 }
 0x186   :  { %v8421_v16 = vpop.permute.xlu0 %517  ;;  %v8423_v17 = vpop.permute.xlu1 %562 }
 0x18a   :  { %v8443_v28 = vpop.permute.xlu1 %603  ;;  %v301_v30 = vpop.permute.xlu0 %300 }
 0x18b   :  { %v310_v38 = vsel %vm308_vm0, %v301_v30, %v8382_v62 }
 0x18e   :  { %v8470_v47 = vpop.permute.xlu1 %607  ;;  %v353_v49 = vpop.permute.xlu0 %352 }
 0x18f   :  { %v355_v3 = vsel %vm354_vm1, %v8384_v63, %v353_v49  ;;  %v358_v32 = vsel %vm354_vm1, %v353_v49, %v8378_v60  ;;  %v311_v49 = vsel %vm308_vm0, %v8380_v61, %v301_v30 }
 0x190   :  { %v363_v9 = vmul.f32 %v8370_v56, %v358_v32  ;;  %v366_v50 = vmul.f32 %v8370_v56, %v355_v3  ;;  %v8574_v3 = vrot.slane %v8419_v15, %v581_v46  ;;  %v8588_v46 = vrot.slane %v8403_v11, %v8553_v31 }
 0x192   :  { %v305_v41 = vpop.permute.xlu1 %304  ;;  %v398_v39 = vpop.permute.xlu0 %397  ;;  %12246 = vst [vmem:[#allocation26_spill] sm:$0xff] %v8574_v3  ;;  %12247 = vst [vmem:[#allocation27_spill] sm:$0xff] %v8588_v46 }
 0x193   :  { %v309_v19 = vsel %vm308_vm0, %v8382_v62, %v305_v41  ;;  %v312_v18 = vsel %vm308_vm0, %v305_v41, %v8380_v61  ;;  %v403_v61 = vsel %vm399_vm2, %v398_v39, %v8386_v0  ;;  %v400_v30 = vsel %vm399_vm2, %v8390_v4, %v398_v39 }
 0x194   :  { %v318_v58 = vmul.f32 %v8366_v54, %v312_v18  ;;  %v321_v41 = vmul.f32 %v8366_v54, %v309_v19  ;;  %v319_v19 = vmul.f32 %v8366_v54, %v311_v49  ;;  %v386_v49 = vmul.f32 %v8477_v53, %v366_v50 }
 0x195   :  { %v408_v39 = vmul.f32 %v8362_v51, %v403_v61 }
 0x196   :  { %v349_v22 = vpop.permute.xlu1 %348  ;;  %v439_v35 = vpop.permute.xlu0 %438  ;;  %v338_v33 = vmul.f32 %v8480_v2, %v318_v58 }
 0x197   :  { %v356_v18 = vsel %vm354_vm1, %v349_v22, %v8384_v63  ;;  %v357_v62 = vsel %vm354_vm1, %v8378_v60, %v349_v22  ;;  %v320_v63 = vmul.f32 %v8366_v54, %v310_v38  ;;  %v341_v60 = vmul.f32 %v8483_v12, %v321_v41 }
 0x198   :  { %v364_v32 = vmul.f32 %v8370_v56, %v357_v62  ;;  %v365_v6 = vmul.f32 %v8370_v56, %v356_v18  ;;  %v383_v22 = vmul.f32 %v8473_v48, %v363_v9  ;;  %v411_v54 = vmul.f32 %v8362_v51, %v400_v30 }
 0x199   :  { %v447_v58 = vsel %vm444_vm3, %v8388_v1, %v439_v35  ;;  %v339_v38 = vmul.f32 %v8465_v40, %v319_v19  ;;  %v340_v18 = vmul.f32 %v8468_v42, %v320_v63 }
 0x19a   :  { %v384_v62 = vmul.f32 %v8493_v25, %v364_v32  ;;  %v394_v3 = vpop.permute.xlu1 %393  ;;  %v520_v56 = vpop.permute.xlu0 %519  ;;  %v385_v41 = vmul.f32 %v8496_v26, %v365_v6  ;;  %v387_v30 = vadd.f32 %v383_v22, %v338_v33  ;;  %v390_v32 = vadd.f32 %v386_v49, %v341_v60 }
 0x19b   :  { %v401_v11 = vsel %vm399_vm2, %v394_v3, %v8390_v4  ;;  %v402_v9 = vsel %vm399_vm2, %v8386_v0, %v394_v3  ;;  %v446_v4 = vsel %vm444_vm3, %v439_v35, %v8392_v5  ;;  %v454_v0 = vmul.f32 %v8364_v52, %v447_v58 }
 0x19c   :  { %v409_v50 = vmul.f32 %v8362_v51, %v402_v9  ;;  %v410_v61 = vmul.f32 %v8362_v51, %v401_v11  ;;  %v388_v25 = vadd.f32 %v384_v62, %v339_v38  ;;  %v428_v51 = vmul.f32 %v8486_v23, %v408_v39 }
 0x19d   :  { %v431_v11 = vmul.f32 %v8490_v24, %v411_v54  ;;  %v389_v63 = vadd.f32 %v385_v41, %v340_v18  ;;  %v455_v60 = vmul.f32 %v8364_v52, %v446_v4  ;;  %v8627_v49 = vrot.slane %v8409_v13, %v8553_v31 }
 0x19e   :  { %v429_v3 = vmul.f32 %v8506_v44, %v409_v50  ;;  %v430_v6 = vmul.f32 %v8509_v43, %v410_v61  ;;  %v443_v19 = vpop.permute.xlu1 %442  ;;  %v561_v9 = vpop.permute.xlu0 %560  ;;  %v432_v62 = vadd.f32 %v428_v51, %v387_v30 }
 0x19f   :  { %v445_v33 = vsel %vm444_vm3, %v8392_v5, %v443_v19  ;;  %v448_v35 = vsel %vm444_vm3, %v443_v19, %v8388_v1  ;;  %12248 = vst [vmem:[#allocation28_spill] sm:$0xff] %v8627_v49  ;;  %v435_v39 = vadd.f32 %v431_v11, %v390_v32  ;;  %v474_v5 = vmul.f32 %v8500_v45, %v454_v0 }
 0x1a0   :  { %v433_v22 = vadd.f32 %v429_v3, %v388_v25  ;;  %v453_v54 = vmul.f32 %v8364_v52, %v448_v35  ;;  %v456_v58 = vmul.f32 %v8364_v52, %v445_v33  ;;  %v434_v38 = vadd.f32 %v430_v6, %v389_v63 }
 0x1a1   :  { %v522_v1 = vsel %vm521_vm4, %v8421_v16, %v520_v56  ;;  %v525_v25 = vsel %vm521_vm4, %v520_v56, %v8396_v7  ;;  %v568_v52 = vsel %vm566_vm5, %v561_v9, %v8423_v17  ;;  %v569_v18 = vsel %vm566_vm5, %v8398_v10, %v561_v9 }
 0x1a2   :  { %v516_v41 = vpop.permute.xlu1 %515  ;;  %v565_v13 = vpop.permute.xlu0 %564  ;;  %v473_v50 = vmul.f32 %v8518_v8, %v453_v54  ;;  %v476_v61 = vmul.f32 %v8521_v34, %v456_v58  ;;  %v475_v30 = vmul.f32 %v8503_v29, %v455_v60  ;;  %v478_v32 = vadd.f32 %v474_v5, %v433_v22 }
 0x1a3   :  { %v523_v56 = vsel %vm521_vm4, %v516_v41, %v8421_v16  ;;  %v524_v4 = vsel %vm521_vm4, %v8396_v7, %v516_v41  ;;  %v532_v0 = vmul.f32 %v8368_v55, %v522_v1  ;;  %v533_v51 = vmul.f32 %v8368_v55, %v525_v25 }
 0x1a4   :  { %v477_v3 = vadd.f32 %v473_v50, %v432_v62  ;;  %v530_v6 = vmul.f32 %v8368_v55, %v524_v4  ;;  %v531_v19 = vmul.f32 %v8368_v55, %v523_v56  ;;  %v479_v9 = vadd.f32 %v475_v30, %v434_v38  ;;  %v12255_v56 = vld [vmem:[#allocation18_spill] sm:$0xff] }
 0x1a5   :  { %v575_v11 = vmul.f32 %v8376_v59, %v569_v18  ;;  %v576_v33 = vmul.f32 %v8376_v59, %v568_v52  ;;  %v480_v16 = vadd.f32 %v476_v61, %v435_v39  ;;  %v510_v22 = vadd.f32 %v8458_v37, %v478_v32  ;;  %v12252_v61 = vld [vmem:[#allocation10_spill] sm:$0xff]  ;;  %v12253_v18 = vld [vmem:[#allocation21_spill] sm:$0xff] }
 0x1a6   :  { %v606_v35 = vpop.permute.xlu0 %605  ;;  %v509_v63 = vadd.f32 %v8455_v36, %v477_v3  ;;  %v550_v7 = vmul.f32 %v8542_v21, %v530_v6  ;;  %v551_v60 = vmul.f32 %v8545_v20, %v531_v19  ;;  %v567_v62 = vsel %vm566_vm5, %v8423_v17, %v565_v13  ;;  %v649_v54 = vpop.permute.xlu1 %648  ;;  %v12251_v17 = vld [vmem:[#allocation9_spill] sm:$0xff]  ;;  %v12256_v3 = vld [vmem:[#allocation22_spill] sm:$0xff] }
 0x1a7   :  { %v613_v55 = vsel %vm611_vm6, %v606_v35, %v8470_v47  ;;  %v614_v39 = vsel %vm611_vm6, %v8443_v28, %v606_v35  ;;  %v8676_v5 = vrot.slane %v8414_v14, %v8553_v31  ;;  %v8680_v37 = vrot.slane %v8419_v15, %v8553_v31  ;;  %v12254_v31 = vld [vmem:[#allocation17_spill] sm:$0xff] }
 0x1a8   :  { %v554_v36 = vadd.f32 %v550_v7, %v509_v63  ;;  %v620_v58 = vmul.f32 %v8372_v57, %v614_v39  ;;  %v511_v38 = vadd.f32 %v12251_v17, %v479_v9  ;;  %v555_v1 = vadd.f32 %v551_v60, %v510_v22  ;;  %v12257_v7 = vld [vmem:[#allocation25_spill] sm:$0xff] }
 0x1a9   :  { %12249 = vst [vmem:[#allocation29_spill] sm:$0xff] %v8676_v5  ;;  %12250 = vst [vmem:[#allocation30_spill] sm:$0xff] %v8680_v37  ;;  %v570_v25 = vsel %vm566_vm5, %v565_v13, %v8398_v10  ;;  %v621_v41 = vmul.f32 %v8372_v57, %v613_v55  ;;  %v512_v52 = vadd.f32 %v12252_v61, %v480_v16 }
 0x1aa   :  { %v610_v50 = vpop.permute.xlu0 %609  ;;  %v595_v30 = vmul.f32 %v12253_v18, %v575_v11  ;;  %v577_v14 = vmul.f32 %v8376_v59, %v567_v62  ;;  %v552_v32 = vmul.f32 %v12254_v31, %v532_v0  ;;  %v553_v4 = vmul.f32 %v12255_v56, %v533_v51  ;;  %v653_v0 = vpop.permute.xlu1 %652  ;;  %v12260_v62 = vld [vmem:[#allocation3_spill] sm:$0xff] }
 0x1ab   :  { %v612_v15 = vsel %vm611_vm6, %v8470_v47, %v610_v50  ;;  %v596_v6 = vmul.f32 %v12256_v3, %v576_v33  ;;  %v615_v10 = vsel %vm611_vm6, %v610_v50, %v8443_v28  ;;  %v578_v13 = vmul.f32 %v8376_v59, %v570_v25  ;;  %v8708_v59 = vld [vmem:[%s12224_s26 + $0x20] ss:$0 sm:$0xff]  ;;  %v8713_v28 = vld [vmem:[%s12224_s26 + $0x28] ss:$0 sm:$0xff] }
 0x1ac   :  { %v599_v19 = vadd.f32 %v595_v30, %v554_v36  ;;  %v640_v9 = vmul.f32 %v8588_v46, %v620_v58  ;;  %v622_v11 = vmul.f32 %v8372_v57, %v612_v15  ;;  %v556_v35 = vadd.f32 %v552_v32, %v511_v38  ;;  %12258 = vst [vmem:[#allocation9_spill] sm:$0xff] %v8708_v59  ;;  %v12261_v36 = vld [vmem:[#allocation26_spill] sm:$0xff]  ;;  %v8734_v15 = vld [vmem:[%s12224_s26 + $0x38] ss:$0 sm:$0xff]  ;;  %v12281_v56 = vld [vmem:[#allocation7_spill] sm:$0xff] }
 0x1ad   :  { %v600_v16 = vadd.f32 %v596_v6, %v555_v1  ;;  %v641_v47 = vmul.f32 %v8627_v49, %v621_v41  ;;  %v623_v51 = vmul.f32 %v8372_v57, %v615_v10  ;;  %v557_v33 = vadd.f32 %v553_v4, %v512_v52  ;;  %12259 = vst [vmem:[#allocation10_spill] sm:$0xff] %v8713_v28 }
 0x1ae   :  { %v651_v63 = vpop.permute.xlu0 %650  ;;  %v597_v60 = vmul.f32 %v12257_v7, %v577_v14  ;;  %v598_v58 = vmul.f32 %v12261_v36, %v578_v13  ;;  %v644_v17 = vadd.f32 %v640_v9, %v599_v19  ;;  %v642_v38 = vmul.f32 %v8676_v5, %v622_v11  ;;  %v8729_v14 = vld [vmem:[%s12224_s26 + $0x30] ss:$0 sm:$0xff]  ;;  %12263 = vst [vmem:[#allocation31_spill] sm:$0xff] %v8734_v15 }
 0x1af   :  { %v658_v22 = vsel %vm656_vm7, %v651_v63, %v653_v0  ;;  %v659_v57 = vsel %vm656_vm7, %v649_v54, %v651_v63  ;;  %v645_v1 = vadd.f32 %v641_v47, %v600_v16  ;;  %v643_v25 = vmul.f32 %v8680_v37, %v623_v51  ;;  %12262 = vst [vmem:[#allocation3_spill] sm:$0xff] %v8729_v14 }
 0x1b0   :  { %v665_v55 = vmul.f32 %v12260_v62, %v659_v57  ;;  %v666_v39 = vmul.f32 %v12260_v62, %v658_v22  ;;  %v601_v52 = vadd.f32 %v597_v60, %v556_v35  ;;  %v602_v30 = vadd.f32 %v598_v58, %v557_v33 }
 0x1b2   :  { %v685_v41 = vmul.f32 %v8708_v59, %v665_v55  ;;  %v686_v50 = vmul.f32 %v8713_v28, %v666_v39  ;;  %v655_v61 = vpop.permute.xlu0 %654  ;;  %v646_v9 = vadd.f32 %v642_v38, %v601_v52  ;;  %v647_v16 = vadd.f32 %v643_v25, %v602_v30 }
 0x1b3   :  { %v657_v32 = vsel %vm656_vm7, %v653_v0, %v655_v61  ;;  %v660_v4 = vsel %vm656_vm7, %v655_v61, %v649_v54 }
 0x1b4   :  { %v689_v6 = vadd.f32 %v685_v41, %v644_v17  ;;  %v690_v10 = vadd.f32 %v686_v50, %v645_v1  ;;  %v667_v13 = vmul.f32 %v12260_v62, %v657_v32  ;;  %v668_v19 = vmul.f32 %v12260_v62, %v660_v4  ;;  %v12264_v32 = vld [vmem:[#allocation2_spill] sm:$0xff] }
 0x1b5   :  { %v12062_v62 = vmov 18  }
 0x1b6   :  { %v687_v11 = vmul.f32 %v8729_v14, %v667_v13  ;;  %v688_v35 = vmul.f32 %v8734_v15, %v668_v19  ;;  %v700_v47 = vmul.f32 %v689_v6, %v689_v6  ;;  %v701_v51 = vmul.f32 %v690_v10, %v690_v10  ;;  %7426 = vset.pattern.permute.xlu1 %v12062_v62 }
 0x1b7   :  { %v693_v0 = vadd.f32 %v690_v10, %v689_v6  ;;  %v12060_v19 = vmov 19  }
 0x1b8   :  { %v691_v63 = vadd.f32 %v687_v11, %v646_v9  ;;  %v692_v33 = vadd.f32 %v688_v35, %v647_v16  ;;  %v704_v54 = vadd.f32 %v701_v51, %v700_v47 }
 0x1ba   :  { %v694_v60 = vadd.f32 %v693_v0, %v691_v63  ;;  %v702_v22 = vmul.f32 %v691_v63, %v691_v63  ;;  %v703_v55 = vmul.f32 %v692_v33, %v692_v33 }
 0x1bc   :  { %v695_v57 = vadd.f32 %v694_v60, %v692_v33  ;;  %v705_v39 = vadd.f32 %v704_v54, %v702_v22 }
 0x1be   :  { %696 = vadd.xlane.f32.xlu1 %v695_v57  ;;  %v706_v58 = vadd.f32 %v705_v39, %v703_v55  ;;  %v295_v39 = vld [vmem:[%s12265_s25 + $0x8] sm:$0xff] }
 0x1c0   :  { %707 = vadd.xlane.f32.xlu0 %v706_v58  ;;  %v290_v58 = vld [vmem:[%s12266_s0 + $0x8] sm:$0xff] }
 0x24b   :  { %v697_v17 = vpop.xlane.xlu1 %696 }
 0x24c   :  { %v699_v38 = vmul.f32 0.001953125, %v697_v17  ;;  %v294_v17 = vld [vmem:[%s12265_s25] sm:$0xff] }
 0x24d   :  { %v708_v1 = vpop.xlane.xlu0 %707 }
 0x24e   :  { %v710_v25 = vmul.f32 %v699_v38, %v699_v38  ;;  %v709_v41 = vmul.f32 0.001953125, %v708_v1 }
 0x250   :  { %v711_v50 = vsub.f32 %v709_v41, %v710_v25 }
 0x252   :  { %v712_v61 = vmax.f32 %v711_v50, 0.0 }
 0x254   :  { %v713_v52 = vadd.f32 1e-05, %v712_v61 }
 0x256   :  { %7561 = vrsqrt.f32 %v713_v52 }
 0x260   :  { %v7562_v30 = vpop.eup %7561 }
 0x261   :  { %v715_v4 = vmul.f32 %v7562_v30, %v12264_v32 }
 0x263   :  { %718 = vperm.xlu1 %7426, %v715_v4   ;;  %v725_v13 = vmul.f32 %v715_v4, %v699_v38 }
 0x265   :  { %727 = vrot.lane.b32.xlu0 %v725_v13, %s7925_s29 }
 0x267   :  { %7427 = vset.pattern.permute.xlu1 %v12060_v19 }
 0x2d7   :  { %v728_v9 = vpop.permute.xlu0 %727 }
 0x2d8   :  { %v730_v11 = vsub.f32 %v12264_v32, %v728_v9 }
 0x2da   :  { %733 = vperm.xlu1 %7427, %v730_v11  }
 0x2e2   :  { %v719_v35 = vpop.permute.xlu1 %718 }
 0x2e3   :  { %v721_v16 = vmul.f32 %v719_v35, %v689_v6  ;;  %v723_v47 = vmul.f32 %v719_v35, %v691_v63  ;;  %v722_v51 = vmul.f32 %v719_v35, %v690_v10  ;;  %v724_v0 = vmul.f32 %v719_v35, %v692_v33  ;;  %v289_v6 = vld [vmem:[%s12266_s0] sm:$0xff]  ;;  %v292_v10 = vld [vmem:[%s12266_s0 + $0x18] sm:$0xff]  ;;  %v291_v63 = vld [vmem:[%s12266_s0 + $0x10] sm:$0xff]  ;;  %s12277_s0 = smov 113  }
 0x2e4   :  { %v12267_v33 = vmov 0.0  }
 0x359   :  { %v734_v60 = vpop.permute.xlu1 %733 }
 0x35a   :  { %v737_v22 = vadd.f32 %v734_v60, %v722_v51  ;;  %v739_v54 = vadd.f32 %v734_v60, %v724_v0  ;;  %v736_v57 = vadd.f32 %v734_v60, %v721_v16  ;;  %v738_v55 = vadd.f32 %v734_v60, %v723_v47 }
 0x35c   :  { %744 = vmatprep.subr.mxu0 %v737_v22  ;;  %815 = vmatprep.subr.mxu1 %v739_v54 }
 0x35d   :  { %745 = vmatpush1.msra.mxu0 %v736_v57  ;;  %816 = vmatpush1.msra.mxu1 %v738_v55 }
 0x35e   :  { %7238 = vmatmul.mubr.msk.f32.vlgmr.msra.gmra.mrb[2].mxu0 %vm740_vm8, %v295_v39  ;;  %7239 = vmatmul.mubr.msk.f32.vlgmr.msra.gmra.mrb[2].mxu1 %vm740_vm8, %v295_v39 }
 0x35f   :  { %959 = vmatprep.subr.mxu0 %v290_v58  ;;  %1023 = vmatprep.mubr.f32.mxu0 %v12267_v33 }
 0x360   :  { %960 = vmatpush1.msra.mxu0 %v289_v6  ;;  %1030 = vmatprep.subr.mxu1 %v292_v10 }
 0x361   :  { %1031 = vmatpush1.msra.mxu1 %v291_v63  ;;  %1094 = vmatprep.mubr.f32.mxu1 %v12267_v33 }
 0x362   :  { %7240 = vmatmul.mubr.msk.f32.vlgmr.msra.gmra.mrb[4].mxu0 %vm740_vm8, %v294_v17  ;;  %7241 = vmatmul.mubr.msk.f32.vlgmr.msra.gmra.mrb[4].mxu1 %vm740_vm8, %v294_v17 }
 0x363   :  { %1524 = vmatprep.mubr.f32.mxu0 %v12267_v33  ;;  %1595 = vmatprep.mubr.f32.mxu1 %v12267_v33 }
 0x431   :  { %v8775_v38 = vpop.f32.mrb[2].mxu0  ;;  %v8777_v1 = vpop.f32.mrb[2].mxu1 }
 0x432   :  { %12268 = vst [vmem:[#allocation2_spill] sm:$0xff] %v8775_v38  ;;  %12269 = vst [vmem:[#allocation32_spill] sm:$0xff] %v8777_v1  ;;  %v892_v25 = vmul.f32 %v8775_v38, %v8775_v38  ;;  %v8781_v41 = vpop.f32.mrb[3].mxu0  ;;  %v8783_v50 = vpop.f32.mrb[3].mxu1  ;;  %v894_v30 = vmul.f32 %v8777_v1, %v8777_v1 }
 0x433   :  { %12270 = vst [vmem:[#allocation33_spill] sm:$0xff] %v8781_v41  ;;  %12271 = vst [vmem:[#allocation34_spill] sm:$0xff] %v8783_v50  ;;  %v886_v61 = vadd.f32 %v8781_v41, %v8775_v38  ;;  %v893_v52 = vmul.f32 %v8781_v41, %v8781_v41  ;;  %v895_v54 = vmul.f32 %v8783_v50, %v8783_v50 }
 0x435   :  { %v887_v4 = vadd.f32 %v886_v61, %v8777_v1  ;;  %v8792_v13 = vpop.f32.mrb[4].mxu0  ;;  %v8794_v9 = vpop.f32.mrb[4].mxu1  ;;  %v896_v11 = vadd.f32 %v893_v52, %v892_v25  ;;  %v12058_v25 = vmov 20  }
 0x436   :  { %v1107_v35 = vmul.f32 %v8792_v13, %v8792_v13  ;;  %v8798_v16 = vpop.f32.mrb[5].mxu0  ;;  %v8800_v47 = vpop.f32.mrb[5].mxu1  ;;  %v1109_v22 = vmul.f32 %v8794_v9, %v8794_v9  ;;  %7428 = vset.pattern.permute.xlu1 %v12058_v25 }
 0x437   :  { %v8803_v51 = vadd.f32 %v887_v4, %v8783_v50  ;;  %v1101_v0 = vadd.f32 %v8798_v16, %v8792_v13  ;;  %v1108_v60 = vmul.f32 %v8798_v16, %v8798_v16  ;;  %v897_v57 = vadd.f32 %v896_v11, %v894_v30 }
 0x438   :  { %v1110_v10 = vmul.f32 %v8800_v47, %v8800_v47 }
 0x439   :  { %12272 = vst [vmem:[#allocation35_spill] sm:$0xff] %v8803_v51  ;;  %v1102_v55 = vadd.f32 %v1101_v0, %v8794_v9  ;;  %v1111_v39 = vadd.f32 %v1108_v60, %v1107_v35  ;;  %v8814_v58 = vadd.f32 %v897_v57, %v895_v54  ;;  %v12064_v54 = vmov 21  }
 0x43a   :  { %7429 = vset.pattern.permute.xlu0 %v12064_v54 }
 0x43b   :  { %12273 = vst [vmem:[#allocation36_spill] sm:$0xff] %v8814_v58  ;;  %v1103_v6 = vadd.f32 %v1102_v55, %v8800_v47  ;;  %v1112_v63 = vadd.f32 %v1111_v39, %v1109_v22  ;;  %v12056_v39 = vmov 9  }
 0x43d   :  { %1104 = vadd.xlane.f32.xlu0 %v1103_v6  ;;  %v1113_v17 = vadd.f32 %v1112_v63, %v1110_v10  ;;  %v12054_v6 = vmov 10   ;;  %v12052_v10 = vmov 12   ;;  %v12050_v63 = vmov 13  }
 0x43f   :  { %1114 = vadd.xlane.f32.xlu1 %v1113_v17 }
 0x4ca   :  { %v1105_v61 = vpop.xlane.xlu0 %1104 }
 0x4cb   :  { %v1106_v52 = vmul.f32 0.001953125, %v1105_v61 }
 0x4cc   :  { %v1115_v30 = vpop.xlane.xlu1 %1114 }
 0x4cd   :  { %v1117_v4 = vmul.f32 %v1106_v52, %v1106_v52  ;;  %v1116_v11 = vmul.f32 0.001953125, %v1115_v30  ;;  %v12044_v30 = vmov 16  }
 0x4cf   :  { %v1118_v35 = vsub.f32 %v1116_v11, %v1117_v4  ;;  %v12040_v4 = vmov 11   ;;  %v12042_v11 = vmov 17  }
 0x4d1   :  { %v1119_v0 = vmax.f32 %v1118_v35, 0.0  ;;  %v12046_v35 = vmov 15  }
 0x4d3   :  { %v1120_v60 = vadd.f32 1e-05, %v1119_v0  ;;  %v12274_v0 = vmov 3  }
 0x4d5   :  { %7563 = vrsqrt.f32 %v1120_v60 }
 0x4df   :  { %v7564_v57 = vpop.eup %7563 }
 0x4e0   :  { %v1122_v22 = vmul.f32 %v7564_v57, %v12264_v32 }
 0x4e2   :  { %1125 = vperm.xlu1 %7428, %v1122_v22   ;;  %v1132_v55 = vmul.f32 %v1122_v22, %v1106_v52  ;;  %v12048_v52 = vmov 14  }
 0x4e4   :  { %1134 = vrot.lane.b32.xlu0 %v1132_v55, %s7925_s29 }
 0x4e6   :  { %7430 = vset.pattern.permute.xlu1 %v12056_v39 }
 0x4e7   :  { %1184 = vperm.xlu1 %7430, %v12264_v32  }
 0x4eb   :  { %7431 = vset.pattern.permute.xlu1 %v12054_v6 }
 0x4ec   :  { %1212 = vperm.xlu1 %7431, %v12264_v32  }
 0x4f0   :  { %7433 = vset.pattern.permute.xlu1 %v12052_v10 }
 0x4f1   :  { %1268 = vperm.xlu1 %7433, %v12264_v32  }
 0x4f5   :  { %7434 = vset.pattern.permute.xlu1 %v12050_v63 }
 0x4f6   :  { %1284 = vperm.xlu1 %7434, %v12264_v32  }
 0x4fa   :  { %7435 = vset.pattern.permute.xlu1 %v12048_v52 }
 0x4fb   :  { %1312 = vperm.xlu1 %7435, %v12264_v32  }
 0x4ff   :  { %7437 = vset.pattern.permute.xlu1 %v12044_v30 }
 0x500   :  { %1368 = vperm.xlu1 %7437, %v12264_v32  }
 0x504   :  { %7438 = vset.pattern.permute.xlu1 %v12042_v11 }
 0x505   :  { %1396 = vperm.xlu1 %7438, %v12264_v32  }
 0x556   :  { %v1135_v17 = vpop.permute.xlu0 %1134 }
 0x557   :  { %v1137_v61 = vsub.f32 %v12264_v32, %v1135_v17 }
 0x559   :  { %1140 = vperm.xlu0 %7429, %v1137_v61  }
 0x55d   :  { %7432 = vset.pattern.permute.xlu0 %v12040_v4 }
 0x55e   :  { %1240 = vperm.xlu0 %7432, %v12264_v32  }
 0x561   :  { %v1126_v60 = vpop.permute.xlu1 %1125 }
 0x562   :  { %7436 = vset.pattern.permute.xlu0 %v12046_v35  ;;  %v1128_v57 = vmul.f32 %v1126_v60, %v8792_v13  ;;  %v1129_v22 = vmul.f32 %v1126_v60, %v8798_v16  ;;  %v1130_v55 = vmul.f32 %v1126_v60, %v8794_v9  ;;  %v1131_v17 = vmul.f32 %v1126_v60, %v8800_v47 }
 0x563   :  { %1340 = vperm.xlu0 %7436, %v12264_v32  }
 0x567   :  { %7443 = vset.pattern.permute.xlu0 %v12274_v0 }
 0x5d8   :  { %v1141_v61 = vpop.permute.xlu0 %1140 }
 0x5d9   :  { %v1143_v4 = vadd.f32 %v1141_v61, %v1128_v57  ;;  %v1144_v11 = vadd.f32 %v1141_v61, %v1129_v22  ;;  %v1145_v30 = vadd.f32 %v1141_v61, %v1130_v55  ;;  %v1146_v35 = vadd.f32 %v1141_v61, %v1131_v17 }
 0x5db   :  { %v1147_v52 = vsub.f32 0.0, %v1143_v4  ;;  %v1148_v63 = vsub.f32 0.0, %v1144_v11  ;;  %v1150_v10 = vsub.f32 0.0, %v1146_v35  ;;  %v1149_v32 = vsub.f32 0.0, %v1145_v30 }
 0x5dd   :  { %v1151_v6 = vmul.f32 1.442695, %v1147_v52  ;;  %v1153_v39 = vmul.f32 1.442695, %v1148_v63  ;;  %v1157_v25 = vmul.f32 1.442695, %v1150_v10 }
 0x5de   :  { %v1155_v13 = vmul.f32 1.442695, %v1149_v32 }
 0x5df   :  { %7565 = vpow2.f32 %v1151_v6 }
 0x5e0   :  { %7567 = vpow2.f32 %v1153_v39 }
 0x5e1   :  { %7569 = vpow2.f32 %v1157_v25 }
 0x5e2   :  { %7571 = vpow2.f32 %v1155_v13 }
 0x5e9   :  { %v7566_v9 = vpop.eup %7565 }
 0x5ea   :  { %v7568_v16 = vpop.eup %7567  ;;  %v1159_v47 = vadd.f32 1.0, %v7566_v9 }
 0x5eb   :  { %v1160_v60 = vadd.f32 1.0, %v7568_v16  ;;  %v7570_v57 = vpop.eup %7569  ;;  %v1241_v16 = vpop.permute.xlu0 %1240 }
 0x5ec   :  { %7573 = vrcp.f32 %v1159_v47  ;;  %v1162_v22 = vadd.f32 1.0, %v7570_v57  ;;  %v7572_v55 = vpop.eup %7571 }
 0x5ed   :  { %7575 = vrcp.f32 %v1160_v60  ;;  %v1161_v17 = vadd.f32 1.0, %v7572_v55 }
 0x5ee   :  { %7577 = vrcp.f32 %v1162_v22 }
 0x5ef   :  { %7579 = vrcp.f32 %v1161_v17  ;;  %v8919_v60 = vpop.permute.xlu0 %1340 }
 0x5f6   :  { %v7574_v61 = vpop.eup %7573 }
 0x5f7   :  { %v7576_v63 = vpop.eup %7575  ;;  %v8847_v10 = vmul.f32 %v7574_v61, %v1143_v4 }
 0x5f8   :  { %v8849_v39 = vmul.f32 %v7576_v63, %v1144_v11  ;;  %v7578_v25 = vpop.eup %7577 }
 0x5f9   :  { %1171 = vrot.lane.b32.xlu1 %v8847_v10, %s7923_s11  ;;  %v8855_v6 = vmul.f32 %v7578_v25, %v1146_v35  ;;  %v7580_v52 = vpop.eup %7579 }
 0x5fa   :  { %1173 = vrot.lane.b32.xlu0 %v8849_v39, %s7923_s11  ;;  %v1169_v4 = vmul.f32 %v7580_v52, %v1145_v30  ;;  %v1185_v30 = vpop.permute.xlu1 %1184 }
 0x5fd   :  { %1177 = vrot.lane.b32.xlu1 %v8855_v6, %s7923_s11 }
 0x5fe   :  { %1199 = vrot.lane.b32.xlu0 %v8847_v10, %s12101_s27  ;;  %v1213_v11 = vpop.permute.xlu1 %1212 }
 0x601   :  { %1201 = vrot.lane.b32.xlu1 %v8849_v39, %s12101_s27 }
 0x602   :  { %1205 = vrot.lane.b32.xlu0 %v8855_v6, %s12101_s27  ;;  %v8909_v35 = vpop.permute.xlu1 %1268 }
 0x605   :  { %1203 = vrot.lane.b32.xlu1 %v1169_v4, %s12101_s27 }
 0x606   :  { %1175 = vrot.lane.b32.xlu0 %v1169_v4, %s7923_s11  ;;  %v8911_v32 = vpop.permute.xlu1 %1284 }
 0x607   :  { %v1287_v51 = vmul.f32 %v8911_v32, %v8847_v10  ;;  %v1288_v59 = vmul.f32 %v8911_v32, %v8849_v39 }
 0x609   :  { %1229 = vrot.lane.b32.xlu1 %v8849_v39, %s12275_s28 }
 0x60a   :  { %1227 = vrot.lane.b32.xlu0 %v8847_v10, %s12275_s28  ;;  %v8913_v13 = vpop.permute.xlu1 %1312 }
 0x60d   :  { %1255 = vrot.lane.b32.xlu1 %v8847_v10, %s7925_s29 }
 0x60e   :  { %1233 = vrot.lane.b32.xlu0 %v8855_v6, %s12275_s28  ;;  %v8915_v9 = vpop.permute.xlu1 %1368 }
 0x611   :  { %1261 = vrot.lane.b32.xlu1 %v8855_v6, %s7925_s29 }
 0x612   :  { %1231 = vrot.lane.b32.xlu0 %v1169_v4, %s12275_s28  ;;  %v8917_v47 = vpop.permute.xlu1 %1396 }
 0x613   :  { %12280 = vst [vmem:[#allocation37_spill] sm:$0xff] %v8917_v47 }
 0x615   :  { %1259 = vrot.lane.b32.xlu1 %v1169_v4, %s7925_s29 }
 0x616   :  { %1257 = vrot.lane.b32.xlu0 %v8849_v39, %s7925_s29 }
 0x619   :  { %1301 = vrot.lane.b32.xlu1 %v8849_v39, %s12276_s1 }
 0x61a   :  { %1299 = vrot.lane.b32.xlu0 %v8847_v10, %s12276_s1 }
 0x61d   :  { %1327 = vrot.lane.b32.xlu1 %v8847_v10, %s12277_s0 }
 0x61e   :  { %1303 = vrot.lane.b32.xlu0 %v1169_v4, %s12276_s1 }
 0x621   :  { %1331 = vrot.lane.b32.xlu1 %v1169_v4, %s12277_s0 }
 0x622   :  { %1305 = vrot.lane.b32.xlu0 %v8855_v6, %s12276_s1 }
 0x625   :  { %1355 = vrot.lane.b32.xlu1 %v8847_v10, %s12278_s10 }
 0x626   :  { %1329 = vrot.lane.b32.xlu0 %v8849_v39, %s12277_s0 }
 0x629   :  { %1359 = vrot.lane.b32.xlu1 %v1169_v4, %s12278_s10 }
 0x62a   :  { %1333 = vrot.lane.b32.xlu0 %v8855_v6, %s12277_s0 }
 0x62d   :  { %1383 = vrot.lane.b32.xlu1 %v8847_v10, %s12279_s24  ;;  %v8942_v10 = vmul.f32 %v8911_v32, %v1169_v4 }
 0x62e   :  { %1357 = vrot.lane.b32.xlu0 %v8849_v39, %s12278_s10 }
 0x631   :  { %1387 = vrot.lane.b32.xlu1 %v1169_v4, %s12279_s24  ;;  %v8955_v4 = vmul.f32 %v1287_v51, %v12281_v56 }
 0x632   :  { %1361 = vrot.lane.b32.xlu0 %v8855_v6, %s12278_s10 }
 0x636   :  { %1385 = vrot.lane.b32.xlu0 %v8849_v39, %s12279_s24 }
 0x63a   :  { %1389 = vrot.lane.b32.xlu0 %v8855_v6, %s12279_s24 }
 0x66b   :  { %v1172_v57 = vpop.permute.xlu1 %1171 }
 0x66c   :  { %v1174_v22 = vpop.permute.xlu0 %1173 }
 0x66f   :  { %v1178_v55 = vpop.permute.xlu1 %1177 }
 0x670   :  { %v1200_v17 = vpop.permute.xlu0 %1199  ;;  %v1182_v15 = vsel %vm308_vm0, %v1178_v55, %v1172_v57 }
 0x673   :  { %v1202_v61 = vpop.permute.xlu1 %1201 }
 0x674   :  { %v1206_v63 = vpop.permute.xlu0 %1205  ;;  %v1209_v37 = vsel %vm354_vm1, %v1200_v17, %v1202_v61 }
 0x675   :  { %v1210_v14 = vsel %vm354_vm1, %v1206_v63, %v1200_v17  ;;  %v1187_v17 = vmul.f32 %v1185_v30, %v1182_v15 }
 0x676   :  { %v1215_v49 = vmul.f32 %v1213_v11, %v1210_v14 }
 0x677   :  { %v1204_v25 = vpop.permute.xlu1 %1203 }
 0x678   :  { %v1176_v52 = vpop.permute.xlu0 %1175  ;;  %v1207_v28 = vsel %vm354_vm1, %v1204_v25, %v1206_v63  ;;  %v1208_v36 = vsel %vm354_vm1, %v1202_v61, %v1204_v25  ;;  %v1181_v61 = vsel %vm308_vm0, %v1172_v57, %v1174_v22  ;;  %v1216_v25 = vmul.f32 %v1213_v11, %v1209_v37 }
 0x679   :  { %v1179_v5 = vsel %vm308_vm0, %v1176_v52, %v1178_v55  ;;  %v1180_v63 = vsel %vm308_vm0, %v1174_v22, %v1176_v52  ;;  %v1218_v46 = vmul.f32 %v1213_v11, %v1207_v28  ;;  %v1217_v52 = vmul.f32 %v1213_v11, %v1208_v36 }
 0x67a   :  { %v1190_v31 = vmul.f32 %v1185_v30, %v1179_v5  ;;  %v1189_v3 = vmul.f32 %v1185_v30, %v1180_v63  ;;  %v1188_v5 = vmul.f32 %v1185_v30, %v1181_v61  ;;  %v1191_v36 = vmul.f32 %v1187_v17, %v8480_v2 }
 0x67b   :  { %v1230_v19 = vpop.permute.xlu1 %1229  ;;  %v1219_v11 = vmul.f32 %v1215_v49, %v8473_v48 }
 0x67c   :  { %v1228_v62 = vpop.permute.xlu0 %1227  ;;  %v1194_v57 = vmul.f32 %v1190_v31, %v8483_v12  ;;  %v1193_v49 = vmul.f32 %v1189_v3, %v8468_v42 }
 0x67d   :  { %v1237_v18 = vsel %vm399_vm2, %v1228_v62, %v1230_v19 }
 0x67e   :  { %v1244_v22 = vmul.f32 %v1241_v16, %v1237_v18 }
 0x67f   :  { %v1256_v54 = vpop.permute.xlu1 %1255 }
 0x680   :  { %v1234_v50 = vpop.permute.xlu0 %1233  ;;  %v1248_v3 = vmul.f32 %v1244_v22, %v8506_v44 }
 0x681   :  { %v1238_v39 = vsel %vm399_vm2, %v1234_v50, %v1228_v62  ;;  %v1222_v62 = vmul.f32 %v1218_v46, %v8477_v53  ;;  %v1221_v46 = vmul.f32 %v1217_v52, %v8496_v26 }
 0x682   :  { %v1243_v20 = vmul.f32 %v1241_v16, %v1238_v39 }
 0x683   :  { %v1262_v1 = vpop.permute.xlu1 %1261  ;;  %v1226_v52 = vadd.f32 %v1222_v62, %v1194_v57 }
 0x684   :  { %v1232_v41 = vpop.permute.xlu0 %1231  ;;  %v1266_v28 = vsel %vm444_vm3, %v1262_v1, %v1256_v54  ;;  %v1247_v18 = vmul.f32 %v1243_v20, %v8486_v23 }
 0x685   :  { %v1235_v55 = vsel %vm399_vm2, %v1232_v41, %v1234_v50  ;;  %v1236_v14 = vsel %vm399_vm2, %v1230_v19, %v1232_v41  ;;  %v12282_v41 = vld [vmem:[#allocation15_spill] sm:$0xff] }
 0x686   :  { %v1246_v50 = vmul.f32 %v1241_v16, %v1235_v55  ;;  %v1220_v39 = vmul.f32 %v1216_v25, %v12282_v41  ;;  %v1245_v30 = vmul.f32 %v1241_v16, %v1236_v14  ;;  %v1223_v14 = vadd.f32 %v1219_v11, %v1191_v36 }
 0x687   :  { %v1260_v38 = vpop.permute.xlu1 %1259 }
 0x688   :  { %v1258_v0 = vpop.permute.xlu0 %1257  ;;  %v1263_v51 = vsel %vm444_vm3, %v1260_v38, %v1262_v1  ;;  %v1271_v1 = vmul.f32 %v8909_v35, %v1266_v28  ;;  %v1250_v31 = vmul.f32 %v1246_v50, %v8490_v24  ;;  %v1192_v28 = vmul.f32 %v1188_v5, %v8465_v40 }
 0x689   :  { %v1264_v63 = vsel %vm444_vm3, %v1258_v0, %v1260_v38  ;;  %v1265_v19 = vsel %vm444_vm3, %v1256_v54, %v1258_v0  ;;  %v1274_v17 = vmul.f32 %v8909_v35, %v1263_v51  ;;  %v1290_v54 = vmul.f32 %v8911_v32, %v8855_v6  ;;  %v12283_v0 = vld [vmem:[#allocation8_spill] sm:$0xff] }
 0x68a   :  { %v1292_v61 = vmul.f32 %v1288_v59, %v12283_v0  ;;  %v1272_v16 = vmul.f32 %v8909_v35, %v1265_v19  ;;  %v1273_v25 = vmul.f32 %v8909_v35, %v1264_v63  ;;  %v1275_v20 = vmul.f32 %v1271_v1, %v8518_v8  ;;  %v12284_v19 = vld [vmem:[#allocation5_spill] sm:$0xff]  ;;  %v12285_v1 = vld [vmem:[#allocation6_spill] sm:$0xff] }
 0x68b   :  { %v8921_v58 = vpop.permute.xlu1 %1301  ;;  %v1249_v50 = vmul.f32 %v1245_v30, %v8509_v43  ;;  %v1278_v51 = vmul.f32 %v1274_v17, %v8521_v34  ;;  %v1224_v6 = vadd.f32 %v1220_v39, %v1192_v28  ;;  %v1225_v32 = vadd.f32 %v1221_v46, %v1193_v49 }
 0x68c   :  { %v8923_v33 = vpop.permute.xlu0 %1299  ;;  %v1251_v35 = vadd.f32 %v1247_v18, %v1223_v14  ;;  %v1254_v63 = vadd.f32 %v1250_v31, %v1226_v52  ;;  %v1276_v11 = vmul.f32 %v1272_v16, %v8500_v45  ;;  %v1277_v62 = vmul.f32 %v1273_v25, %v8503_v29 }
 0x68d   :  { %v1309_v59 = vsel %vm521_vm4, %v8923_v33, %v8921_v58  ;;  %v1293_v39 = vmul.f32 %v8942_v10, %v12284_v19  ;;  %v1294_v30 = vmul.f32 %v1290_v54, %v12285_v1  ;;  %v1252_v17 = vadd.f32 %v1248_v3, %v1224_v6 }
 0x68e   :  { %v1315_v46 = vmul.f32 %v8913_v13, %v1309_v59  ;;  %v1279_v49 = vadd.f32 %v1275_v20, %v1251_v35  ;;  %v1253_v18 = vadd.f32 %v1249_v50, %v1225_v32  ;;  %v1282_v31 = vadd.f32 %v1278_v51, %v1254_v63  ;;  %v12286_v35 = vld [vmem:[#allocation24_spill] sm:$0xff] }
 0x68f   :  { %v8939_v47 = vpop.permute.xlu1 %1327  ;;  %v1280_v14 = vadd.f32 %v1276_v11, %v1252_v17 }
 0x690   :  { %v8950_v7 = vpop.permute.xlu0 %1303  ;;  %v1281_v52 = vadd.f32 %v1277_v62, %v1253_v18  ;;  %v1319_v20 = vmul.f32 %v1315_v46, %v8542_v21  ;;  %v1295_v51 = vadd.f32 %v8955_v4, %v1279_v49  ;;  %v1298_v11 = vadd.f32 %v1294_v30, %v1282_v31  ;;  %v12287_v62 = vld [vmem:[#allocation21_spill] sm:$0xff]  ;;  %v12288_v30 = vld [vmem:[#allocation22_spill] sm:$0xff] }
 0x691   :  { %v1308_v57 = vsel %vm521_vm4, %v8921_v58, %v8950_v7  ;;  %v1296_v46 = vadd.f32 %v1292_v61, %v1280_v14  ;;  %v12289_v31 = vld [vmem:[#allocation17_spill] sm:$0xff]  ;;  %v12294_v14 = vld [vmem:[#allocation26_spill] sm:$0xff] }
 0x692   :  { %v1316_v58 = vmul.f32 %v8913_v13, %v1308_v57  ;;  %v1297_v49 = vadd.f32 %v1293_v39, %v1281_v52  ;;  %v12293_v61 = vld [vmem:[#allocation25_spill] sm:$0xff] }
 0x693   :  { %v8961_v15 = vpop.permute.xlu1 %1331 }
 0x694   :  { %v1306_v37 = vpop.permute.xlu0 %1305  ;;  %v1320_v63 = vmul.f32 %v1316_v58, %v12286_v35  ;;  %v12290_v58 = vld [vmem:[#allocation18_spill] sm:$0xff] }
 0x695   :  { %v1307_v25 = vsel %vm521_vm4, %v8950_v7, %v1306_v37  ;;  %v1310_v10 = vsel %vm521_vm4, %v1306_v37, %v8923_v33 }
 0x696   :  { %v1317_v59 = vmul.f32 %v8913_v13, %v1307_v25  ;;  %v1318_v6 = vmul.f32 %v8913_v13, %v1310_v10  ;;  %v12291_v10 = vld [vmem:[#allocation27_spill] sm:$0xff] }
 0x697   :  { %v8980_v55 = vpop.permute.xlu1 %1355 }
 0x698   :  { %v1330_v38 = vpop.permute.xlu0 %1329  ;;  %v1322_v25 = vmul.f32 %v1318_v6, %v12290_v58 }
 0x699   :  { %v1337_v22 = vsel %vm566_vm5, %v8939_v47, %v1330_v38  ;;  %v1336_v16 = vsel %vm566_vm5, %v1330_v38, %v8961_v15 }
 0x69a   :  { %v1343_v54 = vmul.f32 %v8919_v60, %v1337_v22  ;;  %v1344_v7 = vmul.f32 %v8919_v60, %v1336_v16  ;;  %v1321_v16 = vmul.f32 %v1317_v59, %v12289_v31  ;;  %v12295_v59 = vld [vmem:[#allocation37_spill] sm:$0xff] }
 0x69b   :  { %v1360_v5 = vpop.permute.xlu1 %1359 }
 0x69c   :  { %v1334_v36 = vpop.permute.xlu0 %1333  ;;  %v1347_v57 = vmul.f32 %v1343_v54, %v12287_v62  ;;  %v1348_v18 = vmul.f32 %v1344_v7, %v12288_v30 }
 0x69d   :  { %v1335_v33 = vsel %vm566_vm5, %v8961_v15, %v1334_v36  ;;  %v1338_v37 = vsel %vm566_vm5, %v1334_v36, %v8939_v47  ;;  %v1323_v36 = vadd.f32 %v1319_v20, %v1295_v51 }
 0x69e   :  { %v1345_v17 = vmul.f32 %v8919_v60, %v1335_v33  ;;  %v1346_v47 = vmul.f32 %v8919_v60, %v1338_v37 }
 0x69f   :  { %v1384_v50 = vpop.permute.xlu1 %1383 }
 0x6a0   :  { %v1358_v28 = vpop.permute.xlu0 %1357  ;;  %v1349_v39 = vmul.f32 %v1345_v17, %v12293_v61  ;;  %v1350_v52 = vmul.f32 %v1346_v47, %v12294_v14  ;;  %v12297_v17 = vld [vmem:[#allocation30_spill] sm:$0xff]  ;;  %v12298_v47 = vld [vmem:[#allocation9_spill] sm:$0xff] }
 0x6a1   :  { %v1364_v3 = vsel %vm611_vm6, %v1358_v28, %v1360_v5  ;;  %v1365_v38 = vsel %vm611_vm6, %v8980_v55, %v1358_v28  ;;  %v1324_v28 = vadd.f32 %v1320_v63, %v1296_v46  ;;  %v1325_v63 = vadd.f32 %v1321_v16, %v1297_v49  ;;  %v12299_v46 = vld [vmem:[#allocation10_spill] sm:$0xff] }
 0x6a2   :  { %v1371_v32 = vmul.f32 %v8915_v9, %v1365_v38  ;;  %v1372_v15 = vmul.f32 %v8915_v9, %v1364_v3  ;;  %v1351_v3 = vadd.f32 %v1347_v57, %v1323_v36  ;;  %v1326_v57 = vadd.f32 %v1322_v25, %v1298_v11 }
 0x6a3   :  { %v1388_v33 = vpop.permute.xlu1 %1387  ;;  %v1352_v51 = vadd.f32 %v1348_v18, %v1324_v28  ;;  %v12300_v28 = vld [vmem:[#allocation3_spill] sm:$0xff] }
 0x6a4   :  { %v1362_v22 = vpop.permute.xlu0 %1361  ;;  %v1375_v54 = vmul.f32 %v1371_v32, %v12291_v10  ;;  %v1353_v10 = vadd.f32 %v1349_v39, %v1325_v63 }
 0x6a5   :  { %v1363_v4 = vsel %vm611_vm6, %v1360_v5, %v1362_v22  ;;  %v1366_v13 = vsel %vm611_vm6, %v1362_v22, %v8980_v55  ;;  %v12292_v5 = vld [vmem:[#allocation28_spill] sm:$0xff] }
 0x6a6   :  { %v1373_v60 = vmul.f32 %v8915_v9, %v1363_v4  ;;  %v1376_v38 = vmul.f32 %v1372_v15, %v12292_v5  ;;  %v1374_v55 = vmul.f32 %v8915_v9, %v1366_v13  ;;  %v1379_v15 = vadd.f32 %v1375_v54, %v1351_v3  ;;  %v12296_v9 = vld [vmem:[#allocation29_spill] sm:$0xff] }
 0x6a8   :  { %v1386_v20 = vpop.permute.xlu0 %1385  ;;  %v1377_v22 = vmul.f32 %v1373_v60, %v12296_v9  ;;  %v1380_v4 = vadd.f32 %v1376_v38, %v1352_v51  ;;  %v1378_v13 = vmul.f32 %v1374_v55, %v12297_v17  ;;  %v12301_v38 = vld [vmem:[#allocation31_spill] sm:$0xff] }
 0x6a9   :  { %v1392_v7 = vsel %vm656_vm7, %v1386_v20, %v1388_v33  ;;  %v1393_v37 = vsel %vm656_vm7, %v1384_v50, %v1386_v20  ;;  %v1354_v20 = vadd.f32 %v1350_v52, %v1326_v57 }
 0x6aa   :  { %v1399_v6 = vmul.f32 %v12295_v59, %v1393_v37  ;;  %v1400_v32 = vmul.f32 %v12295_v59, %v1392_v7  ;;  %v1381_v60 = vadd.f32 %v1377_v22, %v1353_v10  ;;  %v12088_v10 = vmov 22  }
 0x6ab   :  { %v1382_v7 = vadd.f32 %v1378_v13, %v1354_v20  ;;  %7439 = vset.pattern.permute.xlu1 %v12088_v10 }
 0x6ac   :  { %v1403_v36 = vmul.f32 %v12298_v47, %v1399_v6  ;;  %v1404_v5 = vmul.f32 %v12299_v46, %v1400_v32  ;;  %v1390_v14 = vpop.permute.xlu0 %1389 }
 0x6ad   :  { %v1391_v18 = vsel %vm656_vm7, %v1388_v33, %v1390_v14  ;;  %v1394_v49 = vsel %vm656_vm7, %v1390_v14, %v1384_v50 }
 0x6ae   :  { %v1407_v11 = vadd.f32 %v1403_v36, %v1379_v15  ;;  %v1408_v16 = vadd.f32 %v1404_v5, %v1380_v4  ;;  %v1401_v25 = vmul.f32 %v12295_v59, %v1391_v18  ;;  %v1402_v54 = vmul.f32 %v12295_v59, %v1394_v49  ;;  %v7891_v18 = vld [vmem:[%s12219_s3] sm:$0xff] }
 0x6b0   :  { %v1405_v3 = vmul.f32 %v12300_v28, %v1401_v25  ;;  %v1406_v55 = vmul.f32 %v12301_v38, %v1402_v54  ;;  %v1417_v39 = vmul.f32 %v1407_v11, %v1407_v11  ;;  %v1418_v52 = vmul.f32 %v1408_v16, %v1408_v16  ;;  %v12303_v38 = vld [vmem:[#allocation35_spill] sm:$0xff] }
 0x6b1   :  { %v1411_v33 = vadd.f32 %v1408_v16, %v1407_v11  ;;  %v12086_v54 = vmov 23  }
 0x6b2   :  { %v1409_v37 = vadd.f32 %v1405_v3, %v1381_v60  ;;  %v1410_v51 = vadd.f32 %v1406_v55, %v1382_v7  ;;  %v1421_v50 = vadd.f32 %v1418_v52, %v1417_v39  ;;  %v12302_v3 = vmov 2  }
 0x6b4   :  { %v1412_v6 = vadd.f32 %v1411_v33, %v1409_v37  ;;  %v1419_v32 = vmul.f32 %v1409_v37, %v1409_v37  ;;  %v1420_v5 = vmul.f32 %v1410_v51, %v1410_v51 }
 0x6b6   :  { %v1413_v14 = vadd.f32 %v1412_v6, %v1410_v51  ;;  %v1422_v63 = vadd.f32 %v1421_v50, %v1419_v32 }
 0x6b8   :  { %1414 = vadd.xlane.f32.xlu1 %v1413_v14  ;;  %v1423_v57 = vadd.f32 %v1422_v63, %v1420_v5  ;;  %v296_v63 = vld [vmem:[%s12265_s25 + $0x10] sm:$0xff]  ;;  %s12370_s25 = smov 16  }
 0x6ba   :  { %1424 = vadd.xlane.f32.xlu0 %v1423_v57 }
 0x745   :  { %v1415_v59 = vpop.xlane.xlu1 %1414 }
 0x746   :  { %v1416_v15 = vmul.f32 0.001953125, %v1415_v59 }
 0x747   :  { %v1425_v22 = vpop.xlane.xlu0 %1424 }
 0x748   :  { %v1427_v4 = vmul.f32 %v1416_v15, %v1416_v15  ;;  %v1426_v13 = vmul.f32 0.001953125, %v1425_v22 }
 0x74a   :  { %v1428_v47 = vsub.f32 %v1426_v13, %v1427_v4 }
 0x74c   :  { %v1429_v36 = vmax.f32 %v1428_v47, 0.0 }
 0x74e   :  { %v1430_v46 = vadd.f32 1e-05, %v1429_v36 }
 0x750   :  { %7581 = vrsqrt.f32 %v1430_v46 }
 0x75a   :  { %v7582_v20 = vpop.eup %7581 }
 0x75b   :  { %v1432_v49 = vmul.f32 %v7891_v18, %v7582_v20 }
 0x75d   :  { %1435 = vperm.xlu1 %7439, %v1432_v49   ;;  %v1442_v25 = vmul.f32 %v1432_v49, %v1416_v15  ;;  %v12305_v49 = vld [vmem:[#allocation36_spill] sm:$0xff] }
 0x75f   :  { %1444 = vrot.lane.b32.xlu0 %v1442_v25, %s7925_s29 }
 0x761   :  { %7440 = vset.pattern.permute.xlu1 %v12086_v54 }
 0x7d1   :  { %v1445_v60 = vpop.permute.xlu0 %1444 }
 0x7d2   :  { %v1447_v28 = vsub.f32 %v7891_v18, %v1445_v60 }
 0x7d4   :  { %1450 = vperm.xlu1 %7440, %v1447_v28  }
 0x7d8   :  { %7441 = vset.pattern.permute.xlu1 %v12302_v3 }
 0x7dc   :  { %v1436_v55 = vpop.permute.xlu1 %1435 }
 0x7dd   :  { %v1438_v7 = vmul.f32 %v1436_v55, %v1407_v11  ;;  %v1440_v39 = vmul.f32 %v1436_v55, %v1409_v37  ;;  %v1439_v52 = vmul.f32 %v1436_v55, %v1408_v16  ;;  %v1441_v33 = vmul.f32 %v1436_v55, %v1410_v51 }
 0x7de   :  { %v12304_v11 = vmov 0.0  }
 0x7f8   :  { %889 = vadd.xlane.f32.xlu1 %v12303_v38 }
 0x853   :  { %v1451_v6 = vpop.permute.xlu1 %1450 }
 0x854   :  { %v1454_v32 = vadd.f32 %v1451_v6, %v1439_v52  ;;  %v1456_v50 = vadd.f32 %v1451_v6, %v1441_v33  ;;  %v1453_v14 = vadd.f32 %v1451_v6, %v1438_v7  ;;  %v1455_v5 = vadd.f32 %v1451_v6, %v1440_v39 }
 0x856   :  { %1460 = vmatprep.subr.mxu0 %v1454_v32  ;;  %1531 = vmatprep.subr.mxu1 %v1456_v50 }
 0x857   :  { %1461 = vmatpush1.msra.mxu0 %v1453_v14  ;;  %1532 = vmatpush1.msra.mxu1 %v1455_v5 }
 0x858   :  { %7242 = vmatmul.mubr.msk.f32.vlgmr.msra.gmra.mrb[6].mxu0 %vm740_vm8, %v296_v63  ;;  %7243 = vmatmul.mubr.msk.f32.vlgmr.msra.gmra.mrb[6].mxu1 %vm740_vm8, %v296_v63 }
 0x859   :  { %2064 = vmatprep.mubr.f32.mxu0 %v12304_v11  ;;  %2135 = vmatprep.mubr.f32.mxu1 %v12304_v11 }
 0x885   :  { %v890_v28 = vpop.xlane.xlu1 %889 }
 0x886   :  { %v891_v55 = vmul.f32 0.001953125, %v890_v28 }
 0x888   :  { %v902_v6 = vmul.f32 %v891_v55, %v891_v55 }
 0x92b   :  { %v9093_v16 = vpop.f32.mrb[6].mxu0  ;;  %v9095_v37 = vpop.f32.mrb[6].mxu1 }
 0x92c   :  { %v1608_v51 = vmul.f32 %v9093_v16, %v9093_v16  ;;  %v9099_v57 = vpop.f32.mrb[7].mxu0  ;;  %v9101_v59 = vpop.f32.mrb[7].mxu1  ;;  %v1610_v4 = vmul.f32 %v9095_v37, %v9095_v37 }
 0x92d   :  { %v1602_v15 = vadd.f32 %v9099_v57, %v9093_v16  ;;  %v1609_v22 = vmul.f32 %v9099_v57, %v9099_v57  ;;  %v1611_v46 = vmul.f32 %v9101_v59, %v9101_v59 }
 0x92f   :  { %v1603_v13 = vadd.f32 %v1602_v15, %v9095_v37  ;;  %v1612_v47 = vadd.f32 %v1609_v22, %v1608_v51  ;;  %v297_v15 = vld [vmem:[%s12306_s9] sm:$0xff] }
 0x931   :  { %v1604_v36 = vadd.f32 %v1603_v13, %v9101_v59  ;;  %v1613_v20 = vadd.f32 %v1612_v47, %v1610_v4 }
 0x933   :  { %1605 = vadd.xlane.f32.xlu0 %v1604_v36  ;;  %v1614_v18 = vadd.f32 %v1613_v20, %v1611_v46  ;;  %v12307_v20 = vmov 0  }
 0x937   :  { %1615 = vadd.xlane.f32.xlu0 %v1614_v18  ;;  %v12308_v18 = vmov 1  }
 0x93b   :  { %899 = vadd.xlane.f32.xlu0 %v12305_v49 }
 0x9c0   :  { %v1606_v25 = vpop.xlane.xlu0 %1605 }
 0x9c1   :  { %v1607_v60 = vmul.f32 0.001953125, %v1606_v25 }
 0x9c3   :  { %v1618_v7 = vmul.f32 %v1607_v60, %v1607_v60 }
 0x9c4   :  { %v1616_v38 = vpop.xlane.xlu0 %1615 }
 0x9c5   :  { %v1617_v39 = vmul.f32 0.001953125, %v1616_v38 }
 0x9c7   :  { %v1619_v52 = vsub.f32 %v1617_v39, %v1618_v7  ;;  %v12312_v7 = vmov 6   ;;  %v12313_v39 = vmov 3  }
 0x9c8   :  { %v900_v33 = vpop.xlane.xlu0 %899 }
 0x9c9   :  { %v1620_v32 = vmax.f32 %v1619_v52, 0.0  ;;  %v901_v50 = vmul.f32 0.001953125, %v900_v33  ;;  %v12314_v52 = vmov 21   ;;  %v12315_v33 = vmov 5  }
 0x9cb   :  { %v1621_v14 = vadd.f32 1e-05, %v1620_v32  ;;  %v903_v5 = vsub.f32 %v901_v50, %v902_v6  ;;  %v12316_v6 = vmov 7   ;;  %v12317_v32 = vmov 8  }
 0x9cc   :  { %v12318_v50 = vmov 18  }
 0x9cd   :  { %7583 = vrsqrt.f32 %v1621_v14  ;;  %v904_v63 = vmax.f32 %v903_v5, 0.0 }
 0x9cf   :  { %v905_v51 = vadd.f32 1e-05, %v904_v63 }
 0x9d1   :  { %7585 = vrsqrt.f32 %v905_v51 }
 0x9d7   :  { %v7584_v22 = vpop.eup %7583 }
 0x9d8   :  { %v1623_v4 = vmul.f32 %v7584_v22, %v297_v15 }
 0x9da   :  { %v1633_v13 = vmul.f32 %v1623_v4, %v1607_v60  ;;  %v9124_v60 = vld [vmem:[%s12309_s2] sm:$0xff] }
 0x9db   :  { %v7586_v47 = vpop.eup %7585  ;;  %12310 = vst [vmem:[#allocation15_spill] sm:$0xff] %v9124_v60 }
 0x9dc   :  { %1635 = vrot.lane.b32.xlu1 %v1633_v13, %s7925_s29  ;;  %v907_v36 = vmul.f32 %v7586_v47, %v297_v15 }
 0x9de   :  { %v917_v46 = vmul.f32 %v907_v36, %v891_v55  ;;  %v12311_v55 = vmov 4  }
 0x9e0   :  { %1626 = vperm.xlu1 %7441, %v1623_v4   ;;  %919 = vrot.lane.b32.xlu0 %v917_v46, %s7925_s29 }
 0x9e4   :  { %7442 = vset.pattern.permute.xlu1 %v12307_v20 }
 0x9e5   :  { %910 = vperm.xlu1 %7442, %v907_v36  }
 0x9e9   :  { %7444 = vset.pattern.permute.xlu1 %v12308_v18 }
 0xa4e   :  { %v1636_v49 = vpop.permute.xlu1 %1635 }
 0xa4f   :  { %v1638_v25 = vsub.f32 %v297_v15, %v1636_v49  ;;  %v12319_v49 = vld [vmem:[#allocation2_spill] sm:$0xff] }
 0xa51   :  { %1641 = vperm.xlu0 %7443, %v1638_v25  }
 0xa52   :  { %v920_v28 = vpop.permute.xlu0 %919 }
 0xa53   :  { %v922_v38 = vsub.f32 %v297_v15, %v920_v28  ;;  %v12320_v28 = vld [vmem:[#allocation33_spill] sm:$0xff] }
 0xa55   :  { %925 = vperm.xlu1 %7444, %v922_v38   ;;  %7446 = vset.pattern.permute.xlu0 %v12308_v18 }
 0xa56   :  { %1752 = vperm.xlu0 %7446, %v9124_v60  }
 0xa59   :  { %7445 = vset.pattern.permute.xlu1 %v12307_v20 }
 0xa5a   :  { %7449 = vset.pattern.permute.xlu0 %v12311_v55  ;;  %1724 = vperm.xlu1 %7445, %v9124_v60  }
 0xa5b   :  { %1824 = vperm.xlu0 %7449, %v9124_v60  }
 0xa5e   :  { %7447 = vset.pattern.permute.xlu1 %v12302_v3 }
 0xa5f   :  { %1780 = vperm.xlu1 %7447, %v9124_v60   ;;  %7451 = vset.pattern.permute.xlu0 %v12312_v7  ;;  %v1627_v14 = vpop.permute.xlu1 %1626 }
 0xa60   :  { %1880 = vperm.xlu0 %7451, %v9124_v60   ;;  %v1629_v5 = vmul.f32 %v1627_v14, %v9093_v16  ;;  %v1630_v63 = vmul.f32 %v1627_v14, %v9099_v57  ;;  %v1631_v51 = vmul.f32 %v1627_v14, %v9095_v37  ;;  %v1632_v15 = vmul.f32 %v1627_v14, %v9101_v59  ;;  %v12321_v14 = vld [vmem:[#allocation32_spill] sm:$0xff] }
 0xa63   :  { %7448 = vset.pattern.permute.xlu1 %v12313_v39 }
 0xa64   :  { %1808 = vperm.xlu1 %7448, %v9124_v60   ;;  %7457 = vset.pattern.permute.xlu0 %v12314_v52  ;;  %v911_v22 = vpop.permute.xlu1 %910 }
 0xa65   :  { %v913_v25 = vmul.f32 %v911_v22, %v12319_v49  ;;  %v914_v38 = vmul.f32 %v911_v22, %v12320_v28 }
 0xa68   :  { %7450 = vset.pattern.permute.xlu1 %v12315_v33 }
 0xa69   :  { %1852 = vperm.xlu1 %7450, %v9124_v60  }
 0xa6d   :  { %7452 = vset.pattern.permute.xlu1 %v12316_v6 }
 0xa6e   :  { %1908 = vperm.xlu1 %7452, %v9124_v60  }
 0xa72   :  { %7453 = vset.pattern.permute.xlu1 %v12317_v32 }
 0xa73   :  { %1936 = vperm.xlu1 %7453, %v9124_v60  }
 0xa77   :  { %7454 = vset.pattern.permute.xlu1 %v12318_v50 }
 0xad0   :  { %v1642_v4 = vpop.permute.xlu0 %1641 }
 0xad1   :  { %v9150_v13 = vadd.f32 %v1642_v4, %v1629_v5  ;;  %v9152_v47 = vadd.f32 %v1642_v4, %v1630_v63  ;;  %v9154_v36 = vadd.f32 %v1642_v4, %v1631_v51  ;;  %v9156_v46 = vadd.f32 %v1642_v4, %v1632_v15  ;;  %v12322_v63 = vld [vmem:[#allocation34_spill] sm:$0xff] }
 0xad2   :  { %v915_v5 = vmul.f32 %v911_v22, %v12321_v14  ;;  %v916_v54 = vmul.f32 %v911_v22, %v12322_v63 }
 0xad3   :  { %v1648_v16 = vsub.f32 0.0, %v9150_v13  ;;  %v1649_v57 = vsub.f32 0.0, %v9152_v47  ;;  %v1650_v37 = vsub.f32 0.0, %v9154_v36  ;;  %v1651_v59 = vsub.f32 0.0, %v9156_v46 }
 0xad4   :  { %v926_v51 = vpop.permute.xlu1 %925 }
 0xad5   :  { %v1652_v10 = vmul.f32 1.442695, %v1648_v16  ;;  %v1654_v15 = vmul.f32 1.442695, %v1649_v57  ;;  %v1656_v4 = vmul.f32 1.442695, %v1650_v37  ;;  %v928_v50 = vadd.f32 %v926_v51, %v913_v25 }
 0xad6   :  { %v1658_v49 = vmul.f32 1.442695, %v1651_v59  ;;  %v929_v32 = vadd.f32 %v926_v51, %v914_v38  ;;  %v930_v6 = vadd.f32 %v926_v51, %v915_v5  ;;  %v9166_v33 = vadd.f32 %v926_v51, %v916_v54 }
 0xad7   :  { %7587 = vpow2.f32 %v1652_v10  ;;  %v932_v52 = vsub.f32 0.0, %v928_v50 }
 0xad8   :  { %7589 = vpow2.f32 %v1654_v15  ;;  %v933_v7 = vsub.f32 0.0, %v929_v32  ;;  %v934_v55 = vsub.f32 0.0, %v930_v6  ;;  %v935_v28 = vsub.f32 0.0, %v9166_v33 }
 0xad9   :  { %7591 = vpow2.f32 %v1656_v4  ;;  %v936_v14 = vmul.f32 1.442695, %v932_v52 }
 0xada   :  { %7593 = vpow2.f32 %v1658_v49  ;;  %v938_v22 = vmul.f32 1.442695, %v933_v7  ;;  %v940_v16 = vmul.f32 1.442695, %v934_v55  ;;  %v942_v57 = vmul.f32 1.442695, %v935_v28 }
 0xadb   :  { %7595 = vpow2.f32 %v936_v14 }
 0xadc   :  { %7597 = vpow2.f32 %v938_v22 }
 0xadd   :  { %7599 = vpow2.f32 %v940_v16 }
 0xade   :  { %7601 = vpow2.f32 %v942_v57 }
 0xae1   :  { %v7588_v25 = vpop.eup %7587 }
 0xae2   :  { %v7590_v54 = vpop.eup %7589  ;;  %v1660_v37 = vadd.f32 1.0, %v7588_v25 }
 0xae3   :  { %v7592_v10 = vpop.eup %7591  ;;  %v1661_v59 = vadd.f32 1.0, %v7590_v54 }
 0xae4   :  { %v7594_v38 = vpop.eup %7593  ;;  %v1662_v5 = vadd.f32 1.0, %v7592_v10  ;;  %7603 = vrcp.f32 %v1660_v37 }
 0xae5   :  { %v7596_v63 = vpop.eup %7595  ;;  %v1663_v51 = vadd.f32 1.0, %v7594_v38  ;;  %7605 = vrcp.f32 %v1661_v59 }
 0xae6   :  { %v7598_v52 = vpop.eup %7597  ;;  %7607 = vrcp.f32 %v1662_v5  ;;  %v944_v7 = vadd.f32 1.0, %v7596_v63 }
 0xae7   :  { %v7600_v55 = vpop.eup %7599  ;;  %7609 = vrcp.f32 %v1663_v51  ;;  %v945_v15 = vadd.f32 1.0, %v7598_v52 }
 0xae8   :  { %v7602_v4 = vpop.eup %7601  ;;  %v946_v49 = vadd.f32 1.0, %v7600_v55  ;;  %7611 = vrcp.f32 %v944_v7 }
 0xae9   :  { %v947_v28 = vadd.f32 1.0, %v7602_v4  ;;  %7613 = vrcp.f32 %v945_v15 }
 0xaea   :  { %7615 = vrcp.f32 %v946_v49 }
 0xaeb   :  { %7617 = vrcp.f32 %v947_v28 }
 0xaee   :  { %v7604_v14 = vpop.eup %7603 }
 0xaef   :  { %v7606_v22 = vpop.eup %7605  ;;  %v1668_v16 = vmul.f32 %v7604_v14, %v9150_v13 }
 0xaf0   :  { %v7608_v57 = vpop.eup %7607  ;;  %v1669_v25 = vmul.f32 %v7606_v22, %v9152_v47 }
 0xaf1   :  { %v7610_v54 = vpop.eup %7609  ;;  %v1670_v37 = vmul.f32 %v7608_v57, %v9154_v36  ;;  %v1676_v5 = vrot.slane %v1668_v16, 4 }
 0xaf2   :  { %v7612_v10 = vpop.eup %7611  ;;  %v1671_v59 = vmul.f32 %v7610_v54, %v9156_v46  ;;  %v1677_v52 = vrot.slane %v1669_v25, 4 }
 0xaf3   :  { %v7614_v38 = vpop.eup %7613  ;;  %v952_v63 = vmul.f32 %v7612_v10, %v928_v50  ;;  %v1678_v15 = vrot.slane %v1670_v37, 4 }
 0xaf4   :  { %v7616_v51 = vpop.eup %7615  ;;  %v953_v7 = vmul.f32 %v7614_v38, %v929_v32  ;;  %v1679_v49 = vrot.slane %v1671_v59, 4 }
 0xaf5   :  { %v7618_v55 = vpop.eup %7617  ;;  %v954_v4 = vmul.f32 %v7616_v51, %v930_v6  ;;  %v9174_v13 = vsel %vm1684_vm9, %v952_v63, %v1676_v5  ;;  %v1693_v47 = vrot.slane %v952_v63, 4 }
 0xaf6   :  { %v955_v36 = vmul.f32 %v7618_v55, %v9166_v33  ;;  %v9178_v28 = vsel %vm1684_vm9, %v953_v7, %v1677_v52  ;;  %1710 = vrot.lane.b32.xlu0 %v9174_v13, %s7923_s11  ;;  %v1694_v50 = vrot.slane %v953_v7, 4 }
 0xaf7   :  { %v9183_v46 = vsel %vm1684_vm9, %v954_v4, %v1678_v15  ;;  %1712 = vrot.lane.b32.xlu1 %v9178_v28, %s7923_s11  ;;  %v9188_v6 = vsel %vm1684_vm9, %v1693_v47, %v1668_v16  ;;  %v1695_v32 = vrot.slane %v954_v4, 4 }
 0xaf8   :  { %12323 = vst [vmem:[#allocation37_spill] sm:$0xff] %v9188_v6  ;;  %v9191_v14 = vsel %vm1684_vm9, %v955_v36, %v1679_v49  ;;  %v9194_v33 = vsel %vm1684_vm9, %v1694_v50, %v1669_v25  ;;  %v1696_v22 = vrot.slane %v955_v36, 4  ;;  %v1725_v25 = vpop.permute.xlu1 %1724 }
 0xaf9   :  { %12324 = vst [vmem:[#allocation9_spill] sm:$0xff] %v9194_v33  ;;  %v9197_v57 = vsel %vm1684_vm9, %v1695_v32, %v1670_v37 }
 0xafa   :  { %12325 = vst [vmem:[#allocation10_spill] sm:$0xff] %v9197_v57  ;;  %1716 = vrot.lane.b32.xlu0 %v9191_v14, %s7923_s11  ;;  %v9204_v16 = vsel %vm1684_vm9, %v1696_v22, %v1671_v59  ;;  %v1753_v59 = vpop.permute.xlu0 %1752 }
 0xafb   :  { %1739 = vrot.lane.b32.xlu1 %v9174_v13, %s12101_s27  ;;  %12326 = vst [vmem:[#allocation3_spill] sm:$0xff] %v9204_v16 }
 0xafc   :  { %v9262_v54 = vpop.permute.xlu1 %1780 }
 0xafe   :  { %1741 = vrot.lane.b32.xlu0 %v9178_v28, %s12101_s27  ;;  %v1825_v5 = vpop.permute.xlu0 %1824 }
 0xaff   :  { %1745 = vrot.lane.b32.xlu1 %v9191_v14, %s12101_s27  ;;  %v1827_v6 = vmul.f32 %v1825_v5, %v9174_v13  ;;  %v1828_v17 = vmul.f32 %v1825_v5, %v9178_v28  ;;  %v9287_v61 = vmul.f32 %v1825_v5, %v9183_v46  ;;  %v9297_v62 = vmul.f32 %v1825_v5, %v9191_v14 }
 0xb00   :  { %v9264_v37 = vpop.permute.xlu1 %1808 }
 0xb01   :  { %v9290_v30 = vmul.f32 %v1827_v6, %v12281_v56 }
 0xb02   :  { %1767 = vrot.lane.b32.xlu0 %v9174_v13, %s12275_s28  ;;  %v9270_v63 = vpop.permute.xlu0 %1880 }
 0xb03   :  { %1714 = vrot.lane.b32.xlu1 %v9183_v46, %s7923_s11  ;;  %12329 = vst [vmem:[#allocation36_spill] sm:$0xff] %v9290_v30 }
 0xb04   :  { %v9266_v10 = vpop.permute.xlu1 %1852 }
 0xb06   :  { %1773 = vrot.lane.b32.xlu0 %v9191_v14, %s12275_s28 }
 0xb07   :  { %1743 = vrot.lane.b32.xlu1 %v9183_v46, %s12101_s27 }
 0xb08   :  { %v9268_v38 = vpop.permute.xlu1 %1908 }
 0xb09   :  { %12327 = vst [vmem:[#allocation31_spill] sm:$0xff] %v9268_v38 }
 0xb0a   :  { %1771 = vrot.lane.b32.xlu0 %v9183_v46, %s12275_s28 }
 0xb0b   :  { %1769 = vrot.lane.b32.xlu1 %v9178_v28, %s12275_s28 }
 0xb0c   :  { %v9272_v51 = vpop.permute.xlu1 %1936 }
 0xb0d   :  { %12328 = vst [vmem:[#allocation35_spill] sm:$0xff] %v9272_v51 }
 0xb0e   :  { %1797 = vrot.lane.b32.xlu0 %v9178_v28, %s7925_s29 }
 0xb0f   :  { %1795 = vrot.lane.b32.xlu1 %v9174_v13, %s7925_s29 }
 0xb12   :  { %1839 = vrot.lane.b32.xlu0 %v9174_v13, %s12276_s1 }
 0xb13   :  { %1801 = vrot.lane.b32.xlu1 %v9191_v14, %s7925_s29 }
 0xb16   :  { %1843 = vrot.lane.b32.xlu0 %v9183_v46, %s12276_s1 }
 0xb17   :  { %1799 = vrot.lane.b32.xlu1 %v9183_v46, %s7925_s29 }
 0xb1a   :  { %1845 = vrot.lane.b32.xlu0 %v9191_v14, %s12276_s1 }
 0xb1b   :  { %1841 = vrot.lane.b32.xlu1 %v9178_v28, %s12276_s1 }
 0xb1e   :  { %1869 = vrot.lane.b32.xlu0 %v9178_v28, %s12277_s0 }
 0xb1f   :  { %1867 = vrot.lane.b32.xlu1 %v9174_v13, %s12277_s0 }
 0xb22   :  { %1873 = vrot.lane.b32.xlu0 %v9191_v14, %s12277_s0 }
 0xb23   :  { %1871 = vrot.lane.b32.xlu1 %v9183_v46, %s12277_s0 }
 0xb26   :  { %1897 = vrot.lane.b32.xlu0 %v9178_v28, %s12278_s10 }
 0xb27   :  { %1895 = vrot.lane.b32.xlu1 %v9174_v13, %s12278_s10 }
 0xb2a   :  { %1901 = vrot.lane.b32.xlu0 %v9191_v14, %s12278_s10 }
 0xb2b   :  { %1899 = vrot.lane.b32.xlu1 %v9183_v46, %s12278_s10 }
 0xb2e   :  { %1925 = vrot.lane.b32.xlu0 %v9178_v28, %s12279_s24 }
 0xb2f   :  { %1923 = vrot.lane.b32.xlu1 %v9174_v13, %s12279_s24 }
 0xb32   :  { %1929 = vrot.lane.b32.xlu0 %v9191_v14, %s12279_s24 }
 0xb33   :  { %1927 = vrot.lane.b32.xlu1 %v9183_v46, %s12279_s24 }
 0xb68   :  { %v1711_v52 = vpop.permute.xlu0 %1710 }
 0xb69   :  { %v1713_v7 = vpop.permute.xlu1 %1712 }
 0xb6a   :  { %v1720_v11 = vsel %vm308_vm0, %v1711_v52, %v1713_v7 }
 0xb6b   :  { %v1728_v16 = vmul.f32 %v1725_v25, %v1720_v11 }
 0xb6c   :  { %v1717_v55 = vpop.permute.xlu0 %1716 }
 0xb6d   :  { %v1740_v15 = vpop.permute.xlu1 %1739  ;;  %v1732_v38 = vmul.f32 %v1728_v16, %v8465_v40  ;;  %v1721_v14 = vsel %vm308_vm0, %v1717_v55, %v1711_v52 }
 0xb70   :  { %v1742_v4 = vpop.permute.xlu0 %1741 }
 0xb71   :  { %v1746_v47 = vpop.permute.xlu1 %1745  ;;  %v1749_v33 = vsel %vm354_vm1, %v1740_v15, %v1742_v4 }
 0xb72   :  { %v1750_v11 = vsel %vm354_vm1, %v1746_v47, %v1740_v15  ;;  %v1756_v28 = vmul.f32 %v1753_v59, %v1749_v33 }
 0xb73   :  { %v1755_v33 = vmul.f32 %v1753_v59, %v1750_v11 }
 0xb74   :  { %v1768_v49 = vpop.permute.xlu0 %1767  ;;  %v1760_v40 = vmul.f32 %v1756_v28, %v12282_v41 }
 0xb75   :  { %v1715_v36 = vpop.permute.xlu1 %1714 }
 0xb76   :  { %v1718_v5 = vsel %vm308_vm0, %v1715_v36, %v1717_v55 }
 0xb78   :  { %v1774_v50 = vpop.permute.xlu0 %1773 }
 0xb79   :  { %v1744_v32 = vpop.permute.xlu1 %1743  ;;  %v1778_v52 = vsel %vm399_vm2, %v1774_v50, %v1768_v49 }
 0xb7a   :  { %v1748_v9 = vsel %vm354_vm1, %v1742_v4, %v1744_v32  ;;  %v1719_v4 = vsel %vm308_vm0, %v1713_v7, %v1715_v36  ;;  %v1747_v46 = vsel %vm354_vm1, %v1744_v32, %v1746_v47  ;;  %v1727_v36 = vmul.f32 %v1725_v25, %v1721_v14 }
 0xb7b   :  { %v1757_v6 = vmul.f32 %v1753_v59, %v1748_v9  ;;  %v1729_v32 = vmul.f32 %v1725_v25, %v1719_v4  ;;  %v1758_v16 = vmul.f32 %v1753_v59, %v1747_v46 }
 0xb7c   :  { %v1772_v22 = vpop.permute.xlu0 %1771 }
 0xb7d   :  { %v1770_v18 = vpop.permute.xlu1 %1769  ;;  %v1775_v9 = vsel %vm399_vm2, %v1772_v22, %v1774_v50  ;;  %v1761_v4 = vmul.f32 %v1757_v6, %v8496_v26  ;;  %v1759_v50 = vmul.f32 %v1755_v33, %v8473_v48  ;;  %v1783_v6 = vmul.f32 %v9262_v54, %v1778_v52 }
 0xb7e   :  { %v1777_v13 = vsel %vm399_vm2, %v1768_v49, %v1770_v18  ;;  %v1776_v56 = vsel %vm399_vm2, %v1770_v18, %v1772_v22  ;;  %v1786_v46 = vmul.f32 %v9262_v54, %v1775_v9  ;;  %v1832_v52 = vmul.f32 %v1828_v17, %v12283_v0 }
 0xb7f   :  { %v1784_v7 = vmul.f32 %v9262_v54, %v1777_v13  ;;  %v1785_v11 = vmul.f32 %v9262_v54, %v1776_v56  ;;  %v1730_v13 = vmul.f32 %v1725_v25, %v1718_v5  ;;  %v1733_v25 = vmul.f32 %v1729_v32, %v8468_v42 }
 0xb80   :  { %v1798_v20 = vpop.permute.xlu0 %1797  ;;  %v1790_v32 = vmul.f32 %v1786_v46, %v8490_v24 }
 0xb81   :  { %v1796_v3 = vpop.permute.xlu1 %1795  ;;  %v1789_v14 = vmul.f32 %v1785_v11, %v8509_v43  ;;  %v1765_v9 = vadd.f32 %v1761_v4, %v1733_v25  ;;  %v1834_v25 = vmul.f32 %v9297_v62, %v12285_v1 }
 0xb82   :  { %v1805_v15 = vsel %vm444_vm3, %v1796_v3, %v1798_v20 }
 0xb83   :  { %v1812_v55 = vmul.f32 %v9264_v37, %v1805_v15  ;;  %v1762_v15 = vmul.f32 %v1758_v16, %v8477_v53 }
 0xb84   :  { %v9274_v39 = vpop.permute.xlu0 %1839 }
 0xb85   :  { %v1802_v57 = vpop.permute.xlu1 %1801  ;;  %v1816_v5 = vmul.f32 %v1812_v55, %v8500_v45  ;;  %v1787_v55 = vmul.f32 %v1783_v6, %v8486_v23 }
 0xb86   :  { %v1806_v28 = vsel %vm444_vm3, %v1802_v57, %v1796_v3  ;;  %v1731_v3 = vmul.f32 %v1727_v36, %v8480_v2 }
 0xb87   :  { %v1811_v33 = vmul.f32 %v9264_v37, %v1806_v28 }
 0xb88   :  { %v9281_v60 = vpop.permute.xlu0 %1843  ;;  %v1763_v11 = vadd.f32 %v1759_v50, %v1731_v3  ;;  %v1833_v50 = vmul.f32 %v9287_v61, %v12284_v19 }
 0xb89   :  { %v1800_v51 = vpop.permute.xlu1 %1799  ;;  %v1815_v46 = vmul.f32 %v1811_v33, %v8518_v8 }
 0xb8a   :  { %v1804_v18 = vsel %vm444_vm3, %v1798_v20, %v1800_v51  ;;  %v1803_v59 = vsel %vm444_vm3, %v1800_v51, %v1802_v57  ;;  %v1788_v20 = vmul.f32 %v1784_v7, %v8506_v44  ;;  %v1764_v51 = vadd.f32 %v1760_v40, %v1732_v38 }
 0xb8b   :  { %v1813_v49 = vmul.f32 %v9264_v37, %v1804_v18  ;;  %v1814_v7 = vmul.f32 %v9264_v37, %v1803_v59  ;;  %v1734_v57 = vmul.f32 %v1730_v13, %v8483_v12  ;;  %v1793_v13 = vadd.f32 %v1789_v14, %v1765_v9 }
 0xb8c   :  { %v1846_v30 = vpop.permute.xlu0 %1845  ;;  %v1792_v54 = vadd.f32 %v1788_v20, %v1764_v51  ;;  %v1791_v51 = vadd.f32 %v1787_v55, %v1763_v11 }
 0xb8d   :  { %v1842_v47 = vpop.permute.xlu1 %1841  ;;  %v1817_v16 = vmul.f32 %v1813_v49, %v8503_v29  ;;  %v1847_v40 = vsel %vm521_vm4, %v9281_v60, %v1846_v30  ;;  %v1766_v36 = vadd.f32 %v1762_v15, %v1734_v57  ;;  %v1818_v37 = vmul.f32 %v1814_v7, %v8521_v34 }
 0xb8e   :  { %v1820_v4 = vadd.f32 %v1816_v5, %v1792_v54  ;;  %v1848_v59 = vsel %vm521_vm4, %v1842_v47, %v9281_v60  ;;  %v1850_v20 = vsel %vm521_vm4, %v1846_v30, %v9274_v39  ;;  %v1857_v17 = vmul.f32 %v9266_v10, %v1847_v40 }
 0xb8f   :  { %v1849_v28 = vsel %vm521_vm4, %v9274_v39, %v1842_v47  ;;  %v1794_v60 = vadd.f32 %v1790_v32, %v1766_v36  ;;  %v1821_v6 = vadd.f32 %v1817_v16, %v1793_v13  ;;  %v1856_v14 = vmul.f32 %v9266_v10, %v1848_v59 }
 0xb90   :  { %v1870_v22 = vpop.permute.xlu0 %1869  ;;  %v1858_v47 = vmul.f32 %v9266_v10, %v1850_v20  ;;  %v1855_v61 = vmul.f32 %v9266_v10, %v1849_v28  ;;  %v1819_v7 = vadd.f32 %v1815_v46, %v1791_v51  ;;  %v1861_v3 = vmul.f32 %v1857_v17, %v12289_v31  ;;  %v12331_v17 = vld [vmem:[#allocation36_spill] sm:$0xff] }
 0xb91   :  { %v1868_v56 = vpop.permute.xlu1 %1867  ;;  %v1822_v39 = vadd.f32 %v1818_v37, %v1794_v60  ;;  %v1836_v57 = vadd.f32 %v1832_v52, %v1820_v4  ;;  %v1837_v32 = vadd.f32 %v1833_v50, %v1821_v6  ;;  %v1860_v40 = vmul.f32 %v1856_v14, %v12286_v35  ;;  %v12330_v4 = vld [vmem:[#allocation31_spill] sm:$0xff] }
 0xb92   :  { %v1877_v30 = vsel %vm566_vm5, %v1868_v56, %v1870_v22  ;;  %v1862_v36 = vmul.f32 %v1858_v47, %v12290_v58  ;;  %v1859_v13 = vmul.f32 %v1855_v61, %v8542_v21  ;;  %v1835_v28 = vadd.f32 %v12331_v17, %v1819_v7 }
 0xb93   :  { %v1883_v54 = vmul.f32 %v9270_v63, %v1877_v30  ;;  %v1838_v55 = vadd.f32 %v1834_v25, %v1822_v39  ;;  %v12333_v25 = vld [vmem:[#allocation22_spill] sm:$0xff]  ;;  %v1865_v51 = vadd.f32 %v1861_v3, %v1837_v32  ;;  %v1864_v14 = vadd.f32 %v1860_v40, %v1836_v57  ;;  %v12334_v30 = vld [vmem:[#allocation25_spill] sm:$0xff]  ;;  %v12335_v39 = vld [vmem:[#allocation27_spill] sm:$0xff] }
 0xb94   :  { %v1874_v18 = vpop.permute.xlu0 %1873 }
 0xb95   :  { %v1872_v38 = vpop.permute.xlu1 %1871  ;;  %v1866_v7 = vadd.f32 %v1862_v36, %v1838_v55 }
 0xb96   :  { %v1876_v5 = vsel %vm566_vm5, %v1870_v22, %v1872_v38  ;;  %v1875_v62 = vsel %vm566_vm5, %v1872_v38, %v1874_v18  ;;  %v1878_v22 = vsel %vm566_vm5, %v1874_v18, %v1868_v56 }
 0xb97   :  { %v1884_v16 = vmul.f32 %v9270_v63, %v1876_v5  ;;  %v1885_v38 = vmul.f32 %v9270_v63, %v1875_v62  ;;  %v1886_v18 = vmul.f32 %v9270_v63, %v1878_v22  ;;  %v12336_v62 = vld [vmem:[#allocation35_spill] sm:$0xff]  ;;  %v12338_v22 = vld [vmem:[#allocation28_spill] sm:$0xff] }
 0xb98   :  { %v1898_v49 = vpop.permute.xlu0 %1897 }
 0xb99   :  { %v1896_v15 = vpop.permute.xlu1 %1895  ;;  %v1888_v60 = vmul.f32 %v1884_v16, %v12333_v25  ;;  %v1889_v5 = vmul.f32 %v1885_v38, %v12334_v30  ;;  %v9408_v38 = vld [vmem:[%s12224_s26 + $0x20] ss:$0 sm:$0xff] }
 0xb9a   :  { %v1905_v9 = vsel %vm611_vm6, %v1896_v15, %v1898_v49  ;;  %12340 = vst [vmem:[#allocation2_spill] sm:$0xff] %v9408_v38 }
 0xb9b   :  { %v1911_v56 = vmul.f32 %v12330_v4, %v1905_v9  ;;  %v1892_v40 = vadd.f32 %v1888_v60, %v1864_v14  ;;  %v1893_v36 = vadd.f32 %v1889_v5, %v1865_v51  ;;  %v9424_v51 = vld [vmem:[%s12224_s26 + $0x38] ss:$0 sm:$0xff] }
 0xb9c   :  { %v1902_v33 = vpop.permute.xlu0 %1901  ;;  %12342 = vst [vmem:[#allocation33_spill] sm:$0xff] %v9424_v51 }
 0xb9d   :  { %v1900_v10 = vpop.permute.xlu1 %1899  ;;  %v1906_v37 = vsel %vm611_vm6, %v1902_v33, %v1896_v15  ;;  %v1863_v15 = vadd.f32 %v1859_v13, %v1835_v28  ;;  %v1915_v47 = vmul.f32 %v1911_v56, %v12335_v39 }
 0xb9e   :  { %v1903_v52 = vsel %vm611_vm6, %v1900_v10, %v1902_v33  ;;  %v1904_v11 = vsel %vm611_vm6, %v1898_v49, %v1900_v10  ;;  %v12332_v49 = vld [vmem:[#allocation21_spill] sm:$0xff]  ;;  %v1914_v61 = vmul.f32 %v12330_v4, %v1906_v37  ;;  %v12337_v33 = vld [vmem:[#allocation26_spill] sm:$0xff] }
 0xb9f   :  { %v1912_v59 = vmul.f32 %v12330_v4, %v1904_v11  ;;  %v1913_v46 = vmul.f32 %v12330_v4, %v1903_v52  ;;  %v1887_v50 = vmul.f32 %v1883_v54, %v12332_v49  ;;  %v1890_v54 = vmul.f32 %v1886_v18, %v12337_v33  ;;  %v12339_v10 = vld [vmem:[#allocation29_spill] sm:$0xff]  ;;  %v12341_v37 = vld [vmem:[#allocation30_spill] sm:$0xff]  ;;  %v12374_v49 = vld [vmem:[#allocation7_spill] sm:$0xff] }
 0xba0   :  { %v1926_v20 = vpop.permute.xlu0 %1925 }
 0xba1   :  { %v1924_v6 = vpop.permute.xlu1 %1923  ;;  %v1916_v16 = vmul.f32 %v1912_v59, %v12338_v22  ;;  %v1917_v3 = vmul.f32 %v1913_v46, %v12339_v10  ;;  %v1891_v32 = vadd.f32 %v1887_v50, %v1863_v15  ;;  %v1918_v59 = vmul.f32 %v1914_v61, %v12341_v37 }
 0xba2   :  { %v1933_v63 = vsel %vm656_vm7, %v1924_v6, %v1926_v20  ;;  %v1894_v28 = vadd.f32 %v1890_v54, %v1866_v7 }
 0xba3   :  { %v1939_v9 = vmul.f32 %v12336_v62, %v1933_v63  ;;  %v1919_v18 = vadd.f32 %v1915_v47, %v1891_v32  ;;  %v1920_v50 = vadd.f32 %v1916_v16, %v1892_v40  ;;  %v1921_v60 = vadd.f32 %v1917_v3, %v1893_v36  ;;  %v9436_v63 = vld [vmem:[%s12224_s26 + $0x30] ss:$0 sm:$0xff] }
 0xba4   :  { %v1930_v57 = vpop.permute.xlu0 %1929  ;;  %12344 = vst [vmem:[#allocation34_spill] sm:$0xff] %v9436_v63  ;;  %v1922_v47 = vadd.f32 %v1918_v59, %v1894_v28 }
 0xba5   :  { %v1943_v52 = vmul.f32 %v9408_v38, %v1939_v9  ;;  %v1934_v11 = vsel %vm656_vm7, %v1930_v57, %v1924_v6  ;;  %v1928_v55 = vpop.permute.xlu1 %1927 }
 0xba6   :  { %v1942_v13 = vmul.f32 %v12336_v62, %v1934_v11  ;;  %v1931_v4 = vsel %vm656_vm7, %v1928_v55, %v1930_v57  ;;  %v1932_v56 = vsel %vm656_vm7, %v1926_v20, %v1928_v55  ;;  %v9430_v20 = vld [vmem:[%s12224_s26 + $0x28] ss:$0 sm:$0xff] }
 0xba7   :  { %v1940_v46 = vmul.f32 %v12336_v62, %v1932_v56  ;;  %v1941_v17 = vmul.f32 %v12336_v62, %v1931_v4  ;;  %v1947_v6 = vadd.f32 %v1943_v52, %v1919_v18  ;;  %12343 = vst [vmem:[#allocation32_spill] sm:$0xff] %v9430_v20 }
 0xba8   :  { %v1946_v14 = vmul.f32 %v9424_v51, %v1942_v13 }
 0xba9   :  { %v1944_v5 = vmul.f32 %v9430_v20, %v1940_v46  ;;  %v1945_v15 = vmul.f32 %v9436_v63, %v1941_v17  ;;  %v1957_v54 = vmul.f32 %v1947_v6, %v1947_v6 }
 0xbaa   :  { %v1950_v9 = vadd.f32 %v1946_v14, %v1922_v47 }
 0xbab   :  { %v1948_v61 = vadd.f32 %v1944_v5, %v1920_v50  ;;  %v1949_v62 = vadd.f32 %v1945_v15, %v1921_v60  ;;  %v12345_v50 = vld [vmem:[#allocation15_spill] sm:$0xff]  ;;  %v12346_v5 = vmov 19  }
 0xbac   :  { %v1960_v52 = vmul.f32 %v1950_v9, %v1950_v9 }
 0xbad   :  { %v1951_v7 = vadd.f32 %v1948_v61, %v1947_v6  ;;  %v1958_v16 = vmul.f32 %v1948_v61, %v1948_v61  ;;  %v1959_v57 = vmul.f32 %v1949_v62, %v1949_v62 }
 0xbaf   :  { %v1952_v3 = vadd.f32 %v1951_v7, %v1949_v62  ;;  %v1961_v32 = vadd.f32 %v1958_v16, %v1957_v54  ;;  %v12347_v7 = vmov 20  }
 0xbb1   :  { %v1953_v40 = vadd.f32 %v1952_v3, %v1950_v9  ;;  %v1962_v11 = vadd.f32 %v1961_v32, %v1959_v57 }
 0xbb3   :  { %1954 = vadd.xlane.f32.xlu1 %v1953_v40  ;;  %v1963_v55 = vadd.f32 %v1962_v11, %v1960_v52 }
 0xbb5   :  { %1964 = vadd.xlane.f32.xlu0 %v1963_v55 }
 0xc40   :  { %v1955_v36 = vpop.xlane.xlu1 %1954 }
 0xc41   :  { %v1956_v13 = vmul.f32 0.001953125, %v1955_v36 }
 0xc42   :  { %v1965_v4 = vpop.xlane.xlu0 %1964 }
 0xc43   :  { %v1967_v56 = vmul.f32 %v1956_v13, %v1956_v13  ;;  %v1966_v18 = vmul.f32 0.001953125, %v1965_v4  ;;  %v12348_v4 = vld [vmem:[#allocation9_spill] sm:$0xff] }
 0xc45   :  { %v1968_v59 = vsub.f32 %v1966_v18, %v1967_v56  ;;  %v12352_v56 = vmov 0.0  }
 0xc47   :  { %v1969_v46 = vmax.f32 %v1968_v59, 0.0 }
 0xc49   :  { %v1970_v17 = vadd.f32 1e-05, %v1969_v46 }
 0xc4b   :  { %7619 = vrsqrt.f32 %v1970_v17 }
 0xc55   :  { %v7620_v28 = vpop.eup %7619 }
 0xc56   :  { %v1972_v60 = vmul.f32 %v7620_v28, %v12345_v50 }
 0xc58   :  { %1975 = vperm.xlu1 %7454, %v1972_v60   ;;  %v1982_v14 = vmul.f32 %v1972_v60, %v1956_v13  ;;  %v1707_v13 = vld [vmem:[%s11968_s12 + $0x8] sm:$0xff] }
 0xc5a   :  { %1984 = vrot.lane.b32.xlu0 %v1982_v14, %s7925_s29 }
 0xc5c   :  { %7455 = vset.pattern.permute.xlu1 %v12346_v5 }
 0xccc   :  { %v1985_v15 = vpop.permute.xlu0 %1984 }
 0xccd   :  { %v1987_v47 = vsub.f32 %v12345_v50, %v1985_v15 }
 0xccf   :  { %1990 = vperm.xlu1 %7455, %v1987_v47  }
 0xcd3   :  { %7456 = vset.pattern.permute.xlu1 %v12347_v7 }
 0xcd7   :  { %v1976_v54 = vpop.permute.xlu1 %1975 }
 0xcd8   :  { %v1978_v16 = vmul.f32 %v1976_v54, %v1947_v6  ;;  %v1980_v3 = vmul.f32 %v1976_v54, %v1949_v62  ;;  %v1979_v57 = vmul.f32 %v1976_v54, %v1948_v61  ;;  %v1981_v32 = vmul.f32 %v1976_v54, %v1950_v9  ;;  %v12349_v6 = vld [vmem:[#allocation3_spill] sm:$0xff]  ;;  %v1706_v61 = vld [vmem:[%s11968_s12] sm:$0xff]  ;;  %v12350_v62 = vld [vmem:[#allocation37_spill] sm:$0xff] }
 0xcd9   :  { %v12351_v9 = vld [vmem:[#allocation10_spill] sm:$0xff] }
 0xd4e   :  { %v1991_v40 = vpop.permute.xlu1 %1990 }
 0xd4f   :  { %v1994_v52 = vadd.f32 %v1991_v40, %v1979_v57  ;;  %v1996_v11 = vadd.f32 %v1991_v40, %v1981_v32  ;;  %v1993_v55 = vadd.f32 %v1991_v40, %v1978_v16  ;;  %v1995_v36 = vadd.f32 %v1991_v40, %v1980_v3 }
 0xd51   :  { %2000 = vmatprep.subr.mxu0 %v1994_v52  ;;  %2071 = vmatprep.subr.mxu1 %v1996_v11 }
 0xd52   :  { %2001 = vmatpush1.msra.mxu0 %v1993_v55  ;;  %2072 = vmatpush1.msra.mxu1 %v1995_v36 }
 0xd53   :  { %7244 = vmatmul.mubr.msk.f32.vlgmr.msra.gmra.mrb[8].mxu0 %vm740_vm8, %v1707_v13  ;;  %2215 = vmatprep.subr.mxu0 %v12348_v4 }
 0xd54   :  { %2286 = vmatprep.subr.mxu1 %v12349_v6  ;;  %7245 = vmatmul.mubr.msk.f32.vlgmr.msra.gmra.mrb[8].mxu1 %vm740_vm8, %v1707_v13 }
 0xd55   :  { %2216 = vmatpush1.msra.mxu0 %v12350_v62  ;;  %2287 = vmatpush1.msra.mxu1 %v12351_v9 }
 0xd56   :  { %2279 = vmatprep.mubr.f32.mxu0 %v12352_v56  ;;  %2350 = vmatprep.mubr.f32.mxu1 %v12352_v56 }
 0xd57   :  { %7246 = vmatmul.mubr.msk.f32.vlgmr.msra.gmra.mrb[10].mxu0 %vm740_vm8, %v1706_v61 }
 0xd58   :  { %7247 = vmatmul.mubr.msk.f32.vlgmr.msra.gmra.mrb[10].mxu1 %vm740_vm8, %v1706_v61  ;;  %2780 = vmatprep.mubr.f32.mxu0 %v12352_v56 }
 0xd59   :  { %2851 = vmatprep.mubr.f32.mxu1 %v12352_v56 }
 0xe26   :  { %v9462_v18 = vpop.f32.mrb[8].mxu0 }
 0xe27   :  { %12353 = vst [vmem:[#allocation31_spill] sm:$0xff] %v9462_v18  ;;  %v2148_v59 = vmul.f32 %v9462_v18, %v9462_v18  ;;  %v9466_v46 = vpop.f32.mrb[9].mxu0  ;;  %v9468_v17 = vpop.f32.mrb[8].mxu1 }
 0xe28   :  { %12354 = vst [vmem:[#allocation36_spill] sm:$0xff] %v9466_v46  ;;  %12355 = vst [vmem:[#allocation35_spill] sm:$0xff] %v9468_v17  ;;  %v2142_v28 = vadd.f32 %v9466_v46, %v9462_v18  ;;  %v2149_v60 = vmul.f32 %v9466_v46, %v9466_v46  ;;  %v2150_v14 = vmul.f32 %v9468_v17, %v9468_v17  ;;  %v9476_v15 = vpop.f32.mrb[9].mxu1 }
 0xe29   :  { %12356 = vst [vmem:[#allocation15_spill] sm:$0xff] %v9476_v15  ;;  %v2151_v3 = vmul.f32 %v9476_v15, %v9476_v15 }
 0xe2a   :  { %v2152_v47 = vadd.f32 %v2149_v60, %v2148_v59  ;;  %v2143_v54 = vadd.f32 %v2142_v28, %v9468_v17  ;;  %v2281_v16 = vpop.f32.mrb[10].mxu0 }
 0xe2b   :  { %v2363_v57 = vmul.f32 %v2281_v16, %v2281_v16  ;;  %v2283_v32 = vpop.f32.mrb[11].mxu0  ;;  %v2352_v40 = vpop.f32.mrb[10].mxu1 }
 0xe2c   :  { %v2153_v52 = vadd.f32 %v2152_v47, %v2150_v14  ;;  %v9482_v11 = vadd.f32 %v2143_v54, %v9476_v15  ;;  %v2357_v55 = vadd.f32 %v2283_v32, %v2281_v16  ;;  %v2364_v36 = vmul.f32 %v2283_v32, %v2283_v32  ;;  %v2354_v13 = vpop.f32.mrb[11].mxu1 }
 0xe2d   :  { %v2365_v4 = vmul.f32 %v2352_v40, %v2352_v40  ;;  %v2366_v28 = vmul.f32 %v2354_v13, %v2354_v13 }
 0xe2e   :  { %12357 = vst [vmem:[#allocation9_spill] sm:$0xff] %v9482_v11  ;;  %v2367_v6 = vadd.f32 %v2364_v36, %v2363_v57  ;;  %v2358_v61 = vadd.f32 %v2357_v55, %v2352_v40  ;;  %v9484_v62 = vadd.f32 %v2153_v52, %v2151_v3  ;;  %v12359_v52 = vmov 9  }
 0xe2f   :  { %v12360_v55 = vmov 10  }
 0xe30   :  { %12358 = vst [vmem:[#allocation3_spill] sm:$0xff] %v9484_v62  ;;  %v2368_v9 = vadd.f32 %v2367_v6, %v2365_v4  ;;  %v2359_v59 = vadd.f32 %v2358_v61, %v2354_v13  ;;  %v12367_v6 = vmov 11   ;;  %v12368_v61 = vmov 15  }
 0xe32   :  { %2360 = vadd.xlane.f32.xlu0 %v2359_v59  ;;  %v2369_v60 = vadd.f32 %v2368_v9, %v2366_v28  ;;  %v12369_v9 = vmov 3  }
 0xe34   :  { %2370 = vadd.xlane.f32.xlu1 %v2369_v60 }
 0xebf   :  { %v2361_v7 = vpop.xlane.xlu0 %2360 }
 0xec0   :  { %v2362_v5 = vmul.f32 0.001953125, %v2361_v7  ;;  %v12361_v7 = vmov 12  }
 0xec1   :  { %v2371_v14 = vpop.xlane.xlu1 %2370 }
 0xec2   :  { %v2373_v47 = vmul.f32 %v2362_v5, %v2362_v5  ;;  %v2372_v54 = vmul.f32 0.001953125, %v2371_v14 }
 0xec4   :  { %v2374_v15 = vsub.f32 %v2372_v54, %v2373_v47 }
 0xec6   :  { %v2375_v17 = vmax.f32 %v2374_v15, 0.0  ;;  %v12366_v15 = vmov 22  }
 0xec8   :  { %v2376_v46 = vadd.f32 1e-05, %v2375_v17  ;;  %v12365_v17 = vmov 17  }
 0xeca   :  { %7621 = vrsqrt.f32 %v2376_v46  ;;  %v12362_v46 = vmov 13  }
 0xed4   :  { %v7622_v18 = vpop.eup %7621 }
 0xed5   :  { %v2378_v57 = vmul.f32 %v7622_v18, %v12345_v50  ;;  %v12363_v18 = vmov 14  }
 0xed7   :  { %2381 = vperm.xlu1 %7456, %v2378_v57   ;;  %v2388_v3 = vmul.f32 %v2378_v57, %v2362_v5  ;;  %v12364_v5 = vmov 16  }
 0xed9   :  { %2390 = vrot.lane.b32.xlu0 %v2388_v3, %s7925_s29 }
 0xedb   :  { %7458 = vset.pattern.permute.xlu1 %v12359_v52 }
 0xedc   :  { %2440 = vperm.xlu1 %7458, %v12345_v50  }
 0xee0   :  { %7459 = vset.pattern.permute.xlu1 %v12360_v55 }
 0xee1   :  { %2468 = vperm.xlu1 %7459, %v12345_v50  }
 0xee5   :  { %7461 = vset.pattern.permute.xlu1 %v12361_v7 }
 0xee6   :  { %2524 = vperm.xlu1 %7461, %v12345_v50  }
 0xeea   :  { %7462 = vset.pattern.permute.xlu1 %v12362_v46 }
 0xeeb   :  { %2540 = vperm.xlu1 %7462, %v12345_v50  }
 0xeef   :  { %7463 = vset.pattern.permute.xlu1 %v12363_v18 }
 0xef0   :  { %2568 = vperm.xlu1 %7463, %v12345_v50  }
 0xef4   :  { %7465 = vset.pattern.permute.xlu1 %v12364_v5 }
 0xef5   :  { %2624 = vperm.xlu1 %7465, %v12345_v50  }
 0xef9   :  { %7466 = vset.pattern.permute.xlu1 %v12365_v17 }
 0xefa   :  { %2652 = vperm.xlu1 %7466, %v12345_v50  }
 0xefe   :  { %7467 = vset.pattern.permute.xlu1 %v12366_v15 }
 0xf4b   :  { %v2391_v36 = vpop.permute.xlu0 %2390 }
 0xf4c   :  { %v2393_v4 = vsub.f32 %v12345_v50, %v2391_v36 }
 0xf4e   :  { %2396 = vperm.xlu0 %7457, %v2393_v4  }
 0xf52   :  { %7460 = vset.pattern.permute.xlu0 %v12367_v6 }
 0xf53   :  { %2496 = vperm.xlu0 %7460, %v12345_v50  }
 0xf56   :  { %v2382_v59 = vpop.permute.xlu1 %2381 }
 0xf57   :  { %7464 = vset.pattern.permute.xlu0 %v12368_v61  ;;  %v2384_v28 = vmul.f32 %v2382_v59, %v2281_v16  ;;  %v2385_v60 = vmul.f32 %v2382_v59, %v2283_v32  ;;  %v2386_v14 = vmul.f32 %v2382_v59, %v2352_v40  ;;  %v2387_v47 = vmul.f32 %v2382_v59, %v2354_v13 }
 0xf58   :  { %2596 = vperm.xlu0 %7464, %v12345_v50  }
 0xf5c   :  { %7471 = vset.pattern.permute.xlu0 %v12369_v9 }
 0xfcd   :  { %v2397_v54 = vpop.permute.xlu0 %2396 }
 0xfce   :  { %v2399_v57 = vadd.f32 %v2397_v54, %v2384_v28  ;;  %v2400_v3 = vadd.f32 %v2397_v54, %v2385_v60  ;;  %v2401_v36 = vadd.f32 %v2397_v54, %v2386_v14  ;;  %v2402_v4 = vadd.f32 %v2397_v54, %v2387_v47  ;;  %v2441_v54 = vpop.permute.xlu1 %2440 }
 0xfd0   :  { %v2403_v15 = vsub.f32 0.0, %v2399_v57  ;;  %v2404_v6 = vsub.f32 0.0, %v2400_v3  ;;  %v2406_v17 = vsub.f32 0.0, %v2402_v4  ;;  %v2405_v5 = vsub.f32 0.0, %v2401_v36 }
 0xfd2   :  { %v2407_v18 = vmul.f32 1.442695, %v2403_v15  ;;  %v2409_v61 = vmul.f32 1.442695, %v2404_v6  ;;  %v2413_v46 = vmul.f32 1.442695, %v2406_v17 }
 0xfd3   :  { %v2411_v50 = vmul.f32 1.442695, %v2405_v5 }
 0xfd4   :  { %7623 = vpow2.f32 %v2407_v18 }
 0xfd5   :  { %7625 = vpow2.f32 %v2409_v61 }
 0xfd6   :  { %7627 = vpow2.f32 %v2413_v46 }
 0xfd7   :  { %7629 = vpow2.f32 %v2411_v50 }
 0xfde   :  { %v7624_v16 = vpop.eup %7623 }
 0xfdf   :  { %v7626_v32 = vpop.eup %7625  ;;  %v2415_v40 = vadd.f32 1.0, %v7624_v16  ;;  %v2497_v16 = vpop.permute.xlu0 %2496 }
 0xfe0   :  { %v2416_v13 = vadd.f32 1.0, %v7626_v32  ;;  %v7628_v59 = vpop.eup %7627 }
 0xfe1   :  { %7631 = vrcp.f32 %v2415_v40  ;;  %v2418_v28 = vadd.f32 1.0, %v7628_v59  ;;  %v7630_v60 = vpop.eup %7629 }
 0xfe2   :  { %7633 = vrcp.f32 %v2416_v13  ;;  %v2417_v14 = vadd.f32 1.0, %v7630_v60 }
 0xfe3   :  { %7635 = vrcp.f32 %v2418_v28  ;;  %v9581_v40 = vpop.permute.xlu0 %2596 }
 0xfe4   :  { %7637 = vrcp.f32 %v2417_v14  ;;  %12373 = vst [vmem:[#allocation38_spill] sm:$0xff] %v9581_v40 }
 0xfeb   :  { %v7632_v47 = vpop.eup %7631 }
 0xfec   :  { %v7634_v15 = vpop.eup %7633  ;;  %v9509_v17 = vmul.f32 %v7632_v47, %v2399_v57  ;;  %v2469_v57 = vpop.permute.xlu1 %2468 }
 0xfed   :  { %v9511_v18 = vmul.f32 %v7634_v15, %v2400_v3  ;;  %v7636_v46 = vpop.eup %7635 }
 0xfee   :  { %2427 = vrot.lane.b32.xlu1 %v9509_v17, %s7923_s11  ;;  %v9517_v5 = vmul.f32 %v7636_v46, %v2402_v4  ;;  %v7638_v6 = vpop.eup %7637 }
 0xfef   :  { %2429 = vrot.lane.b32.xlu0 %v9511_v18, %s7923_s11  ;;  %v2425_v61 = vmul.f32 %v7638_v6, %v2401_v36 }
 0xff0   :  { %v9571_v3 = vpop.permute.xlu1 %2524 }
 0xff2   :  { %2433 = vrot.lane.b32.xlu1 %v9517_v5, %s7923_s11 }
 0xff3   :  { %2455 = vrot.lane.b32.xlu0 %v9509_v17, %s12370_s25 }
 0xff4   :  { %v9573_v36 = vpop.permute.xlu1 %2540 }
 0xff5   :  { %v2543_v20 = vmul.f32 %v9573_v36, %v9509_v17 }
 0xff6   :  { %2457 = vrot.lane.b32.xlu1 %v9511_v18, %s12370_s25 }
 0xff7   :  { %2461 = vrot.lane.b32.xlu0 %v9517_v5, %s12370_s25 }
 0xff8   :  { %v9575_v4 = vpop.permute.xlu1 %2568 }
 0xffa   :  { %2459 = vrot.lane.b32.xlu1 %v2425_v61, %s12370_s25 }
 0xffb   :  { %2431 = vrot.lane.b32.xlu0 %v2425_v61, %s7923_s11 }
 0xffc   :  { %v9577_v50 = vpop.permute.xlu1 %2624 }
 0xffd   :  { %12371 = vst [vmem:[#allocation37_spill] sm:$0xff] %v9577_v50 }
 0xffe   :  { %2485 = vrot.lane.b32.xlu1 %v9511_v18, %s12275_s28 }
 0xfff   :  { %2483 = vrot.lane.b32.xlu0 %v9509_v17, %s12275_s28 }
0x1000   :  { %v9579_v32 = vpop.permute.xlu1 %2652 }
0x1001   :  { %12372 = vst [vmem:[#allocation10_spill] sm:$0xff] %v9579_v32  ;;  %v2544_v32 = vmul.f32 %v9573_v36, %v9511_v18 }
0x1002   :  { %2511 = vrot.lane.b32.xlu1 %v9509_v17, %s7925_s29 }
0x1003   :  { %2489 = vrot.lane.b32.xlu0 %v9517_v5, %s12275_s28 }
0x1006   :  { %2517 = vrot.lane.b32.xlu1 %v9517_v5, %s7925_s29 }
0x1007   :  { %2487 = vrot.lane.b32.xlu0 %v2425_v61, %s12275_s28 }
0x100a   :  { %2515 = vrot.lane.b32.xlu1 %v2425_v61, %s7925_s29 }
0x100b   :  { %2513 = vrot.lane.b32.xlu0 %v9511_v18, %s7925_s29 }
0x100e   :  { %2557 = vrot.lane.b32.xlu1 %v9511_v18, %s12276_s1 }
0x100f   :  { %2555 = vrot.lane.b32.xlu0 %v9509_v17, %s12276_s1 }
0x1012   :  { %2583 = vrot.lane.b32.xlu1 %v9509_v17, %s12277_s0 }
0x1013   :  { %2559 = vrot.lane.b32.xlu0 %v2425_v61, %s12276_s1 }
0x1016   :  { %2587 = vrot.lane.b32.xlu1 %v2425_v61, %s12277_s0 }
0x1017   :  { %2561 = vrot.lane.b32.xlu0 %v9517_v5, %s12276_s1 }
0x101a   :  { %2611 = vrot.lane.b32.xlu1 %v9509_v17, %s12278_s10 }
0x101b   :  { %2585 = vrot.lane.b32.xlu0 %v9511_v18, %s12277_s0 }
0x101e   :  { %2615 = vrot.lane.b32.xlu1 %v2425_v61, %s12278_s10 }
0x101f   :  { %2589 = vrot.lane.b32.xlu0 %v9517_v5, %s12277_s0 }
0x1022   :  { %2639 = vrot.lane.b32.xlu1 %v9509_v17, %s12279_s24  ;;  %v9604_v17 = vmul.f32 %v9573_v36, %v2425_v61 }
0x1023   :  { %2613 = vrot.lane.b32.xlu0 %v9511_v18, %s12278_s10 }
0x1026   :  { %2643 = vrot.lane.b32.xlu1 %v2425_v61, %s12279_s24  ;;  %v9617_v61 = vmul.f32 %v2543_v20, %v12374_v49 }
0x1027   :  { %2617 = vrot.lane.b32.xlu0 %v9517_v5, %s12278_s10 }
0x102b   :  { %2641 = vrot.lane.b32.xlu0 %v9511_v18, %s12279_s24 }
0x102f   :  { %2645 = vrot.lane.b32.xlu0 %v9517_v5, %s12279_s24 }
0x1060   :  { %v2428_v13 = vpop.permute.xlu1 %2427 }
0x1061   :  { %v2430_v59 = vpop.permute.xlu0 %2429 }
0x1064   :  { %v2434_v28 = vpop.permute.xlu1 %2433 }
0x1065   :  { %v2456_v60 = vpop.permute.xlu0 %2455  ;;  %v2438_v38 = vsel %vm308_vm0, %v2434_v28, %v2428_v13 }
0x1068   :  { %v2458_v14 = vpop.permute.xlu1 %2457 }
0x1069   :  { %v2462_v47 = vpop.permute.xlu0 %2461  ;;  %v2465_v33 = vsel %vm354_vm1, %v2456_v60, %v2458_v14 }
0x106a   :  { %v2466_v37 = vsel %vm354_vm1, %v2462_v47, %v2456_v60  ;;  %v2443_v60 = vmul.f32 %v2441_v54, %v2438_v38 }
0x106b   :  { %v2471_v31 = vmul.f32 %v2469_v57, %v2466_v37 }
0x106c   :  { %v2460_v15 = vpop.permute.xlu1 %2459 }
0x106d   :  { %v2432_v46 = vpop.permute.xlu0 %2431  ;;  %v2463_v10 = vsel %vm354_vm1, %v2460_v15, %v2462_v47  ;;  %v2464_v39 = vsel %vm354_vm1, %v2458_v14, %v2460_v15  ;;  %v2437_v14 = vsel %vm308_vm0, %v2428_v13, %v2430_v59  ;;  %v2472_v15 = vmul.f32 %v2469_v57, %v2465_v33 }
0x106e   :  { %v2435_v30 = vsel %vm308_vm0, %v2432_v46, %v2434_v28  ;;  %v2436_v47 = vsel %vm308_vm0, %v2430_v59, %v2432_v46  ;;  %v2474_v25 = vmul.f32 %v2469_v57, %v2463_v10  ;;  %v2473_v46 = vmul.f32 %v2469_v57, %v2464_v39 }
0x106f   :  { %v2446_v35 = vmul.f32 %v2441_v54, %v2435_v30  ;;  %v2445_v50 = vmul.f32 %v2441_v54, %v2436_v47  ;;  %v2444_v30 = vmul.f32 %v2441_v54, %v2437_v14  ;;  %v2447_v39 = vmul.f32 %v2443_v60, %v8480_v2  ;;  %v12375_v14 = vld [vmem:[#allocation11_spill] sm:$0xff] }
0x1070   :  { %v2486_v6 = vpop.permute.xlu1 %2485  ;;  %v2475_v57 = vmul.f32 %v2471_v31, %v8473_v48  ;;  %v2477_v31 = vmul.f32 %v2473_v46, %v8496_v26 }
0x1071   :  { %v2484_v7 = vpop.permute.xlu0 %2483  ;;  %v2450_v13 = vmul.f32 %v2446_v35, %v8483_v12  ;;  %v2449_v35 = vmul.f32 %v2445_v50, %v8468_v42 }
0x1072   :  { %v2493_v21 = vsel %vm399_vm2, %v2484_v7, %v2486_v6 }
0x1073   :  { %v2500_v59 = vmul.f32 %v2497_v16, %v2493_v21 }
0x1074   :  { %v2512_v55 = vpop.permute.xlu1 %2511 }
0x1075   :  { %v2490_v52 = vpop.permute.xlu0 %2489  ;;  %v2504_v50 = vmul.f32 %v2500_v59, %v8506_v44 }
0x1076   :  { %v2494_v18 = vsel %vm399_vm2, %v2490_v52, %v2484_v7  ;;  %v2478_v7 = vmul.f32 %v2474_v25, %v8477_v53 }
0x1077   :  { %v2499_v40 = vmul.f32 %v2497_v16, %v2494_v18 }
0x1078   :  { %v2518_v9 = vpop.permute.xlu1 %2517  ;;  %v2482_v46 = vadd.f32 %v2478_v7, %v2450_v13 }
0x1079   :  { %v2488_v62 = vpop.permute.xlu0 %2487  ;;  %v2522_v10 = vsel %vm444_vm3, %v2518_v9, %v2512_v55  ;;  %v2503_v21 = vmul.f32 %v2499_v40, %v8486_v23 }
0x107a   :  { %v2491_v28 = vsel %vm399_vm2, %v2488_v62, %v2490_v52  ;;  %v2492_v37 = vsel %vm399_vm2, %v2486_v6, %v2488_v62  ;;  %v2476_v6 = vmul.f32 %v2472_v15, %v12282_v41  ;;  %v2448_v15 = vmul.f32 %v2444_v30, %v12375_v14 }
0x107b   :  { %v2502_v20 = vmul.f32 %v2497_v16, %v2491_v28  ;;  %v2501_v54 = vmul.f32 %v2497_v16, %v2492_v37 }
0x107c   :  { %v2516_v56 = vpop.permute.xlu1 %2515 }
0x107d   :  { %v2514_v11 = vpop.permute.xlu0 %2513  ;;  %v2519_v52 = vsel %vm444_vm3, %v2516_v56, %v2518_v9  ;;  %v2527_v9 = vmul.f32 %v9571_v3, %v2522_v10  ;;  %v2506_v25 = vmul.f32 %v2502_v20, %v8490_v24  ;;  %v2479_v10 = vadd.f32 %v2475_v57, %v2447_v39 }
0x107e   :  { %v2520_v47 = vsel %vm444_vm3, %v2514_v11, %v2516_v56  ;;  %v2521_v62 = vsel %vm444_vm3, %v2512_v55, %v2514_v11  ;;  %v2530_v18 = vmul.f32 %v9571_v3, %v2519_v52  ;;  %v2546_v11 = vmul.f32 %v9573_v36, %v9517_v5 }
0x107f   :  { %v2548_v55 = vmul.f32 %v2544_v32, %v12283_v0  ;;  %v2528_v16 = vmul.f32 %v9571_v3, %v2521_v62  ;;  %v2529_v28 = vmul.f32 %v9571_v3, %v2520_v47  ;;  %v2531_v40 = vmul.f32 %v2527_v9, %v8518_v8 }
0x1080   :  { %v9583_v51 = vpop.permute.xlu1 %2557  ;;  %v2505_v37 = vmul.f32 %v2501_v54, %v8509_v43  ;;  %v2534_v20 = vmul.f32 %v2530_v18, %v8521_v34  ;;  %v2480_v36 = vadd.f32 %v2476_v6, %v2448_v15  ;;  %v2481_v32 = vadd.f32 %v2477_v31, %v2449_v35 }
0x1081   :  { %v9585_v63 = vpop.permute.xlu0 %2555  ;;  %v2507_v3 = vadd.f32 %v2503_v21, %v2479_v10  ;;  %v2510_v52 = vadd.f32 %v2506_v25, %v2482_v46  ;;  %v2532_v57 = vmul.f32 %v2528_v16, %v8500_v45  ;;  %v2533_v7 = vmul.f32 %v2529_v28, %v8503_v29  ;;  %v12376_v25 = vld [vmem:[#allocation38_spill] sm:$0xff]  ;;  %v12377_v46 = vld [vmem:[#allocation23_spill] sm:$0xff] }
0x1082   :  { %v2565_v5 = vsel %vm521_vm4, %v9585_v63, %v9583_v51  ;;  %v2549_v47 = vmul.f32 %v9604_v17, %v12284_v19  ;;  %v2550_v62 = vmul.f32 %v2546_v11, %v12285_v1  ;;  %v2508_v6 = vadd.f32 %v2504_v50, %v2480_v36  ;;  %v12378_v36 = vld [vmem:[#allocation37_spill] sm:$0xff] }
0x1083   :  { %v2571_v9 = vmul.f32 %v9575_v4, %v2565_v5  ;;  %v2535_v54 = vadd.f32 %v2531_v40, %v2507_v3  ;;  %v2509_v18 = vadd.f32 %v2505_v37, %v2481_v32  ;;  %v2538_v31 = vadd.f32 %v2534_v20, %v2510_v52  ;;  %v12379_v3 = vld [vmem:[#allocation24_spill] sm:$0xff] }
0x1084   :  { %v9601_v22 = vpop.permute.xlu1 %2583  ;;  %v2536_v28 = vadd.f32 %v2532_v57, %v2508_v6 }
0x1085   :  { %v9612_v58 = vpop.permute.xlu0 %2559  ;;  %v2537_v15 = vadd.f32 %v2533_v7, %v2509_v18  ;;  %v2575_v50 = vmul.f32 %v2571_v9, %v12377_v46  ;;  %v2551_v37 = vadd.f32 %v9617_v61, %v2535_v54  ;;  %v2554_v57 = vadd.f32 %v2550_v62, %v2538_v31  ;;  %v12380_v7 = vld [vmem:[#allocation21_spill] sm:$0xff]  ;;  %v12381_v62 = vld [vmem:[#allocation22_spill] sm:$0xff] }
0x1086   :  { %v2564_v13 = vsel %vm521_vm4, %v9583_v51, %v9612_v58  ;;  %v2552_v9 = vadd.f32 %v2548_v55, %v2536_v28  ;;  %v12382_v31 = vld [vmem:[#allocation17_spill] sm:$0xff]  ;;  %v12387_v28 = vld [vmem:[#allocation26_spill] sm:$0xff] }
0x1087   :  { %v2572_v51 = vmul.f32 %v9575_v4, %v2564_v13  ;;  %v2553_v54 = vadd.f32 %v2549_v47, %v2537_v15  ;;  %v12386_v55 = vld [vmem:[#allocation25_spill] sm:$0xff] }
0x1088   :  { %v9623_v38 = vpop.permute.xlu1 %2587 }
0x1089   :  { %v2562_v33 = vpop.permute.xlu0 %2561  ;;  %v2576_v52 = vmul.f32 %v2572_v51, %v12379_v3  ;;  %v12383_v51 = vld [vmem:[#allocation18_spill] sm:$0xff] }
0x108a   :  { %v2563_v21 = vsel %vm521_vm4, %v9612_v58, %v2562_v33  ;;  %v2566_v17 = vsel %vm521_vm4, %v2562_v33, %v9585_v63 }
0x108b   :  { %v2573_v20 = vmul.f32 %v9575_v4, %v2563_v21  ;;  %v2574_v5 = vmul.f32 %v9575_v4, %v2566_v17  ;;  %v12384_v17 = vld [vmem:[#allocation27_spill] sm:$0xff] }
0x108c   :  { %v9642_v60 = vpop.permute.xlu1 %2611 }
0x108d   :  { %v2586_v56 = vpop.permute.xlu0 %2585  ;;  %v2578_v21 = vmul.f32 %v2574_v5, %v12383_v51 }
0x108e   :  { %v2593_v59 = vsel %vm566_vm5, %v9601_v22, %v2586_v56  ;;  %v2592_v35 = vsel %vm566_vm5, %v2586_v56, %v9623_v38 }
0x108f   :  { %v2599_v11 = vmul.f32 %v12376_v25, %v2593_v59  ;;  %v2600_v58 = vmul.f32 %v12376_v25, %v2592_v35  ;;  %v2577_v35 = vmul.f32 %v2573_v20, %v12382_v31  ;;  %v12388_v20 = vld [vmem:[#allocation10_spill] sm:$0xff] }
0x1090   :  { %v2616_v30 = vpop.permute.xlu1 %2615 }
0x1091   :  { %v2590_v39 = vpop.permute.xlu0 %2589  ;;  %v2603_v13 = vmul.f32 %v2599_v11, %v12380_v7  ;;  %v2604_v18 = vmul.f32 %v2600_v58, %v12381_v62 }
0x1092   :  { %v2591_v63 = vsel %vm566_vm5, %v9623_v38, %v2590_v39  ;;  %v2594_v33 = vsel %vm566_vm5, %v2590_v39, %v9601_v22  ;;  %v2579_v39 = vadd.f32 %v2575_v50, %v2551_v37 }
0x1093   :  { %v2601_v6 = vmul.f32 %v12376_v25, %v2591_v63  ;;  %v2602_v22 = vmul.f32 %v12376_v25, %v2594_v33 }
0x1094   :  { %v2640_v40 = vpop.permute.xlu1 %2639 }
0x1095   :  { %v2614_v16 = vpop.permute.xlu0 %2613  ;;  %v2605_v47 = vmul.f32 %v2601_v6, %v12386_v55  ;;  %v2606_v15 = vmul.f32 %v2602_v22, %v12387_v28  ;;  %v12390_v6 = vld [vmem:[#allocation30_spill] sm:$0xff] }
0x1096   :  { %v2620_v10 = vsel %vm611_vm6, %v2614_v16, %v2616_v30  ;;  %v2621_v56 = vsel %vm611_vm6, %v9642_v60, %v2614_v16  ;;  %v2580_v16 = vadd.f32 %v2576_v52, %v2552_v9  ;;  %v2581_v52 = vadd.f32 %v2577_v35, %v2553_v54  ;;  %v12391_v22 = vld [vmem:[#allocation2_spill] sm:$0xff]  ;;  %v12392_v9 = vld [vmem:[#allocation32_spill] sm:$0xff] }
0x1097   :  { %v2627_v32 = vmul.f32 %v12378_v36, %v2621_v56  ;;  %v2628_v38 = vmul.f32 %v12378_v36, %v2620_v10  ;;  %v2607_v10 = vadd.f32 %v2603_v13, %v2579_v39  ;;  %v2582_v13 = vadd.f32 %v2578_v21, %v2554_v57 }
0x1098   :  { %v2644_v63 = vpop.permute.xlu1 %2643  ;;  %v2608_v37 = vadd.f32 %v2604_v18, %v2580_v16 }
0x1099   :  { %v2618_v59 = vpop.permute.xlu0 %2617  ;;  %v2631_v11 = vmul.f32 %v2627_v32, %v12384_v17  ;;  %v2609_v17 = vadd.f32 %v2605_v47, %v2581_v52 }
0x109a   :  { %v2619_v61 = vsel %vm611_vm6, %v2616_v30, %v2618_v59  ;;  %v2622_v4 = vsel %vm611_vm6, %v2618_v59, %v9642_v60  ;;  %v12385_v30 = vld [vmem:[#allocation28_spill] sm:$0xff] }
0x109b   :  { %v2629_v25 = vmul.f32 %v12378_v36, %v2619_v61  ;;  %v2632_v56 = vmul.f32 %v2628_v38, %v12385_v30  ;;  %v2630_v60 = vmul.f32 %v12378_v36, %v2622_v4  ;;  %v2635_v38 = vadd.f32 %v2631_v11, %v2607_v10  ;;  %v12389_v36 = vld [vmem:[#allocation29_spill] sm:$0xff]  ;;  %v12393_v10 = vld [vmem:[#allocation34_spill] sm:$0xff] }
0x109d   :  { %v2642_v50 = vpop.permute.xlu0 %2641  ;;  %v2633_v59 = vmul.f32 %v2629_v25, %v12389_v36  ;;  %v2636_v61 = vadd.f32 %v2632_v56, %v2608_v37  ;;  %v2634_v4 = vmul.f32 %v2630_v60, %v12390_v6  ;;  %v12394_v60 = vld [vmem:[#allocation33_spill] sm:$0xff] }
0x109e   :  { %v2648_v58 = vsel %vm656_vm7, %v2642_v50, %v2644_v63  ;;  %v2649_v33 = vsel %vm656_vm7, %v2640_v40, %v2642_v50  ;;  %v2610_v50 = vadd.f32 %v2606_v15, %v2582_v13 }
0x109f   :  { %v2655_v5 = vmul.f32 %v12388_v20, %v2649_v33  ;;  %v2656_v32 = vmul.f32 %v12388_v20, %v2648_v58  ;;  %v2637_v25 = vadd.f32 %v2633_v59, %v2609_v17 }
0x10a0   :  { %v2638_v16 = vadd.f32 %v2634_v4, %v2610_v50  ;;  %v7896_v50 = vld [vmem:[%s12309_s2] sm:$0xff] }
0x10a1   :  { %v2659_v39 = vmul.f32 %v12391_v22, %v2655_v5  ;;  %v2660_v30 = vmul.f32 %v12392_v9, %v2656_v32  ;;  %v2646_v28 = vpop.permute.xlu0 %2645 }
0x10a2   :  { %v2647_v18 = vsel %vm656_vm7, %v2644_v63, %v2646_v28  ;;  %v2650_v54 = vsel %vm656_vm7, %v2646_v28, %v2640_v40 }
0x10a3   :  { %v2663_v57 = vadd.f32 %v2659_v39, %v2635_v38  ;;  %v2664_v35 = vadd.f32 %v2660_v30, %v2636_v61  ;;  %v2657_v21 = vmul.f32 %v12388_v20, %v2647_v18  ;;  %v2658_v11 = vmul.f32 %v12388_v20, %v2650_v54 }
0x10a5   :  { %v2661_v56 = vmul.f32 %v12393_v10, %v2657_v21  ;;  %v2662_v58 = vmul.f32 %v12394_v60, %v2658_v11  ;;  %v2673_v47 = vmul.f32 %v2663_v57, %v2663_v57  ;;  %v2674_v15 = vmul.f32 %v2664_v35, %v2664_v35  ;;  %v12397_v10 = vld [vmem:[#allocation9_spill] sm:$0xff] }
0x10a6   :  { %v2667_v63 = vadd.f32 %v2664_v35, %v2663_v57  ;;  %v12395_v21 = vmov 23  }
0x10a7   :  { %v2665_v33 = vadd.f32 %v2661_v56, %v2637_v25  ;;  %v2666_v37 = vadd.f32 %v2662_v58, %v2638_v16  ;;  %v2677_v40 = vadd.f32 %v2674_v15, %v2673_v47  ;;  %v12396_v16 = vmov 2  }
0x10a9   :  { %v2668_v5 = vadd.f32 %v2667_v63, %v2665_v33  ;;  %v2675_v32 = vmul.f32 %v2665_v33, %v2665_v33  ;;  %v2676_v30 = vmul.f32 %v2666_v37, %v2666_v37 }
0x10ab   :  { %v2669_v28 = vadd.f32 %v2668_v5, %v2666_v37  ;;  %v2678_v52 = vadd.f32 %v2677_v40, %v2675_v32 }
0x10ad   :  { %2670 = vadd.xlane.f32.xlu1 %v2669_v28  ;;  %v2679_v13 = vadd.f32 %v2678_v52, %v2676_v30  ;;  %v1708_v30 = vld [vmem:[%s11968_s12 + $0x10] sm:$0xff] }
0x10af   :  { %2680 = vadd.xlane.f32.xlu0 %v2679_v13 }
0x113a   :  { %v2671_v17 = vpop.xlane.xlu1 %2670 }
0x113b   :  { %v2672_v20 = vmul.f32 0.001953125, %v2671_v17 }
0x113c   :  { %v2681_v38 = vpop.xlane.xlu0 %2680 }
0x113d   :  { %v2683_v59 = vmul.f32 %v2672_v20, %v2672_v20  ;;  %v2682_v61 = vmul.f32 0.001953125, %v2681_v38 }
0x113f   :  { %v2684_v4 = vsub.f32 %v2682_v61, %v2683_v59 }
0x1141   :  { %v2685_v22 = vmax.f32 %v2684_v4, 0.0 }
0x1143   :  { %v2686_v39 = vadd.f32 1e-05, %v2685_v22 }
0x1145   :  { %7639 = vrsqrt.f32 %v2686_v39 }
0x114f   :  { %v7640_v9 = vpop.eup %7639 }
0x1150   :  { %v2688_v18 = vmul.f32 %v7896_v50, %v7640_v9 }
0x1152   :  { %2691 = vperm.xlu1 %7467, %v2688_v18   ;;  %v2698_v54 = vmul.f32 %v2688_v18, %v2672_v20 }
0x1154   :  { %2700 = vrot.lane.b32.xlu0 %v2698_v54, %s7925_s29 }
0x1156   :  { %7468 = vset.pattern.permute.xlu1 %v12395_v21 }
0x11c6   :  { %v2701_v11 = vpop.permute.xlu0 %2700 }
0x11c7   :  { %v2703_v25 = vsub.f32 %v7896_v50, %v2701_v11  ;;  %v12399_v50 = vld [vmem:[#allocation3_spill] sm:$0xff] }
0x11c9   :  { %2706 = vperm.xlu1 %7468, %v2703_v25  }
0x11cd   :  { %7469 = vset.pattern.permute.xlu1 %v12396_v16 }
0x11d1   :  { %v2692_v56 = vpop.permute.xlu1 %2691 }
0x11d2   :  { %v2694_v60 = vmul.f32 %v2692_v56, %v2663_v57  ;;  %v2696_v58 = vmul.f32 %v2692_v56, %v2665_v33  ;;  %v2695_v47 = vmul.f32 %v2692_v56, %v2664_v35  ;;  %v2697_v15 = vmul.f32 %v2692_v56, %v2666_v37 }
0x11d3   :  { %v12398_v57 = vmov 0.0  }
0x11ed   :  { %2145 = vadd.xlane.f32.xlu1 %v12397_v10 }
0x1248   :  { %v2707_v63 = vpop.permute.xlu1 %2706 }
0x1249   :  { %v2710_v5 = vadd.f32 %v2707_v63, %v2695_v47  ;;  %v2712_v32 = vadd.f32 %v2707_v63, %v2697_v15  ;;  %v2709_v40 = vadd.f32 %v2707_v63, %v2694_v60  ;;  %v2711_v28 = vadd.f32 %v2707_v63, %v2696_v58 }
0x124b   :  { %2716 = vmatprep.subr.mxu0 %v2710_v5  ;;  %2787 = vmatprep.subr.mxu1 %v2712_v32 }
0x124c   :  { %2717 = vmatpush1.msra.mxu0 %v2709_v40  ;;  %2788 = vmatpush1.msra.mxu1 %v2711_v28 }
0x124d   :  { %7248 = vmatmul.mubr.msk.f32.vlgmr.msra.gmra.mrb[12].mxu0 %vm740_vm8, %v1708_v30  ;;  %7249 = vmatmul.mubr.msk.f32.vlgmr.msra.gmra.mrb[12].mxu1 %vm740_vm8, %v1708_v30 }
0x124e   :  { %3319 = vmatprep.mubr.f32.mxu0 %v12398_v57  ;;  %3390 = vmatprep.mubr.f32.mxu1 %v12398_v57 }
0x127a   :  { %v2146_v11 = vpop.xlane.xlu1 %2145 }
0x127b   :  { %v2147_v10 = vmul.f32 0.001953125, %v2146_v11 }
0x127d   :  { %v2158_v15 = vmul.f32 %v2147_v10, %v2147_v10 }
0x1320   :  { %v9754_v35 = vpop.f32.mrb[12].mxu0  ;;  %v9756_v33 = vpop.f32.mrb[12].mxu1 }
0x1321   :  { %v2864_v37 = vmul.f32 %v9754_v35, %v9754_v35  ;;  %v9760_v52 = vpop.f32.mrb[13].mxu0  ;;  %v9762_v13 = vpop.f32.mrb[13].mxu1  ;;  %v2866_v38 = vmul.f32 %v9756_v33, %v9756_v33 }
0x1322   :  { %v2858_v17 = vadd.f32 %v9760_v52, %v9754_v35  ;;  %v2865_v20 = vmul.f32 %v9760_v52, %v9760_v52  ;;  %v2867_v39 = vmul.f32 %v9762_v13, %v9762_v13 }
0x1324   :  { %v2868_v59 = vadd.f32 %v2865_v20, %v2864_v37  ;;  %v2859_v61 = vadd.f32 %v2858_v17, %v9756_v33  ;;  %v1709_v37 = vld [vmem:[%s11969_s13] sm:$0xff] }
0x1326   :  { %v2869_v4 = vadd.f32 %v2868_v59, %v2866_v38  ;;  %v2860_v22 = vadd.f32 %v2859_v61, %v9762_v13 }
0x1328   :  { %2861 = vadd.xlane.f32.xlu0 %v2860_v22  ;;  %v2870_v9 = vadd.f32 %v2869_v4, %v2867_v39  ;;  %v12400_v22 = vmov 0   ;;  %v12401_v39 = vmov 1  }
0x132c   :  { %2871 = vadd.xlane.f32.xlu0 %v2870_v9 }
0x1330   :  { %2155 = vadd.xlane.f32.xlu0 %v12399_v50 }
0x13b5   :  { %v2862_v18 = vpop.xlane.xlu0 %2861 }
0x13b6   :  { %v2863_v54 = vmul.f32 0.001953125, %v2862_v18 }
0x13b8   :  { %v2874_v56 = vmul.f32 %v2863_v54, %v2863_v54 }
0x13b9   :  { %v2872_v25 = vpop.xlane.xlu0 %2871 }
0x13ba   :  { %v2873_v60 = vmul.f32 0.001953125, %v2872_v25  ;;  %v12403_v25 = vmov 4  }
0x13bc   :  { %v2875_v58 = vsub.f32 %v2873_v60, %v2874_v56  ;;  %v12405_v56 = vmov 3   ;;  %v12406_v60 = vmov 21  }
0x13bd   :  { %v2156_v47 = vpop.xlane.xlu0 %2155 }
0x13be   :  { %v2876_v63 = vmax.f32 %v2875_v58, 0.0  ;;  %v2157_v5 = vmul.f32 0.001953125, %v2156_v47  ;;  %v12407_v58 = vmov 5   ;;  %v12408_v47 = vmov 7  }
0x13c0   :  { %v2877_v32 = vadd.f32 1e-05, %v2876_v63  ;;  %v2159_v40 = vsub.f32 %v2157_v5, %v2158_v15  ;;  %v12409_v15 = vmov 8   ;;  %v12410_v63 = vmov 18  }
0x13c2   :  { %7641 = vrsqrt.f32 %v2877_v32  ;;  %v2160_v28 = vmax.f32 %v2159_v40, 0.0 }
0x13c4   :  { %v2161_v30 = vadd.f32 1e-05, %v2160_v28 }
0x13c6   :  { %7643 = vrsqrt.f32 %v2161_v30 }
0x13cc   :  { %v7642_v17 = vpop.eup %7641 }
0x13cd   :  { %v2879_v20 = vmul.f32 %v7642_v17, %v1709_v37 }
0x13cf   :  { %v2889_v38 = vmul.f32 %v2879_v20, %v2863_v54  ;;  %v9785_v54 = vld [vmem:[%s11970_s14] sm:$0xff] }
0x13d0   :  { %v7644_v59 = vpop.eup %7643  ;;  %12402 = vst [vmem:[#allocation38_spill] sm:$0xff] %v9785_v54 }
0x13d1   :  { %2891 = vrot.lane.b32.xlu1 %v2889_v38, %s7925_s29  ;;  %v2163_v61 = vmul.f32 %v7644_v59, %v1709_v37 }
0x13d3   :  { %v2173_v4 = vmul.f32 %v2163_v61, %v2147_v10  ;;  %v12404_v10 = vmov 6  }
0x13d5   :  { %2882 = vperm.xlu1 %7469, %v2879_v20   ;;  %2175 = vrot.lane.b32.xlu0 %v2173_v4, %s7925_s29  ;;  %v12411_v4 = vld [vmem:[#allocation31_spill] sm:$0xff] }
0x13d9   :  { %7470 = vset.pattern.permute.xlu1 %v12400_v22 }
0x13da   :  { %2166 = vperm.xlu1 %7470, %v2163_v61  }
0x13de   :  { %7472 = vset.pattern.permute.xlu1 %v12401_v39 }
0x1443   :  { %v2892_v9 = vpop.permute.xlu1 %2891 }
0x1444   :  { %v2894_v50 = vsub.f32 %v1709_v37, %v2892_v9 }
0x1446   :  { %2897 = vperm.xlu0 %7471, %v2894_v50   ;;  %v12412_v50 = vld [vmem:[#allocation36_spill] sm:$0xff] }
0x1447   :  { %v2176_v18 = vpop.permute.xlu0 %2175 }
0x1448   :  { %v2178_v11 = vsub.f32 %v1709_v37, %v2176_v18 }
0x144a   :  { %2181 = vperm.xlu1 %7472, %v2178_v11   ;;  %7474 = vset.pattern.permute.xlu0 %v12401_v39  ;;  %v12413_v11 = vld [vmem:[#allocation35_spill] sm:$0xff] }
0x144b   :  { %3007 = vperm.xlu0 %7474, %v9785_v54  }
0x144e   :  { %7473 = vset.pattern.permute.xlu1 %v12400_v22 }
0x144f   :  { %7477 = vset.pattern.permute.xlu0 %v12403_v25  ;;  %2979 = vperm.xlu1 %7473, %v9785_v54  }
0x1450   :  { %3079 = vperm.xlu0 %7477, %v9785_v54  }
0x1453   :  { %7475 = vset.pattern.permute.xlu1 %v12396_v16 }
0x1454   :  { %3035 = vperm.xlu1 %7475, %v9785_v54   ;;  %7479 = vset.pattern.permute.xlu0 %v12404_v10  ;;  %v2883_v5 = vpop.permute.xlu1 %2882 }
0x1455   :  { %3135 = vperm.xlu0 %7479, %v9785_v54   ;;  %v2885_v32 = vmul.f32 %v2883_v5, %v9754_v35  ;;  %v2886_v40 = vmul.f32 %v2883_v5, %v9760_v52  ;;  %v2887_v28 = vmul.f32 %v2883_v5, %v9756_v33  ;;  %v2888_v30 = vmul.f32 %v2883_v5, %v9762_v13 }
0x1458   :  { %7476 = vset.pattern.permute.xlu1 %v12405_v56 }
0x1459   :  { %3063 = vperm.xlu1 %7476, %v9785_v54   ;;  %7485 = vset.pattern.permute.xlu0 %v12406_v60  ;;  %v2167_v37 = vpop.permute.xlu1 %2166 }
0x145a   :  { %v2169_v9 = vmul.f32 %v2167_v37, %v12411_v4  ;;  %v2170_v18 = vmul.f32 %v2167_v37, %v12412_v50  ;;  %v2171_v5 = vmul.f32 %v2167_v37, %v12413_v11 }
0x145d   :  { %7478 = vset.pattern.permute.xlu1 %v12407_v58 }
0x145e   :  { %3107 = vperm.xlu1 %7478, %v9785_v54  }
0x1462   :  { %7480 = vset.pattern.permute.xlu1 %v12408_v47 }
0x1463   :  { %3163 = vperm.xlu1 %7480, %v9785_v54  }
0x1467   :  { %7481 = vset.pattern.permute.xlu1 %v12409_v15 }
0x1468   :  { %3191 = vperm.xlu1 %7481, %v9785_v54  }
0x146c   :  { %7482 = vset.pattern.permute.xlu1 %v12410_v63 }
0x14c5   :  { %v2898_v17 = vpop.permute.xlu0 %2897 }
0x14c6   :  { %v9811_v20 = vadd.f32 %v2898_v17, %v2885_v32  ;;  %v9813_v38 = vadd.f32 %v2898_v17, %v2886_v40  ;;  %v9815_v59 = vadd.f32 %v2898_v17, %v2887_v28  ;;  %v9817_v61 = vadd.f32 %v2898_v17, %v2888_v30  ;;  %v12414_v32 = vld [vmem:[#allocation15_spill] sm:$0xff] }
0x14c7   :  { %v2172_v40 = vmul.f32 %v2167_v37, %v12414_v32 }
0x14c8   :  { %v2904_v35 = vsub.f32 0.0, %v9811_v20  ;;  %v2905_v52 = vsub.f32 0.0, %v9813_v38  ;;  %v2906_v33 = vsub.f32 0.0, %v9815_v59  ;;  %v2907_v13 = vsub.f32 0.0, %v9817_v61 }
0x14c9   :  { %v2182_v28 = vpop.permute.xlu1 %2181 }
0x14ca   :  { %v2908_v63 = vmul.f32 1.442695, %v2904_v35  ;;  %v2910_v30 = vmul.f32 1.442695, %v2905_v52  ;;  %v2912_v17 = vmul.f32 1.442695, %v2906_v33  ;;  %v2184_v15 = vadd.f32 %v2182_v28, %v2169_v9 }
0x14cb   :  { %v2914_v4 = vmul.f32 1.442695, %v2907_v13  ;;  %v2185_v47 = vadd.f32 %v2182_v28, %v2170_v18  ;;  %v2186_v58 = vadd.f32 %v2182_v28, %v2171_v5  ;;  %v2187_v60 = vadd.f32 %v2182_v28, %v2172_v40 }
0x14cc   :  { %7645 = vpow2.f32 %v2908_v63  ;;  %v2188_v10 = vsub.f32 0.0, %v2184_v15 }
0x14cd   :  { %7647 = vpow2.f32 %v2910_v30  ;;  %v2189_v25 = vsub.f32 0.0, %v2185_v47  ;;  %v2190_v39 = vsub.f32 0.0, %v2186_v58  ;;  %v2191_v22 = vsub.f32 0.0, %v2187_v60 }
0x14ce   :  { %7649 = vpow2.f32 %v2912_v17  ;;  %v2192_v50 = vmul.f32 1.442695, %v2188_v10 }
0x14cf   :  { %7651 = vpow2.f32 %v2914_v4  ;;  %v2194_v11 = vmul.f32 1.442695, %v2189_v25  ;;  %v2196_v37 = vmul.f32 1.442695, %v2190_v39  ;;  %v2198_v32 = vmul.f32 1.442695, %v2191_v22 }
0x14d0   :  { %7653 = vpow2.f32 %v2192_v50 }
0x14d1   :  { %7655 = vpow2.f32 %v2194_v11 }
0x14d2   :  { %7657 = vpow2.f32 %v2196_v37 }
0x14d3   :  { %7659 = vpow2.f32 %v2198_v32 }
0x14d6   :  { %v7646_v9 = vpop.eup %7645 }
0x14d7   :  { %v7648_v35 = vpop.eup %7647  ;;  %v2916_v52 = vadd.f32 1.0, %v7646_v9 }
0x14d8   :  { %v7650_v33 = vpop.eup %7649  ;;  %v2917_v63 = vadd.f32 1.0, %v7648_v35 }
0x14d9   :  { %v7652_v13 = vpop.eup %7651  ;;  %v2918_v18 = vadd.f32 1.0, %v7650_v33  ;;  %7661 = vrcp.f32 %v2916_v52 }
0x14da   :  { %v7654_v5 = vpop.eup %7653  ;;  %v2919_v40 = vadd.f32 1.0, %v7652_v13  ;;  %7663 = vrcp.f32 %v2917_v63 }
0x14db   :  { %v7656_v10 = vpop.eup %7655  ;;  %7665 = vrcp.f32 %v2918_v18  ;;  %v2200_v25 = vadd.f32 1.0, %v7654_v5 }
0x14dc   :  { %v7658_v39 = vpop.eup %7657  ;;  %7667 = vrcp.f32 %v2919_v40  ;;  %v2201_v22 = vadd.f32 1.0, %v7656_v10 }
0x14dd   :  { %v7660_v28 = vpop.eup %7659  ;;  %v2202_v30 = vadd.f32 1.0, %v7658_v39  ;;  %7669 = vrcp.f32 %v2200_v25 }
0x14de   :  { %v2203_v17 = vadd.f32 1.0, %v7660_v28  ;;  %7671 = vrcp.f32 %v2201_v22 }
0x14df   :  { %7673 = vrcp.f32 %v2202_v30 }
0x14e0   :  { %7675 = vrcp.f32 %v2203_v17 }
0x14e3   :  { %v7662_v4 = vpop.eup %7661 }
0x14e4   :  { %v7664_v50 = vpop.eup %7663  ;;  %v2924_v11 = vmul.f32 %v7662_v4, %v9811_v20 }
0x14e5   :  { %v7666_v37 = vpop.eup %7665  ;;  %v2925_v32 = vmul.f32 %v7664_v50, %v9813_v38 }
0x14e6   :  { %v7668_v9 = vpop.eup %7667  ;;  %v2926_v35 = vmul.f32 %v7666_v37, %v9815_v59  ;;  %v2932_v13 = vrot.slane %v2924_v11, 4  ;;  %v2980_v37 = vpop.permute.xlu1 %2979 }
0x14e7   :  { %v7670_v52 = vpop.eup %7669  ;;  %v2927_v33 = vmul.f32 %v7668_v9, %v9817_v61  ;;  %v2933_v40 = vrot.slane %v2925_v32, 4 }
0x14e8   :  { %v7672_v63 = vpop.eup %7671  ;;  %v2208_v18 = vmul.f32 %v7670_v52, %v2184_v15  ;;  %v2934_v39 = vrot.slane %v2926_v35, 4  ;;  %v3008_v52 = vpop.permute.xlu0 %3007 }
0x14e9   :  { %v7674_v5 = vpop.eup %7673  ;;  %v2209_v10 = vmul.f32 %v7672_v63, %v2185_v47  ;;  %v2935_v38 = vrot.slane %v2927_v33, 4 }
0x14ea   :  { %v7676_v25 = vpop.eup %7675  ;;  %v2210_v22 = vmul.f32 %v7674_v5, %v2186_v58  ;;  %v9832_v20 = vsel %vm1684_vm9, %v2208_v18, %v2932_v13  ;;  %v2948_v28 = vrot.slane %v2208_v18, 4 }
0x14eb   :  { %v2211_v30 = vmul.f32 %v7676_v25, %v2187_v60  ;;  %v9835_v59 = vsel %vm1684_vm9, %v2209_v10, %v2933_v40  ;;  %2965 = vrot.lane.b32.xlu0 %v9832_v20, %s7923_s11  ;;  %v2949_v61 = vrot.slane %v2209_v10, 4 }
0x14ec   :  { %v9840_v15 = vsel %vm1684_vm9, %v2210_v22, %v2934_v39  ;;  %2967 = vrot.lane.b32.xlu1 %v9835_v59, %s7923_s11  ;;  %v9845_v58 = vsel %vm1684_vm9, %v2948_v28, %v2924_v11  ;;  %v2950_v47 = vrot.slane %v2210_v22, 4  ;;  %v3080_v63 = vpop.permute.xlu0 %3079 }
0x14ed   :  { %12415 = vst [vmem:[#allocation37_spill] sm:$0xff] %v9845_v58  ;;  %v9848_v17 = vsel %vm1684_vm9, %v2211_v30, %v2935_v38  ;;  %v9851_v60 = vsel %vm1684_vm9, %v2949_v61, %v2925_v32  ;;  %v2951_v4 = vrot.slane %v2211_v30, 4  ;;  %v9919_v32 = vpop.permute.xlu1 %3035  ;;  %v3082_v58 = vmul.f32 %v3080_v63, %v9832_v20 }
0x14ee   :  { %12416 = vst [vmem:[#allocation10_spill] sm:$0xff] %v9851_v60  ;;  %v9854_v50 = vsel %vm1684_vm9, %v2950_v47, %v2926_v35  ;;  %v3083_v6 = vmul.f32 %v3080_v63, %v9835_v59  ;;  %v9944_v55 = vmul.f32 %v3080_v63, %v9840_v15  ;;  %v9954_v7 = vmul.f32 %v3080_v63, %v9848_v17 }
0x14ef   :  { %12417 = vst [vmem:[#allocation2_spill] sm:$0xff] %v9854_v50  ;;  %2971 = vrot.lane.b32.xlu0 %v9848_v17, %s7923_s11  ;;  %v9861_v11 = vsel %vm1684_vm9, %v2951_v4, %v2927_v33  ;;  %v9947_v62 = vmul.f32 %v3082_v58, %v12374_v49 }
0x14f0   :  { %2994 = vrot.lane.b32.xlu1 %v9832_v20, %s12370_s25  ;;  %12418 = vst [vmem:[#allocation32_spill] sm:$0xff] %v9861_v11  ;;  %v9927_v13 = vpop.permute.xlu0 %3135 }
0x14f1   :  { %v9921_v9 = vpop.permute.xlu1 %3063  ;;  %12421 = vst [vmem:[#allocation9_spill] sm:$0xff] %v9947_v62 }
0x14f3   :  { %2996 = vrot.lane.b32.xlu0 %v9835_v59, %s12370_s25 }
0x14f4   :  { %3000 = vrot.lane.b32.xlu1 %v9848_v17, %s12370_s25 }
0x14f5   :  { %v9923_v35 = vpop.permute.xlu1 %3107 }
0x14f7   :  { %3022 = vrot.lane.b32.xlu0 %v9832_v20, %s12275_s28 }
0x14f8   :  { %2969 = vrot.lane.b32.xlu1 %v9840_v15, %s7923_s11 }
0x14f9   :  { %v9925_v33 = vpop.permute.xlu1 %3163 }
0x14fa   :  { %12419 = vst [vmem:[#allocation34_spill] sm:$0xff] %v9925_v33 }
0x14fb   :  { %3028 = vrot.lane.b32.xlu0 %v9848_v17, %s12275_s28 }
0x14fc   :  { %2998 = vrot.lane.b32.xlu1 %v9840_v15, %s12370_s25 }
0x14fd   :  { %v9929_v18 = vpop.permute.xlu1 %3191 }
0x14fe   :  { %12420 = vst [vmem:[#allocation33_spill] sm:$0xff] %v9929_v18 }
0x14ff   :  { %3026 = vrot.lane.b32.xlu0 %v9840_v15, %s12275_s28 }
0x1500   :  { %3024 = vrot.lane.b32.xlu1 %v9835_v59, %s12275_s28 }
0x1503   :  { %3052 = vrot.lane.b32.xlu0 %v9835_v59, %s7925_s29 }
0x1504   :  { %3050 = vrot.lane.b32.xlu1 %v9832_v20, %s7925_s29 }
0x1507   :  { %3094 = vrot.lane.b32.xlu0 %v9832_v20, %s12276_s1 }
0x1508   :  { %3056 = vrot.lane.b32.xlu1 %v9848_v17, %s7925_s29 }
0x150b   :  { %3098 = vrot.lane.b32.xlu0 %v9840_v15, %s12276_s1 }
0x150c   :  { %3054 = vrot.lane.b32.xlu1 %v9840_v15, %s7925_s29 }
0x150f   :  { %3100 = vrot.lane.b32.xlu0 %v9848_v17, %s12276_s1 }
0x1510   :  { %3096 = vrot.lane.b32.xlu1 %v9835_v59, %s12276_s1 }
0x1513   :  { %3124 = vrot.lane.b32.xlu0 %v9835_v59, %s12277_s0 }
0x1514   :  { %3122 = vrot.lane.b32.xlu1 %v9832_v20, %s12277_s0 }
0x1517   :  { %3128 = vrot.lane.b32.xlu0 %v9848_v17, %s12277_s0 }
0x1518   :  { %3126 = vrot.lane.b32.xlu1 %v9840_v15, %s12277_s0 }
0x151b   :  { %3152 = vrot.lane.b32.xlu0 %v9835_v59, %s12278_s10 }
0x151c   :  { %3150 = vrot.lane.b32.xlu1 %v9832_v20, %s12278_s10 }
0x151f   :  { %3156 = vrot.lane.b32.xlu0 %v9848_v17, %s12278_s10 }
0x1520   :  { %3154 = vrot.lane.b32.xlu1 %v9840_v15, %s12278_s10 }
0x1523   :  { %3180 = vrot.lane.b32.xlu0 %v9835_v59, %s12279_s24 }
0x1524   :  { %3178 = vrot.lane.b32.xlu1 %v9832_v20, %s12279_s24 }
0x1527   :  { %3184 = vrot.lane.b32.xlu0 %v9848_v17, %s12279_s24 }
0x1528   :  { %3182 = vrot.lane.b32.xlu1 %v9840_v15, %s12279_s24 }
0x155d   :  { %v2966_v5 = vpop.permute.xlu0 %2965 }
0x155e   :  { %v2968_v40 = vpop.permute.xlu1 %2967 }
0x155f   :  { %v2975_v57 = vsel %vm308_vm0, %v2966_v5, %v2968_v40 }
0x1560   :  { %v2983_v11 = vmul.f32 %v2980_v37, %v2975_v57 }
0x1561   :  { %v2972_v10 = vpop.permute.xlu0 %2971 }
0x1562   :  { %v2995_v25 = vpop.permute.xlu1 %2994  ;;  %v2987_v33 = vmul.f32 %v2983_v11, %v12375_v14  ;;  %v2976_v17 = vsel %vm308_vm0, %v2972_v10, %v2966_v5 }
0x1565   :  { %v2997_v39 = vpop.permute.xlu0 %2996 }
0x1566   :  { %v3001_v22 = vpop.permute.xlu1 %3000  ;;  %v3004_v60 = vsel %vm354_vm1, %v2995_v25, %v2997_v39 }
0x1567   :  { %v3005_v57 = vsel %vm354_vm1, %v3001_v22, %v2995_v25  ;;  %v3011_v59 = vmul.f32 %v3008_v52, %v3004_v60 }
0x1568   :  { %v3010_v60 = vmul.f32 %v3008_v52, %v3005_v57 }
0x1569   :  { %v3023_v28 = vpop.permute.xlu0 %3022  ;;  %v3015_v14 = vmul.f32 %v3011_v59, %v12282_v41 }
0x156a   :  { %v2970_v38 = vpop.permute.xlu1 %2969 }
0x156b   :  { %v2973_v63 = vsel %vm308_vm0, %v2970_v38, %v2972_v10 }
0x156d   :  { %v3029_v30 = vpop.permute.xlu0 %3028 }
0x156e   :  { %v2999_v61 = vpop.permute.xlu1 %2998  ;;  %v3033_v5 = vsel %vm399_vm2, %v3029_v30, %v3023_v28 }
0x156f   :  { %v3003_v36 = vsel %vm354_vm1, %v2997_v39, %v2999_v61  ;;  %v2974_v39 = vsel %vm308_vm0, %v2968_v40, %v2970_v38  ;;  %v3002_v15 = vsel %vm354_vm1, %v2999_v61, %v3001_v22  ;;  %v2982_v38 = vmul.f32 %v2980_v37, %v2976_v17 }
0x1570   :  { %v3012_v58 = vmul.f32 %v3008_v52, %v3003_v36  ;;  %v2984_v61 = vmul.f32 %v2980_v37, %v2974_v39  ;;  %v3013_v11 = vmul.f32 %v3008_v52, %v3002_v15 }
0x1571   :  { %v3027_v47 = vpop.permute.xlu0 %3026 }
0x1572   :  { %v3025_v4 = vpop.permute.xlu1 %3024  ;;  %v3030_v36 = vsel %vm399_vm2, %v3027_v47, %v3029_v30  ;;  %v3016_v39 = vmul.f32 %v3012_v58, %v8496_v26  ;;  %v3014_v30 = vmul.f32 %v3010_v60, %v8473_v48  ;;  %v3038_v58 = vmul.f32 %v9919_v32, %v3033_v5 }
0x1573   :  { %v3032_v20 = vsel %vm399_vm2, %v3023_v28, %v3025_v4  ;;  %v3031_v49 = vsel %vm399_vm2, %v3025_v4, %v3027_v47  ;;  %v3041_v15 = vmul.f32 %v9919_v32, %v3030_v36  ;;  %v3087_v5 = vmul.f32 %v3083_v6, %v12283_v0 }
0x1574   :  { %v3039_v40 = vmul.f32 %v9919_v32, %v3032_v20  ;;  %v3040_v57 = vmul.f32 %v9919_v32, %v3031_v49  ;;  %v2985_v20 = vmul.f32 %v2980_v37, %v2973_v63  ;;  %v2988_v37 = vmul.f32 %v2984_v61, %v8468_v42 }
0x1575   :  { %v3053_v16 = vpop.permute.xlu0 %3052  ;;  %v3045_v61 = vmul.f32 %v3041_v15, %v8490_v24 }
0x1576   :  { %v3051_v21 = vpop.permute.xlu1 %3050  ;;  %v3044_v17 = vmul.f32 %v3040_v57, %v8509_v43  ;;  %v3020_v36 = vadd.f32 %v3016_v39, %v2988_v37  ;;  %v3089_v37 = vmul.f32 %v9954_v7, %v12285_v1 }
0x1577   :  { %v3060_v25 = vsel %vm444_vm3, %v3051_v21, %v3053_v16 }
0x1578   :  { %v3067_v10 = vmul.f32 %v9921_v9, %v3060_v25  ;;  %v3017_v25 = vmul.f32 %v3013_v11, %v8477_v53 }
0x1579   :  { %v9931_v56 = vpop.permute.xlu0 %3094 }
0x157a   :  { %v3057_v50 = vpop.permute.xlu1 %3056  ;;  %v3071_v63 = vmul.f32 %v3067_v10, %v8500_v45  ;;  %v3042_v10 = vmul.f32 %v3038_v58, %v8486_v23 }
0x157b   :  { %v3061_v59 = vsel %vm444_vm3, %v3057_v50, %v3051_v21  ;;  %v2986_v21 = vmul.f32 %v2982_v38, %v8480_v2 }
0x157c   :  { %v3066_v60 = vmul.f32 %v9921_v9, %v3061_v59 }
0x157d   :  { %v9938_v54 = vpop.permute.xlu0 %3098  ;;  %v3018_v57 = vadd.f32 %v3014_v30, %v2986_v21  ;;  %v3088_v30 = vmul.f32 %v9944_v55, %v12284_v19 }
0x157e   :  { %v3055_v18 = vpop.permute.xlu1 %3054  ;;  %v3070_v15 = vmul.f32 %v3066_v60, %v8518_v8 }
0x157f   :  { %v3059_v4 = vsel %vm444_vm3, %v3053_v16, %v3055_v18  ;;  %v3058_v52 = vsel %vm444_vm3, %v3055_v18, %v3057_v50  ;;  %v3043_v16 = vmul.f32 %v3039_v40, %v8506_v44  ;;  %v3019_v18 = vadd.f32 %v3015_v14, %v2987_v33 }
0x1580   :  { %v3068_v28 = vmul.f32 %v9921_v9, %v3059_v4  ;;  %v3069_v40 = vmul.f32 %v9921_v9, %v3058_v52  ;;  %v2989_v50 = vmul.f32 %v2985_v20, %v8483_v12  ;;  %v3048_v20 = vadd.f32 %v3044_v17, %v3020_v36 }
0x1581   :  { %v3101_v62 = vpop.permute.xlu0 %3100  ;;  %v3047_v32 = vadd.f32 %v3043_v16, %v3019_v18  ;;  %v3046_v18 = vadd.f32 %v3042_v10, %v3018_v57 }
0x1582   :  { %v3097_v22 = vpop.permute.xlu1 %3096  ;;  %v3072_v11 = vmul.f32 %v3068_v28, %v8503_v29  ;;  %v3102_v14 = vsel %vm521_vm4, %v9938_v54, %v3101_v62  ;;  %v3021_v38 = vadd.f32 %v3017_v25, %v2989_v50  ;;  %v3073_v9 = vmul.f32 %v3069_v40, %v8521_v34 }
0x1583   :  { %v3075_v39 = vadd.f32 %v3071_v63, %v3047_v32  ;;  %v3103_v52 = vsel %vm521_vm4, %v3097_v22, %v9938_v54  ;;  %v3105_v16 = vsel %vm521_vm4, %v3101_v62, %v9931_v56  ;;  %v3112_v6 = vmul.f32 %v9923_v35, %v3102_v14 }
0x1584   :  { %v3104_v59 = vsel %vm521_vm4, %v9931_v56, %v3097_v22  ;;  %v3049_v54 = vadd.f32 %v3045_v61, %v3021_v38  ;;  %v3076_v58 = vadd.f32 %v3072_v11, %v3048_v20  ;;  %v3111_v17 = vmul.f32 %v9923_v35, %v3103_v52 }
0x1585   :  { %v3125_v47 = vpop.permute.xlu0 %3124  ;;  %v3113_v22 = vmul.f32 %v9923_v35, %v3105_v16  ;;  %v3110_v55 = vmul.f32 %v9923_v35, %v3104_v59  ;;  %v3074_v40 = vadd.f32 %v3070_v15, %v3046_v18  ;;  %v3116_v21 = vmul.f32 %v3112_v6, %v12382_v31  ;;  %v12423_v6 = vld [vmem:[#allocation9_spill] sm:$0xff] }
0x1586   :  { %v3123_v49 = vpop.permute.xlu1 %3122  ;;  %v3077_v56 = vadd.f32 %v3073_v9, %v3049_v54  ;;  %v3091_v50 = vadd.f32 %v3087_v5, %v3075_v39  ;;  %v3092_v61 = vadd.f32 %v3088_v30, %v3076_v58  ;;  %v3115_v14 = vmul.f32 %v3111_v17, %v12379_v3  ;;  %v12422_v39 = vld [vmem:[#allocation34_spill] sm:$0xff] }
0x1587   :  { %v3132_v62 = vsel %vm566_vm5, %v3123_v49, %v3125_v47  ;;  %v3117_v38 = vmul.f32 %v3113_v22, %v12383_v51  ;;  %v3114_v20 = vmul.f32 %v3110_v55, %v12377_v46  ;;  %v3090_v59 = vadd.f32 %v12423_v6, %v3074_v40 }
0x1588   :  { %v3138_v32 = vmul.f32 %v9927_v13, %v3132_v62  ;;  %v3093_v10 = vadd.f32 %v3089_v37, %v3077_v56  ;;  %v12425_v37 = vld [vmem:[#allocation22_spill] sm:$0xff]  ;;  %v3120_v18 = vadd.f32 %v3116_v21, %v3092_v61  ;;  %v3119_v17 = vadd.f32 %v3115_v14, %v3091_v50  ;;  %v12426_v62 = vld [vmem:[#allocation25_spill] sm:$0xff]  ;;  %v12427_v56 = vld [vmem:[#allocation27_spill] sm:$0xff] }
0x1589   :  { %v3129_v4 = vpop.permute.xlu0 %3128 }
0x158a   :  { %v3127_v33 = vpop.permute.xlu1 %3126  ;;  %v3121_v40 = vadd.f32 %v3117_v38, %v3093_v10 }
0x158b   :  { %v3131_v63 = vsel %vm566_vm5, %v3125_v47, %v3127_v33  ;;  %v3130_v7 = vsel %vm566_vm5, %v3127_v33, %v3129_v4  ;;  %v3133_v47 = vsel %vm566_vm5, %v3129_v4, %v3123_v49 }
0x158c   :  { %v3139_v11 = vmul.f32 %v9927_v13, %v3131_v63  ;;  %v3140_v33 = vmul.f32 %v9927_v13, %v3130_v7  ;;  %v3141_v4 = vmul.f32 %v9927_v13, %v3133_v47  ;;  %v12428_v7 = vld [vmem:[#allocation33_spill] sm:$0xff]  ;;  %v12430_v47 = vld [vmem:[#allocation28_spill] sm:$0xff] }
0x158d   :  { %v3153_v28 = vpop.permute.xlu0 %3152 }
0x158e   :  { %v3151_v25 = vpop.permute.xlu1 %3150  ;;  %v3143_v54 = vmul.f32 %v3139_v11, %v12425_v37  ;;  %v3144_v63 = vmul.f32 %v3140_v33, %v12426_v62  ;;  %v10065_v33 = vld [vmem:[%s12224_s26 + $0x20] ss:$0 sm:$0xff] }
0x158f   :  { %v3160_v36 = vsel %vm611_vm6, %v3151_v25, %v3153_v28  ;;  %12432 = vst [vmem:[#allocation3_spill] sm:$0xff] %v10065_v33 }
0x1590   :  { %v3166_v49 = vmul.f32 %v12422_v39, %v3160_v36  ;;  %v3147_v14 = vadd.f32 %v3143_v54, %v3119_v17  ;;  %v3148_v38 = vadd.f32 %v3144_v63, %v3120_v18  ;;  %v10081_v18 = vld [vmem:[%s12224_s26 + $0x38] ss:$0 sm:$0xff] }
0x1591   :  { %v3157_v60 = vpop.permute.xlu0 %3156  ;;  %12434 = vst [vmem:[#allocation31_spill] sm:$0xff] %v10081_v18 }
0x1592   :  { %v3155_v35 = vpop.permute.xlu1 %3154  ;;  %v3161_v9 = vsel %vm611_vm6, %v3157_v60, %v3151_v25  ;;  %v3118_v25 = vadd.f32 %v3114_v20, %v3090_v59  ;;  %v3170_v22 = vmul.f32 %v3166_v49, %v12427_v56 }
0x1593   :  { %v3158_v5 = vsel %vm611_vm6, %v3155_v35, %v3157_v60  ;;  %v3159_v57 = vsel %vm611_vm6, %v3153_v28, %v3155_v35  ;;  %v12424_v28 = vld [vmem:[#allocation21_spill] sm:$0xff]  ;;  %v3169_v55 = vmul.f32 %v12422_v39, %v3161_v9  ;;  %v12429_v60 = vld [vmem:[#allocation26_spill] sm:$0xff] }
0x1594   :  { %v3167_v52 = vmul.f32 %v12422_v39, %v3159_v57  ;;  %v3168_v15 = vmul.f32 %v12422_v39, %v3158_v5  ;;  %v3142_v30 = vmul.f32 %v3138_v32, %v12424_v28  ;;  %v3145_v32 = vmul.f32 %v3141_v4, %v12429_v60  ;;  %v12431_v35 = vld [vmem:[#allocation29_spill] sm:$0xff]  ;;  %v12433_v9 = vld [vmem:[#allocation30_spill] sm:$0xff]  ;;  %v12465_v28 = vld [vmem:[#allocation7_spill] sm:$0xff] }
0x1595   :  { %v3181_v16 = vpop.permute.xlu0 %3180 }
0x1596   :  { %v3179_v58 = vpop.permute.xlu1 %3178  ;;  %v3171_v11 = vmul.f32 %v3167_v52, %v12430_v47  ;;  %v3172_v21 = vmul.f32 %v3168_v15, %v12431_v35  ;;  %v3146_v61 = vadd.f32 %v3142_v30, %v3118_v25  ;;  %v3173_v52 = vmul.f32 %v3169_v55, %v12433_v9 }
0x1597   :  { %v3188_v13 = vsel %vm656_vm7, %v3179_v58, %v3181_v16  ;;  %v3149_v59 = vadd.f32 %v3145_v32, %v3121_v40 }
0x1598   :  { %v3194_v36 = vmul.f32 %v12428_v7, %v3188_v13  ;;  %v3174_v4 = vadd.f32 %v3170_v22, %v3146_v61  ;;  %v3175_v30 = vadd.f32 %v3171_v11, %v3147_v14  ;;  %v3176_v54 = vadd.f32 %v3172_v21, %v3148_v38  ;;  %v10093_v13 = vld [vmem:[%s12224_s26 + $0x30] ss:$0 sm:$0xff] }
0x1599   :  { %v3185_v50 = vpop.permute.xlu0 %3184  ;;  %12436 = vst [vmem:[#allocation35_spill] sm:$0xff] %v10093_v13  ;;  %v3177_v22 = vadd.f32 %v3173_v52, %v3149_v59 }
0x159a   :  { %v3198_v5 = vmul.f32 %v10065_v33, %v3194_v36  ;;  %v3189_v57 = vsel %vm656_vm7, %v3185_v50, %v3179_v58  ;;  %v3183_v10 = vpop.permute.xlu1 %3182 }
0x159b   :  { %v3197_v20 = vmul.f32 %v12428_v7, %v3189_v57  ;;  %v3186_v39 = vsel %vm656_vm7, %v3183_v10, %v3185_v50  ;;  %v3187_v49 = vsel %vm656_vm7, %v3181_v16, %v3183_v10  ;;  %v10087_v16 = vld [vmem:[%s12224_s26 + $0x28] ss:$0 sm:$0xff] }
0x159c   :  { %v3195_v15 = vmul.f32 %v12428_v7, %v3187_v49  ;;  %v3196_v6 = vmul.f32 %v12428_v7, %v3186_v39  ;;  %v3202_v58 = vadd.f32 %v3198_v5, %v3174_v4  ;;  %12435 = vst [vmem:[#allocation36_spill] sm:$0xff] %v10087_v16 }
0x159d   :  { %v3201_v17 = vmul.f32 %v10081_v18, %v3197_v20 }
0x159e   :  { %v3199_v63 = vmul.f32 %v10087_v16, %v3195_v15  ;;  %v3200_v25 = vmul.f32 %v10093_v13, %v3196_v6  ;;  %v3212_v32 = vmul.f32 %v3202_v58, %v3202_v58 }
0x159f   :  { %v3205_v36 = vadd.f32 %v3201_v17, %v3177_v22 }
0x15a0   :  { %v3203_v55 = vadd.f32 %v3199_v63, %v3175_v30  ;;  %v3204_v7 = vadd.f32 %v3200_v25, %v3176_v54  ;;  %v12437_v30 = vld [vmem:[#allocation38_spill] sm:$0xff]  ;;  %v12438_v63 = vmov 19  }
0x15a1   :  { %v3215_v5 = vmul.f32 %v3205_v36, %v3205_v36 }
0x15a2   :  { %v3206_v40 = vadd.f32 %v3203_v55, %v3202_v58  ;;  %v3213_v11 = vmul.f32 %v3203_v55, %v3203_v55  ;;  %v3214_v50 = vmul.f32 %v3204_v7, %v3204_v7 }
0x15a4   :  { %v3207_v21 = vadd.f32 %v3206_v40, %v3204_v7  ;;  %v3216_v61 = vadd.f32 %v3213_v11, %v3212_v32  ;;  %v12439_v40 = vmov 20  }
0x15a6   :  { %v3208_v14 = vadd.f32 %v3207_v21, %v3205_v36  ;;  %v3217_v57 = vadd.f32 %v3216_v61, %v3214_v50 }
0x15a8   :  { %3209 = vadd.xlane.f32.xlu1 %v3208_v14  ;;  %v3218_v10 = vadd.f32 %v3217_v57, %v3215_v5 }
0x15aa   :  { %3219 = vadd.xlane.f32.xlu0 %v3218_v10 }
0x1635   :  { %v3210_v38 = vpop.xlane.xlu1 %3209 }
0x1636   :  { %v3211_v20 = vmul.f32 0.001953125, %v3210_v38 }
0x1637   :  { %v3220_v39 = vpop.xlane.xlu0 %3219 }
0x1638   :  { %v3222_v49 = vmul.f32 %v3211_v20, %v3211_v20  ;;  %v3221_v4 = vmul.f32 0.001953125, %v3220_v39  ;;  %v12440_v39 = vld [vmem:[#allocation10_spill] sm:$0xff] }
0x163a   :  { %v3223_v52 = vsub.f32 %v3221_v4, %v3222_v49  ;;  %v12444_v49 = vmov 0.0  }
0x163c   :  { %v3224_v15 = vmax.f32 %v3223_v52, 0.0 }
0x163e   :  { %v3225_v6 = vadd.f32 1e-05, %v3224_v15 }
0x1640   :  { %7677 = vrsqrt.f32 %v3225_v6 }
0x164a   :  { %v7678_v59 = vpop.eup %7677 }
0x164b   :  { %v3227_v54 = vmul.f32 %v7678_v59, %v12437_v30 }
0x164d   :  { %3230 = vperm.xlu1 %7482, %v3227_v54   ;;  %v3237_v17 = vmul.f32 %v3227_v54, %v3211_v20  ;;  %v2962_v20 = vld [vmem:[%s11971_s15 + $0x8] sm:$0xff] }
0x164f   :  { %3239 = vrot.lane.b32.xlu0 %v3237_v17, %s7925_s29 }
0x1651   :  { %7483 = vset.pattern.permute.xlu1 %v12438_v63 }
0x16c1   :  { %v3240_v25 = vpop.permute.xlu0 %3239 }
0x16c2   :  { %v3242_v22 = vsub.f32 %v12437_v30, %v3240_v25 }
0x16c4   :  { %3245 = vperm.xlu1 %7483, %v3242_v22  }
0x16c8   :  { %7484 = vset.pattern.permute.xlu1 %v12439_v40 }
0x16cc   :  { %v3231_v32 = vpop.permute.xlu1 %3230 }
0x16cd   :  { %v3233_v11 = vmul.f32 %v3231_v32, %v3202_v58  ;;  %v3235_v21 = vmul.f32 %v3231_v32, %v3204_v7  ;;  %v3234_v50 = vmul.f32 %v3231_v32, %v3203_v55  ;;  %v3236_v61 = vmul.f32 %v3231_v32, %v3205_v36  ;;  %v12441_v58 = vld [vmem:[#allocation32_spill] sm:$0xff]  ;;  %v2961_v55 = vld [vmem:[%s11971_s15] sm:$0xff]  ;;  %v12442_v7 = vld [vmem:[#allocation37_spill] sm:$0xff] }
0x16ce   :  { %v12443_v36 = vld [vmem:[#allocation2_spill] sm:$0xff] }
0x1743   :  { %v3246_v14 = vpop.permute.xlu1 %3245 }
0x1744   :  { %v3249_v5 = vadd.f32 %v3246_v14, %v3234_v50  ;;  %v3251_v57 = vadd.f32 %v3246_v14, %v3236_v61  ;;  %v3248_v10 = vadd.f32 %v3246_v14, %v3233_v11  ;;  %v3250_v38 = vadd.f32 %v3246_v14, %v3235_v21 }
0x1746   :  { %3255 = vmatprep.subr.mxu0 %v3249_v5  ;;  %3326 = vmatprep.subr.mxu1 %v3251_v57 }
0x1747   :  { %3256 = vmatpush1.msra.mxu0 %v3248_v10  ;;  %3327 = vmatpush1.msra.mxu1 %v3250_v38 }
0x1748   :  { %7250 = vmatmul.mubr.msk.f32.vlgmr.msra.gmra.mrb[14].mxu0 %vm740_vm8, %v2962_v20  ;;  %3470 = vmatprep.subr.mxu0 %v12440_v39 }
0x1749   :  { %3541 = vmatprep.subr.mxu1 %v12441_v58  ;;  %7251 = vmatmul.mubr.msk.f32.vlgmr.msra.gmra.mrb[14].mxu1 %vm740_vm8, %v2962_v20 }
0x174a   :  { %3471 = vmatpush1.msra.mxu0 %v12442_v7  ;;  %3542 = vmatpush1.msra.mxu1 %v12443_v36 }
0x174b   :  { %3534 = vmatprep.mubr.f32.mxu0 %v12444_v49  ;;  %3605 = vmatprep.mubr.f32.mxu1 %v12444_v49 }
0x174c   :  { %7252 = vmatmul.mubr.msk.f32.vlgmr.msra.gmra.mrb[16].mxu0 %vm740_vm8, %v2961_v55 }
0x174d   :  { %7253 = vmatmul.mubr.msk.f32.vlgmr.msra.gmra.mrb[16].mxu1 %vm740_vm8, %v2961_v55  ;;  %4035 = vmatprep.mubr.f32.mxu0 %v12444_v49 }
0x174e   :  { %4106 = vmatprep.mubr.f32.mxu1 %v12444_v49 }
0x181b   :  { %v10119_v4 = vpop.f32.mrb[14].mxu0 }
0x181c   :  { %12445 = vst [vmem:[#allocation15_spill] sm:$0xff] %v10119_v4  ;;  %v3403_v52 = vmul.f32 %v10119_v4, %v10119_v4  ;;  %v10123_v15 = vpop.f32.mrb[15].mxu0  ;;  %v10125_v6 = vpop.f32.mrb[14].mxu1 }
0x181d   :  { %12446 = vst [vmem:[#allocation34_spill] sm:$0xff] %v10123_v15  ;;  %12447 = vst [vmem:[#allocation9_spill] sm:$0xff] %v10125_v6  ;;  %v3397_v59 = vadd.f32 %v10123_v15, %v10119_v4  ;;  %v3404_v54 = vmul.f32 %v10123_v15, %v10123_v15  ;;  %v3405_v17 = vmul.f32 %v10125_v6, %v10125_v6  ;;  %v10133_v25 = vpop.f32.mrb[15].mxu1 }
0x181e   :  { %12448 = vst [vmem:[#allocation33_spill] sm:$0xff] %v10133_v25  ;;  %v3406_v21 = vmul.f32 %v10133_v25, %v10133_v25 }
0x181f   :  { %v3407_v22 = vadd.f32 %v3404_v54, %v3403_v52  ;;  %v3398_v32 = vadd.f32 %v3397_v59, %v10125_v6  ;;  %v3536_v11 = vpop.f32.mrb[16].mxu0 }
0x1820   :  { %v3618_v50 = vmul.f32 %v3536_v11, %v3536_v11  ;;  %v3538_v61 = vpop.f32.mrb[17].mxu0  ;;  %v3607_v14 = vpop.f32.mrb[16].mxu1 }
0x1821   :  { %v3408_v5 = vadd.f32 %v3407_v22, %v3405_v17  ;;  %v10139_v57 = vadd.f32 %v3398_v32, %v10133_v25  ;;  %v3612_v10 = vadd.f32 %v3538_v61, %v3536_v11  ;;  %v3619_v38 = vmul.f32 %v3538_v61, %v3538_v61  ;;  %v3609_v20 = vpop.f32.mrb[17].mxu1 }
0x1822   :  { %v3620_v39 = vmul.f32 %v3607_v14, %v3607_v14  ;;  %v3621_v59 = vmul.f32 %v3609_v20, %v3609_v20 }
0x1823   :  { %12449 = vst [vmem:[#allocation38_spill] sm:$0xff] %v10139_v57  ;;  %v3622_v58 = vadd.f32 %v3619_v38, %v3618_v50  ;;  %v3613_v55 = vadd.f32 %v3612_v10, %v3607_v14  ;;  %v10141_v7 = vadd.f32 %v3408_v5, %v3406_v21  ;;  %v12451_v5 = vmov 9  }
0x1824   :  { %v12452_v10 = vmov 10  }
0x1825   :  { %12450 = vst [vmem:[#allocation10_spill] sm:$0xff] %v10141_v7  ;;  %v3623_v36 = vadd.f32 %v3622_v58, %v3620_v39  ;;  %v3614_v52 = vadd.f32 %v3613_v55, %v3609_v20  ;;  %v12459_v58 = vmov 11   ;;  %v12460_v55 = vmov 15  }
0x1827   :  { %3615 = vadd.xlane.f32.xlu0 %v3614_v52  ;;  %v3624_v54 = vadd.f32 %v3623_v36, %v3621_v59  ;;  %v12461_v36 = vmov 3  }
0x1829   :  { %3625 = vadd.xlane.f32.xlu1 %v3624_v54 }
0x18b4   :  { %v3616_v40 = vpop.xlane.xlu0 %3615 }
0x18b5   :  { %v3617_v63 = vmul.f32 0.001953125, %v3616_v40  ;;  %v12453_v40 = vmov 12  }
0x18b6   :  { %v3626_v17 = vpop.xlane.xlu1 %3625 }
0x18b7   :  { %v3628_v22 = vmul.f32 %v3617_v63, %v3617_v63  ;;  %v3627_v32 = vmul.f32 0.001953125, %v3626_v17 }
0x18b9   :  { %v3629_v25 = vsub.f32 %v3627_v32, %v3628_v22 }
0x18bb   :  { %v3630_v6 = vmax.f32 %v3629_v25, 0.0  ;;  %v12458_v25 = vmov 22  }
0x18bd   :  { %v3631_v15 = vadd.f32 1e-05, %v3630_v6  ;;  %v12457_v6 = vmov 17  }
0x18bf   :  { %7679 = vrsqrt.f32 %v3631_v15  ;;  %v12454_v15 = vmov 13  }
0x18c9   :  { %v7680_v4 = vpop.eup %7679 }
0x18ca   :  { %v3633_v50 = vmul.f32 %v7680_v4, %v12437_v30  ;;  %v12455_v4 = vmov 14  }
0x18cc   :  { %3636 = vperm.xlu1 %7484, %v3633_v50   ;;  %v3643_v21 = vmul.f32 %v3633_v50, %v3617_v63  ;;  %v12456_v63 = vmov 16  }
0x18ce   :  { %3645 = vrot.lane.b32.xlu0 %v3643_v21, %s7925_s29 }
0x18d0   :  { %7486 = vset.pattern.permute.xlu1 %v12451_v5 }
0x18d1   :  { %3695 = vperm.xlu1 %7486, %v12437_v30  }
0x18d5   :  { %7487 = vset.pattern.permute.xlu1 %v12452_v10 }
0x18d6   :  { %3723 = vperm.xlu1 %7487, %v12437_v30  }
0x18da   :  { %7489 = vset.pattern.permute.xlu1 %v12453_v40 }
0x18db   :  { %3779 = vperm.xlu1 %7489, %v12437_v30  }
0x18df   :  { %7490 = vset.pattern.permute.xlu1 %v12454_v15 }
0x18e0   :  { %3795 = vperm.xlu1 %7490, %v12437_v30  }
0x18e4   :  { %7491 = vset.pattern.permute.xlu1 %v12455_v4 }
0x18e5   :  { %3823 = vperm.xlu1 %7491, %v12437_v30  }
0x18e9   :  { %7493 = vset.pattern.permute.xlu1 %v12456_v63 }
0x18ea   :  { %3879 = vperm.xlu1 %7493, %v12437_v30  }
0x18ee   :  { %7494 = vset.pattern.permute.xlu1 %v12457_v6 }
0x18ef   :  { %3907 = vperm.xlu1 %7494, %v12437_v30  }
0x18f3   :  { %7495 = vset.pattern.permute.xlu1 %v12458_v25 }
0x1940   :  { %v3646_v38 = vpop.permute.xlu0 %3645 }
0x1941   :  { %v3648_v39 = vsub.f32 %v12437_v30, %v3646_v38 }
0x1943   :  { %3651 = vperm.xlu0 %7485, %v3648_v39  }
0x1947   :  { %7488 = vset.pattern.permute.xlu0 %v12459_v58 }
0x1948   :  { %3751 = vperm.xlu0 %7488, %v12437_v30  }
0x194b   :  { %v3637_v52 = vpop.permute.xlu1 %3636 }
0x194c   :  { %7492 = vset.pattern.permute.xlu0 %v12460_v55  ;;  %v3639_v59 = vmul.f32 %v3637_v52, %v3536_v11  ;;  %v3640_v54 = vmul.f32 %v3637_v52, %v3538_v61  ;;  %v3641_v17 = vmul.f32 %v3637_v52, %v3607_v14  ;;  %v3642_v22 = vmul.f32 %v3637_v52, %v3609_v20 }
0x194d   :  { %3851 = vperm.xlu0 %7492, %v12437_v30  }
0x1951   :  { %7499 = vset.pattern.permute.xlu0 %v12461_v36 }
0x19c2   :  { %v3652_v32 = vpop.permute.xlu0 %3651 }
0x19c3   :  { %v3654_v50 = vadd.f32 %v3652_v32, %v3639_v59  ;;  %v3655_v21 = vadd.f32 %v3652_v32, %v3640_v54  ;;  %v3656_v38 = vadd.f32 %v3652_v32, %v3641_v17  ;;  %v3657_v39 = vadd.f32 %v3652_v32, %v3642_v22  ;;  %v3696_v32 = vpop.permute.xlu1 %3695 }
0x19c5   :  { %v3658_v25 = vsub.f32 0.0, %v3654_v50  ;;  %v3659_v58 = vsub.f32 0.0, %v3655_v21  ;;  %v3661_v6 = vsub.f32 0.0, %v3657_v39  ;;  %v3660_v63 = vsub.f32 0.0, %v3656_v38 }
0x19c7   :  { %v3662_v4 = vmul.f32 1.442695, %v3658_v25  ;;  %v3664_v55 = vmul.f32 1.442695, %v3659_v58  ;;  %v3668_v15 = vmul.f32 1.442695, %v3661_v6 }
0x19c8   :  { %v3666_v30 = vmul.f32 1.442695, %v3660_v63 }
0x19c9   :  { %7681 = vpow2.f32 %v3662_v4 }
0x19ca   :  { %7683 = vpow2.f32 %v3664_v55 }
0x19cb   :  { %7685 = vpow2.f32 %v3668_v15 }
0x19cc   :  { %7687 = vpow2.f32 %v3666_v30 }
0x19d3   :  { %v7682_v11 = vpop.eup %7681 }
0x19d4   :  { %v7684_v61 = vpop.eup %7683  ;;  %v3670_v14 = vadd.f32 1.0, %v7682_v11  ;;  %v3752_v11 = vpop.permute.xlu0 %3751 }
0x19d5   :  { %v3671_v20 = vadd.f32 1.0, %v7684_v61  ;;  %v7686_v52 = vpop.eup %7685 }
0x19d6   :  { %7689 = vrcp.f32 %v3670_v14  ;;  %v3673_v59 = vadd.f32 1.0, %v7686_v52  ;;  %v7688_v54 = vpop.eup %7687 }
0x19d7   :  { %7691 = vrcp.f32 %v3671_v20  ;;  %v3672_v17 = vadd.f32 1.0, %v7688_v54 }
0x19d8   :  { %7693 = vrcp.f32 %v3673_v59  ;;  %v10238_v14 = vpop.permute.xlu0 %3851 }
0x19d9   :  { %7695 = vrcp.f32 %v3672_v17  ;;  %12464 = vst [vmem:[#allocation2_spill] sm:$0xff] %v10238_v14 }
0x19e0   :  { %v7690_v22 = vpop.eup %7689 }
0x19e1   :  { %v7692_v25 = vpop.eup %7691  ;;  %v10166_v6 = vmul.f32 %v7690_v22, %v3654_v50  ;;  %v3724_v50 = vpop.permute.xlu1 %3723 }
0x19e2   :  { %v10168_v4 = vmul.f32 %v7692_v25, %v3655_v21  ;;  %v7694_v15 = vpop.eup %7693 }
0x19e3   :  { %3682 = vrot.lane.b32.xlu1 %v10166_v6, %s7923_s11  ;;  %v10174_v63 = vmul.f32 %v7694_v15, %v3657_v39  ;;  %v7696_v58 = vpop.eup %7695 }
0x19e4   :  { %3684 = vrot.lane.b32.xlu0 %v10168_v4, %s7923_s11  ;;  %v3680_v55 = vmul.f32 %v7696_v58, %v3656_v38 }
0x19e5   :  { %v10228_v21 = vpop.permute.xlu1 %3779 }
0x19e7   :  { %3688 = vrot.lane.b32.xlu1 %v10174_v63, %s7923_s11 }
0x19e8   :  { %3710 = vrot.lane.b32.xlu0 %v10166_v6, %s12370_s25 }
0x19e9   :  { %v10230_v38 = vpop.permute.xlu1 %3795 }
0x19ea   :  { %v3798_v16 = vmul.f32 %v10230_v38, %v10166_v6 }
0x19eb   :  { %3712 = vrot.lane.b32.xlu1 %v10168_v4, %s12370_s25 }
0x19ec   :  { %3716 = vrot.lane.b32.xlu0 %v10174_v63, %s12370_s25 }
0x19ed   :  { %v10232_v39 = vpop.permute.xlu1 %3823 }
0x19ef   :  { %3714 = vrot.lane.b32.xlu1 %v3680_v55, %s12370_s25 }
0x19f0   :  { %3686 = vrot.lane.b32.xlu0 %v3680_v55, %s7923_s11 }
0x19f1   :  { %v10234_v30 = vpop.permute.xlu1 %3879 }
0x19f2   :  { %12462 = vst [vmem:[#allocation32_spill] sm:$0xff] %v10234_v30 }
0x19f3   :  { %3740 = vrot.lane.b32.xlu1 %v10168_v4, %s12275_s28 }
0x19f4   :  { %3738 = vrot.lane.b32.xlu0 %v10166_v6, %s12275_s28 }
0x19f5   :  { %v10236_v61 = vpop.permute.xlu1 %3907 }
0x19f6   :  { %12463 = vst [vmem:[#allocation37_spill] sm:$0xff] %v10236_v61  ;;  %v3799_v61 = vmul.f32 %v10230_v38, %v10168_v4 }
0x19f7   :  { %3766 = vrot.lane.b32.xlu1 %v10166_v6, %s7925_s29 }
0x19f8   :  { %3744 = vrot.lane.b32.xlu0 %v10174_v63, %s12275_s28 }
0x19fb   :  { %3772 = vrot.lane.b32.xlu1 %v10174_v63, %s7925_s29 }
0x19fc   :  { %3742 = vrot.lane.b32.xlu0 %v3680_v55, %s12275_s28 }
0x19ff   :  { %3770 = vrot.lane.b32.xlu1 %v3680_v55, %s7925_s29 }
0x1a00   :  { %3768 = vrot.lane.b32.xlu0 %v10168_v4, %s7925_s29 }
0x1a03   :  { %3812 = vrot.lane.b32.xlu1 %v10168_v4, %s12276_s1 }
0x1a04   :  { %3810 = vrot.lane.b32.xlu0 %v10166_v6, %s12276_s1 }
0x1a07   :  { %3838 = vrot.lane.b32.xlu1 %v10166_v6, %s12277_s0 }
0x1a08   :  { %3814 = vrot.lane.b32.xlu0 %v3680_v55, %s12276_s1 }
0x1a0b   :  { %3842 = vrot.lane.b32.xlu1 %v3680_v55, %s12277_s0 }
0x1a0c   :  { %3816 = vrot.lane.b32.xlu0 %v10174_v63, %s12276_s1 }
0x1a0f   :  { %3866 = vrot.lane.b32.xlu1 %v10166_v6, %s12278_s10 }
0x1a10   :  { %3840 = vrot.lane.b32.xlu0 %v10168_v4, %s12277_s0 }
0x1a13   :  { %3870 = vrot.lane.b32.xlu1 %v3680_v55, %s12278_s10 }
0x1a14   :  { %3844 = vrot.lane.b32.xlu0 %v10174_v63, %s12277_s0 }
0x1a17   :  { %3894 = vrot.lane.b32.xlu1 %v10166_v6, %s12279_s24  ;;  %v10261_v6 = vmul.f32 %v10230_v38, %v3680_v55 }
0x1a18   :  { %3868 = vrot.lane.b32.xlu0 %v10168_v4, %s12278_s10 }
0x1a1b   :  { %3898 = vrot.lane.b32.xlu1 %v3680_v55, %s12279_s24  ;;  %v10274_v55 = vmul.f32 %v3798_v16, %v12465_v28 }
0x1a1c   :  { %3872 = vrot.lane.b32.xlu0 %v10174_v63, %s12278_s10 }
0x1a20   :  { %3896 = vrot.lane.b32.xlu0 %v10168_v4, %s12279_s24 }
0x1a24   :  { %3900 = vrot.lane.b32.xlu0 %v10174_v63, %s12279_s24 }
0x1a55   :  { %v3683_v20 = vpop.permute.xlu1 %3682 }
0x1a56   :  { %v3685_v52 = vpop.permute.xlu0 %3684 }
0x1a59   :  { %v3689_v59 = vpop.permute.xlu1 %3688 }
0x1a5a   :  { %v3711_v54 = vpop.permute.xlu0 %3710  ;;  %v3693_v33 = vsel %vm308_vm0, %v3689_v59, %v3683_v20 }
0x1a5d   :  { %v3713_v17 = vpop.permute.xlu1 %3712 }
0x1a5e   :  { %v3717_v22 = vpop.permute.xlu0 %3716  ;;  %v3720_v60 = vsel %vm354_vm1, %v3711_v54, %v3713_v17 }
0x1a5f   :  { %v3721_v9 = vsel %vm354_vm1, %v3717_v22, %v3711_v54  ;;  %v3698_v54 = vmul.f32 %v3696_v32, %v3693_v33 }
0x1a60   :  { %v3726_v31 = vmul.f32 %v3724_v50, %v3721_v9 }
0x1a61   :  { %v3715_v25 = vpop.permute.xlu1 %3714 }
0x1a62   :  { %v3687_v15 = vpop.permute.xlu0 %3686  ;;  %v3718_v35 = vsel %vm354_vm1, %v3715_v25, %v3717_v22  ;;  %v3719_v56 = vsel %vm354_vm1, %v3713_v17, %v3715_v25  ;;  %v3692_v17 = vsel %vm308_vm0, %v3683_v20, %v3685_v52  ;;  %v3727_v25 = vmul.f32 %v3724_v50, %v3720_v60 }
0x1a63   :  { %v3690_v62 = vsel %vm308_vm0, %v3687_v15, %v3689_v59  ;;  %v3691_v22 = vsel %vm308_vm0, %v3685_v52, %v3687_v15  ;;  %v3729_v37 = vmul.f32 %v3724_v50, %v3718_v35  ;;  %v3728_v15 = vmul.f32 %v3724_v50, %v3719_v56 }
0x1a64   :  { %v3701_v3 = vmul.f32 %v3696_v32, %v3690_v62  ;;  %v3700_v30 = vmul.f32 %v3696_v32, %v3691_v22  ;;  %v3699_v62 = vmul.f32 %v3696_v32, %v3692_v17  ;;  %v3702_v56 = vmul.f32 %v3698_v54, %v8480_v2  ;;  %v12466_v17 = vld [vmem:[#allocation11_spill] sm:$0xff] }
0x1a65   :  { %v3741_v58 = vpop.permute.xlu1 %3740  ;;  %v3730_v50 = vmul.f32 %v3726_v31, %v8473_v48  ;;  %v3732_v31 = vmul.f32 %v3728_v15, %v8496_v26 }
0x1a66   :  { %v3739_v40 = vpop.permute.xlu0 %3738  ;;  %v3705_v20 = vmul.f32 %v3701_v3, %v8483_v12  ;;  %v3704_v3 = vmul.f32 %v3700_v30, %v8468_v42 }
0x1a67   :  { %v3748_v46 = vsel %vm399_vm2, %v3739_v40, %v3741_v58 }
0x1a68   :  { %v3755_v52 = vmul.f32 %v3752_v11, %v3748_v46 }
0x1a69   :  { %v3767_v10 = vpop.permute.xlu1 %3766 }
0x1a6a   :  { %v3745_v5 = vpop.permute.xlu0 %3744  ;;  %v3759_v30 = vmul.f32 %v3755_v52, %v8506_v44 }
0x1a6b   :  { %v3749_v4 = vsel %vm399_vm2, %v3745_v5, %v3739_v40  ;;  %v3733_v40 = vmul.f32 %v3729_v37, %v8477_v53 }
0x1a6c   :  { %v3754_v14 = vmul.f32 %v3752_v11, %v3749_v4 }
0x1a6d   :  { %v3773_v36 = vpop.permute.xlu1 %3772  ;;  %v3737_v15 = vadd.f32 %v3733_v40, %v3705_v20 }
0x1a6e   :  { %v3743_v7 = vpop.permute.xlu0 %3742  ;;  %v3777_v35 = vsel %vm444_vm3, %v3773_v36, %v3767_v10  ;;  %v3758_v46 = vmul.f32 %v3754_v14, %v8486_v23 }
0x1a6f   :  { %v3746_v59 = vsel %vm399_vm2, %v3743_v7, %v3745_v5  ;;  %v3747_v9 = vsel %vm399_vm2, %v3741_v58, %v3743_v7  ;;  %v3731_v58 = vmul.f32 %v3727_v25, %v12282_v41  ;;  %v3703_v25 = vmul.f32 %v3699_v62, %v12466_v17 }
0x1a70   :  { %v3757_v16 = vmul.f32 %v3752_v11, %v3746_v59  ;;  %v3756_v32 = vmul.f32 %v3752_v11, %v3747_v9 }
0x1a71   :  { %v3771_v49 = vpop.permute.xlu1 %3770 }
0x1a72   :  { %v3769_v57 = vpop.permute.xlu0 %3768  ;;  %v3774_v5 = vsel %vm444_vm3, %v3771_v49, %v3773_v36  ;;  %v3782_v36 = vmul.f32 %v10228_v21, %v3777_v35  ;;  %v3761_v37 = vmul.f32 %v3757_v16, %v8490_v24  ;;  %v3734_v35 = vadd.f32 %v3730_v50, %v3702_v56 }
0x1a73   :  { %v3775_v22 = vsel %vm444_vm3, %v3769_v57, %v3771_v49  ;;  %v3776_v7 = vsel %vm444_vm3, %v3767_v10, %v3769_v57  ;;  %v3785_v4 = vmul.f32 %v10228_v21, %v3774_v5  ;;  %v3801_v57 = vmul.f32 %v10230_v38, %v10174_v63 }
0x1a74   :  { %v3803_v10 = vmul.f32 %v3799_v61, %v12283_v0  ;;  %v3783_v11 = vmul.f32 %v10228_v21, %v3776_v7  ;;  %v3784_v59 = vmul.f32 %v10228_v21, %v3775_v22  ;;  %v3786_v14 = vmul.f32 %v3782_v36, %v8518_v8 }
0x1a75   :  { %v10240_v18 = vpop.permute.xlu1 %3812  ;;  %v3760_v9 = vmul.f32 %v3756_v32, %v8509_v43  ;;  %v3789_v16 = vmul.f32 %v3785_v4, %v8521_v34  ;;  %v3735_v38 = vadd.f32 %v3731_v58, %v3703_v25  ;;  %v3736_v61 = vadd.f32 %v3732_v31, %v3704_v3 }
0x1a76   :  { %v10242_v13 = vpop.permute.xlu0 %3810  ;;  %v3762_v21 = vadd.f32 %v3758_v46, %v3734_v35  ;;  %v3765_v5 = vadd.f32 %v3761_v37, %v3737_v15  ;;  %v3787_v50 = vmul.f32 %v3783_v11, %v8500_v45  ;;  %v3788_v40 = vmul.f32 %v3784_v59, %v8503_v29  ;;  %v12467_v37 = vld [vmem:[#allocation2_spill] sm:$0xff]  ;;  %v12468_v15 = vld [vmem:[#allocation23_spill] sm:$0xff] }
0x1a77   :  { %v3820_v63 = vsel %vm521_vm4, %v10242_v13, %v10240_v18  ;;  %v3804_v22 = vmul.f32 %v10261_v6, %v12284_v19  ;;  %v3805_v7 = vmul.f32 %v3801_v57, %v12285_v1  ;;  %v3763_v58 = vadd.f32 %v3759_v30, %v3735_v38  ;;  %v12469_v38 = vld [vmem:[#allocation32_spill] sm:$0xff] }
0x1a78   :  { %v3826_v36 = vmul.f32 %v10232_v39, %v3820_v63  ;;  %v3790_v32 = vadd.f32 %v3786_v14, %v3762_v21  ;;  %v3764_v4 = vadd.f32 %v3760_v9, %v3736_v61  ;;  %v3793_v31 = vadd.f32 %v3789_v16, %v3765_v5  ;;  %v12470_v21 = vld [vmem:[#allocation24_spill] sm:$0xff] }
0x1a79   :  { %v10258_v47 = vpop.permute.xlu1 %3838  ;;  %v3791_v59 = vadd.f32 %v3787_v50, %v3763_v58 }
0x1a7a   :  { %v10269_v51 = vpop.permute.xlu0 %3814  ;;  %v3792_v25 = vadd.f32 %v3788_v40, %v3764_v4  ;;  %v3830_v30 = vmul.f32 %v3826_v36, %v12468_v15  ;;  %v3806_v9 = vadd.f32 %v10274_v55, %v3790_v32  ;;  %v3809_v50 = vadd.f32 %v3805_v7, %v3793_v31  ;;  %v12471_v40 = vld [vmem:[#allocation21_spill] sm:$0xff]  ;;  %v12472_v7 = vld [vmem:[#allocation22_spill] sm:$0xff] }
0x1a7b   :  { %v3819_v20 = vsel %vm521_vm4, %v10240_v18, %v10269_v51  ;;  %v3807_v36 = vadd.f32 %v3803_v10, %v3791_v59  ;;  %v12473_v31 = vld [vmem:[#allocation17_spill] sm:$0xff]  ;;  %v12478_v59 = vld [vmem:[#allocation26_spill] sm:$0xff] }
0x1a7c   :  { %v3827_v18 = vmul.f32 %v10232_v39, %v3819_v20  ;;  %v3808_v32 = vadd.f32 %v3804_v22, %v3792_v25  ;;  %v12477_v10 = vld [vmem:[#allocation25_spill] sm:$0xff] }
0x1a7d   :  { %v10280_v33 = vpop.permute.xlu1 %3842 }
0x1a7e   :  { %v3817_v60 = vpop.permute.xlu0 %3816  ;;  %v3831_v5 = vmul.f32 %v3827_v18, %v12470_v21  ;;  %v12474_v18 = vld [vmem:[#allocation18_spill] sm:$0xff] }
0x1a7f   :  { %v3818_v46 = vsel %vm521_vm4, %v10269_v51, %v3817_v60  ;;  %v3821_v6 = vsel %vm521_vm4, %v3817_v60, %v10242_v13 }
0x1a80   :  { %v3828_v16 = vmul.f32 %v10232_v39, %v3818_v46  ;;  %v3829_v63 = vmul.f32 %v10232_v39, %v3821_v6  ;;  %v12475_v6 = vld [vmem:[#allocation27_spill] sm:$0xff] }
0x1a81   :  { %v10299_v54 = vpop.permute.xlu1 %3866 }
0x1a82   :  { %v3841_v49 = vpop.permute.xlu0 %3840  ;;  %v3833_v46 = vmul.f32 %v3829_v63, %v12474_v18 }
0x1a83   :  { %v3848_v52 = vsel %vm566_vm5, %v10258_v47, %v3841_v49  ;;  %v3847_v3 = vsel %vm566_vm5, %v3841_v49, %v10280_v33 }
0x1a84   :  { %v3854_v57 = vmul.f32 %v12467_v37, %v3848_v52  ;;  %v3855_v51 = vmul.f32 %v12467_v37, %v3847_v3  ;;  %v3832_v3 = vmul.f32 %v3828_v16, %v12473_v31  ;;  %v12479_v16 = vld [vmem:[#allocation37_spill] sm:$0xff] }
0x1a85   :  { %v3871_v62 = vpop.permute.xlu1 %3870 }
0x1a86   :  { %v3845_v56 = vpop.permute.xlu0 %3844  ;;  %v3858_v20 = vmul.f32 %v3854_v57, %v12471_v40  ;;  %v3859_v4 = vmul.f32 %v3855_v51, %v12472_v7 }
0x1a87   :  { %v3846_v13 = vsel %vm566_vm5, %v10280_v33, %v3845_v56  ;;  %v3849_v60 = vsel %vm566_vm5, %v3845_v56, %v10258_v47  ;;  %v3834_v56 = vadd.f32 %v3830_v30, %v3806_v9 }
0x1a88   :  { %v3856_v58 = vmul.f32 %v12467_v37, %v3846_v13  ;;  %v3857_v47 = vmul.f32 %v12467_v37, %v3849_v60 }
0x1a89   :  { %v3895_v14 = vpop.permute.xlu1 %3894 }
0x1a8a   :  { %v3869_v11 = vpop.permute.xlu0 %3868  ;;  %v3860_v22 = vmul.f32 %v3856_v58, %v12477_v10  ;;  %v3861_v25 = vmul.f32 %v3857_v47, %v12478_v59  ;;  %v12481_v58 = vld [vmem:[#allocation30_spill] sm:$0xff]  ;;  %v12482_v47 = vld [vmem:[#allocation3_spill] sm:$0xff] }
0x1a8b   :  { %v3875_v35 = vsel %vm611_vm6, %v3869_v11, %v3871_v62  ;;  %v3876_v49 = vsel %vm611_vm6, %v10299_v54, %v3869_v11  ;;  %v3835_v11 = vadd.f32 %v3831_v5, %v3807_v36  ;;  %v3836_v5 = vadd.f32 %v3832_v3, %v3808_v32  ;;  %v12483_v36 = vld [vmem:[#allocation36_spill] sm:$0xff] }
0x1a8c   :  { %v3882_v61 = vmul.f32 %v12469_v38, %v3876_v49  ;;  %v3883_v33 = vmul.f32 %v12469_v38, %v3875_v35  ;;  %v3862_v35 = vadd.f32 %v3858_v20, %v3834_v56  ;;  %v3837_v20 = vadd.f32 %v3833_v46, %v3809_v50 }
0x1a8d   :  { %v3899_v13 = vpop.permute.xlu1 %3898  ;;  %v3863_v9 = vadd.f32 %v3859_v4, %v3835_v11 }
0x1a8e   :  { %v3873_v52 = vpop.permute.xlu0 %3872  ;;  %v3886_v57 = vmul.f32 %v3882_v61, %v12475_v6  ;;  %v3864_v6 = vadd.f32 %v3860_v22, %v3836_v5 }
0x1a8f   :  { %v3874_v55 = vsel %vm611_vm6, %v3871_v62, %v3873_v52  ;;  %v3877_v39 = vsel %vm611_vm6, %v3873_v52, %v10299_v54  ;;  %v12476_v62 = vld [vmem:[#allocation28_spill] sm:$0xff] }
0x1a90   :  { %v3884_v37 = vmul.f32 %v12469_v38, %v3874_v55  ;;  %v3887_v49 = vmul.f32 %v3883_v33, %v12476_v62  ;;  %v3885_v54 = vmul.f32 %v12469_v38, %v3877_v39  ;;  %v3890_v33 = vadd.f32 %v3886_v57, %v3862_v35  ;;  %v12480_v38 = vld [vmem:[#allocation29_spill] sm:$0xff]  ;;  %v12484_v35 = vld [vmem:[#allocation35_spill] sm:$0xff] }
0x1a92   :  { %v3897_v30 = vpop.permute.xlu0 %3896  ;;  %v3888_v52 = vmul.f32 %v3884_v37, %v12480_v38  ;;  %v3891_v55 = vadd.f32 %v3887_v49, %v3863_v9  ;;  %v3889_v39 = vmul.f32 %v3885_v54, %v12481_v58  ;;  %v12485_v54 = vld [vmem:[#allocation31_spill] sm:$0xff] }
0x1a93   :  { %v3903_v51 = vsel %vm656_vm7, %v3897_v30, %v3899_v13  ;;  %v3904_v60 = vsel %vm656_vm7, %v3895_v14, %v3897_v30  ;;  %v3865_v30 = vadd.f32 %v3861_v25, %v3837_v20 }
0x1a94   :  { %v3910_v63 = vmul.f32 %v12479_v16, %v3904_v60  ;;  %v3911_v61 = vmul.f32 %v12479_v16, %v3903_v51  ;;  %v3892_v37 = vadd.f32 %v3888_v52, %v3864_v6 }
0x1a95   :  { %v3893_v11 = vadd.f32 %v3889_v39, %v3865_v30  ;;  %v7901_v30 = vld [vmem:[%s11970_s14] sm:$0xff] }
0x1a96   :  { %v3914_v56 = vmul.f32 %v12482_v47, %v3910_v63  ;;  %v3915_v62 = vmul.f32 %v12483_v36, %v3911_v61  ;;  %v3901_v59 = vpop.permute.xlu0 %3900 }
0x1a97   :  { %v3902_v4 = vsel %vm656_vm7, %v3899_v13, %v3901_v59  ;;  %v3905_v32 = vsel %vm656_vm7, %v3901_v59, %v3895_v14 }
0x1a98   :  { %v3918_v50 = vadd.f32 %v3914_v56, %v3890_v33  ;;  %v3919_v3 = vadd.f32 %v3915_v62, %v3891_v55  ;;  %v3912_v46 = vmul.f32 %v12479_v16, %v3902_v4  ;;  %v3913_v57 = vmul.f32 %v12479_v16, %v3905_v32 }
0x1a9a   :  { %v3916_v49 = vmul.f32 %v12484_v35, %v3912_v46  ;;  %v3917_v51 = vmul.f32 %v12485_v54, %v3913_v57  ;;  %v3928_v22 = vmul.f32 %v3918_v50, %v3918_v50  ;;  %v3929_v25 = vmul.f32 %v3919_v3, %v3919_v3  ;;  %v12488_v35 = vld [vmem:[#allocation38_spill] sm:$0xff] }
0x1a9b   :  { %v3922_v13 = vadd.f32 %v3919_v3, %v3918_v50  ;;  %v12486_v46 = vmov 23  }
0x1a9c   :  { %v3920_v60 = vadd.f32 %v3916_v49, %v3892_v37  ;;  %v3921_v9 = vadd.f32 %v3917_v51, %v3893_v11  ;;  %v3932_v14 = vadd.f32 %v3929_v25, %v3928_v22  ;;  %v12487_v11 = vmov 2  }
0x1a9e   :  { %v3923_v63 = vadd.f32 %v3922_v13, %v3920_v60  ;;  %v3930_v61 = vmul.f32 %v3920_v60, %v3920_v60  ;;  %v3931_v62 = vmul.f32 %v3921_v9, %v3921_v9 }
0x1aa0   :  { %v3924_v59 = vadd.f32 %v3923_v63, %v3921_v9  ;;  %v3933_v5 = vadd.f32 %v3932_v14, %v3930_v61 }
0x1aa2   :  { %3925 = vadd.xlane.f32.xlu1 %v3924_v59  ;;  %v3934_v20 = vadd.f32 %v3933_v5, %v3931_v62  ;;  %v2963_v62 = vld [vmem:[%s11971_s15 + $0x10] sm:$0xff] }
0x1aa4   :  { %3935 = vadd.xlane.f32.xlu0 %v3934_v20 }
0x1b2f   :  { %v3926_v6 = vpop.xlane.xlu1 %3925 }
0x1b30   :  { %v3927_v16 = vmul.f32 0.001953125, %v3926_v6 }
0x1b31   :  { %v3936_v33 = vpop.xlane.xlu0 %3935 }
0x1b32   :  { %v3938_v52 = vmul.f32 %v3927_v16, %v3927_v16  ;;  %v3937_v55 = vmul.f32 0.001953125, %v3936_v33 }
0x1b34   :  { %v3939_v39 = vsub.f32 %v3937_v55, %v3938_v52 }
0x1b36   :  { %v3940_v47 = vmax.f32 %v3939_v39, 0.0 }
0x1b38   :  { %v3941_v56 = vadd.f32 1e-05, %v3940_v47 }
0x1b3a   :  { %7697 = vrsqrt.f32 %v3941_v56 }
0x1b44   :  { %v7698_v36 = vpop.eup %7697 }
0x1b45   :  { %v3943_v4 = vmul.f32 %v7901_v30, %v7698_v36 }
0x1b47   :  { %3946 = vperm.xlu1 %7495, %v3943_v4   ;;  %v3953_v32 = vmul.f32 %v3943_v4, %v3927_v16 }
0x1b49   :  { %3955 = vrot.lane.b32.xlu0 %v3953_v32, %s7925_s29 }
0x1b4b   :  { %7496 = vset.pattern.permute.xlu1 %v12486_v46 }
0x1bbb   :  { %v3956_v57 = vpop.permute.xlu0 %3955 }
0x1bbc   :  { %v3958_v37 = vsub.f32 %v7901_v30, %v3956_v57  ;;  %v12490_v30 = vld [vmem:[#allocation10_spill] sm:$0xff] }
0x1bbe   :  { %3961 = vperm.xlu1 %7496, %v3958_v37  }
0x1bc2   :  { %7497 = vset.pattern.permute.xlu1 %v12487_v11 }
0x1bc6   :  { %v3947_v49 = vpop.permute.xlu1 %3946 }
0x1bc7   :  { %v3949_v54 = vmul.f32 %v3947_v49, %v3918_v50  ;;  %v3951_v51 = vmul.f32 %v3947_v49, %v3920_v60  ;;  %v3950_v22 = vmul.f32 %v3947_v49, %v3919_v3  ;;  %v3952_v25 = vmul.f32 %v3947_v49, %v3921_v9 }
0x1bc8   :  { %v12489_v50 = vmov 0.0  }
0x1be2   :  { %3400 = vadd.xlane.f32.xlu1 %v12488_v35 }
0x1c3d   :  { %v3962_v13 = vpop.permute.xlu1 %3961 }
0x1c3e   :  { %v3965_v63 = vadd.f32 %v3962_v13, %v3950_v22  ;;  %v3967_v61 = vadd.f32 %v3962_v13, %v3952_v25  ;;  %v3964_v14 = vadd.f32 %v3962_v13, %v3949_v54  ;;  %v3966_v59 = vadd.f32 %v3962_v13, %v3951_v51 }
0x1c40   :  { %3971 = vmatprep.subr.mxu0 %v3965_v63  ;;  %4042 = vmatprep.subr.mxu1 %v3967_v61 }
0x1c41   :  { %3972 = vmatpush1.msra.mxu0 %v3964_v14  ;;  %4043 = vmatpush1.msra.mxu1 %v3966_v59 }
0x1c42   :  { %7254 = vmatmul.mubr.msk.f32.vlgmr.msra.gmra.mrb[18].mxu0 %vm740_vm8, %v2963_v62  ;;  %7255 = vmatmul.mubr.msk.f32.vlgmr.msra.gmra.mrb[18].mxu1 %vm740_vm8, %v2963_v62 }
0x1c43   :  { %4573 = vmatprep.mubr.f32.mxu0 %v12489_v50  ;;  %4644 = vmatprep.mubr.f32.mxu1 %v12489_v50 }
0x1c6f   :  { %v3401_v57 = vpop.xlane.xlu1 %3400 }
0x1c70   :  { %v3402_v35 = vmul.f32 0.001953125, %v3401_v57 }
0x1c72   :  { %v3413_v25 = vmul.f32 %v3402_v35, %v3402_v35 }
0x1d15   :  { %v10411_v3 = vpop.f32.mrb[18].mxu0  ;;  %v10413_v60 = vpop.f32.mrb[18].mxu1 }
0x1d16   :  { %v4119_v9 = vmul.f32 %v10411_v3, %v10411_v3  ;;  %v10417_v5 = vpop.f32.mrb[19].mxu0  ;;  %v10419_v20 = vpop.f32.mrb[19].mxu1  ;;  %v4121_v33 = vmul.f32 %v10413_v60, %v10413_v60 }
0x1d17   :  { %v4113_v6 = vadd.f32 %v10417_v5, %v10411_v3  ;;  %v4120_v16 = vmul.f32 %v10417_v5, %v10417_v5  ;;  %v4122_v56 = vmul.f32 %v10419_v20, %v10419_v20 }
0x1d19   :  { %v4123_v52 = vadd.f32 %v4120_v16, %v4119_v9  ;;  %v4114_v55 = vadd.f32 %v4113_v6, %v10413_v60  ;;  %v2964_v9 = vld [vmem:[%s11972_s16] sm:$0xff] }
0x1d1b   :  { %v4124_v39 = vadd.f32 %v4123_v52, %v4121_v33  ;;  %v4115_v47 = vadd.f32 %v4114_v55, %v10419_v20 }
0x1d1d   :  { %4116 = vadd.xlane.f32.xlu0 %v4115_v47  ;;  %v4125_v36 = vadd.f32 %v4124_v39, %v4122_v56  ;;  %v12491_v47 = vmov 0   ;;  %v12492_v56 = vmov 1  }
0x1d21   :  { %4126 = vadd.xlane.f32.xlu0 %v4125_v36 }
0x1d25   :  { %3410 = vadd.xlane.f32.xlu0 %v12490_v30 }
0x1daa   :  { %v4117_v4 = vpop.xlane.xlu0 %4116 }
0x1dab   :  { %v4118_v32 = vmul.f32 0.001953125, %v4117_v4 }
0x1dad   :  { %v4129_v49 = vmul.f32 %v4118_v32, %v4118_v32 }
0x1dae   :  { %v4127_v37 = vpop.xlane.xlu0 %4126 }
0x1daf   :  { %v4128_v54 = vmul.f32 0.001953125, %v4127_v37  ;;  %v12494_v37 = vmov 4  }
0x1db1   :  { %v4130_v51 = vsub.f32 %v4128_v54, %v4129_v49  ;;  %v12496_v49 = vmov 3   ;;  %v12497_v54 = vmov 21  }
0x1db2   :  { %v3411_v22 = vpop.xlane.xlu0 %3410 }
0x1db3   :  { %v4131_v13 = vmax.f32 %v4130_v51, 0.0  ;;  %v3412_v63 = vmul.f32 0.001953125, %v3411_v22  ;;  %v12498_v51 = vmov 5   ;;  %v12499_v22 = vmov 7  }
0x1db5   :  { %v4132_v61 = vadd.f32 1e-05, %v4131_v13  ;;  %v3414_v14 = vsub.f32 %v3412_v63, %v3413_v25  ;;  %v12500_v25 = vmov 8   ;;  %v12501_v13 = vmov 18  }
0x1db7   :  { %7699 = vrsqrt.f32 %v4132_v61  ;;  %v3415_v59 = vmax.f32 %v3414_v14, 0.0 }
0x1db9   :  { %v3416_v62 = vadd.f32 1e-05, %v3415_v59 }
0x1dbb   :  { %7701 = vrsqrt.f32 %v3416_v62 }
0x1dc1   :  { %v7700_v6 = vpop.eup %7699 }
0x1dc2   :  { %v4134_v16 = vmul.f32 %v7700_v6, %v2964_v9 }
0x1dc4   :  { %v4144_v33 = vmul.f32 %v4134_v16, %v4118_v32  ;;  %v10442_v32 = vld [vmem:[%s11973_s17] sm:$0xff] }
0x1dc5   :  { %v7702_v52 = vpop.eup %7701  ;;  %12493 = vst [vmem:[#allocation2_spill] sm:$0xff] %v10442_v32 }
0x1dc6   :  { %4146 = vrot.lane.b32.xlu1 %v4144_v33, %s7925_s29  ;;  %v3418_v55 = vmul.f32 %v7702_v52, %v2964_v9 }
0x1dc8   :  { %v3428_v39 = vmul.f32 %v3418_v55, %v3402_v35  ;;  %v12495_v35 = vmov 6  }
0x1dca   :  { %4137 = vperm.xlu1 %7497, %v4134_v16   ;;  %3430 = vrot.lane.b32.xlu0 %v3428_v39, %s7925_s29  ;;  %v12502_v39 = vld [vmem:[#allocation15_spill] sm:$0xff] }
0x1dce   :  { %7498 = vset.pattern.permute.xlu1 %v12491_v47 }
0x1dcf   :  { %3421 = vperm.xlu1 %7498, %v3418_v55  }
0x1dd3   :  { %7500 = vset.pattern.permute.xlu1 %v12492_v56 }
0x1e38   :  { %v4147_v36 = vpop.permute.xlu1 %4146 }
0x1e39   :  { %v4149_v30 = vsub.f32 %v2964_v9, %v4147_v36 }
0x1e3b   :  { %4152 = vperm.xlu0 %7499, %v4149_v30   ;;  %v12503_v30 = vld [vmem:[#allocation34_spill] sm:$0xff] }
0x1e3c   :  { %v3431_v4 = vpop.permute.xlu0 %3430 }
0x1e3d   :  { %v3433_v57 = vsub.f32 %v2964_v9, %v3431_v4 }
0x1e3f   :  { %3436 = vperm.xlu1 %7500, %v3433_v57   ;;  %7502 = vset.pattern.permute.xlu0 %v12492_v56  ;;  %v12504_v57 = vld [vmem:[#allocation9_spill] sm:$0xff] }
0x1e40   :  { %4261 = vperm.xlu0 %7502, %v10442_v32  }
0x1e43   :  { %7501 = vset.pattern.permute.xlu1 %v12491_v47 }
0x1e44   :  { %7505 = vset.pattern.permute.xlu0 %v12494_v37  ;;  %4233 = vperm.xlu1 %7501, %v10442_v32  }
0x1e45   :  { %4333 = vperm.xlu0 %7505, %v10442_v32  }
0x1e48   :  { %7503 = vset.pattern.permute.xlu1 %v12487_v11 }
0x1e49   :  { %4289 = vperm.xlu1 %7503, %v10442_v32   ;;  %7507 = vset.pattern.permute.xlu0 %v12495_v35  ;;  %v4138_v63 = vpop.permute.xlu1 %4137 }
0x1e4a   :  { %4389 = vperm.xlu0 %7507, %v10442_v32   ;;  %v4140_v61 = vmul.f32 %v4138_v63, %v10411_v3  ;;  %v4141_v14 = vmul.f32 %v4138_v63, %v10417_v5  ;;  %v4142_v59 = vmul.f32 %v4138_v63, %v10413_v60  ;;  %v4143_v62 = vmul.f32 %v4138_v63, %v10419_v20 }
0x1e4d   :  { %7504 = vset.pattern.permute.xlu1 %v12496_v49 }
0x1e4e   :  { %4317 = vperm.xlu1 %7504, %v10442_v32   ;;  %7513 = vset.pattern.permute.xlu0 %v12497_v54  ;;  %v3422_v9 = vpop.permute.xlu1 %3421 }
0x1e4f   :  { %v3424_v36 = vmul.f32 %v3422_v9, %v12502_v39  ;;  %v3425_v4 = vmul.f32 %v3422_v9, %v12503_v30  ;;  %v3426_v63 = vmul.f32 %v3422_v9, %v12504_v57 }
0x1e52   :  { %7506 = vset.pattern.permute.xlu1 %v12498_v51 }
0x1e53   :  { %4361 = vperm.xlu1 %7506, %v10442_v32  }
0x1e57   :  { %7508 = vset.pattern.permute.xlu1 %v12499_v22 }
0x1e58   :  { %4417 = vperm.xlu1 %7508, %v10442_v32  }
0x1e5c   :  { %7509 = vset.pattern.permute.xlu1 %v12500_v25 }
0x1e5d   :  { %4445 = vperm.xlu1 %7509, %v10442_v32  }
0x1e61   :  { %7510 = vset.pattern.permute.xlu1 %v12501_v13 }
0x1eba   :  { %v4153_v6 = vpop.permute.xlu0 %4152 }
0x1ebb   :  { %v10468_v16 = vadd.f32 %v4153_v6, %v4140_v61  ;;  %v10470_v33 = vadd.f32 %v4153_v6, %v4141_v14  ;;  %v10472_v52 = vadd.f32 %v4153_v6, %v4142_v59  ;;  %v10474_v55 = vadd.f32 %v4153_v6, %v4143_v62  ;;  %v12505_v61 = vld [vmem:[#allocation33_spill] sm:$0xff] }
0x1ebc   :  { %v3427_v14 = vmul.f32 %v3422_v9, %v12505_v61 }
0x1ebd   :  { %v4159_v3 = vsub.f32 0.0, %v10468_v16  ;;  %v4160_v5 = vsub.f32 0.0, %v10470_v33  ;;  %v4161_v60 = vsub.f32 0.0, %v10472_v52  ;;  %v4162_v20 = vsub.f32 0.0, %v10474_v55 }
0x1ebe   :  { %v3437_v59 = vpop.permute.xlu1 %3436 }
0x1ebf   :  { %v4163_v13 = vmul.f32 1.442695, %v4159_v3  ;;  %v4165_v62 = vmul.f32 1.442695, %v4160_v5  ;;  %v4167_v6 = vmul.f32 1.442695, %v4161_v60  ;;  %v3439_v25 = vadd.f32 %v3437_v59, %v3424_v36 }
0x1ec0   :  { %v4169_v39 = vmul.f32 1.442695, %v4162_v20  ;;  %v3440_v22 = vadd.f32 %v3437_v59, %v3425_v4  ;;  %v3441_v51 = vadd.f32 %v3437_v59, %v3426_v63  ;;  %v3442_v54 = vadd.f32 %v3437_v59, %v3427_v14 }
0x1ec1   :  { %7703 = vpow2.f32 %v4163_v13  ;;  %v3443_v35 = vsub.f32 0.0, %v3439_v25 }
0x1ec2   :  { %7705 = vpow2.f32 %v4165_v62  ;;  %v3444_v37 = vsub.f32 0.0, %v3440_v22  ;;  %v3445_v56 = vsub.f32 0.0, %v3441_v51  ;;  %v3446_v47 = vsub.f32 0.0, %v3442_v54 }
0x1ec3   :  { %7707 = vpow2.f32 %v4167_v6  ;;  %v3447_v30 = vmul.f32 1.442695, %v3443_v35 }
0x1ec4   :  { %7709 = vpow2.f32 %v4169_v39  ;;  %v3449_v57 = vmul.f32 1.442695, %v3444_v37  ;;  %v3451_v9 = vmul.f32 1.442695, %v3445_v56  ;;  %v3453_v61 = vmul.f32 1.442695, %v3446_v47 }
0x1ec5   :  { %7711 = vpow2.f32 %v3447_v30 }
0x1ec6   :  { %7713 = vpow2.f32 %v3449_v57 }
0x1ec7   :  { %7715 = vpow2.f32 %v3451_v9 }
0x1ec8   :  { %7717 = vpow2.f32 %v3453_v61 }
0x1ecb   :  { %v7704_v36 = vpop.eup %7703 }
0x1ecc   :  { %v7706_v3 = vpop.eup %7705  ;;  %v4171_v5 = vadd.f32 1.0, %v7704_v36 }
0x1ecd   :  { %v7708_v60 = vpop.eup %7707  ;;  %v4172_v13 = vadd.f32 1.0, %v7706_v3 }
0x1ece   :  { %v7710_v20 = vpop.eup %7709  ;;  %v4173_v4 = vadd.f32 1.0, %v7708_v60  ;;  %7719 = vrcp.f32 %v4171_v5 }
0x1ecf   :  { %v7712_v63 = vpop.eup %7711  ;;  %v4174_v14 = vadd.f32 1.0, %v7710_v20  ;;  %7721 = vrcp.f32 %v4172_v13 }
0x1ed0   :  { %v7714_v35 = vpop.eup %7713  ;;  %7723 = vrcp.f32 %v4173_v4  ;;  %v3455_v37 = vadd.f32 1.0, %v7712_v63 }
0x1ed1   :  { %v7716_v56 = vpop.eup %7715  ;;  %7725 = vrcp.f32 %v4174_v14  ;;  %v3456_v47 = vadd.f32 1.0, %v7714_v35 }
0x1ed2   :  { %v7718_v59 = vpop.eup %7717  ;;  %v3457_v62 = vadd.f32 1.0, %v7716_v56  ;;  %7727 = vrcp.f32 %v3455_v37 }
0x1ed3   :  { %v3458_v6 = vadd.f32 1.0, %v7718_v59  ;;  %7729 = vrcp.f32 %v3456_v47 }
0x1ed4   :  { %7731 = vrcp.f32 %v3457_v62 }
0x1ed5   :  { %7733 = vrcp.f32 %v3458_v6 }
0x1ed8   :  { %v7720_v39 = vpop.eup %7719 }
0x1ed9   :  { %v7722_v30 = vpop.eup %7721  ;;  %v4179_v57 = vmul.f32 %v7720_v39, %v10468_v16 }
0x1eda   :  { %v7724_v9 = vpop.eup %7723  ;;  %v4180_v61 = vmul.f32 %v7722_v30, %v10470_v33 }
0x1edb   :  { %v7726_v36 = vpop.eup %7725  ;;  %v4181_v3 = vmul.f32 %v7724_v9, %v10472_v52  ;;  %v4187_v20 = vrot.slane %v4179_v57, 4  ;;  %v4234_v9 = vpop.permute.xlu1 %4233 }
0x1edc   :  { %v7728_v5 = vpop.eup %7727  ;;  %v4182_v60 = vmul.f32 %v7726_v36, %v10474_v55  ;;  %v4188_v14 = vrot.slane %v4180_v61, 4 }
0x1edd   :  { %v7730_v13 = vpop.eup %7729  ;;  %v3463_v4 = vmul.f32 %v7728_v5, %v3439_v25  ;;  %v4189_v56 = vrot.slane %v4181_v3, 4  ;;  %v4262_v5 = vpop.permute.xlu0 %4261 }
0x1ede   :  { %v7732_v63 = vpop.eup %7731  ;;  %v3464_v35 = vmul.f32 %v7730_v13, %v3440_v22  ;;  %v4190_v33 = vrot.slane %v4182_v60, 4 }
0x1edf   :  { %v7734_v37 = vpop.eup %7733  ;;  %v3465_v47 = vmul.f32 %v7732_v63, %v3441_v51  ;;  %v10489_v16 = vsel %vm1684_vm9, %v3463_v4, %v4187_v20  ;;  %v4203_v59 = vrot.slane %v3463_v4, 4 }
0x1ee0   :  { %v3466_v62 = vmul.f32 %v7734_v37, %v3442_v54  ;;  %v10492_v52 = vsel %vm1684_vm9, %v3464_v35, %v4188_v14  ;;  %4219 = vrot.lane.b32.xlu0 %v10489_v16, %s7923_s11  ;;  %v4204_v55 = vrot.slane %v3464_v35, 4 }
0x1ee1   :  { %v10497_v25 = vsel %vm1684_vm9, %v3465_v47, %v4189_v56  ;;  %4221 = vrot.lane.b32.xlu1 %v10492_v52, %s7923_s11  ;;  %v10502_v51 = vsel %vm1684_vm9, %v4203_v59, %v4179_v57  ;;  %v4205_v22 = vrot.slane %v3465_v47, 4  ;;  %v4334_v13 = vpop.permute.xlu0 %4333 }
0x1ee2   :  { %12506 = vst [vmem:[#allocation32_spill] sm:$0xff] %v10502_v51  ;;  %v10505_v6 = vsel %vm1684_vm9, %v3466_v62, %v4190_v33  ;;  %v10508_v54 = vsel %vm1684_vm9, %v4204_v55, %v4180_v61  ;;  %v4206_v39 = vrot.slane %v3466_v62, 4  ;;  %v10576_v61 = vpop.permute.xlu1 %4289  ;;  %v4336_v51 = vmul.f32 %v4334_v13, %v10489_v16 }
0x1ee3   :  { %12507 = vst [vmem:[#allocation37_spill] sm:$0xff] %v10508_v54  ;;  %v10511_v30 = vsel %vm1684_vm9, %v4205_v22, %v4181_v3  ;;  %v4337_v58 = vmul.f32 %v4334_v13, %v10492_v52  ;;  %v10601_v10 = vmul.f32 %v4334_v13, %v10497_v25  ;;  %v10611_v40 = vmul.f32 %v4334_v13, %v10505_v6 }
0x1ee4   :  { %12508 = vst [vmem:[#allocation3_spill] sm:$0xff] %v10511_v30  ;;  %4225 = vrot.lane.b32.xlu0 %v10505_v6, %s7923_s11  ;;  %v10518_v57 = vsel %vm1684_vm9, %v4206_v39, %v4182_v60  ;;  %v10604_v7 = vmul.f32 %v4336_v51, %v12465_v28 }
0x1ee5   :  { %4248 = vrot.lane.b32.xlu1 %v10489_v16, %s12370_s25  ;;  %12509 = vst [vmem:[#allocation36_spill] sm:$0xff] %v10518_v57  ;;  %v10584_v20 = vpop.permute.xlu0 %4389 }
0x1ee6   :  { %v10578_v36 = vpop.permute.xlu1 %4317  ;;  %12512 = vst [vmem:[#allocation38_spill] sm:$0xff] %v10604_v7 }
0x1ee8   :  { %4250 = vrot.lane.b32.xlu0 %v10492_v52, %s12370_s25 }
0x1ee9   :  { %4254 = vrot.lane.b32.xlu1 %v10505_v6, %s12370_s25 }
0x1eea   :  { %v10580_v3 = vpop.permute.xlu1 %4361 }
0x1eec   :  { %4276 = vrot.lane.b32.xlu0 %v10489_v16, %s12275_s28 }
0x1eed   :  { %4223 = vrot.lane.b32.xlu1 %v10497_v25, %s7923_s11 }
0x1eee   :  { %v10582_v60 = vpop.permute.xlu1 %4417 }
0x1eef   :  { %12510 = vst [vmem:[#allocation35_spill] sm:$0xff] %v10582_v60 }
0x1ef0   :  { %4282 = vrot.lane.b32.xlu0 %v10505_v6, %s12275_s28 }
0x1ef1   :  { %4252 = vrot.lane.b32.xlu1 %v10497_v25, %s12370_s25 }
0x1ef2   :  { %v10586_v4 = vpop.permute.xlu1 %4445 }
0x1ef3   :  { %12511 = vst [vmem:[#allocation31_spill] sm:$0xff] %v10586_v4 }
0x1ef4   :  { %4280 = vrot.lane.b32.xlu0 %v10497_v25, %s12275_s28 }
0x1ef5   :  { %4278 = vrot.lane.b32.xlu1 %v10492_v52, %s12275_s28 }
0x1ef8   :  { %4306 = vrot.lane.b32.xlu0 %v10492_v52, %s7925_s29 }
0x1ef9   :  { %4304 = vrot.lane.b32.xlu1 %v10489_v16, %s7925_s29 }
0x1efc   :  { %4348 = vrot.lane.b32.xlu0 %v10489_v16, %s12276_s1 }
0x1efd   :  { %4310 = vrot.lane.b32.xlu1 %v10505_v6, %s7925_s29 }
0x1f00   :  { %4352 = vrot.lane.b32.xlu0 %v10497_v25, %s12276_s1 }
0x1f01   :  { %4308 = vrot.lane.b32.xlu1 %v10497_v25, %s7925_s29 }
0x1f04   :  { %4354 = vrot.lane.b32.xlu0 %v10505_v6, %s12276_s1 }
0x1f05   :  { %4350 = vrot.lane.b32.xlu1 %v10492_v52, %s12276_s1 }
0x1f08   :  { %4378 = vrot.lane.b32.xlu0 %v10492_v52, %s12277_s0 }
0x1f09   :  { %4376 = vrot.lane.b32.xlu1 %v10489_v16, %s12277_s0 }
0x1f0c   :  { %4382 = vrot.lane.b32.xlu0 %v10505_v6, %s12277_s0 }
0x1f0d   :  { %4380 = vrot.lane.b32.xlu1 %v10497_v25, %s12277_s0 }
0x1f10   :  { %4406 = vrot.lane.b32.xlu0 %v10492_v52, %s12278_s10 }
0x1f11   :  { %4404 = vrot.lane.b32.xlu1 %v10489_v16, %s12278_s10 }
0x1f14   :  { %4410 = vrot.lane.b32.xlu0 %v10505_v6, %s12278_s10 }
0x1f15   :  { %4408 = vrot.lane.b32.xlu1 %v10497_v25, %s12278_s10 }
0x1f18   :  { %4434 = vrot.lane.b32.xlu0 %v10492_v52, %s12279_s24 }
0x1f19   :  { %4432 = vrot.lane.b32.xlu1 %v10489_v16, %s12279_s24 }
0x1f1c   :  { %4438 = vrot.lane.b32.xlu0 %v10505_v6, %s12279_s24 }
0x1f1d   :  { %4436 = vrot.lane.b32.xlu1 %v10497_v25, %s12279_s24 }
0x1f52   :  { %v4220_v63 = vpop.permute.xlu0 %4219 }
0x1f53   :  { %v4222_v14 = vpop.permute.xlu1 %4221 }
0x1f54   :  { %v4229_v50 = vsel %vm308_vm0, %v4220_v63, %v4222_v14 }
0x1f55   :  { %v4237_v57 = vmul.f32 %v4234_v9, %v4229_v50 }
0x1f56   :  { %v4226_v35 = vpop.permute.xlu0 %4225 }
0x1f57   :  { %v4249_v37 = vpop.permute.xlu1 %4248  ;;  %v4241_v60 = vmul.f32 %v4237_v57, %v12466_v17  ;;  %v4230_v6 = vsel %vm308_vm0, %v4226_v35, %v4220_v63 }
0x1f5a   :  { %v4251_v56 = vpop.permute.xlu0 %4250 }
0x1f5b   :  { %v4255_v47 = vpop.permute.xlu1 %4254  ;;  %v4258_v54 = vsel %vm354_vm1, %v4249_v37, %v4251_v56 }
0x1f5c   :  { %v4259_v50 = vsel %vm354_vm1, %v4255_v47, %v4249_v37  ;;  %v4265_v52 = vmul.f32 %v4262_v5, %v4258_v54 }
0x1f5d   :  { %v4264_v54 = vmul.f32 %v4262_v5, %v4259_v50 }
0x1f5e   :  { %v4277_v59 = vpop.permute.xlu0 %4276  ;;  %v4269_v17 = vmul.f32 %v4265_v52, %v12282_v41 }
0x1f5f   :  { %v4224_v33 = vpop.permute.xlu1 %4223 }
0x1f60   :  { %v4227_v13 = vsel %vm308_vm0, %v4224_v33, %v4226_v35 }
0x1f62   :  { %v4283_v62 = vpop.permute.xlu0 %4282 }
0x1f63   :  { %v4253_v55 = vpop.permute.xlu1 %4252  ;;  %v4287_v63 = vsel %vm399_vm2, %v4283_v62, %v4277_v59 }
0x1f64   :  { %v4257_v38 = vsel %vm354_vm1, %v4251_v56, %v4253_v55  ;;  %v4228_v56 = vsel %vm308_vm0, %v4222_v14, %v4224_v33  ;;  %v4256_v25 = vsel %vm354_vm1, %v4253_v55, %v4255_v47  ;;  %v4236_v33 = vmul.f32 %v4234_v9, %v4230_v6 }
0x1f65   :  { %v4266_v51 = vmul.f32 %v4262_v5, %v4257_v38  ;;  %v4238_v55 = vmul.f32 %v4234_v9, %v4228_v56  ;;  %v4267_v57 = vmul.f32 %v4262_v5, %v4256_v25 }
0x1f66   :  { %v4281_v22 = vpop.permute.xlu0 %4280 }
0x1f67   :  { %v4279_v39 = vpop.permute.xlu1 %4278  ;;  %v4284_v38 = vsel %vm399_vm2, %v4281_v22, %v4283_v62  ;;  %v4270_v56 = vmul.f32 %v4266_v51, %v8496_v26  ;;  %v4268_v62 = vmul.f32 %v4264_v54, %v8473_v48  ;;  %v4292_v51 = vmul.f32 %v10576_v61, %v4287_v63 }
0x1f68   :  { %v4286_v16 = vsel %vm399_vm2, %v4277_v59, %v4279_v39  ;;  %v4285_v28 = vsel %vm399_vm2, %v4279_v39, %v4281_v22  ;;  %v4295_v25 = vmul.f32 %v10576_v61, %v4284_v38  ;;  %v4341_v63 = vmul.f32 %v4337_v58, %v12283_v0 }
0x1f69   :  { %v4293_v14 = vmul.f32 %v10576_v61, %v4286_v16  ;;  %v4294_v50 = vmul.f32 %v10576_v61, %v4285_v28  ;;  %v4239_v16 = vmul.f32 %v4234_v9, %v4227_v13  ;;  %v4242_v9 = vmul.f32 %v4238_v55, %v8468_v42 }
0x1f6a   :  { %v4307_v11 = vpop.permute.xlu0 %4306  ;;  %v4299_v55 = vmul.f32 %v4295_v25, %v8490_v24 }
0x1f6b   :  { %v4305_v49 = vpop.permute.xlu1 %4304  ;;  %v4298_v6 = vmul.f32 %v4294_v50, %v8509_v43  ;;  %v4274_v38 = vadd.f32 %v4270_v56, %v4242_v9  ;;  %v4343_v9 = vmul.f32 %v10611_v40, %v12285_v1 }
0x1f6c   :  { %v4314_v37 = vsel %vm444_vm3, %v4305_v49, %v4307_v11 }
0x1f6d   :  { %v4321_v35 = vmul.f32 %v10578_v36, %v4314_v37  ;;  %v4271_v37 = vmul.f32 %v4267_v57, %v8477_v53 }
0x1f6e   :  { %v10588_v46 = vpop.permute.xlu0 %4348 }
0x1f6f   :  { %v4311_v30 = vpop.permute.xlu1 %4310  ;;  %v4325_v13 = vmul.f32 %v4321_v35, %v8500_v45  ;;  %v4296_v35 = vmul.f32 %v4292_v51, %v8486_v23 }
0x1f70   :  { %v4315_v52 = vsel %vm444_vm3, %v4311_v30, %v4305_v49  ;;  %v4240_v49 = vmul.f32 %v4236_v33, %v8480_v2 }
0x1f71   :  { %v4320_v54 = vmul.f32 %v10578_v36, %v4315_v52 }
0x1f72   :  { %v10595_v32 = vpop.permute.xlu0 %4352  ;;  %v4272_v50 = vadd.f32 %v4268_v62, %v4240_v49  ;;  %v4342_v62 = vmul.f32 %v10601_v10, %v12284_v19 }
0x1f73   :  { %v4309_v4 = vpop.permute.xlu1 %4308  ;;  %v4324_v25 = vmul.f32 %v4320_v54, %v8518_v8 }
0x1f74   :  { %v4313_v39 = vsel %vm444_vm3, %v4307_v11, %v4309_v4  ;;  %v4312_v5 = vsel %vm444_vm3, %v4309_v4, %v4311_v30  ;;  %v4297_v11 = vmul.f32 %v4293_v14, %v8506_v44  ;;  %v4273_v4 = vadd.f32 %v4269_v17, %v4241_v60 }
0x1f75   :  { %v4322_v59 = vmul.f32 %v10578_v36, %v4313_v39  ;;  %v4323_v14 = vmul.f32 %v10578_v36, %v4312_v5  ;;  %v4243_v30 = vmul.f32 %v4239_v16, %v8483_v12  ;;  %v4302_v16 = vadd.f32 %v4298_v6, %v4274_v38 }
0x1f76   :  { %v4355_v7 = vpop.permute.xlu0 %4354  ;;  %v4301_v61 = vadd.f32 %v4297_v11, %v4273_v4  ;;  %v4300_v4 = vadd.f32 %v4296_v35, %v4272_v50 }
0x1f77   :  { %v4351_v47 = vpop.permute.xlu1 %4350  ;;  %v4326_v57 = vmul.f32 %v4322_v59, %v8503_v29  ;;  %v4356_v17 = vsel %vm521_vm4, %v10595_v32, %v4355_v7  ;;  %v4275_v33 = vadd.f32 %v4271_v37, %v4243_v30  ;;  %v4327_v36 = vmul.f32 %v4323_v14, %v8521_v34 }
0x1f78   :  { %v4329_v56 = vadd.f32 %v4325_v13, %v4301_v61  ;;  %v4357_v5 = vsel %vm521_vm4, %v4351_v47, %v10595_v32  ;;  %v4359_v11 = vsel %vm521_vm4, %v4355_v7, %v10588_v46  ;;  %v4366_v58 = vmul.f32 %v10580_v3, %v4356_v17 }
0x1f79   :  { %v4358_v52 = vsel %vm521_vm4, %v10588_v46, %v4351_v47  ;;  %v4303_v32 = vadd.f32 %v4299_v55, %v4275_v33  ;;  %v4330_v51 = vadd.f32 %v4326_v57, %v4302_v16  ;;  %v4365_v6 = vmul.f32 %v10580_v3, %v4357_v5 }
0x1f7a   :  { %v4379_v22 = vpop.permute.xlu0 %4378  ;;  %v4367_v47 = vmul.f32 %v10580_v3, %v4359_v11  ;;  %v4364_v10 = vmul.f32 %v10580_v3, %v4358_v52  ;;  %v4328_v14 = vadd.f32 %v4324_v25, %v4300_v4  ;;  %v4370_v49 = vmul.f32 %v4366_v58, %v12473_v31  ;;  %v12514_v58 = vld [vmem:[#allocation38_spill] sm:$0xff] }
0x1f7b   :  { %v4377_v28 = vpop.permute.xlu1 %4376  ;;  %v4331_v46 = vadd.f32 %v4327_v36, %v4303_v32  ;;  %v4345_v30 = vadd.f32 %v4341_v63, %v4329_v56  ;;  %v4346_v55 = vadd.f32 %v4342_v62, %v4330_v51  ;;  %v4369_v17 = vmul.f32 %v4365_v6, %v12470_v21  ;;  %v12513_v56 = vld [vmem:[#allocation35_spill] sm:$0xff] }
0x1f7c   :  { %v4386_v7 = vsel %vm566_vm5, %v4377_v28, %v4379_v22  ;;  %v4371_v33 = vmul.f32 %v4367_v47, %v12474_v18  ;;  %v4368_v16 = vmul.f32 %v4364_v10, %v12468_v15  ;;  %v4344_v52 = vadd.f32 %v12514_v58, %v4328_v14 }
0x1f7d   :  { %v4392_v61 = vmul.f32 %v10584_v20, %v4386_v7  ;;  %v4347_v35 = vadd.f32 %v4343_v9, %v4331_v46  ;;  %v12516_v9 = vld [vmem:[#allocation22_spill] sm:$0xff]  ;;  %v4374_v4 = vadd.f32 %v4370_v49, %v4346_v55  ;;  %v4373_v6 = vadd.f32 %v4369_v17, %v4345_v30  ;;  %v12517_v7 = vld [vmem:[#allocation25_spill] sm:$0xff]  ;;  %v12518_v46 = vld [vmem:[#allocation27_spill] sm:$0xff] }
0x1f7e   :  { %v4383_v39 = vpop.permute.xlu0 %4382 }
0x1f7f   :  { %v4381_v60 = vpop.permute.xlu1 %4380  ;;  %v4375_v14 = vadd.f32 %v4371_v33, %v4347_v35 }
0x1f80   :  { %v4385_v13 = vsel %vm566_vm5, %v4379_v22, %v4381_v60  ;;  %v4384_v40 = vsel %vm566_vm5, %v4381_v60, %v4383_v39  ;;  %v4387_v22 = vsel %vm566_vm5, %v4383_v39, %v4377_v28 }
0x1f81   :  { %v4393_v57 = vmul.f32 %v10584_v20, %v4385_v13  ;;  %v4394_v60 = vmul.f32 %v10584_v20, %v4384_v40  ;;  %v4395_v39 = vmul.f32 %v10584_v20, %v4387_v22  ;;  %v12519_v40 = vld [vmem:[#allocation31_spill] sm:$0xff]  ;;  %v12521_v22 = vld [vmem:[#allocation28_spill] sm:$0xff] }
0x1f82   :  { %v4407_v59 = vpop.permute.xlu0 %4406 }
0x1f83   :  { %v4405_v37 = vpop.permute.xlu1 %4404  ;;  %v4397_v32 = vmul.f32 %v4393_v57, %v12516_v9  ;;  %v4398_v13 = vmul.f32 %v4394_v60, %v12517_v7  ;;  %v10722_v60 = vld [vmem:[%s12224_s26 + $0x20] ss:$0 sm:$0xff] }
0x1f84   :  { %v4414_v38 = vsel %vm611_vm6, %v4405_v37, %v4407_v59  ;;  %12523 = vst [vmem:[#allocation10_spill] sm:$0xff] %v10722_v60 }
0x1f85   :  { %v4420_v28 = vmul.f32 %v12513_v56, %v4414_v38  ;;  %v4401_v17 = vadd.f32 %v4397_v32, %v4373_v6  ;;  %v4402_v33 = vadd.f32 %v4398_v13, %v4374_v4  ;;  %v10738_v4 = vld [vmem:[%s12224_s26 + $0x38] ss:$0 sm:$0xff] }
0x1f86   :  { %v4411_v54 = vpop.permute.xlu0 %4410  ;;  %12525 = vst [vmem:[#allocation15_spill] sm:$0xff] %v10738_v4 }
0x1f87   :  { %v4409_v3 = vpop.permute.xlu1 %4408  ;;  %v4415_v36 = vsel %vm611_vm6, %v4411_v54, %v4405_v37  ;;  %v4372_v37 = vadd.f32 %v4368_v16, %v4344_v52  ;;  %v4424_v47 = vmul.f32 %v4420_v28, %v12518_v46 }
0x1f88   :  { %v4412_v63 = vsel %vm611_vm6, %v4409_v3, %v4411_v54  ;;  %v4413_v50 = vsel %vm611_vm6, %v4407_v59, %v4409_v3  ;;  %v12515_v59 = vld [vmem:[#allocation21_spill] sm:$0xff]  ;;  %v4423_v10 = vmul.f32 %v12513_v56, %v4415_v36  ;;  %v12520_v54 = vld [vmem:[#allocation26_spill] sm:$0xff] }
0x1f89   :  { %v4421_v5 = vmul.f32 %v12513_v56, %v4413_v50  ;;  %v4422_v25 = vmul.f32 %v12513_v56, %v4412_v63  ;;  %v4396_v62 = vmul.f32 %v4392_v61, %v12515_v59  ;;  %v4399_v61 = vmul.f32 %v4395_v39, %v12520_v54  ;;  %v12522_v3 = vld [vmem:[#allocation29_spill] sm:$0xff]  ;;  %v12524_v36 = vld [vmem:[#allocation30_spill] sm:$0xff]  ;;  %v12556_v59 = vld [vmem:[#allocation7_spill] sm:$0xff] }
0x1f8a   :  { %v4435_v11 = vpop.permute.xlu0 %4434 }
0x1f8b   :  { %v4433_v51 = vpop.permute.xlu1 %4432  ;;  %v4425_v57 = vmul.f32 %v4421_v5, %v12521_v22  ;;  %v4426_v49 = vmul.f32 %v4422_v25, %v12522_v3  ;;  %v4400_v55 = vadd.f32 %v4396_v62, %v4372_v37  ;;  %v4427_v5 = vmul.f32 %v4423_v10, %v12524_v36 }
0x1f8c   :  { %v4442_v20 = vsel %vm656_vm7, %v4433_v51, %v4435_v11  ;;  %v4403_v52 = vadd.f32 %v4399_v61, %v4375_v14 }
0x1f8d   :  { %v4448_v38 = vmul.f32 %v12519_v40, %v4442_v20  ;;  %v4428_v39 = vadd.f32 %v4424_v47, %v4400_v55  ;;  %v4429_v62 = vadd.f32 %v4425_v57, %v4401_v17  ;;  %v4430_v32 = vadd.f32 %v4426_v49, %v4402_v33  ;;  %v10750_v20 = vld [vmem:[%s12224_s26 + $0x30] ss:$0 sm:$0xff] }
0x1f8e   :  { %v4439_v30 = vpop.permute.xlu0 %4438  ;;  %12527 = vst [vmem:[#allocation9_spill] sm:$0xff] %v10750_v20  ;;  %v4431_v47 = vadd.f32 %v4427_v5, %v4403_v52 }
0x1f8f   :  { %v4452_v63 = vmul.f32 %v10722_v60, %v4448_v38  ;;  %v4443_v50 = vsel %vm656_vm7, %v4439_v30, %v4433_v51  ;;  %v4437_v35 = vpop.permute.xlu1 %4436 }
0x1f90   :  { %v4451_v16 = vmul.f32 %v12519_v40, %v4443_v50  ;;  %v4440_v56 = vsel %vm656_vm7, %v4437_v35, %v4439_v30  ;;  %v4441_v28 = vsel %vm656_vm7, %v4435_v11, %v4437_v35  ;;  %v10744_v11 = vld [vmem:[%s12224_s26 + $0x28] ss:$0 sm:$0xff] }
0x1f91   :  { %v4449_v25 = vmul.f32 %v12519_v40, %v4441_v28  ;;  %v4450_v58 = vmul.f32 %v12519_v40, %v4440_v56  ;;  %v4456_v51 = vadd.f32 %v4452_v63, %v4428_v39  ;;  %12526 = vst [vmem:[#allocation34_spill] sm:$0xff] %v10744_v11 }
0x1f92   :  { %v4455_v6 = vmul.f32 %v10738_v4, %v4451_v16 }
0x1f93   :  { %v4453_v13 = vmul.f32 %v10744_v11, %v4449_v25  ;;  %v4454_v37 = vmul.f32 %v10750_v20, %v4450_v58  ;;  %v4466_v61 = vmul.f32 %v4456_v51, %v4456_v51 }
0x1f94   :  { %v4459_v38 = vadd.f32 %v4455_v6, %v4431_v47 }
0x1f95   :  { %v4457_v10 = vadd.f32 %v4453_v13, %v4429_v62  ;;  %v4458_v40 = vadd.f32 %v4454_v37, %v4430_v32  ;;  %v12528_v62 = vld [vmem:[#allocation2_spill] sm:$0xff]  ;;  %v12529_v13 = vmov 19  }
0x1f96   :  { %v4469_v63 = vmul.f32 %v4459_v38, %v4459_v38 }
0x1f97   :  { %v4460_v14 = vadd.f32 %v4457_v10, %v4456_v51  ;;  %v4467_v57 = vmul.f32 %v4457_v10, %v4457_v10  ;;  %v4468_v30 = vmul.f32 %v4458_v40, %v4458_v40 }
0x1f99   :  { %v4461_v49 = vadd.f32 %v4460_v14, %v4458_v40  ;;  %v4470_v55 = vadd.f32 %v4467_v57, %v4466_v61  ;;  %v12530_v14 = vmov 20  }
0x1f9b   :  { %v4462_v17 = vadd.f32 %v4461_v49, %v4459_v38  ;;  %v4471_v50 = vadd.f32 %v4470_v55, %v4468_v30 }
0x1f9d   :  { %4463 = vadd.xlane.f32.xlu1 %v4462_v17  ;;  %v4472_v35 = vadd.f32 %v4471_v50, %v4469_v63 }
0x1f9f   :  { %4473 = vadd.xlane.f32.xlu0 %v4472_v35 }
0x202a   :  { %v4464_v33 = vpop.xlane.xlu1 %4463 }
0x202b   :  { %v4465_v16 = vmul.f32 0.001953125, %v4464_v33 }
0x202c   :  { %v4474_v56 = vpop.xlane.xlu0 %4473 }
0x202d   :  { %v4476_v28 = vmul.f32 %v4465_v16, %v4465_v16  ;;  %v4475_v39 = vmul.f32 0.001953125, %v4474_v56  ;;  %v12535_v56 = vld [vmem:[#allocation3_spill] sm:$0xff] }
0x202f   :  { %v4477_v5 = vsub.f32 %v4475_v39, %v4476_v28  ;;  %v12536_v28 = vmov 0.0  }
0x2031   :  { %v4478_v25 = vmax.f32 %v4477_v5, 0.0 }
0x2033   :  { %v4479_v58 = vadd.f32 1e-05, %v4478_v25 }
0x2035   :  { %7735 = vrsqrt.f32 %v4479_v58 }
0x203f   :  { %v7736_v52 = vpop.eup %7735 }
0x2040   :  { %v4481_v32 = vmul.f32 %v7736_v52, %v12528_v62 }
0x2042   :  { %4484 = vperm.xlu1 %7510, %v4481_v32   ;;  %v4491_v6 = vmul.f32 %v4481_v32, %v4465_v16  ;;  %v10761_v16 = vld [vmem:[%s11974_s18 + $0x8] sm:$0xff] }
0x2043   :  { %12531 = vst [vmem:[#allocation33_spill] sm:$0xff] %v10761_v16 }
0x2044   :  { %4493 = vrot.lane.b32.xlu0 %v4491_v6, %s7925_s29 }
0x2046   :  { %7511 = vset.pattern.permute.xlu1 %v12529_v13 }
0x20b6   :  { %v4494_v37 = vpop.permute.xlu0 %4493 }
0x20b7   :  { %v4496_v47 = vsub.f32 %v12528_v62, %v4494_v37 }
0x20b9   :  { %4499 = vperm.xlu1 %7511, %v4496_v47  }
0x20bd   :  { %7512 = vset.pattern.permute.xlu1 %v12530_v14 }
0x20c1   :  { %v4485_v61 = vpop.permute.xlu1 %4484 }
0x20c2   :  { %v4487_v57 = vmul.f32 %v4485_v61, %v4456_v51  ;;  %v4489_v49 = vmul.f32 %v4485_v61, %v4458_v40  ;;  %v4488_v30 = vmul.f32 %v4485_v61, %v4457_v10  ;;  %v4490_v55 = vmul.f32 %v4485_v61, %v4459_v38  ;;  %v12532_v51 = vld [vmem:[#allocation37_spill] sm:$0xff]  ;;  %v12533_v10 = vld [vmem:[#allocation36_spill] sm:$0xff]  ;;  %v4216_v40 = vld [vmem:[%s11974_s18] sm:$0xff] }
0x20c3   :  { %v12534_v38 = vld [vmem:[#allocation32_spill] sm:$0xff] }
0x2138   :  { %v4500_v17 = vpop.permute.xlu1 %4499 }
0x2139   :  { %v4503_v63 = vadd.f32 %v4500_v17, %v4488_v30  ;;  %v4505_v50 = vadd.f32 %v4500_v17, %v4490_v55  ;;  %v4502_v35 = vadd.f32 %v4500_v17, %v4487_v57  ;;  %v4504_v33 = vadd.f32 %v4500_v17, %v4489_v49 }
0x213b   :  { %4509 = vmatprep.subr.mxu0 %v4503_v63  ;;  %4580 = vmatprep.subr.mxu1 %v4505_v50 }
0x213c   :  { %4510 = vmatpush1.msra.mxu0 %v4502_v35  ;;  %4581 = vmatpush1.msra.mxu1 %v4504_v33 }
0x213d   :  { %7256 = vmatmul.mubr.msk.f32.vlgmr.msra.gmra.mrb[20].mxu0 %vm740_vm8, %v10761_v16  ;;  %4732 = vmatprep.subr.mxu0 %v12532_v51 }
0x213e   :  { %4803 = vmatprep.subr.mxu1 %v12533_v10  ;;  %7257 = vmatmul.mubr.msk.f32.vlgmr.msra.gmra.mrb[20].mxu1 %vm740_vm8, %v10761_v16 }
0x213f   :  { %4733 = vmatpush1.msra.mxu0 %v12534_v38  ;;  %4804 = vmatpush1.msra.mxu1 %v12535_v56 }
0x2140   :  { %4796 = vmatprep.mubr.f32.mxu0 %v12536_v28  ;;  %4867 = vmatprep.mubr.f32.mxu1 %v12536_v28 }
0x2141   :  { %7258 = vmatmul.mubr.msk.f32.vlgmr.msra.gmra.mrb[22].mxu0 %vm740_vm8, %v4216_v40 }
0x2142   :  { %7259 = vmatmul.mubr.msk.f32.vlgmr.msra.gmra.mrb[22].mxu1 %vm740_vm8, %v4216_v40  ;;  %5297 = vmatprep.mubr.f32.mxu0 %v12536_v28 }
0x2143   :  { %5368 = vmatprep.mubr.f32.mxu1 %v12536_v28 }
0x2210   :  { %v10780_v39 = vpop.f32.mrb[20].mxu0 }
0x2211   :  { %12537 = vst [vmem:[#allocation35_spill] sm:$0xff] %v10780_v39  ;;  %v4651_v5 = vsel %vm1684_vm9, %v10780_v39, 0.0  ;;  %v4661_v25 = vmul.f32 %v10780_v39, %v10780_v39  ;;  %v10786_v58 = vpop.f32.mrb[21].mxu0  ;;  %v10788_v52 = vpop.f32.mrb[20].mxu1 }
0x2212   :  { %12538 = vst [vmem:[#allocation38_spill] sm:$0xff] %v10786_v58  ;;  %12539 = vst [vmem:[#allocation31_spill] sm:$0xff] %v10788_v52  ;;  %v4652_v32 = vsel %vm1684_vm9, %v10786_v58, 0.0  ;;  %v4662_v6 = vmul.f32 %v10786_v58, %v10786_v58  ;;  %v4654_v37 = vsel %vm1684_vm9, %v10788_v52, 0.0  ;;  %v4663_v47 = vmul.f32 %v10788_v52, %v10788_v52  ;;  %v10798_v61 = vpop.f32.mrb[21].mxu1 }
0x2213   :  { %12540 = vst [vmem:[#allocation2_spill] sm:$0xff] %v10798_v61  ;;  %v4665_v57 = vsel %vm1684_vm9, %v4661_v25, 0.0  ;;  %v4653_v49 = vadd.f32 %v4652_v32, %v4651_v5  ;;  %v4664_v17 = vmul.f32 %v10798_v61, %v10798_v61  ;;  %v4656_v40 = vsel %vm1684_vm9, %v10798_v61, 0.0 }
0x2214   :  { %v4666_v30 = vsel %vm1684_vm9, %v4662_v6, 0.0  ;;  %v4668_v55 = vsel %vm1684_vm9, %v4663_v47, 0.0  ;;  %v4798_v63 = vpop.f32.mrb[22].mxu0 }
0x2215   :  { %v4667_v50 = vadd.f32 %v4666_v30, %v4665_v57  ;;  %v4655_v35 = vadd.f32 %v4654_v37, %v4653_v49  ;;  %v4880_v33 = vmul.f32 %v4798_v63, %v4798_v63  ;;  %v4800_v51 = vpop.f32.mrb[23].mxu0  ;;  %v4869_v10 = vpop.f32.mrb[22].mxu1  ;;  %v4670_v13 = vsel %vm1684_vm9, %v4664_v17, 0.0 }
0x2216   :  { %v4874_v38 = vadd.f32 %v4800_v51, %v4798_v63  ;;  %v4881_v56 = vmul.f32 %v4800_v51, %v4800_v51  ;;  %v4882_v25 = vmul.f32 %v4869_v10, %v4869_v10  ;;  %v4871_v5 = vpop.f32.mrb[23].mxu1 }
0x2217   :  { %v10807_v32 = vadd.f32 %v4656_v40, %v4655_v35  ;;  %v4669_v6 = vadd.f32 %v4668_v55, %v4667_v50  ;;  %v4883_v49 = vmul.f32 %v4871_v5, %v4871_v5 }
0x2218   :  { %v4884_v47 = vadd.f32 %v4881_v56, %v4880_v33  ;;  %v4875_v14 = vadd.f32 %v4874_v38, %v4869_v10  ;;  %v12544_v33 = vmov 10   ;;  %v12550_v38 = vmov 22  }
0x2219   :  { %12541 = vst [vmem:[#allocation37_spill] sm:$0xff] %v10807_v32  ;;  %v10810_v52 = vadd.f32 %v4670_v13, %v4669_v6  ;;  %v12551_v6 = vmov 11  }
0x221a   :  { %v4885_v37 = vadd.f32 %v4884_v47, %v4882_v25  ;;  %v4876_v57 = vadd.f32 %v4875_v14, %v4871_v5  ;;  %v12543_v14 = vmov 9   ;;  %v12552_v47 = vmov 15  }
0x221b   :  { %12542 = vst [vmem:[#allocation36_spill] sm:$0xff] %v10810_v52 }
0x221c   :  { %4877 = vadd.xlane.f32.xlu0 %v4876_v57  ;;  %v4886_v30 = vadd.f32 %v4885_v37, %v4883_v49 }
0x221e   :  { %4887 = vadd.xlane.f32.xlu1 %v4886_v30 }
0x22a9   :  { %v4878_v61 = vpop.xlane.xlu0 %4877 }
0x22aa   :  { %v4879_v58 = vmul.f32 0.001953125, %v4878_v61  ;;  %v12549_v61 = vmov 17  }
0x22ab   :  { %v4888_v39 = vpop.xlane.xlu1 %4887 }
0x22ac   :  { %v4890_v28 = vmul.f32 %v4879_v58, %v4879_v58  ;;  %v4889_v16 = vmul.f32 0.001953125, %v4888_v39  ;;  %v12545_v39 = vmov 12  }
0x22ae   :  { %v4891_v35 = vsub.f32 %v4889_v16, %v4890_v28  ;;  %v12546_v16 = vmov 13   ;;  %v12547_v28 = vmov 14  }
0x22b0   :  { %v4892_v40 = vmax.f32 %v4891_v35, 0.0 }
0x22b2   :  { %v4893_v55 = vadd.f32 1e-05, %v4892_v40 }
0x22b4   :  { %7737 = vrsqrt.f32 %v4893_v55 }
0x22be   :  { %v7738_v50 = vpop.eup %7737 }
0x22bf   :  { %v4895_v17 = vmul.f32 %v7738_v50, %v12528_v62 }
0x22c1   :  { %4898 = vperm.xlu1 %7512, %v4895_v17   ;;  %v4905_v13 = vmul.f32 %v4895_v17, %v4879_v58  ;;  %v12548_v58 = vmov 16  }
0x22c3   :  { %4907 = vrot.lane.b32.xlu0 %v4905_v13, %s7925_s29 }
0x22c5   :  { %7514 = vset.pattern.permute.xlu1 %v12543_v14 }
0x22c6   :  { %4957 = vperm.xlu1 %7514, %v12528_v62  }
0x22ca   :  { %7515 = vset.pattern.permute.xlu1 %v12544_v33 }
0x22cb   :  { %4985 = vperm.xlu1 %7515, %v12528_v62  }
0x22cf   :  { %7517 = vset.pattern.permute.xlu1 %v12545_v39 }
0x22d0   :  { %5041 = vperm.xlu1 %7517, %v12528_v62  }
0x22d4   :  { %7518 = vset.pattern.permute.xlu1 %v12546_v16 }
0x22d5   :  { %5057 = vperm.xlu1 %7518, %v12528_v62  }
0x22d9   :  { %7519 = vset.pattern.permute.xlu1 %v12547_v28 }
0x22da   :  { %5085 = vperm.xlu1 %7519, %v12528_v62  }
0x22de   :  { %7521 = vset.pattern.permute.xlu1 %v12548_v58 }
0x22df   :  { %5141 = vperm.xlu1 %7521, %v12528_v62  }
0x22e3   :  { %7522 = vset.pattern.permute.xlu1 %v12549_v61 }
0x22e4   :  { %5169 = vperm.xlu1 %7522, %v12528_v62  }
0x22e8   :  { %7523 = vset.pattern.permute.xlu1 %v12550_v38 }
0x2335   :  { %v4908_v56 = vpop.permute.xlu0 %4907 }
0x2336   :  { %v4910_v25 = vsub.f32 %v12528_v62, %v4908_v56 }
0x2338   :  { %4913 = vperm.xlu0 %7513, %v4910_v25  }
0x233c   :  { %7516 = vset.pattern.permute.xlu0 %v12551_v6 }
0x233d   :  { %5013 = vperm.xlu0 %7516, %v12528_v62  }
0x2340   :  { %v4899_v37 = vpop.permute.xlu1 %4898 }
0x2341   :  { %7520 = vset.pattern.permute.xlu0 %v12552_v47  ;;  %v4901_v57 = vmul.f32 %v4899_v37, %v4798_v63  ;;  %v4902_v49 = vmul.f32 %v4899_v37, %v4800_v51  ;;  %v4903_v30 = vmul.f32 %v4899_v37, %v4869_v10  ;;  %v4904_v35 = vmul.f32 %v4899_v37, %v4871_v5 }
0x2342   :  { %5113 = vperm.xlu0 %7520, %v12528_v62  }
0x2346   :  { %7525 = vset.pattern.permute.xlu0 %v12548_v58 }
0x23b7   :  { %v4914_v40 = vpop.permute.xlu0 %4913 }
0x23b8   :  { %v4916_v55 = vadd.f32 %v4914_v40, %v4901_v57  ;;  %v4917_v50 = vadd.f32 %v4914_v40, %v4902_v49  ;;  %v4918_v17 = vadd.f32 %v4914_v40, %v4903_v30  ;;  %v4919_v13 = vadd.f32 %v4914_v40, %v4904_v35 }
0x23ba   :  { %v4920_v56 = vsub.f32 0.0, %v4916_v55  ;;  %v4921_v25 = vsub.f32 0.0, %v4917_v50  ;;  %v4923_v6 = vsub.f32 0.0, %v4919_v13  ;;  %v4922_v38 = vsub.f32 0.0, %v4918_v17 }
0x23bc   :  { %v4924_v61 = vmul.f32 1.442695, %v4920_v56  ;;  %v4926_v47 = vmul.f32 1.442695, %v4921_v25  ;;  %v4930_v28 = vmul.f32 1.442695, %v4923_v6 }
0x23bd   :  { %v4928_v62 = vmul.f32 1.442695, %v4922_v38 }
0x23be   :  { %7739 = vpow2.f32 %v4924_v61 }
0x23bf   :  { %7741 = vpow2.f32 %v4926_v47 }
0x23c0   :  { %7743 = vpow2.f32 %v4930_v28 }
0x23c1   :  { %7745 = vpow2.f32 %v4928_v62 }
0x23c8   :  { %v7740_v63 = vpop.eup %7739 }
0x23c9   :  { %v7742_v51 = vpop.eup %7741  ;;  %v4932_v10 = vadd.f32 1.0, %v7740_v63  ;;  %v5014_v63 = vpop.permute.xlu0 %5013 }
0x23ca   :  { %v4933_v5 = vadd.f32 1.0, %v7742_v51  ;;  %v7744_v37 = vpop.eup %7743 }
0x23cb   :  { %7747 = vrcp.f32 %v4932_v10  ;;  %v4935_v57 = vadd.f32 1.0, %v7744_v37  ;;  %v7746_v49 = vpop.eup %7745 }
0x23cc   :  { %7749 = vrcp.f32 %v4933_v5  ;;  %v4934_v30 = vadd.f32 1.0, %v7746_v49 }
0x23cd   :  { %7751 = vrcp.f32 %v4935_v57  ;;  %v10907_v10 = vpop.permute.xlu0 %5113 }
0x23ce   :  { %7753 = vrcp.f32 %v4934_v30  ;;  %12555 = vst [vmem:[#allocation39_spill] sm:$0xff] %v10907_v10 }
0x23d5   :  { %v7748_v35 = vpop.eup %7747 }
0x23d6   :  { %v7750_v40 = vpop.eup %7749  ;;  %v10835_v6 = vmul.f32 %v7748_v35, %v4916_v55 }
0x23d7   :  { %v10837_v61 = vmul.f32 %v7750_v40, %v4917_v50  ;;  %v7752_v28 = vpop.eup %7751  ;;  %v4958_v50 = vpop.permute.xlu1 %4957 }
0x23d8   :  { %4944 = vrot.lane.b32.xlu1 %v10835_v6, %s7923_s11  ;;  %v10843_v38 = vmul.f32 %v7752_v28, %v4919_v13  ;;  %v7754_v47 = vpop.eup %7753 }
0x23d9   :  { %4946 = vrot.lane.b32.xlu0 %v10837_v61, %s7923_s11  ;;  %v4942_v55 = vmul.f32 %v7754_v47, %v4918_v17 }
0x23db   :  { %v4986_v17 = vpop.permute.xlu1 %4985 }
0x23dc   :  { %4950 = vrot.lane.b32.xlu1 %v10843_v38, %s7923_s11 }
0x23dd   :  { %4972 = vrot.lane.b32.xlu0 %v10835_v6, %s12370_s25 }
0x23df   :  { %v10897_v13 = vpop.permute.xlu1 %5041 }
0x23e0   :  { %4974 = vrot.lane.b32.xlu1 %v10837_v61, %s12370_s25 }
0x23e1   :  { %4978 = vrot.lane.b32.xlu0 %v10843_v38, %s12370_s25 }
0x23e3   :  { %v10899_v56 = vpop.permute.xlu1 %5057 }
0x23e4   :  { %4976 = vrot.lane.b32.xlu1 %v4942_v55, %s12370_s25  ;;  %v5060_v11 = vmul.f32 %v10899_v56, %v10835_v6 }
0x23e5   :  { %4948 = vrot.lane.b32.xlu0 %v4942_v55, %s7923_s11 }
0x23e7   :  { %v10901_v25 = vpop.permute.xlu1 %5085 }
0x23e8   :  { %5002 = vrot.lane.b32.xlu1 %v10837_v61, %s12275_s28 }
0x23e9   :  { %5000 = vrot.lane.b32.xlu0 %v10835_v6, %s12275_s28 }
0x23eb   :  { %v10903_v62 = vpop.permute.xlu1 %5141 }
0x23ec   :  { %5028 = vrot.lane.b32.xlu1 %v10835_v6, %s7925_s29  ;;  %12553 = vst [vmem:[#allocation32_spill] sm:$0xff] %v10903_v62 }
0x23ed   :  { %5006 = vrot.lane.b32.xlu0 %v10843_v38, %s12275_s28 }
0x23ef   :  { %v10905_v51 = vpop.permute.xlu1 %5169 }
0x23f0   :  { %5034 = vrot.lane.b32.xlu1 %v10843_v38, %s7925_s29  ;;  %12554 = vst [vmem:[#allocation3_spill] sm:$0xff] %v10905_v51  ;;  %v5061_v51 = vmul.f32 %v10899_v56, %v10837_v61 }
0x23f1   :  { %5004 = vrot.lane.b32.xlu0 %v4942_v55, %s12275_s28 }
0x23f4   :  { %5032 = vrot.lane.b32.xlu1 %v4942_v55, %s7925_s29 }
0x23f5   :  { %5030 = vrot.lane.b32.xlu0 %v10837_v61, %s7925_s29 }
0x23f8   :  { %5074 = vrot.lane.b32.xlu1 %v10837_v61, %s12276_s1 }
0x23f9   :  { %5072 = vrot.lane.b32.xlu0 %v10835_v6, %s12276_s1 }
0x23fc   :  { %5100 = vrot.lane.b32.xlu1 %v10835_v6, %s12277_s0 }
0x23fd   :  { %5076 = vrot.lane.b32.xlu0 %v4942_v55, %s12276_s1 }
0x2400   :  { %5104 = vrot.lane.b32.xlu1 %v4942_v55, %s12277_s0 }
0x2401   :  { %5078 = vrot.lane.b32.xlu0 %v10843_v38, %s12276_s1 }
0x2404   :  { %5128 = vrot.lane.b32.xlu1 %v10835_v6, %s12278_s10 }
0x2405   :  { %5102 = vrot.lane.b32.xlu0 %v10837_v61, %s12277_s0 }
0x2408   :  { %5132 = vrot.lane.b32.xlu1 %v4942_v55, %s12278_s10 }
0x2409   :  { %5106 = vrot.lane.b32.xlu0 %v10843_v38, %s12277_s0 }
0x240c   :  { %5156 = vrot.lane.b32.xlu1 %v10835_v6, %s12279_s24  ;;  %v10930_v6 = vmul.f32 %v10899_v56, %v4942_v55 }
0x240d   :  { %5130 = vrot.lane.b32.xlu0 %v10837_v61, %s12278_s10 }
0x2410   :  { %5160 = vrot.lane.b32.xlu1 %v4942_v55, %s12279_s24  ;;  %v10943_v55 = vmul.f32 %v5060_v11, %v12556_v59 }
0x2411   :  { %5134 = vrot.lane.b32.xlu0 %v10843_v38, %s12278_s10 }
0x2415   :  { %5158 = vrot.lane.b32.xlu0 %v10837_v61, %s12279_s24 }
0x2419   :  { %5162 = vrot.lane.b32.xlu0 %v10843_v38, %s12279_s24 }
0x244a   :  { %v4945_v5 = vpop.permute.xlu1 %4944 }
0x244b   :  { %v4947_v37 = vpop.permute.xlu0 %4946 }
0x244e   :  { %v4951_v57 = vpop.permute.xlu1 %4950 }
0x244f   :  { %v4973_v49 = vpop.permute.xlu0 %4972  ;;  %v4955_v60 = vsel %vm308_vm0, %v4951_v57, %v4945_v5 }
0x2452   :  { %v4975_v30 = vpop.permute.xlu1 %4974 }
0x2453   :  { %v4979_v35 = vpop.permute.xlu0 %4978  ;;  %v4982_v54 = vsel %vm354_vm1, %v4973_v49, %v4975_v30 }
0x2454   :  { %v4983_v36 = vsel %vm354_vm1, %v4979_v35, %v4973_v49  ;;  %v4960_v49 = vmul.f32 %v4958_v50, %v4955_v60 }
0x2455   :  { %v4988_v31 = vmul.f32 %v4986_v17, %v4983_v36 }
0x2456   :  { %v4977_v40 = vpop.permute.xlu1 %4976 }
0x2457   :  { %v4949_v28 = vpop.permute.xlu0 %4948  ;;  %v4980_v3 = vsel %vm354_vm1, %v4977_v40, %v4979_v35  ;;  %v4981_v46 = vsel %vm354_vm1, %v4975_v30, %v4977_v40  ;;  %v4954_v30 = vsel %vm308_vm0, %v4945_v5, %v4947_v37  ;;  %v4989_v40 = vmul.f32 %v4986_v17, %v4982_v54 }
0x2458   :  { %v4952_v7 = vsel %vm308_vm0, %v4949_v28, %v4951_v57  ;;  %v4953_v35 = vsel %vm308_vm0, %v4947_v37, %v4949_v28  ;;  %v4991_v9 = vmul.f32 %v4986_v17, %v4980_v3  ;;  %v4990_v28 = vmul.f32 %v4986_v17, %v4981_v46 }
0x2459   :  { %v4963_v21 = vmul.f32 %v4958_v50, %v4952_v7  ;;  %v4962_v62 = vmul.f32 %v4958_v50, %v4953_v35  ;;  %v4961_v7 = vmul.f32 %v4958_v50, %v4954_v30  ;;  %v4964_v46 = vmul.f32 %v4960_v49, %v8480_v2  ;;  %v12557_v30 = vld [vmem:[#allocation11_spill] sm:$0xff] }
0x245a   :  { %v5003_v47 = vpop.permute.xlu1 %5002  ;;  %v4992_v17 = vmul.f32 %v4988_v31, %v8473_v48  ;;  %v4994_v31 = vmul.f32 %v4990_v28, %v8496_v26 }
0x245b   :  { %v5001_v16 = vpop.permute.xlu0 %5000  ;;  %v4967_v5 = vmul.f32 %v4963_v21, %v8483_v12  ;;  %v4966_v21 = vmul.f32 %v4962_v62, %v8468_v42 }
0x245c   :  { %v5010_v15 = vsel %vm399_vm2, %v5001_v16, %v5003_v47 }
0x245d   :  { %v5017_v37 = vmul.f32 %v5014_v63, %v5010_v15 }
0x245e   :  { %v5029_v39 = vpop.permute.xlu1 %5028 }
0x245f   :  { %v5007_v33 = vpop.permute.xlu0 %5006  ;;  %v5021_v62 = vmul.f32 %v5017_v37, %v8506_v44 }
0x2460   :  { %v5011_v61 = vsel %vm399_vm2, %v5007_v33, %v5001_v16  ;;  %v4995_v16 = vmul.f32 %v4991_v9, %v8477_v53 }
0x2461   :  { %v5016_v10 = vmul.f32 %v5014_v63, %v5011_v61 }
0x2462   :  { %v5035_v14 = vpop.permute.xlu1 %5034  ;;  %v4999_v28 = vadd.f32 %v4995_v16, %v4967_v5 }
0x2463   :  { %v5005_v52 = vpop.permute.xlu0 %5004  ;;  %v5039_v3 = vsel %vm444_vm3, %v5035_v14, %v5029_v39  ;;  %v5020_v15 = vmul.f32 %v5016_v10, %v8486_v23 }
0x2464   :  { %v5008_v57 = vsel %vm399_vm2, %v5005_v52, %v5007_v33  ;;  %v5009_v36 = vsel %vm399_vm2, %v5003_v47, %v5005_v52  ;;  %v4993_v47 = vmul.f32 %v4989_v40, %v12282_v41  ;;  %v4965_v40 = vmul.f32 %v4961_v7, %v12557_v30 }
0x2465   :  { %v5019_v11 = vmul.f32 %v5014_v63, %v5008_v57  ;;  %v5018_v50 = vmul.f32 %v5014_v63, %v5009_v36 }
0x2466   :  { %v5033_v32 = vpop.permute.xlu1 %5032 }
0x2467   :  { %v5031_v58 = vpop.permute.xlu0 %5030  ;;  %v5036_v33 = vsel %vm444_vm3, %v5033_v32, %v5035_v14  ;;  %v5044_v14 = vmul.f32 %v10897_v13, %v5039_v3  ;;  %v5023_v9 = vmul.f32 %v5019_v11, %v8490_v24  ;;  %v4996_v3 = vadd.f32 %v4992_v17, %v4964_v46 }
0x2468   :  { %v5037_v35 = vsel %vm444_vm3, %v5031_v58, %v5033_v32  ;;  %v5038_v52 = vsel %vm444_vm3, %v5029_v39, %v5031_v58  ;;  %v5047_v61 = vmul.f32 %v10897_v13, %v5036_v33  ;;  %v5063_v39 = vmul.f32 %v10899_v56, %v10843_v38 }
0x2469   :  { %v5065_v58 = vmul.f32 %v5061_v51, %v12283_v0  ;;  %v5045_v63 = vmul.f32 %v10897_v13, %v5038_v52  ;;  %v5046_v57 = vmul.f32 %v10897_v13, %v5037_v35  ;;  %v5048_v10 = vmul.f32 %v5044_v14, %v8518_v8 }
0x246a   :  { %v10909_v4 = vpop.permute.xlu1 %5074  ;;  %v5022_v36 = vmul.f32 %v5018_v50, %v8509_v43  ;;  %v5051_v11 = vmul.f32 %v5047_v61, %v8521_v34  ;;  %v4997_v56 = vadd.f32 %v4993_v47, %v4965_v40  ;;  %v4998_v51 = vadd.f32 %v4994_v31, %v4966_v21 }
0x246b   :  { %v10911_v20 = vpop.permute.xlu0 %5072  ;;  %v5024_v13 = vadd.f32 %v5020_v15, %v4996_v3  ;;  %v5027_v33 = vadd.f32 %v5023_v9, %v4999_v28  ;;  %v5049_v17 = vmul.f32 %v5045_v63, %v8500_v45  ;;  %v5050_v16 = vmul.f32 %v5046_v57, %v8503_v29  ;;  %v12558_v9 = vld [vmem:[#allocation39_spill] sm:$0xff] }
0x246c   :  { %v5082_v38 = vsel %vm521_vm4, %v10911_v20, %v10909_v4  ;;  %v5066_v35 = vmul.f32 %v10930_v6, %v12284_v19  ;;  %v5067_v52 = vmul.f32 %v5063_v39, %v12285_v1  ;;  %v5025_v47 = vadd.f32 %v5021_v62, %v4997_v56  ;;  %v12559_v28 = vld [vmem:[#allocation23_spill] sm:$0xff]  ;;  %v12560_v56 = vld [vmem:[#allocation32_spill] sm:$0xff] }
0x246d   :  { %v5088_v14 = vmul.f32 %v10901_v25, %v5082_v38  ;;  %v5052_v50 = vadd.f32 %v5048_v10, %v5024_v13  ;;  %v5026_v61 = vadd.f32 %v5022_v36, %v4998_v51  ;;  %v5055_v31 = vadd.f32 %v5051_v11, %v5027_v33  ;;  %v12561_v13 = vld [vmem:[#allocation24_spill] sm:$0xff] }
0x246e   :  { %v10927_v22 = vpop.permute.xlu1 %5100  ;;  %v5053_v57 = vadd.f32 %v5049_v17, %v5025_v47 }
0x246f   :  { %v10938_v18 = vpop.permute.xlu0 %5076  ;;  %v5054_v40 = vadd.f32 %v5050_v16, %v5026_v61  ;;  %v5092_v62 = vmul.f32 %v5088_v14, %v12559_v28  ;;  %v5068_v36 = vadd.f32 %v10943_v55, %v5052_v50  ;;  %v5071_v17 = vadd.f32 %v5067_v52, %v5055_v31  ;;  %v12562_v16 = vld [vmem:[#allocation21_spill] sm:$0xff]  ;;  %v12563_v52 = vld [vmem:[#allocation22_spill] sm:$0xff] }
0x2470   :  { %v5081_v5 = vsel %vm521_vm4, %v10909_v4, %v10938_v18  ;;  %v5069_v14 = vadd.f32 %v5065_v58, %v5053_v57  ;;  %v12564_v31 = vld [vmem:[#allocation17_spill] sm:$0xff]  ;;  %v12569_v57 = vld [vmem:[#allocation26_spill] sm:$0xff] }
0x2471   :  { %v5089_v4 = vmul.f32 %v10901_v25, %v5081_v5  ;;  %v5070_v50 = vadd.f32 %v5066_v35, %v5054_v40  ;;  %v12568_v58 = vld [vmem:[#allocation25_spill] sm:$0xff] }
0x2472   :  { %v10949_v60 = vpop.permute.xlu1 %5104 }
0x2473   :  { %v5079_v54 = vpop.permute.xlu0 %5078  ;;  %v5093_v33 = vmul.f32 %v5089_v4, %v12561_v13  ;;  %v12565_v4 = vld [vmem:[#allocation18_spill] sm:$0xff] }
0x2474   :  { %v5080_v15 = vsel %vm521_vm4, %v10938_v18, %v5079_v54  ;;  %v5083_v6 = vsel %vm521_vm4, %v5079_v54, %v10911_v20 }
0x2475   :  { %v5090_v11 = vmul.f32 %v10901_v25, %v5080_v15  ;;  %v5091_v38 = vmul.f32 %v10901_v25, %v5083_v6  ;;  %v12566_v6 = vld [vmem:[#allocation27_spill] sm:$0xff] }
0x2476   :  { %v10968_v49 = vpop.permute.xlu1 %5128 }
0x2477   :  { %v5103_v32 = vpop.permute.xlu0 %5102  ;;  %v5095_v15 = vmul.f32 %v5091_v38, %v12565_v4 }
0x2478   :  { %v5110_v37 = vsel %vm566_vm5, %v10927_v22, %v5103_v32  ;;  %v5109_v21 = vsel %vm566_vm5, %v5103_v32, %v10949_v60 }
0x2479   :  { %v5116_v39 = vmul.f32 %v12558_v9, %v5110_v37  ;;  %v5117_v18 = vmul.f32 %v12558_v9, %v5109_v21  ;;  %v5094_v21 = vmul.f32 %v5090_v11, %v12564_v31  ;;  %v12570_v11 = vld [vmem:[#allocation3_spill] sm:$0xff] }
0x247a   :  { %v5133_v7 = vpop.permute.xlu1 %5132 }
0x247b   :  { %v5107_v46 = vpop.permute.xlu0 %5106  ;;  %v5120_v5 = vmul.f32 %v5116_v39, %v12562_v16  ;;  %v5121_v61 = vmul.f32 %v5117_v18, %v12563_v52 }
0x247c   :  { %v5108_v20 = vsel %vm566_vm5, %v10949_v60, %v5107_v46  ;;  %v5111_v54 = vsel %vm566_vm5, %v5107_v46, %v10927_v22  ;;  %v5096_v46 = vadd.f32 %v5092_v62, %v5068_v36 }
0x247d   :  { %v5118_v47 = vmul.f32 %v12558_v9, %v5108_v20  ;;  %v5119_v22 = vmul.f32 %v12558_v9, %v5111_v54 }
0x247e   :  { %v5157_v10 = vpop.permute.xlu1 %5156 }
0x247f   :  { %v5131_v63 = vpop.permute.xlu0 %5130  ;;  %v5122_v35 = vmul.f32 %v5118_v47, %v12568_v58  ;;  %v5123_v40 = vmul.f32 %v5119_v22, %v12569_v57  ;;  %v12572_v47 = vld [vmem:[#allocation30_spill] sm:$0xff] }
0x2480   :  { %v5137_v3 = vsel %vm611_vm6, %v5131_v63, %v5133_v7  ;;  %v5138_v32 = vsel %vm611_vm6, %v10968_v49, %v5131_v63  ;;  %v5097_v63 = vadd.f32 %v5093_v33, %v5069_v14  ;;  %v5098_v33 = vadd.f32 %v5094_v21, %v5070_v50  ;;  %v12573_v22 = vld [vmem:[#allocation10_spill] sm:$0xff] }
0x2481   :  { %v5144_v51 = vmul.f32 %v12560_v56, %v5138_v32  ;;  %v5145_v60 = vmul.f32 %v12560_v56, %v5137_v3  ;;  %v5124_v3 = vadd.f32 %v5120_v5, %v5096_v46  ;;  %v5099_v5 = vadd.f32 %v5095_v15, %v5071_v17  ;;  %v12574_v14 = vld [vmem:[#allocation34_spill] sm:$0xff] }
0x2482   :  { %v5161_v20 = vpop.permute.xlu1 %5160  ;;  %v5125_v36 = vadd.f32 %v5121_v61, %v5097_v63 }
0x2483   :  { %v5135_v37 = vpop.permute.xlu0 %5134  ;;  %v5148_v39 = vmul.f32 %v5144_v51, %v12566_v6 }
0x2484   :  { %v5136_v55 = vsel %vm611_vm6, %v5133_v7, %v5135_v37  ;;  %v5139_v25 = vsel %vm611_vm6, %v5135_v37, %v10968_v49  ;;  %v12567_v7 = vld [vmem:[#allocation28_spill] sm:$0xff] }
0x2485   :  { %v5146_v9 = vmul.f32 %v12560_v56, %v5136_v55  ;;  %v5149_v32 = vmul.f32 %v5145_v60, %v12567_v7  ;;  %v5147_v49 = vmul.f32 %v12560_v56, %v5139_v25  ;;  %v5152_v60 = vadd.f32 %v5148_v39, %v5124_v3  ;;  %v12571_v56 = vld [vmem:[#allocation29_spill] sm:$0xff] }
0x2486   :  { %v5126_v7 = vadd.f32 %v5122_v35, %v5098_v33  ;;  %v12575_v3 = vld [vmem:[#allocation9_spill] sm:$0xff] }
0x2487   :  { %v5159_v62 = vpop.permute.xlu0 %5158  ;;  %v5150_v37 = vmul.f32 %v5146_v9, %v12571_v56  ;;  %v5153_v55 = vadd.f32 %v5149_v32, %v5125_v36  ;;  %v5151_v25 = vmul.f32 %v5147_v49, %v12572_v47  ;;  %v12576_v49 = vld [vmem:[#allocation15_spill] sm:$0xff] }
0x2488   :  { %v5165_v18 = vsel %vm656_vm7, %v5159_v62, %v5161_v20  ;;  %v5166_v54 = vsel %vm656_vm7, %v5157_v10, %v5159_v62  ;;  %v5127_v62 = vadd.f32 %v5123_v40, %v5099_v5 }
0x2489   :  { %v5172_v38 = vmul.f32 %v12570_v11, %v5166_v54  ;;  %v5173_v51 = vmul.f32 %v12570_v11, %v5165_v18  ;;  %v5154_v9 = vadd.f32 %v5150_v37, %v5126_v7 }
0x248a   :  { %v5155_v63 = vadd.f32 %v5151_v25, %v5127_v62  ;;  %v7906_v62 = vld [vmem:[%s11973_s17] sm:$0xff] }
0x248b   :  { %v5176_v46 = vmul.f32 %v12573_v22, %v5172_v38  ;;  %v5177_v13 = vmul.f32 %v12574_v14, %v5173_v51  ;;  %v5163_v28 = vpop.permute.xlu0 %5162 }
0x248c   :  { %v5164_v61 = vsel %vm656_vm7, %v5161_v20, %v5163_v28  ;;  %v5167_v50 = vsel %vm656_vm7, %v5163_v28, %v5157_v10 }
0x248d   :  { %v5180_v17 = vadd.f32 %v5176_v46, %v5152_v60  ;;  %v5181_v21 = vadd.f32 %v5177_v13, %v5153_v55  ;;  %v5174_v15 = vmul.f32 %v12570_v11, %v5164_v61  ;;  %v5175_v39 = vmul.f32 %v12570_v11, %v5167_v50 }
0x248f   :  { %v5178_v32 = vmul.f32 %v12575_v3, %v5174_v15  ;;  %v5179_v18 = vmul.f32 %v12576_v49, %v5175_v39  ;;  %v5190_v35 = vmul.f32 %v5180_v17, %v5180_v17  ;;  %v5191_v40 = vmul.f32 %v5181_v21, %v5181_v21  ;;  %v11081_v49 = vld [vmem:[%s11976_s6] sm:$0xff] }
0x2490   :  { %v5184_v20 = vadd.f32 %v5181_v21, %v5180_v17  ;;  %v12577_v15 = vmov 23   ;;  %v12578_v3 = vmov 16  }
0x2491   :  { %v5182_v54 = vadd.f32 %v5178_v32, %v5154_v9  ;;  %v5183_v36 = vadd.f32 %v5179_v18, %v5155_v63  ;;  %v5194_v28 = vadd.f32 %v5191_v40, %v5190_v35  ;;  %v5487_v63 = vld [vmem:[%s11975_s5 + $0x8] sm:$0xff]  ;;  %v5486_v32 = vld [vmem:[%s11975_s5] sm:$0xff]  ;;  %v12579_v18 = vmov 3   ;;  %v12581_v40 = vld [vmem:[#allocation37_spill] sm:$0xff] }
0x2492   :  { %v12580_v35 = vmov 2  }
0x2493   :  { %v5185_v38 = vadd.f32 %v5184_v20, %v5182_v54  ;;  %v5192_v51 = vmul.f32 %v5182_v54, %v5182_v54  ;;  %v5193_v13 = vmul.f32 %v5183_v36, %v5183_v36 }
0x2495   :  { %v5186_v10 = vadd.f32 %v5185_v38, %v5183_v36  ;;  %v5195_v33 = vadd.f32 %v5194_v28, %v5192_v51  ;;  %v5489_v38 = vld [vmem:[%s11977_s4] sm:$0xff]  ;;  %v5490_v51 = vld [vmem:[%s11977_s4 + $0x8] sm:$0xff] }
0x2497   :  { %5187 = vadd.xlane.f32.xlu1 %v5186_v10  ;;  %v5196_v5 = vadd.f32 %v5195_v33, %v5193_v13 }
0x2499   :  { %5197 = vadd.xlane.f32.xlu0 %v5196_v5  ;;  %v12582_v5 = vld [vmem:[#allocation33_spill] sm:$0xff] }
0x2524   :  { %v5188_v7 = vpop.xlane.xlu1 %5187 }
0x2525   :  { %v5189_v11 = vmul.f32 0.001953125, %v5188_v7  ;;  %v5230_v7 = vrot.slane %v12582_v5, 4 }
0x2526   :  { %v5198_v60 = vpop.xlane.xlu0 %5197 }
0x2527   :  { %v5200_v37 = vmul.f32 %v5189_v11, %v5189_v11  ;;  %v5199_v55 = vmul.f32 0.001953125, %v5198_v60  ;;  %v7374_v60 = vpack.c.bf16 %v5490_v51, %v5489_v38 }
0x2529   :  { %v5201_v25 = vsub.f32 %v5199_v55, %v5200_v37 }
0x252b   :  { %v5202_v22 = vmax.f32 %v5201_v25, 0.0 }
0x252d   :  { %v5203_v46 = vadd.f32 1e-05, %v5202_v22 }
0x252f   :  { %7755 = vrsqrt.f32 %v5203_v46 }
0x2539   :  { %v7756_v14 = vpop.eup %7755 }
0x253a   :  { %v5205_v61 = vmul.f32 %v7906_v62, %v7756_v14 }
0x253c   :  { %5208 = vperm.xlu1 %7523, %v5205_v61   ;;  %v5215_v50 = vmul.f32 %v5205_v61, %v5189_v11 }
0x253e   :  { %5217 = vrot.lane.b32.xlu0 %v5215_v50, %s7925_s29 }
0x2540   :  { %7524 = vset.pattern.permute.xlu1 %v12577_v15 }
0x2542   :  { %5493 = vperm.xlu0 %7525, %v5486_v32  }
0x2546   :  { %7529 = vset.pattern.permute.xlu0 %v12579_v18 }
0x25b0   :  { %v5218_v39 = vpop.permute.xlu0 %5217 }
0x25b1   :  { %v5220_v9 = vsub.f32 %v7906_v62, %v5218_v39 }
0x25b3   :  { %5223 = vperm.xlu1 %7524, %v5220_v9  }
0x25b7   :  { %7526 = vset.pattern.permute.xlu1 %v12578_v3 }
0x25b8   :  { %5498 = vperm.xlu1 %7526, %v5487_v63  }
0x25bb   :  { %v5209_v20 = vpop.permute.xlu1 %5208 }
0x25bc   :  { %5595 = vperm.xlu1 %7526, %v11081_v49   ;;  %v5211_v28 = vmul.f32 %v5209_v20, %v5180_v17  ;;  %v5213_v10 = vmul.f32 %v5209_v20, %v5182_v54  ;;  %v5212_v13 = vmul.f32 %v5209_v20, %v5181_v21  ;;  %v5214_v33 = vmul.f32 %v5209_v20, %v5183_v36 }
0x25bd   :  { %v12583_v17 = vmov 0.0   ;;  %v7945_v21 = vmov 0.0|0.0  }
0x25c0   :  { %7527 = vset.pattern.permute.xlu1 %v12580_v35 }
0x25c1   :  { %v5494_v38 = vpop.permute.xlu0 %5493 }
0x25e0   :  { %4658 = vadd.xlane.f32.xlu1 %v12581_v40 }
0x2632   :  { %v5224_v11 = vpop.permute.xlu1 %5223 }
0x2633   :  { %v5227_v37 = vadd.f32 %v5224_v11, %v5212_v13  ;;  %v5229_v55 = vadd.f32 %v5224_v11, %v5214_v33  ;;  %v5226_v25 = vadd.f32 %v5224_v11, %v5211_v28  ;;  %v5228_v22 = vadd.f32 %v5224_v11, %v5213_v10 }
0x2635   :  { %5233 = vmatprep.subr.mxu0 %v5227_v37  ;;  %5304 = vmatprep.subr.mxu1 %v5229_v55 }
0x2636   :  { %5234 = vmatpush1.msra.mxu0 %v5226_v25  ;;  %5305 = vmatpush1.msra.mxu1 %v5228_v22 }
0x2637   :  { %7260 = vmatmul.mubr.msk.f32.vlgmr.msra.gmra.mrb[24].mxu0 %vm740_vm8, %v5230_v7  ;;  %7375 = vmatprep.subr.bf16.mxu0 %v7374_v60  ;;  %v5499_v51 = vpop.permute.xlu1 %5498 }
0x2638   :  { %7377 = vmatpush3.bf16.msra.mxu0 %v7374_v60  ;;  %7261 = vmatmul.mubr.msk.f32.vlgmr.msra.gmra.mrb[24].mxu1 %vm740_vm8, %v5230_v7 }
0x2639   :  { %7300 = vmatprep.mubr.msk.f32.mxu0 %vm5501_vm10, %v5486_v32  ;;  %7378 = vmatprep.subr.bf16.mxu1 %v7945_v21 }
0x263a   :  { %7307 = vmatprep.mubr.msk.f32.mxu1 %vm7946_vm11, %v12583_v17 }
0x263b   :  { %7301 = vmatmul.mubr.msk.f32.vlgmr.msra.gmra.mrb[26].mxu0 %vm5501_vm10, %v5487_v63 }
0x263c   :  { %5765 = vmatprep.mubr.f32.mxu0 %v12583_v17 }
0x270a   :  { %v11100_v54 = vpop.f32.mrb[24].mxu0 }
0x270b   :  { %v5375_v36 = vsel %vm1684_vm9, %v11100_v54, 0.0  ;;  %v5385_v46 = vmul.f32 %v11100_v54, %v11100_v54  ;;  %v11106_v14 = vpop.f32.mrb[25].mxu0  ;;  %v11108_v62 = vpop.f32.mrb[24].mxu1 }
0x270c   :  { %v5376_v61 = vsel %vm1684_vm9, %v11106_v14, 0.0  ;;  %v5386_v50 = vmul.f32 %v11106_v14, %v11106_v14  ;;  %v5378_v39 = vsel %vm1684_vm9, %v11108_v62, 0.0  ;;  %v5387_v9 = vmul.f32 %v11108_v62, %v11108_v62  ;;  %v11118_v63 = vpop.f32.mrb[25].mxu1 }
0x270d   :  { %v5389_v32 = vsel %vm1684_vm9, %v5385_v46, 0.0  ;;  %v5377_v40 = vadd.f32 %v5376_v61, %v5375_v36  ;;  %v5388_v20 = vmul.f32 %v11118_v63, %v11118_v63  ;;  %v5380_v33 = vsel %vm1684_vm9, %v11118_v63, 0.0 }
0x270e   :  { %v5390_v28 = vsel %vm1684_vm9, %v5386_v50, 0.0  ;;  %v5392_v10 = vsel %vm1684_vm9, %v5387_v9, 0.0  ;;  %v7302_v13 = vpop.f32.mrb[26].mxu0  ;;  %v12584_v9 = vld [vmem:[#allocation36_spill] sm:$0xff] }
0x270f   :  { %v5391_v5 = vadd.f32 %v5390_v28, %v5389_v32  ;;  %v5379_v7 = vadd.f32 %v5378_v39, %v5377_v40  ;;  %v5578_v11 = vadd.f32 %v7302_v13, %v5499_v51  ;;  %v5572_v60 = vpop.f32.mrb[27].mxu0  ;;  %v5394_v55 = vsel %vm1684_vm9, %v5388_v20, 0.0 }
0x2710   :  { %v5573_v37 = vadd.f32 %v5572_v60, %v5494_v38  ;;  %v5670_v60 = vld [vmem:[%s11978_s7] sm:$0xff] }
0x2711   :  { %v5582_v25 = vsub.f32 0.0, %v5578_v11  ;;  %v5381_v22 = vadd.f32 %v5380_v33, %v5379_v7  ;;  %v5393_v21 = vadd.f32 %v5392_v10, %v5391_v5  ;;  %v7947_v33 = vmov 1983009808  }
0x2712   :  { %v5581_v36 = vsub.f32 0.0, %v5573_v37  ;;  %v5674_v5 = vunpack.c.l.s4 %v7947_v33 }
0x2713   :  { %v5585_v46 = vmul.f32 1.442695, %v5582_v25  ;;  %5382 = vadd.xlane.f32.xlu0 %v5381_v22  ;;  %v5395_v61 = vadd.f32 %v5394_v55, %v5393_v21  ;;  %v12585_v55 = vld [vmem:[#allocation4_spill] sm:$0xff]  ;;  %v5672_v22 = vcombine.high %v5670_v60, %v5670_v60 }
0x2714   :  { %v5583_v50 = vmul.f32 1.442695, %v5581_v36  ;;  %v5675_v7 = vunpack.c.0.s8 %v5674_v5 }
0x2715   :  { %7757 = vpow2.f32 %v5585_v46 }
0x2716   :  { %7759 = vpow2.f32 %v5583_v50  ;;  %v5678_v25 = vsub.s32 %v5675_v7, %v12585_v55 }
0x2717   :  { %5396 = vadd.xlane.f32.xlu0 %v5395_v61 }
0x2718   :  { %v5679_v21 = vrot.slane %v5670_v60, %v5678_v25  ;;  %v4218_v60 = vld [vmem:[%s11979_s19] sm:$0xf] }
0x271b   :  { %4672 = vadd.xlane.f32.xlu0 %v12584_v9 }
0x271f   :  { %v7758_v32 = vpop.eup %7757 }
0x2720   :  { %v7760_v39 = vpop.eup %7759  ;;  %v5588_v40 = vadd.f32 1.0, %v7758_v32 }
0x2721   :  { %v5587_v51 = vadd.f32 1.0, %v7760_v39 }
0x2722   :  { %7761 = vrcp.f32 %v5588_v40 }
0x2723   :  { %7763 = vrcp.f32 %v5587_v51 }
0x272c   :  { %v7762_v20 = vpop.eup %7761 }
0x272d   :  { %v7764_v38 = vpop.eup %7763  ;;  %v5592_v28 = vmul.f32 %v7762_v20, %v5578_v11  ;;  %v5686_v11 = vrot.slane %v5672_v22, %v5678_v25 }
0x272e   :  { %v5591_v10 = vmul.f32 %v7764_v38, %v5573_v37  ;;  %v5687_v37 = vcombine.high %v5679_v21, %v5679_v21 }
0x272f   :  { %v5688_v36 = vcombine.high %v5686_v11, %v5686_v11 }
0x2730   :  { %v7379_v13 = vpack.c.bf16 %v5592_v28, %v5591_v10  ;;  %7265 = vmatprep.subr.msk.mxu0 %vm5465_vm12, %v5687_v37 }
0x2731   :  { %7266 = vmatpush1.msk.msra.mxu0 %vm5465_vm12, %v5679_v21 }
0x2732   :  { %7380 = vmatpush3.bf16.msra.mxu1 %v7379_v13 }
0x2733   :  { %7268 = vmatprep.subr.msk.mxu1 %vm5465_vm12, %v5688_v36  ;;  %v12586_v36 = vmov 0  }
0x2735   :  { %7308 = vmatmul.mubr.msk.f32.vlgmr.msra.gmra.mrb[26].mxu1 %vm5501_vm10, %v11081_v49  ;;  %v5596_v49 = vpop.permute.xlu1 %5595 }
0x2736   :  { %5836 = vmatprep.mubr.f32.mxu1 %v12583_v17  ;;  %7269 = vmatpush1.msk.msra.mxu1 %vm5465_vm12, %v5686_v11 }
0x2739   :  { %v4659_v50 = vpop.xlane.xlu1 %4658 }
0x273a   :  { %v4660_v32 = vmul.f32 0.001953125, %v4659_v50 }
0x273c   :  { %v4675_v38 = vmul.f32 %v4660_v32, %v4660_v32 }
0x27a0   :  { %v5383_v46 = vpop.xlane.xlu0 %5382 }
0x27a1   :  { %v5384_v61 = vmul.f32 0.001953125, %v5383_v46  ;;  %v12587_v46 = vmov 1  }
0x27a3   :  { %v5399_v39 = vmul.f32 %v5384_v61, %v5384_v61 }
0x27a4   :  { %v5397_v9 = vpop.xlane.xlu0 %5396 }
0x27a5   :  { %v5398_v40 = vmul.f32 0.001953125, %v5397_v9 }
0x27a7   :  { %v5400_v51 = vsub.f32 %v5398_v40, %v5399_v39 }
0x27a8   :  { %v4673_v20 = vpop.xlane.xlu0 %4672 }
0x27a9   :  { %v5401_v28 = vmax.f32 %v5400_v51, 0.0  ;;  %v4674_v10 = vmul.f32 0.001953125, %v4673_v20  ;;  %v11152_v20 = vld [vmem:[%s11980_s20] sm:$0xf] }
0x27aa   :  { %12588 = vst [vmem:[#allocation11_spill] sm:$0xff] %v11152_v20 }
0x27ab   :  { %v5402_v13 = vadd.f32 1e-05, %v5401_v28  ;;  %v4676_v33 = vsub.f32 %v4674_v10, %v4675_v38  ;;  %v12590_v38 = vmov 6   ;;  %v12591_v28 = vmov 21  }
0x27ac   :  { %v12592_v10 = vmov 5  }
0x27ad   :  { %7765 = vrsqrt.f32 %v5402_v13  ;;  %v4677_v5 = vmax.f32 %v4676_v33, 0.0  ;;  %v12593_v13 = vmov 7   ;;  %v12594_v33 = vmov 8  }
0x27af   :  { %v4678_v7 = vadd.f32 1e-05, %v4677_v5  ;;  %v12595_v5 = vmov 18  }
0x27b1   :  { %7767 = vrsqrt.f32 %v4678_v7 }
0x27b7   :  { %v7766_v55 = vpop.eup %7765 }
0x27b8   :  { %v5404_v25 = vmul.f32 %v7766_v55, %v4218_v60 }
0x27ba   :  { %v5414_v22 = vmul.f32 %v5404_v25, %v5384_v61 }
0x27bb   :  { %v7768_v21 = vpop.eup %7767 }
0x27bc   :  { %5416 = vrot.lane.b32.xlu1 %v5414_v22, %s7925_s29  ;;  %v4680_v11 = vmul.f32 %v7768_v21, %v4218_v60 }
0x27be   :  { %v4690_v37 = vmul.f32 %v4680_v11, %v4660_v32 }
0x27c0   :  { %5407 = vperm.xlu1 %7527, %v5404_v25   ;;  %4692 = vrot.lane.b32.xlu0 %v4690_v37, %s7925_s29 }
0x27c4   :  { %7528 = vset.pattern.permute.xlu1 %v12586_v36 }
0x27c5   :  { %4683 = vperm.xlu1 %7528, %v4680_v11  }
0x27c9   :  { %7530 = vset.pattern.permute.xlu1 %v12587_v46 }
0x2808   :  { %v5666_v50 = vpop.f32.mrb[26].mxu1 }
0x2809   :  { %v5667_v9 = vadd.f32 %v5666_v50, %v5596_v49  ;;  %v7309_v39 = vpop.f32.mrb[27].mxu1  ;;  %v12589_v49 = vmov 4  }
0x280b   :  { %7267 = vmatmul.mubr.msk.f32.vlgmr.msra.gmra.mrb[28].mxu0 %vm5689_vm13, %v5667_v9  ;;  %7270 = vmatmul.mubr.msk.f32.vlgmr.msra.gmra.mrb[28].mxu1 %vm5689_vm13, %v5667_v9 }
0x280c   :  { %6291 = vmatprep.mubr.f32.mxu0 %v12583_v17  ;;  %6362 = vmatprep.mubr.f32.mxu1 %v12583_v17 }
0x282e   :  { %v5417_v61 = vpop.permute.xlu1 %5416 }
0x282f   :  { %v5419_v32 = vsub.f32 %v4218_v60, %v5417_v61  ;;  %v12596_v61 = vld [vmem:[#allocation35_spill] sm:$0xff] }
0x2831   :  { %5422 = vperm.xlu0 %7529, %v5419_v32  }
0x2832   :  { %v4693_v40 = vpop.permute.xlu0 %4692 }
0x2833   :  { %v4695_v51 = vsub.f32 %v4218_v60, %v4693_v40  ;;  %v12597_v40 = vld [vmem:[#allocation38_spill] sm:$0xff] }
0x2835   :  { %4698 = vperm.xlu1 %7530, %v4695_v51   ;;  %7532 = vset.pattern.permute.xlu0 %v12587_v46 }
0x2836   :  { %5957 = vperm.xlu0 %7532, %v11152_v20  }
0x2839   :  { %7531 = vset.pattern.permute.xlu1 %v12586_v36 }
0x283a   :  { %7535 = vset.pattern.permute.xlu0 %v12589_v49  ;;  %5929 = vperm.xlu1 %7531, %v11152_v20   ;;  %v12598_v49 = vld [vmem:[#allocation31_spill] sm:$0xff] }
0x283b   :  { %6029 = vperm.xlu0 %7535, %v11152_v20  }
0x283e   :  { %7533 = vset.pattern.permute.xlu1 %v12580_v35 }
0x283f   :  { %5985 = vperm.xlu1 %7533, %v11152_v20   ;;  %7537 = vset.pattern.permute.xlu0 %v12590_v38  ;;  %v5408_v7 = vpop.permute.xlu1 %5407 }
0x2840   :  { %6085 = vperm.xlu0 %7537, %v11152_v20   ;;  %v5410_v60 = vmul.f32 %v5408_v7, %v11100_v54  ;;  %v5411_v55 = vmul.f32 %v5408_v7, %v11106_v14  ;;  %v5412_v25 = vmul.f32 %v5408_v7, %v11108_v62  ;;  %v5413_v22 = vmul.f32 %v5408_v7, %v11118_v63 }
0x2843   :  { %7534 = vset.pattern.permute.xlu1 %v12579_v18 }
0x2844   :  { %6013 = vperm.xlu1 %7534, %v11152_v20   ;;  %7543 = vset.pattern.permute.xlu0 %v12591_v28  ;;  %v4684_v21 = vpop.permute.xlu1 %4683  ;;  %v12599_v28 = vld [vmem:[#allocation2_spill] sm:$0xff] }
0x2845   :  { %v4686_v32 = vmul.f32 %v4684_v21, %v12596_v61  ;;  %v4687_v51 = vmul.f32 %v4684_v21, %v12597_v40  ;;  %v4688_v38 = vmul.f32 %v4684_v21, %v12598_v49 }
0x2848   :  { %7536 = vset.pattern.permute.xlu1 %v12592_v10  ;;  %v4689_v10 = vmul.f32 %v4684_v21, %v12599_v28 }
0x2849   :  { %6057 = vperm.xlu1 %7536, %v11152_v20  }
0x284d   :  { %7538 = vset.pattern.permute.xlu1 %v12593_v13 }
0x284e   :  { %6113 = vperm.xlu1 %7538, %v11152_v20  }
0x2852   :  { %7539 = vset.pattern.permute.xlu1 %v12594_v33 }
0x2853   :  { %6141 = vperm.xlu1 %7539, %v11152_v20  }
0x2857   :  { %7540 = vset.pattern.permute.xlu1 %v12595_v5 }
0x28b0   :  { %v5423_v11 = vpop.permute.xlu0 %5422 }
0x28b1   :  { %v11178_v37 = vadd.f32 %v5423_v11, %v5410_v60  ;;  %v11180_v50 = vadd.f32 %v5423_v11, %v5411_v55  ;;  %v11182_v9 = vadd.f32 %v5423_v11, %v5412_v25  ;;  %v11184_v39 = vadd.f32 %v5423_v11, %v5413_v22 }
0x28b3   :  { %v5429_v54 = vsub.f32 0.0, %v11178_v37  ;;  %v5430_v14 = vsub.f32 0.0, %v11180_v50  ;;  %v5431_v62 = vsub.f32 0.0, %v11182_v9  ;;  %v5432_v63 = vsub.f32 0.0, %v11184_v39 }
0x28b4   :  { %v4699_v13 = vpop.permute.xlu1 %4698 }
0x28b5   :  { %v5433_v33 = vmul.f32 1.442695, %v5429_v54  ;;  %v5435_v5 = vmul.f32 1.442695, %v5430_v14  ;;  %v5437_v7 = vmul.f32 1.442695, %v5431_v62  ;;  %v4701_v60 = vadd.f32 %v4699_v13, %v4686_v32 }
0x28b6   :  { %v5439_v55 = vmul.f32 1.442695, %v5432_v63  ;;  %v4702_v25 = vadd.f32 %v4699_v13, %v4687_v51  ;;  %v4703_v22 = vadd.f32 %v4699_v13, %v4688_v38  ;;  %v11194_v11 = vadd.f32 %v4699_v13, %v4689_v10 }
0x28b7   :  { %7769 = vpow2.f32 %v5433_v33  ;;  %v4705_v61 = vsub.f32 0.0, %v4701_v60 }
0x28b8   :  { %7771 = vpow2.f32 %v5435_v5  ;;  %v4706_v35 = vsub.f32 0.0, %v4702_v25  ;;  %v4707_v18 = vsub.f32 0.0, %v4703_v22  ;;  %v4708_v40 = vsub.f32 0.0, %v11194_v11 }
0x28b9   :  { %7773 = vpow2.f32 %v5437_v7  ;;  %v4709_v49 = vmul.f32 1.442695, %v4705_v61 }
0x28ba   :  { %7775 = vpow2.f32 %v5439_v55  ;;  %v4711_v21 = vmul.f32 1.442695, %v4706_v35  ;;  %v4713_v54 = vmul.f32 1.442695, %v4707_v18  ;;  %v4715_v14 = vmul.f32 1.442695, %v4708_v40 }
0x28bb   :  { %7777 = vpow2.f32 %v4709_v49 }
0x28bc   :  { %7779 = vpow2.f32 %v4711_v21 }
0x28bd   :  { %7781 = vpow2.f32 %v4713_v54 }
0x28be   :  { %7783 = vpow2.f32 %v4715_v14 }
0x28c1   :  { %v7770_v32 = vpop.eup %7769 }
0x28c2   :  { %v7772_v62 = vpop.eup %7771  ;;  %v5441_v63 = vadd.f32 1.0, %v7770_v32 }
0x28c3   :  { %v7774_v51 = vpop.eup %7773  ;;  %v5442_v38 = vadd.f32 1.0, %v7772_v62 }
0x28c4   :  { %v7776_v28 = vpop.eup %7775  ;;  %v5443_v10 = vadd.f32 1.0, %v7774_v51  ;;  %7785 = vrcp.f32 %v5441_v63 }
0x28c5   :  { %v7778_v13 = vpop.eup %7777  ;;  %v5444_v33 = vadd.f32 1.0, %v7776_v28  ;;  %7787 = vrcp.f32 %v5442_v38 }
0x28c6   :  { %v7780_v5 = vpop.eup %7779  ;;  %7789 = vrcp.f32 %v5443_v10  ;;  %v4717_v35 = vadd.f32 1.0, %v7778_v13 }
0x28c7   :  { %v7782_v18 = vpop.eup %7781  ;;  %7791 = vrcp.f32 %v5444_v33  ;;  %v4718_v7 = vadd.f32 1.0, %v7780_v5 }
0x28c8   :  { %v7784_v55 = vpop.eup %7783  ;;  %v4719_v61 = vadd.f32 1.0, %v7782_v18  ;;  %7793 = vrcp.f32 %v4717_v35 }
0x28c9   :  { %v4720_v40 = vadd.f32 1.0, %v7784_v55  ;;  %7795 = vrcp.f32 %v4718_v7 }
0x28ca   :  { %7797 = vrcp.f32 %v4719_v61 }
0x28cb   :  { %7799 = vrcp.f32 %v4720_v40 }
0x28ce   :  { %v7786_v49 = vpop.eup %7785 }
0x28cf   :  { %v7788_v21 = vpop.eup %7787  ;;  %v5449_v54 = vmul.f32 %v7786_v49, %v11178_v37 }
0x28d0   :  { %v7790_v14 = vpop.eup %7789  ;;  %v5450_v32 = vmul.f32 %v7788_v21, %v11180_v50 }
0x28d1   :  { %v7792_v62 = vpop.eup %7791  ;;  %v5451_v63 = vmul.f32 %v7790_v14, %v11182_v9  ;;  %v5457_v13 = vrot.slane %v5449_v54, 6 }
0x28d2   :  { %v7794_v51 = vpop.eup %7793  ;;  %v5452_v38 = vmul.f32 %v7792_v62, %v11184_v39  ;;  %v5458_v35 = vrot.slane %v5450_v32, 6 }
0x28d3   :  { %v7796_v28 = vpop.eup %7795  ;;  %v4725_v10 = vmul.f32 %v7794_v51, %v4701_v60  ;;  %v5459_v61 = vrot.slane %v5451_v63, 6 }
0x28d4   :  { %v7798_v33 = vpop.eup %7797  ;;  %v4726_v5 = vmul.f32 %v7796_v28, %v4702_v25  ;;  %v5460_v49 = vrot.slane %v5452_v38, 6 }
0x28d5   :  { %v7800_v18 = vpop.eup %7799  ;;  %v5466_v7 = vsel %vm5465_vm12, %v4725_v10, %v5457_v13  ;;  %v5474_v55 = vrot.slane %v4725_v10, 2  ;;  %v4727_v37 = vmul.f32 %v7798_v33, %v4703_v22 }
0x28d6   :  { %v5467_v50 = vsel %vm5465_vm12, %v4726_v5, %v5458_v35  ;;  %v5475_v40 = vrot.slane %v4726_v5, 2  ;;  %v4728_v9 = vmul.f32 %v7800_v18, %v11194_v11 }
0x28d7   :  { %v5482_v39 = vsel %vm5465_vm12, %v5474_v55, %v5449_v54  ;;  %v5468_v60 = vsel %vm5465_vm12, %v4727_v37, %v5459_v61  ;;  %v5476_v21 = vrot.slane %v4727_v37, 2 }
0x28d8   :  { %v5483_v25 = vsel %vm5465_vm12, %v5475_v40, %v5450_v32  ;;  %v5469_v14 = vsel %vm5465_vm12, %v4728_v9, %v5460_v49  ;;  %v5477_v62 = vrot.slane %v4728_v9, 2 }
0x28d9   :  { %v5484_v51 = vsel %vm5465_vm12, %v5476_v21, %v5451_v63 }
0x28da   :  { %v5485_v22 = vsel %vm5465_vm12, %v5477_v62, %v5452_v38 }
0x28de   :  { %v5767_v28 = vpop.f32.mrb[28].mxu0  ;;  %v5838_v10 = vpop.f32.mrb[28].mxu1 }
0x28df   :  { %v5843_v13 = vadd.f32 %v5767_v28, %v5466_v7  ;;  %v5875_v33 = vrot.slane %v5767_v28, 4  ;;  %v5845_v11 = vadd.f32 %v5838_v10, %v5468_v60  ;;  %v5877_v5 = vrot.slane %v5838_v10, 4  ;;  %v5769_v35 = vpop.f32.mrb[29].mxu0  ;;  %v5840_v54 = vpop.f32.mrb[29].mxu1 }
0x28e0   :  { %v5844_v18 = vadd.f32 %v5769_v35, %v5467_v50  ;;  %v5876_v55 = vrot.slane %v5769_v35, 4  ;;  %v5846_v37 = vadd.f32 %v5840_v54, %v5469_v14  ;;  %v5878_v61 = vrot.slane %v5840_v54, 4 }
0x28e1   :  { %v5847_v32 = vsub.f32 0.0, %v5843_v13  ;;  %v11210_v40 = vadd.f32 %v5875_v33, %v5482_v39  ;;  %v5849_v9 = vsub.f32 0.0, %v5845_v11  ;;  %v11212_v49 = vadd.f32 %v5877_v5, %v5484_v51 }
0x28e2   :  { %v11214_v63 = vadd.f32 %v5876_v55, %v5483_v25  ;;  %v11216_v38 = vadd.f32 %v5878_v61, %v5485_v22  ;;  %v5850_v60 = vsub.f32 0.0, %v5846_v37  ;;  %v5848_v50 = vsub.f32 0.0, %v5844_v18 }
0x28e3   :  { %12600 = vst [vmem:[#allocation39_spill] sm:$0xff] %v11210_v40  ;;  %12601 = vst [vmem:[#allocation32_spill] sm:$0xff] %v11212_v49  ;;  %v5851_v7 = vmul.f32 1.442695, %v5847_v32  ;;  %v5855_v21 = vmul.f32 1.442695, %v5849_v9 }
0x28e4   :  { %12602 = vst [vmem:[#allocation21_spill] sm:$0xff] %v11214_v63  ;;  %12603 = vst [vmem:[#allocation17_spill] sm:$0xff] %v11216_v38  ;;  %v5857_v28 = vmul.f32 1.442695, %v5850_v60  ;;  %v5853_v39 = vmul.f32 1.442695, %v5848_v50  ;;  %v11276_v60 = vpop.permute.xlu0 %5957 }
0x28e5   :  { %7801 = vpow2.f32 %v5851_v7 }
0x28e6   :  { %7803 = vpow2.f32 %v5855_v21 }
0x28e8   :  { %v6030_v50 = vpop.permute.xlu0 %6029 }
0x28ef   :  { %v7802_v62 = vpop.eup %7801 }
0x28f0   :  { %v7804_v14 = vpop.eup %7803  ;;  %v5859_v10 = vadd.f32 1.0, %v7802_v62 }
0x28f1   :  { %v5861_v35 = vadd.f32 1.0, %v7804_v14 }
0x28f2   :  { %7805 = vrcp.f32 %v5859_v10 }
0x28f3   :  { %7807 = vpow2.f32 %v5857_v28  ;;  %v11280_v28 = vpop.permute.xlu0 %6085 }
0x28f4   :  { %7809 = vrcp.f32 %v5861_v35 }
0x28f5   :  { %7811 = vpow2.f32 %v5853_v39 }
0x28fc   :  { %v7806_v25 = vpop.eup %7805 }
0x28fd   :  { %v7808_v51 = vpop.eup %7807  ;;  %v11218_v22 = vmul.f32 %v7806_v25, %v5843_v13 }
0x28fe   :  { %v7810_v33 = vpop.eup %7809  ;;  %v5862_v5 = vadd.f32 1.0, %v7808_v51 }
0x28ff   :  { %5944 = vrot.lane.b32.xlu1 %v11218_v22, %s12370_s25  ;;  %5915 = vrot.lane.b32.xlu0 %v11218_v22, %s7923_s11  ;;  %v7812_v54 = vpop.eup %7811  ;;  %v11224_v55 = vmul.f32 %v7810_v33, %v5845_v11  ;;  %v6032_v38 = vmul.f32 %v6030_v50, %v11218_v22 }
0x2900   :  { %v5860_v61 = vadd.f32 1.0, %v7812_v54  ;;  %7813 = vrcp.f32 %v5862_v5 }
0x2901   :  { %v6034_v63 = vmul.f32 %v6030_v50, %v11224_v55 }
0x2902   :  { %7815 = vrcp.f32 %v5860_v61 }
0x2903   :  { %5919 = vrot.lane.b32.xlu1 %v11224_v55, %s7923_s11  ;;  %5972 = vrot.lane.b32.xlu0 %v11218_v22, %s12275_s28 }
0x2907   :  { %5948 = vrot.lane.b32.xlu1 %v11224_v55, %s12370_s25  ;;  %5976 = vrot.lane.b32.xlu0 %v11224_v55, %s12275_s28 }
0x290a   :  { %v7814_v13 = vpop.eup %7813 }
0x290b   :  { %6000 = vrot.lane.b32.xlu1 %v11218_v22, %s7925_s29  ;;  %6044 = vrot.lane.b32.xlu0 %v11218_v22, %s12276_s1  ;;  %v5870_v11 = vmul.f32 %v7814_v13, %v5846_v37 }
0x290c   :  { %v7816_v32 = vpop.eup %7815 }
0x290d   :  { %v5868_v9 = vmul.f32 %v7816_v32, %v5844_v18  ;;  %v5930_v18 = vpop.permute.xlu1 %5929 }
0x290f   :  { %6004 = vrot.lane.b32.xlu1 %v11224_v55, %s7925_s29  ;;  %6048 = vrot.lane.b32.xlu0 %v11224_v55, %s12276_s1  ;;  %v6033_v56 = vmul.f32 %v6030_v50, %v5868_v9 }
0x2911   :  { %v11270_v37 = vpop.permute.xlu1 %5985 }
0x2913   :  { %6072 = vrot.lane.b32.xlu1 %v11218_v22, %s12277_s0  ;;  %5921 = vrot.lane.b32.xlu0 %v5870_v11, %s7923_s11 }
0x2915   :  { %v11272_v7 = vpop.permute.xlu1 %6013 }
0x2917   :  { %6076 = vrot.lane.b32.xlu1 %v11224_v55, %s12277_s0  ;;  %5946 = vrot.lane.b32.xlu0 %v5868_v9, %s12370_s25 }
0x2919   :  { %v11274_v21 = vpop.permute.xlu1 %6057 }
0x291b   :  { %6100 = vrot.lane.b32.xlu1 %v11218_v22, %s12278_s10  ;;  %5978 = vrot.lane.b32.xlu0 %v5870_v11, %s12275_s28 }
0x291d   :  { %v11278_v62 = vpop.permute.xlu1 %6113 }
0x291f   :  { %6104 = vrot.lane.b32.xlu1 %v11224_v55, %s12278_s10  ;;  %6002 = vrot.lane.b32.xlu0 %v5868_v9, %s7925_s29 }
0x2921   :  { %v11282_v14 = vpop.permute.xlu1 %6141 }
0x2922   :  { %12604 = vst [vmem:[#allocation18_spill] sm:$0xff] %v11282_v14  ;;  %v6035_v14 = vmul.f32 %v6030_v50, %v5870_v11 }
0x2923   :  { %5917 = vrot.lane.b32.xlu1 %v5868_v9, %s7923_s11  ;;  %6050 = vrot.lane.b32.xlu0 %v5870_v11, %s12276_s1 }
0x2924   :  { %v11331_v50 = vmul.f32 %v6035_v14, %v12285_v1 }
0x2927   :  { %5950 = vrot.lane.b32.xlu1 %v5870_v11, %s12370_s25  ;;  %6074 = vrot.lane.b32.xlu0 %v5868_v9, %s12277_s0 }
0x292b   :  { %5974 = vrot.lane.b32.xlu1 %v5868_v9, %s12275_s28  ;;  %6078 = vrot.lane.b32.xlu0 %v5870_v11, %s12277_s0 }
0x292f   :  { %6006 = vrot.lane.b32.xlu1 %v5870_v11, %s7925_s29  ;;  %6102 = vrot.lane.b32.xlu0 %v5868_v9, %s12278_s10 }
0x2933   :  { %6046 = vrot.lane.b32.xlu1 %v5868_v9, %s12276_s1  ;;  %6106 = vrot.lane.b32.xlu0 %v5870_v11, %s12278_s10 }
0x2937   :  { %6128 = vrot.lane.b32.xlu1 %v11218_v22, %s12279_s24  ;;  %6130 = vrot.lane.b32.xlu0 %v5868_v9, %s12279_s24  ;;  %v11328_v9 = vmul.f32 %v6033_v56, %v12283_v0 }
0x2939   :  { %12605 = vst [vmem:[#allocation25_spill] sm:$0xff] %v11328_v9 }
0x293b   :  { %6132 = vrot.lane.b32.xlu1 %v11224_v55, %s12279_s24  ;;  %6134 = vrot.lane.b32.xlu0 %v5870_v11, %s12279_s24  ;;  %v11316_v55 = vmul.f32 %v6032_v38, %v12556_v59 }
0x2971   :  { %v5916_v10 = vpop.permute.xlu0 %5915  ;;  %v5945_v35 = vpop.permute.xlu1 %5944 }
0x2975   :  { %v11284_v39 = vpop.permute.xlu0 %5972  ;;  %v5920_v25 = vpop.permute.xlu1 %5919 }
0x2979   :  { %v11286_v51 = vpop.permute.xlu0 %5976  ;;  %v5949_v33 = vpop.permute.xlu1 %5948 }
0x297d   :  { %v11288_v5 = vpop.permute.xlu0 %6044  ;;  %v11290_v54 = vpop.permute.xlu1 %6000 }
0x2981   :  { %v11292_v61 = vpop.permute.xlu0 %6048  ;;  %v11294_v13 = vpop.permute.xlu1 %6004 }
0x2985   :  { %v5922_v32 = vpop.permute.xlu0 %5921  ;;  %v11296_v46 = vpop.permute.xlu1 %6072 }
0x2986   :  { %v5926_v49 = vsel %vm308_vm0, %v5922_v32, %v5916_v10  ;;  %v5923_v40 = vsel %vm308_vm0, %v5920_v25, %v5922_v32  ;;  %v11319_v32 = vmul.f32 %v6034_v63, %v12284_v19 }
0x2987   :  { %v5932_v6 = vmul.f32 %v5930_v18, %v5926_v49  ;;  %v5935_v57 = vmul.f32 %v5930_v18, %v5923_v40 }
0x2989   :  { %v5947_v15 = vpop.permute.xlu0 %5946  ;;  %v6077_v36 = vpop.permute.xlu1 %6076  ;;  %v5936_v0 = vmul.f32 %v5932_v6, %v8480_v2  ;;  %v5939_v14 = vmul.f32 %v5935_v57, %v8483_v12 }
0x298a   :  { %v5953_v34 = vsel %vm354_vm1, %v5947_v15, %v5949_v33  ;;  %v5954_v8 = vsel %vm354_vm1, %v5945_v35, %v5947_v15 }
0x298b   :  { %v5962_v59 = vmul.f32 %v11276_v60, %v5953_v34 }
0x298d   :  { %v5979_v3 = vpop.permute.xlu0 %5978  ;;  %v11298_v17 = vpop.permute.xlu1 %6100 }
0x298e   :  { %v5983_v22 = vsel %vm399_vm2, %v5979_v3, %v11284_v39  ;;  %v5980_v40 = vsel %vm399_vm2, %v11286_v51, %v5979_v3  ;;  %v5961_v3 = vmul.f32 %v11276_v60, %v5954_v8 }
0x298f   :  { %v5988_v19 = vmul.f32 %v11270_v37, %v5983_v22  ;;  %v5991_v1 = vmul.f32 %v11270_v37, %v5980_v40 }
0x2990   :  { %v5965_v2 = vmul.f32 %v5961_v3, %v12282_v41 }
0x2991   :  { %v6003_v20 = vpop.permute.xlu0 %6002  ;;  %v11306_v47 = vpop.permute.xlu1 %6104  ;;  %v5995_v9 = vmul.f32 %v5991_v1, %v8490_v24 }
0x2992   :  { %v6010_v49 = vsel %vm444_vm3, %v11290_v54, %v6003_v20  ;;  %v6009_v56 = vsel %vm444_vm3, %v6003_v20, %v11294_v13 }
0x2993   :  { %v6018_v6 = vmul.f32 %v11272_v7, %v6009_v56 }
0x2995   :  { %v6051_v11 = vpop.permute.xlu0 %6050  ;;  %v5918_v15 = vpop.permute.xlu1 %5917 }
0x2996   :  { %v5924_v63 = vsel %vm308_vm0, %v5918_v15, %v5920_v25  ;;  %v5925_v38 = vsel %vm308_vm0, %v5916_v10, %v5918_v15  ;;  %v6017_v25 = vmul.f32 %v11272_v7, %v6010_v49  ;;  %v6052_v8 = vsel %vm521_vm4, %v11292_v61, %v6051_v11 }
0x2997   :  { %v6055_v34 = vsel %vm521_vm4, %v6051_v11, %v11288_v5  ;;  %v5933_v10 = vmul.f32 %v5930_v18, %v5925_v38  ;;  %v5934_v22 = vmul.f32 %v5930_v18, %v5924_v63  ;;  %v5966_v11 = vmul.f32 %v5962_v59, %v8496_v26 }
0x2998   :  { %v5992_v18 = vmul.f32 %v5988_v19, %v8486_v23  ;;  %v6062_v38 = vmul.f32 %v11274_v21, %v6052_v8  ;;  %v6063_v56 = vmul.f32 %v11274_v21, %v6055_v34  ;;  %v6022_v8 = vmul.f32 %v6018_v6, %v8503_v29 }
0x2999   :  { %v6075_v15 = vpop.permute.xlu0 %6074  ;;  %v5951_v20 = vpop.permute.xlu1 %5950  ;;  %v5938_v3 = vmul.f32 %v5934_v22, %v8468_v42 }
0x299a   :  { %v6082_v57 = vsel %vm566_vm5, %v11296_v46, %v6075_v15  ;;  %v5952_v40 = vsel %vm354_vm1, %v5949_v33, %v5951_v20  ;;  %v5955_v49 = vsel %vm354_vm1, %v5951_v20, %v5945_v35  ;;  %v6081_v63 = vsel %vm566_vm5, %v6075_v15, %v6077_v36 }
0x299b   :  { %v5960_v12 = vmul.f32 %v11276_v60, %v5955_v49  ;;  %v5963_v33 = vmul.f32 %v11276_v60, %v5952_v40  ;;  %v5937_v35 = vmul.f32 %v5933_v10, %v12557_v30  ;;  %v6088_v59 = vmul.f32 %v11280_v28, %v6082_v57 }
0x299c   :  { %v6021_v15 = vmul.f32 %v6017_v25, %v8500_v45  ;;  %v6089_v34 = vmul.f32 %v11280_v28, %v6081_v63  ;;  %v6066_v25 = vmul.f32 %v6062_v38, %v12564_v31  ;;  %v6067_v6 = vmul.f32 %v6063_v56, %v12565_v4 }
0x299d   :  { %v6079_v19 = vpop.permute.xlu0 %6078  ;;  %v5975_v20 = vpop.permute.xlu1 %5974  ;;  %v5964_v60 = vmul.f32 %v5960_v12, %v8473_v48  ;;  %v5967_v1 = vmul.f32 %v5963_v33, %v8477_v53  ;;  %v5969_v40 = vadd.f32 %v5965_v2, %v5937_v35  ;;  %v5970_v12 = vadd.f32 %v5966_v11, %v5938_v3 }
0x299e   :  { %v6080_v49 = vsel %vm566_vm5, %v6077_v36, %v6079_v19  ;;  %v5981_v10 = vsel %vm399_vm2, %v5975_v20, %v11286_v51  ;;  %v5982_v22 = vsel %vm399_vm2, %v11284_v39, %v5975_v20  ;;  %v11392_v63 = vmul.f32 %v6088_v59, %v12562_v16 }
0x299f   :  { %v5989_v57 = vmul.f32 %v11270_v37, %v5982_v22  ;;  %v5990_v36 = vmul.f32 %v11270_v37, %v5981_v10  ;;  %v6090_v33 = vmul.f32 %v11280_v28, %v6080_v49  ;;  %v11396_v23 = vmul.f32 %v6089_v34, %v12563_v52 }
0x29a0   :  { %v6083_v39 = vsel %vm566_vm5, %v6079_v19, %v11296_v46  ;;  %v5968_v2 = vadd.f32 %v5964_v60, %v5936_v0  ;;  %v5971_v11 = vadd.f32 %v5967_v1, %v5939_v14 }
0x29a1   :  { %v6103_v51 = vpop.permute.xlu0 %6102  ;;  %v6007_v45 = vpop.permute.xlu1 %6006  ;;  %v5993_v38 = vmul.f32 %v5989_v57, %v8506_v44  ;;  %v5994_v37 = vmul.f32 %v5990_v36, %v8509_v43  ;;  %v6091_v0 = vmul.f32 %v11280_v28, %v6083_v39  ;;  %v6094_v14 = vmul.f32 %v6090_v33, %v12568_v58  ;;  %v12606_v28 = vld [vmem:[#allocation19_spill] sm:$0xff]  ;;  %v12607_v36 = vld [vmem:[#allocation20_spill] sm:$0xff] }
0x29a2   :  { %v6109_v56 = vsel %vm611_vm6, %v6103_v51, %v11306_v47  ;;  %v6110_v35 = vsel %vm611_vm6, %v11298_v17, %v6103_v51  ;;  %v6008_v46 = vsel %vm444_vm3, %v11294_v13, %v6007_v45  ;;  %v6011_v19 = vsel %vm444_vm3, %v6007_v45, %v11290_v54 }
0x29a3   :  { %v5997_v3 = vadd.f32 %v5993_v38, %v5969_v40  ;;  %v5998_v59 = vadd.f32 %v5994_v37, %v5970_v12  ;;  %v6016_v20 = vmul.f32 %v11272_v7, %v6011_v19  ;;  %v6019_v34 = vmul.f32 %v11272_v7, %v6008_v46  ;;  %v12611_v46 = vld [vmem:[#allocation25_spill] sm:$0xff] }
0x29a4   :  { %v6116_v10 = vmul.f32 %v11278_v62, %v6110_v35  ;;  %v6117_v22 = vmul.f32 %v11278_v62, %v6109_v56  ;;  %v5996_v45 = vadd.f32 %v5992_v18, %v5968_v2  ;;  %v5999_v54 = vadd.f32 %v5995_v9, %v5971_v11  ;;  %v12608_v2 = vld [vmem:[#allocation26_spill] sm:$0xff]  ;;  %v12609_v11 = vld [vmem:[#allocation27_spill] sm:$0xff] }
0x29a5   :  { %v6107_v49 = vpop.permute.xlu0 %6106  ;;  %v6047_v60 = vpop.permute.xlu1 %6046  ;;  %v6026_v1 = vadd.f32 %v6022_v8, %v5998_v59  ;;  %v6020_v57 = vmul.f32 %v6016_v20, %v12606_v28  ;;  %v6023_v40 = vmul.f32 %v6019_v34, %v12607_v36  ;;  %v6025_v12 = vadd.f32 %v6021_v15, %v5997_v3  ;;  %v12610_v3 = vld [vmem:[#allocation28_spill] sm:$0xff] }
0x29a6   :  { %v6108_v13 = vsel %vm611_vm6, %v11306_v47, %v6107_v49  ;;  %v6053_v8 = vsel %vm521_vm4, %v6047_v60, %v11292_v61  ;;  %v6054_v33 = vsel %vm521_vm4, %v11288_v5, %v6047_v60  ;;  %v6111_v47 = vsel %vm611_vm6, %v6107_v49, %v11298_v17  ;;  %v12613_v34 = vld [vmem:[#allocation24_spill] sm:$0xff] }
0x29a7   :  { %v6042_v7 = vadd.f32 %v11319_v32, %v6026_v1  ;;  %v6024_v51 = vadd.f32 %v6020_v57, %v5996_v45  ;;  %v6027_v39 = vadd.f32 %v6023_v40, %v5999_v54  ;;  %v6118_v9 = vmul.f32 %v11278_v62, %v6108_v13  ;;  %v12614_v13 = vld [vmem:[#allocation18_spill] sm:$0xff]  ;;  %v12615_v54 = vld [vmem:[#allocation29_spill] sm:$0xff] }
0x29a8   :  { %v6060_v32 = vmul.f32 %v11274_v21, %v6054_v33  ;;  %v6061_v37 = vmul.f32 %v11274_v21, %v6053_v8  ;;  %v6095_v5 = vmul.f32 %v6091_v0, %v12608_v2  ;;  %v6120_v56 = vmul.f32 %v6116_v10, %v12609_v11 }
0x29a9   :  { %v6131_v18 = vpop.permute.xlu0 %6130  ;;  %v6129_v15 = vpop.permute.xlu1 %6128  ;;  %v6070_v38 = vadd.f32 %v6066_v25, %v6042_v7  ;;  %v6043_v35 = vadd.f32 %v11331_v50, %v6027_v39  ;;  %v6040_v17 = vadd.f32 %v11316_v55, %v6024_v51  ;;  %v6121_v59 = vmul.f32 %v6117_v22, %v12610_v3  ;;  %v12612_v25 = vld [vmem:[#allocation23_spill] sm:$0xff]  ;;  %v12616_v51 = vld [vmem:[#allocation30_spill] sm:$0xff] }
0x29aa   :  { %v6138_v61 = vsel %vm656_vm7, %v6129_v15, %v6131_v18  ;;  %v6041_v19 = vadd.f32 %v12611_v46, %v6025_v12  ;;  %v6064_v20 = vmul.f32 %v6060_v32, %v12612_v25  ;;  %v6065_v49 = vmul.f32 %v6061_v37, %v12613_v34  ;;  %v11479_v32 = vld [vmem:[%s12224_s26 + $0x28] ss:$0 sm:$0xff] }
0x29ab   :  { %v6071_v21 = vadd.f32 %v6067_v6, %v6043_v35  ;;  %v6098_v60 = vadd.f32 %v6094_v14, %v6070_v38  ;;  %v6119_v1 = vmul.f32 %v11278_v62, %v6111_v47  ;;  %v6144_v0 = vmul.f32 %v12614_v13, %v6138_v61  ;;  %12619 = vst [vmem:[#allocation34_spill] sm:$0xff] %v11479_v32  ;;  %v11485_v61 = vld [vmem:[%s12224_s26 + $0x30] ss:$0 sm:$0xff] }
0x29ac   :  { %v6122_v50 = vmul.f32 %v6118_v9, %v12615_v54  ;;  %v6068_v57 = vadd.f32 %v6064_v20, %v6040_v17  ;;  %v6069_v55 = vadd.f32 %v6065_v49, %v6041_v19  ;;  %v11467_v9 = vld [vmem:[%s12224_s26 + $0x20] ss:$0 sm:$0xff]  ;;  %12620 = vst [vmem:[#allocation9_spill] sm:$0xff] %v11485_v61 }
0x29ad   :  { %v6135_v45 = vpop.permute.xlu0 %6134  ;;  %v6133_v10 = vpop.permute.xlu1 %6132  ;;  %v6099_v40 = vadd.f32 %v6095_v5, %v6071_v21  ;;  %v6123_v39 = vmul.f32 %v6119_v1, %v12616_v51  ;;  %12617 = vst [vmem:[#allocation3_spill] sm:$0xff] %v11467_v9 }
0x29ae   :  { %v6139_v22 = vsel %vm656_vm7, %v6135_v45, %v6129_v15  ;;  %v6136_v6 = vsel %vm656_vm7, %v6133_v10, %v6135_v45  ;;  %v6137_v62 = vsel %vm656_vm7, %v6131_v18, %v6133_v10  ;;  %v6096_v14 = vadd.f32 %v11392_v63, %v6068_v57  ;;  %v11473_v63 = vld [vmem:[%s12224_s26 + $0x38] ss:$0 sm:$0xff] }
0x29af   :  { %v6147_v12 = vmul.f32 %v12614_v13, %v6139_v22  ;;  %v6097_v7 = vadd.f32 %v11396_v23, %v6069_v55  ;;  %v6145_v8 = vmul.f32 %v12614_v13, %v6137_v62  ;;  %v6146_v33 = vmul.f32 %v12614_v13, %v6136_v6  ;;  %12618 = vst [vmem:[#allocation10_spill] sm:$0xff] %v11473_v63 }
0x29b0   :  { %v6126_v47 = vadd.f32 %v6122_v50, %v6098_v60  ;;  %v6148_v15 = vmul.f32 %v11467_v9, %v6144_v0  ;;  %v6124_v18 = vadd.f32 %v6120_v56, %v6096_v14  ;;  %v6127_v35 = vadd.f32 %v6123_v39, %v6099_v40 }
0x29b1   :  { %v6151_v23 = vmul.f32 %v11473_v63, %v6147_v12  ;;  %v6125_v38 = vadd.f32 %v6121_v59, %v6097_v7  ;;  %v6149_v37 = vmul.f32 %v11479_v32, %v6145_v8  ;;  %v6150_v5 = vmul.f32 %v11485_v61, %v6146_v33 }
0x29b2   :  { %v11488_v17 = vadd.f32 %v6148_v15, %v6124_v18 }
0x29b3   :  { %v11490_v46 = vadd.f32 %v6149_v37, %v6125_v38  ;;  %v11492_v56 = vadd.f32 %v6150_v5, %v6126_v47  ;;  %v11494_v59 = vadd.f32 %v6151_v23, %v6127_v35  ;;  %v12621_v38 = vld [vmem:[#allocation11_spill] sm:$0xff]  ;;  %v12622_v35 = vmov 19  }
0x29b4   :  { %v6156_v19 = vsel %vm1684_vm9, %v11488_v17, 0.0  ;;  %v6166_v49 = vmul.f32 %v11488_v17, %v11488_v17 }
0x29b5   :  { %v6157_v20 = vsel %vm1684_vm9, %v11490_v46, 0.0  ;;  %v6167_v60 = vmul.f32 %v11490_v46, %v11490_v46  ;;  %v6168_v1 = vmul.f32 %v11492_v56, %v11492_v56  ;;  %v6159_v13 = vsel %vm1684_vm9, %v11492_v56, 0.0 }
0x29b6   :  { %v6158_v21 = vadd.f32 %v6157_v20, %v6156_v19  ;;  %v6169_v45 = vmul.f32 %v11494_v59, %v11494_v59  ;;  %v6170_v10 = vsel %vm1684_vm9, %v6166_v49, 0.0  ;;  %v6161_v57 = vsel %vm1684_vm9, %v11494_v59, 0.0 }
0x29b7   :  { %v6171_v50 = vsel %vm1684_vm9, %v6167_v60, 0.0  ;;  %v6173_v40 = vsel %vm1684_vm9, %v6168_v1, 0.0  ;;  %v12623_v49 = vmov 20   ;;  %v12625_v1 = vld [vmem:[#allocation21_spill] sm:$0xff] }
0x29b8   :  { %v6160_v0 = vadd.f32 %v6159_v13, %v6158_v21  ;;  %v6172_v55 = vadd.f32 %v6171_v50, %v6170_v10  ;;  %v6175_v6 = vsel %vm1684_vm9, %v6169_v45, 0.0  ;;  %v12624_v21 = vld [vmem:[#allocation39_spill] sm:$0xff]  ;;  %v5888_v13 = vsub.f32 0.0, %v12625_v1  ;;  %v12627_v10 = vld [vmem:[#allocation32_spill] sm:$0xff] }
0x29b9   :  { %v5887_v60 = vsub.f32 0.0, %v12624_v21  ;;  %v5889_v50 = vsub.f32 0.0, %v12627_v10 }
0x29ba   :  { %v6162_v22 = vadd.f32 %v6161_v57, %v6160_v0  ;;  %v6174_v12 = vadd.f32 %v6173_v40, %v6172_v55  ;;  %v12626_v0 = vld [vmem:[#allocation17_spill] sm:$0xff]  ;;  %v5893_v55 = vmul.f32 1.442695, %v5888_v13 }
0x29bb   :  { %v5890_v45 = vsub.f32 0.0, %v12626_v0  ;;  %v5891_v57 = vmul.f32 1.442695, %v5887_v60  ;;  %v5895_v40 = vmul.f32 1.442695, %v5889_v50 }
0x29bc   :  { %6163 = vadd.xlane.f32.xlu1 %v6162_v22  ;;  %v6176_v62 = vadd.f32 %v6175_v6, %v6174_v12 }
0x29bd   :  { %v5897_v22 = vmul.f32 1.442695, %v5890_v45 }
0x29be   :  { %6177 = vadd.xlane.f32.xlu0 %v6176_v62 }
0x2a49   :  { %v6164_v14 = vpop.xlane.xlu1 %6163 }
0x2a4a   :  { %v6165_v7 = vmul.f32 0.001953125, %v6164_v14 }
0x2a4b   :  { %v6178_v33 = vpop.xlane.xlu0 %6177 }
0x2a4c   :  { %v6180_v8 = vmul.f32 %v6165_v7, %v6165_v7  ;;  %v6179_v39 = vmul.f32 0.001953125, %v6178_v33 }
0x2a4e   :  { %v6181_v47 = vsub.f32 %v6179_v39, %v6180_v8 }
0x2a50   :  { %v6182_v15 = vmax.f32 %v6181_v47, 0.0 }
0x2a52   :  { %v6183_v23 = vadd.f32 1e-05, %v6182_v15  ;;  %v5912_v15 = vld [vmem:[%s11981_s21] sm:$0xff] }
0x2a54   :  { %7817 = vrsqrt.f32 %v6183_v23 }
0x2a55   :  { %7819 = vpow2.f32 %v5891_v57 }
0x2a56   :  { %7821 = vpow2.f32 %v5893_v55 }
0x2a57   :  { %7823 = vpow2.f32 %v5897_v22 }
0x2a58   :  { %7825 = vpow2.f32 %v5895_v40 }
0x2a5e   :  { %v7818_v18 = vpop.eup %7817 }
0x2a5f   :  { %v6185_v37 = vmul.f32 %v7818_v18, %v12621_v38  ;;  %v7820_v12 = vpop.eup %7819 }
0x2a60   :  { %v7822_v6 = vpop.eup %7821 }
0x2a61   :  { %6188 = vperm.xlu1 %7540, %v6185_v37   ;;  %v6195_v5 = vmul.f32 %v6185_v37, %v6165_v7  ;;  %v7824_v62 = vpop.eup %7823  ;;  %v5899_v7 = vadd.f32 1.0, %v7820_v12  ;;  %v5900_v8 = vadd.f32 1.0, %v7822_v6 }
0x2a62   :  { %v7826_v14 = vpop.eup %7825  ;;  %v5902_v33 = vadd.f32 1.0, %v7824_v62 }
0x2a63   :  { %6197 = vrot.lane.b32.xlu0 %v6195_v5, %s7925_s29  ;;  %v5901_v39 = vadd.f32 1.0, %v7826_v14  ;;  %7827 = vrcp.f32 %v5899_v7 }
0x2a64   :  { %7829 = vrcp.f32 %v5900_v8 }
0x2a65   :  { %7541 = vset.pattern.permute.xlu1 %v12622_v35  ;;  %7831 = vrcp.f32 %v5902_v33 }
0x2a66   :  { %7833 = vrcp.f32 %v5901_v39 }
0x2a6d   :  { %v7828_v23 = vpop.eup %7827 }
0x2a6e   :  { %v7830_v35 = vpop.eup %7829 }
0x2a6f   :  { %v5908_v55 = vmul.f32 %v7830_v35, %v12625_v1 }
0x2ad5   :  { %v6198_v19 = vpop.permute.xlu0 %6197 }
0x2ad6   :  { %v6200_v20 = vsub.f32 %v12621_v38, %v6198_v19 }
0x2ad8   :  { %6203 = vperm.xlu1 %7541, %v6200_v20   ;;  %v6211_v20 = vrot.slane %v5912_v15, 4 }
0x2adc   :  { %7542 = vset.pattern.permute.xlu1 %v12623_v49  ;;  %v7832_v49 = vpop.eup %7831 }
0x2add   :  { %v7834_v57 = vpop.eup %7833 }
0x2ae0   :  { %v6189_v47 = vpop.permute.xlu1 %6188 }
0x2ae1   :  { %v6191_v18 = vmul.f32 %v6189_v47, %v11488_v17  ;;  %v6192_v38 = vmul.f32 %v6189_v47, %v11490_v46  ;;  %v6193_v37 = vmul.f32 %v6189_v47, %v11492_v56  ;;  %v6194_v5 = vmul.f32 %v6189_v47, %v11494_v59 }
0x2ae2   :  { %v5910_v17 = vmul.f32 %v7832_v49, %v12626_v0  ;;  %v5907_v46 = vmul.f32 %v7828_v23, %v12624_v21  ;;  %v5909_v56 = vmul.f32 %v7834_v57, %v12627_v10  ;;  %v12628_v59 = vmov 0.0  }
0x2b57   :  { %v6204_v19 = vpop.permute.xlu1 %6203 }
0x2b58   :  { %v6206_v60 = vadd.f32 %v6204_v19, %v6191_v18  ;;  %v6207_v13 = vadd.f32 %v6204_v19, %v6192_v38  ;;  %v6208_v45 = vadd.f32 %v6204_v19, %v6193_v37  ;;  %v6209_v50 = vadd.f32 %v6204_v19, %v6194_v5 }
0x2b5a   :  { %7271 = vmatprep.subr.msk.mxu0 %vm1684_vm9, %v6207_v13  ;;  %7274 = vmatprep.subr.msk.mxu1 %vm1684_vm9, %v6209_v50 }
0x2b5b   :  { %7272 = vmatpush1.msk.msra.mxu0 %vm1684_vm9, %v6206_v60  ;;  %7275 = vmatpush1.msk.msra.mxu1 %vm1684_vm9, %v6208_v45 }
0x2b5c   :  { %7273 = vmatmul.mubr.msk.f32.vlgmr.msra.gmra.mrb[30].mxu0 %vm6212_vm14, %v6211_v20  ;;  %7277 = vmatprep.subr.msk.mxu0 %vm1684_vm9, %v5908_v55 }
0x2b5d   :  { %7280 = vmatprep.subr.msk.mxu1 %vm1684_vm9, %v5910_v17  ;;  %7276 = vmatmul.mubr.msk.f32.vlgmr.msra.gmra.mrb[30].mxu1 %vm6212_vm14, %v6211_v20 }
0x2b5e   :  { %7278 = vmatpush1.msk.msra.mxu0 %vm1684_vm9, %v5907_v46  ;;  %7281 = vmatpush1.msk.msra.mxu1 %vm1684_vm9, %v5909_v56 }
0x2b5f   :  { %6525 = vmatprep.mubr.f32.mxu0 %v12628_v59  ;;  %6596 = vmatprep.mubr.f32.mxu1 %v12628_v59 }
0x2b60   :  { %7279 = vmatmul.mubr.msk.f32.vlgmr.msra.gmra.mrb[32].mxu0 %vm6212_vm14, %v5912_v15 }
0x2b61   :  { %7282 = vmatmul.mubr.msk.f32.vlgmr.msra.gmra.mrb[32].mxu1 %vm6212_vm14, %v5912_v15  ;;  %7054 = vmatprep.mubr.f32.mxu0 %v12628_v59 }
0x2b62   :  { %7125 = vmatprep.mubr.f32.mxu1 %v12628_v59 }
0x2c2f   :  { %v11552_v21 = vpop.f32.mrb[30].mxu0 }
0x2c30   :  { %12629 = vst [vmem:[#allocation15_spill] sm:$0xff] %v11552_v21  ;;  %v6369_v1 = vsel %vm1684_vm9, %v11552_v21, 0.0  ;;  %v6379_v0 = vmul.f32 %v11552_v21, %v11552_v21  ;;  %v11558_v10 = vpop.f32.mrb[31].mxu0  ;;  %v11560_v22 = vpop.f32.mrb[30].mxu1 }
0x2c31   :  { %12630 = vst [vmem:[#allocation37_spill] sm:$0xff] %v11558_v10  ;;  %12631 = vst [vmem:[#allocation33_spill] sm:$0xff] %v11560_v22  ;;  %v6370_v40 = vsel %vm1684_vm9, %v11558_v10, 0.0  ;;  %v6380_v12 = vmul.f32 %v11558_v10, %v11558_v10  ;;  %v6372_v6 = vsel %vm1684_vm9, %v11560_v22, 0.0  ;;  %v6381_v62 = vmul.f32 %v11560_v22, %v11560_v22  ;;  %v11570_v14 = vpop.f32.mrb[31].mxu1 }
0x2c32   :  { %12632 = vst [vmem:[#allocation36_spill] sm:$0xff] %v11570_v14  ;;  %v6383_v7 = vsel %vm1684_vm9, %v6379_v0, 0.0  ;;  %v6371_v8 = vadd.f32 %v6370_v40, %v6369_v1  ;;  %v6382_v15 = vmul.f32 %v11570_v14, %v11570_v14  ;;  %v6374_v50 = vsel %vm1684_vm9, %v11570_v14, 0.0 }
0x2c33   :  { %v6384_v33 = vsel %vm1684_vm9, %v6380_v12, 0.0  ;;  %v6386_v39 = vsel %vm1684_vm9, %v6381_v62, 0.0  ;;  %v11575_v47 = vpop.f32.mrb[32].mxu0 }
0x2c34   :  { %v6385_v23 = vadd.f32 %v6384_v33, %v6383_v7  ;;  %v6373_v18 = vadd.f32 %v6372_v6, %v6371_v8  ;;  %v6603_v38 = vsel %vm1684_vm9, %v11575_v47, 0.0  ;;  %v6613_v37 = vmul.f32 %v11575_v47, %v11575_v47  ;;  %v11583_v5 = vpop.f32.mrb[33].mxu0  ;;  %v11585_v35 = vpop.f32.mrb[32].mxu1 }
0x2c35   :  { %v6604_v19 = vsel %vm1684_vm9, %v11583_v5, 0.0  ;;  %v6614_v20 = vmul.f32 %v11583_v5, %v11583_v5  ;;  %v6606_v49 = vsel %vm1684_vm9, %v11585_v35, 0.0  ;;  %v6615_v60 = vmul.f32 %v11585_v35, %v11585_v35  ;;  %v6600_v13 = vpop.f32.mrb[33].mxu1 }
0x2c36   :  { %v6617_v45 = vsel %vm1684_vm9, %v6613_v37, 0.0  ;;  %v6605_v57 = vadd.f32 %v6604_v19, %v6603_v38  ;;  %v6616_v55 = vmul.f32 %v6600_v13, %v6600_v13  ;;  %v11600_v56 = vadd.f32 %v6374_v50, %v6373_v18 }
0x2c37   :  { %v6618_v17 = vsel %vm1684_vm9, %v6614_v20, 0.0  ;;  %v6620_v46 = vsel %vm1684_vm9, %v6615_v60, 0.0  ;;  %v6387_v59 = vadd.f32 %v6386_v39, %v6385_v23  ;;  %v6388_v40 = vsel %vm1684_vm9, %v6382_v15, 0.0  ;;  %v11610_v60 = vld [vmem:[%s11980_s20] sm:$0xf] }
0x2c38   :  { %12633 = vst [vmem:[#allocation4_spill] sm:$0xff] %v11600_v56  ;;  %v6619_v1 = vadd.f32 %v6618_v17, %v6617_v45  ;;  %v6607_v0 = vadd.f32 %v6606_v49, %v6605_v57  ;;  %v6608_v12 = vsel %vm1684_vm9, %v6600_v13, 0.0  ;;  %v6622_v8 = vsel %vm1684_vm9, %v6616_v55, 0.0  ;;  %12635 = vst [vmem:[#allocation38_spill] sm:$0xff] %v11610_v60 }
0x2c39   :  { %v11604_v6 = vadd.f32 %v6388_v40, %v6387_v59  ;;  %v12636_v57 = vmov 9   ;;  %v12637_v55 = vmov 10   ;;  %v12638_v17 = vmov 12  }
0x2c3a   :  { %v6609_v62 = vadd.f32 %v6608_v12, %v6607_v0  ;;  %v6621_v7 = vadd.f32 %v6620_v46, %v6619_v1  ;;  %v12639_v46 = vmov 13   ;;  %v12640_v59 = vmov 14  }
0x2c3b   :  { %12634 = vst [vmem:[#allocation35_spill] sm:$0xff] %v11604_v6  ;;  %v12641_v1 = vmov 16   ;;  %v12642_v0 = vmov 17   ;;  %v12643_v40 = vmov 22  }
0x2c3c   :  { %6610 = vadd.xlane.f32.xlu0 %v6609_v62  ;;  %v6623_v33 = vadd.f32 %v6622_v8, %v6621_v7  ;;  %v12644_v7 = vmov 11   ;;  %v12645_v8 = vmov 15  }
0x2c3e   :  { %6624 = vadd.xlane.f32.xlu1 %v6623_v33  ;;  %v12646_v33 = vmov 0  }
0x2cc9   :  { %v6611_v38 = vpop.xlane.xlu0 %6610 }
0x2cca   :  { %v6612_v37 = vmul.f32 0.001953125, %v6611_v38 }
0x2ccb   :  { %v6625_v18 = vpop.xlane.xlu1 %6624 }
0x2ccc   :  { %v6627_v19 = vmul.f32 %v6612_v37, %v6612_v37  ;;  %v6626_v39 = vmul.f32 0.001953125, %v6625_v18 }
0x2cce   :  { %v6628_v23 = vsub.f32 %v6626_v39, %v6627_v19 }
0x2cd0   :  { %v6629_v20 = vmax.f32 %v6628_v23, 0.0 }
0x2cd2   :  { %v6630_v49 = vadd.f32 1e-05, %v6629_v20 }
0x2cd4   :  { %7835 = vrsqrt.f32 %v6630_v49 }
0x2cde   :  { %v7836_v15 = vpop.eup %7835 }
0x2cdf   :  { %v6632_v45 = vmul.f32 %v11610_v60, %v7836_v15 }
0x2ce1   :  { %6635 = vperm.xlu1 %7542, %v6632_v45   ;;  %v6642_v50 = vmul.f32 %v6632_v45, %v6612_v37 }
0x2ce3   :  { %6644 = vrot.lane.b32.xlu0 %v6642_v50, %s7925_s29 }
0x2ce5   :  { %7544 = vset.pattern.permute.xlu1 %v12636_v57 }
0x2ce6   :  { %6694 = vperm.xlu1 %7544, %v11610_v60  }
0x2cea   :  { %7545 = vset.pattern.permute.xlu1 %v12637_v55 }
0x2ceb   :  { %6722 = vperm.xlu1 %7545, %v11610_v60  }
0x2cef   :  { %7547 = vset.pattern.permute.xlu1 %v12638_v17 }
0x2cf0   :  { %6778 = vperm.xlu1 %7547, %v11610_v60  }
0x2cf4   :  { %7548 = vset.pattern.permute.xlu1 %v12639_v46 }
0x2cf5   :  { %6794 = vperm.xlu1 %7548, %v11610_v60  }
0x2cf9   :  { %7549 = vset.pattern.permute.xlu1 %v12640_v59 }
0x2cfa   :  { %6822 = vperm.xlu1 %7549, %v11610_v60  }
0x2cfe   :  { %7551 = vset.pattern.permute.xlu1 %v12641_v1 }
0x2cff   :  { %6878 = vperm.xlu1 %7551, %v11610_v60  }
0x2d03   :  { %7552 = vset.pattern.permute.xlu1 %v12642_v0 }
0x2d04   :  { %6906 = vperm.xlu1 %7552, %v11610_v60  }
0x2d08   :  { %7553 = vset.pattern.permute.xlu1 %v12643_v40 }
0x2d55   :  { %v6645_v12 = vpop.permute.xlu0 %6644 }
0x2d56   :  { %v6647_v62 = vsub.f32 %v11610_v60, %v6645_v12 }
0x2d58   :  { %6650 = vperm.xlu0 %7543, %v6647_v62  }
0x2d5c   :  { %7546 = vset.pattern.permute.xlu0 %v12644_v7 }
0x2d5d   :  { %6750 = vperm.xlu0 %7546, %v11610_v60  }
0x2d60   :  { %v6636_v38 = vpop.permute.xlu1 %6635 }
0x2d61   :  { %7550 = vset.pattern.permute.xlu0 %v12645_v8  ;;  %v6638_v37 = vmul.f32 %v6636_v38, %v11575_v47  ;;  %v6639_v18 = vmul.f32 %v6636_v38, %v11583_v5  ;;  %v6640_v19 = vmul.f32 %v6636_v38, %v11585_v35  ;;  %v6641_v39 = vmul.f32 %v6636_v38, %v6600_v13 }
0x2d62   :  { %6850 = vperm.xlu0 %7550, %v11610_v60  }
0x2d66   :  { %7555 = vset.pattern.permute.xlu0 %v12646_v33 }
0x2dd7   :  { %v6651_v23 = vpop.permute.xlu0 %6650 }
0x2dd8   :  { %v6653_v20 = vadd.f32 %v6651_v23, %v6638_v37  ;;  %v6654_v49 = vadd.f32 %v6651_v23, %v6639_v18  ;;  %v6655_v15 = vadd.f32 %v6651_v23, %v6640_v19  ;;  %v6656_v45 = vadd.f32 %v6651_v23, %v6641_v39 }
0x2dda   :  { %v6657_v50 = vsub.f32 0.0, %v6653_v20  ;;  %v6658_v57 = vsub.f32 0.0, %v6654_v49  ;;  %v6660_v55 = vsub.f32 0.0, %v6656_v45  ;;  %v6659_v17 = vsub.f32 0.0, %v6655_v15 }
0x2ddc   :  { %v6661_v46 = vmul.f32 1.442695, %v6657_v50  ;;  %v6663_v59 = vmul.f32 1.442695, %v6658_v57  ;;  %v6667_v1 = vmul.f32 1.442695, %v6660_v55  ;;  %v11722_v55 = vpop.permute.xlu0 %6750 }
0x2ddd   :  { %v6665_v47 = vmul.f32 1.442695, %v6659_v17 }
0x2dde   :  { %7837 = vpow2.f32 %v6661_v46 }
0x2ddf   :  { %7839 = vpow2.f32 %v6663_v59 }
0x2de0   :  { %7841 = vpow2.f32 %v6667_v1 }
0x2de1   :  { %7843 = vpow2.f32 %v6665_v47  ;;  %v11726_v46 = vpop.permute.xlu0 %6850 }
0x2de8   :  { %v7838_v5 = vpop.eup %7837 }
0x2de9   :  { %v7840_v35 = vpop.eup %7839  ;;  %v6669_v13 = vadd.f32 1.0, %v7838_v5 }
0x2dea   :  { %v6670_v0 = vadd.f32 1.0, %v7840_v35  ;;  %v7842_v40 = vpop.eup %7841 }
0x2deb   :  { %7845 = vrcp.f32 %v6669_v13  ;;  %v6672_v12 = vadd.f32 1.0, %v7842_v40  ;;  %v7844_v62 = vpop.eup %7843 }
0x2dec   :  { %7847 = vrcp.f32 %v6670_v0  ;;  %v6671_v7 = vadd.f32 1.0, %v7844_v62 }
0x2ded   :  { %7849 = vrcp.f32 %v6672_v12 }
0x2dee   :  { %7851 = vrcp.f32 %v6671_v7 }
0x2df5   :  { %v7846_v8 = vpop.eup %7845 }
0x2df6   :  { %v7848_v33 = vpop.eup %7847  ;;  %v11638_v38 = vmul.f32 %v7846_v8, %v6653_v20  ;;  %v11710_v20 = vpop.permute.xlu1 %6694 }
0x2df7   :  { %v11640_v37 = vmul.f32 %v7848_v33, %v6654_v49  ;;  %v7850_v18 = vpop.eup %7849 }
0x2df8   :  { %6681 = vrot.lane.b32.xlu1 %v11638_v38, %s7923_s11  ;;  %v11646_v19 = vmul.f32 %v7850_v18, %v6656_v45  ;;  %v7852_v39 = vpop.eup %7851 }
0x2df9   :  { %6683 = vrot.lane.b32.xlu0 %v11640_v37, %s7923_s11  ;;  %v11656_v23 = vmul.f32 %v7852_v39, %v6655_v15 }
0x2dfa   :  { %v11712_v49 = vpop.permute.xlu1 %6722 }
0x2dfc   :  { %6687 = vrot.lane.b32.xlu1 %v11646_v19, %s7923_s11 }
0x2dfd   :  { %6709 = vrot.lane.b32.xlu0 %v11638_v38, %s12370_s25 }
0x2dfe   :  { %v11714_v15 = vpop.permute.xlu1 %6778 }
0x2e00   :  { %6711 = vrot.lane.b32.xlu1 %v11640_v37, %s12370_s25 }
0x2e01   :  { %6715 = vrot.lane.b32.xlu0 %v11646_v19, %s12370_s25 }
0x2e02   :  { %v11716_v45 = vpop.permute.xlu1 %6794 }
0x2e04   :  { %6713 = vrot.lane.b32.xlu1 %v11656_v23, %s12370_s25 }
0x2e05   :  { %6685 = vrot.lane.b32.xlu0 %v11656_v23, %s7923_s11 }
0x2e06   :  { %v11718_v50 = vpop.permute.xlu1 %6822 }
0x2e08   :  { %6739 = vrot.lane.b32.xlu1 %v11640_v37, %s12275_s28 }
0x2e09   :  { %6737 = vrot.lane.b32.xlu0 %v11638_v38, %s12275_s28 }
0x2e0a   :  { %v11720_v57 = vpop.permute.xlu1 %6878 }
0x2e0c   :  { %6765 = vrot.lane.b32.xlu1 %v11638_v38, %s7925_s29 }
0x2e0d   :  { %6743 = vrot.lane.b32.xlu0 %v11646_v19, %s12275_s28 }
0x2e0e   :  { %v11724_v17 = vpop.permute.xlu1 %6906 }
0x2e0f   :  { %12647 = vst [vmem:[#allocation31_spill] sm:$0xff] %v11724_v17 }
0x2e10   :  { %6771 = vrot.lane.b32.xlu1 %v11646_v19, %s7925_s29 }
0x2e11   :  { %6741 = vrot.lane.b32.xlu0 %v11656_v23, %s12275_s28 }
0x2e14   :  { %6769 = vrot.lane.b32.xlu1 %v11656_v23, %s7925_s29 }
0x2e15   :  { %6767 = vrot.lane.b32.xlu0 %v11640_v37, %s7925_s29 }
0x2e18   :  { %6811 = vrot.lane.b32.xlu1 %v11640_v37, %s12276_s1 }
0x2e19   :  { %6809 = vrot.lane.b32.xlu0 %v11638_v38, %s12276_s1 }
0x2e1c   :  { %6837 = vrot.lane.b32.xlu1 %v11638_v38, %s12277_s0 }
0x2e1d   :  { %6813 = vrot.lane.b32.xlu0 %v11656_v23, %s12276_s1 }
0x2e20   :  { %6841 = vrot.lane.b32.xlu1 %v11656_v23, %s12277_s0 }
0x2e21   :  { %6815 = vrot.lane.b32.xlu0 %v11646_v19, %s12276_s1 }
0x2e24   :  { %6865 = vrot.lane.b32.xlu1 %v11638_v38, %s12278_s10 }
0x2e25   :  { %6839 = vrot.lane.b32.xlu0 %v11640_v37, %s12277_s0 }
0x2e28   :  { %6869 = vrot.lane.b32.xlu1 %v11656_v23, %s12278_s10 }
0x2e29   :  { %6843 = vrot.lane.b32.xlu0 %v11646_v19, %s12277_s0 }
0x2e2c   :  { %6893 = vrot.lane.b32.xlu1 %v11638_v38, %s12279_s24 }
0x2e2d   :  { %6867 = vrot.lane.b32.xlu0 %v11640_v37, %s12278_s10 }
0x2e30   :  { %6897 = vrot.lane.b32.xlu1 %v11656_v23, %s12279_s24 }
0x2e31   :  { %6871 = vrot.lane.b32.xlu0 %v11646_v19, %s12278_s10 }
0x2e35   :  { %6895 = vrot.lane.b32.xlu0 %v11640_v37, %s12279_s24 }
0x2e39   :  { %6899 = vrot.lane.b32.xlu0 %v11646_v19, %s12279_s24 }
0x2e6a   :  { %v6682_v59 = vpop.permute.xlu1 %6681 }
0x2e6b   :  { %v6684_v1 = vpop.permute.xlu0 %6683 }
0x2e6e   :  { %v6688_v47 = vpop.permute.xlu1 %6687 }
0x2e6f   :  { %v6710_v5 = vpop.permute.xlu0 %6709 }
0x2e72   :  { %v6712_v35 = vpop.permute.xlu1 %6711 }
0x2e73   :  { %v6716_v13 = vpop.permute.xlu0 %6715 }
0x2e76   :  { %v6714_v0 = vpop.permute.xlu1 %6713 }
0x2e77   :  { %v6686_v40 = vpop.permute.xlu0 %6685  ;;  %v6717_v18 = vsel %vm354_vm1, %v6714_v0, %v6716_v13  ;;  %v6718_v39 = vsel %vm354_vm1, %v6712_v35, %v6714_v0 }
0x2e78   :  { %v6689_v22 = vsel %vm308_vm0, %v6686_v40, %v6688_v47  ;;  %v6690_v10 = vsel %vm308_vm0, %v6684_v1, %v6686_v40  ;;  %v6727_v21 = vmul.f32 %v11712_v49, %v6718_v39  ;;  %v6728_v6 = vmul.f32 %v11712_v49, %v6717_v18 }
0x2e79   :  { %v6699_v0 = vmul.f32 %v11710_v20, %v6690_v10  ;;  %v6700_v61 = vmul.f32 %v11710_v20, %v6689_v22  ;;  %v12648_v22 = vld [vmem:[#allocation13_spill] sm:$0xff] }
0x2e7a   :  { %v6740_v12 = vpop.permute.xlu1 %6739  ;;  %v6731_v17 = vmul.f32 %v6727_v21, %v8496_v26  ;;  %v6691_v26 = vsel %vm308_vm0, %v6682_v59, %v6684_v1  ;;  %v6799_v1 = vmul.f32 %v11716_v45, %v11656_v23 }
0x2e7b   :  { %v6738_v62 = vpop.permute.xlu0 %6737  ;;  %v6703_v10 = vmul.f32 %v6699_v0, %v8468_v42  ;;  %v6704_v54 = vmul.f32 %v6700_v61, %v12648_v22  ;;  %v6719_v42 = vsel %vm354_vm1, %v6710_v5, %v6712_v35  ;;  %v6720_v61 = vsel %vm354_vm1, %v6716_v13, %v6710_v5 }
0x2e7d   :  { %v6735_v21 = vadd.f32 %v6731_v17, %v6703_v10 }
0x2e7e   :  { %v6766_v7 = vpop.permute.xlu1 %6765 }
0x2e7f   :  { %v6744_v8 = vpop.permute.xlu0 %6743 }
0x2e80   :  { %v6748_v5 = vsel %vm399_vm2, %v6744_v8, %v6738_v62 }
0x2e81   :  { %v6753_v0 = vmul.f32 %v11722_v55, %v6748_v5 }
0x2e82   :  { %v6772_v33 = vpop.permute.xlu1 %6771 }
0x2e83   :  { %v6742_v14 = vpop.permute.xlu0 %6741 }
0x2e84   :  { %v6745_v56 = vsel %vm399_vm2, %v6742_v14, %v6744_v8  ;;  %v6746_v60 = vsel %vm399_vm2, %v6740_v12, %v6742_v14  ;;  %v6732_v14 = vmul.f32 %v6728_v6, %v8477_v53  ;;  %v6692_v53 = vsel %vm308_vm0, %v6688_v47, %v6682_v59 }
0x2e85   :  { %v6755_v18 = vmul.f32 %v11722_v55, %v6746_v60  ;;  %v6756_v39 = vmul.f32 %v11722_v55, %v6745_v56  ;;  %v6800_v59 = vmul.f32 %v11716_v45, %v11646_v19  ;;  %v6747_v47 = vsel %vm399_vm2, %v6738_v62, %v6740_v12 }
0x2e86   :  { %v6770_v63 = vpop.permute.xlu1 %6769  ;;  %v6736_v56 = vadd.f32 %v6732_v14, %v6704_v54  ;;  %v6698_v54 = vmul.f32 %v11710_v20, %v6691_v26  ;;  %v6776_v19 = vsel %vm444_vm3, %v6772_v33, %v6766_v7  ;;  %v6754_v8 = vmul.f32 %v11722_v55, %v6747_v47 }
0x2e87   :  { %v6768_v32 = vpop.permute.xlu0 %6767  ;;  %v6773_v9 = vsel %vm444_vm3, %v6770_v63, %v6772_v33  ;;  %v6760_v60 = vmul.f32 %v6756_v39, %v8490_v24  ;;  %v12650_v39 = vld [vmem:[#allocation6_spill] sm:$0xff]  ;;  %v6781_v55 = vmul.f32 %v11714_v15, %v6776_v19  ;;  %v6798_v47 = vmul.f32 %v11716_v45, %v11640_v37 }
0x2e88   :  { %v6774_v40 = vsel %vm444_vm3, %v6768_v32, %v6770_v63  ;;  %v6784_v3 = vmul.f32 %v11714_v15, %v6773_v9  ;;  %v6759_v63 = vmul.f32 %v6755_v18, %v8509_v43  ;;  %v6775_v13 = vsel %vm444_vm3, %v6766_v7, %v6768_v32 }
0x2e89   :  { %v6783_v11 = vmul.f32 %v11714_v15, %v6774_v40  ;;  %v6764_v17 = vadd.f32 %v6760_v60, %v6736_v56  ;;  %v12649_v40 = vld [vmem:[#allocation5_spill] sm:$0xff]  ;;  %v6804_v33 = vmul.f32 %v6800_v59, %v12650_v39  ;;  %v6782_v22 = vmul.f32 %v11714_v15, %v6775_v13  ;;  %v12651_v56 = vld [vmem:[#allocation12_spill] sm:$0xff] }
0x2e8a   :  { %v11752_v51 = vpop.permute.xlu1 %6811  ;;  %v6788_v6 = vmul.f32 %v6784_v3, %v12607_v36  ;;  %v6763_v35 = vadd.f32 %v6759_v63, %v6735_v21  ;;  %v6697_v36 = vmul.f32 %v11710_v20, %v6692_v53  ;;  %v6803_v18 = vmul.f32 %v6799_v1, %v12649_v40 }
0x2e8b   :  { %v6810_v52 = vpop.permute.xlu0 %6809  ;;  %v6787_v43 = vmul.f32 %v6783_v11, %v8503_v29  ;;  %v6726_v29 = vmul.f32 %v11712_v49, %v6719_v42  ;;  %v6725_v11 = vmul.f32 %v11712_v49, %v6720_v61  ;;  %v6702_v21 = vmul.f32 %v6698_v54, %v12557_v30 }
0x2e8c   :  { %v6792_v23 = vadd.f32 %v6788_v6, %v6764_v17  ;;  %v6701_v6 = vmul.f32 %v6697_v36, %v12651_v56  ;;  %v6797_v15 = vmul.f32 %v11716_v45, %v11638_v38  ;;  %v12657_v56 = vld [vmem:[#allocation27_spill] sm:$0xff] }
0x2e8d   :  { %v6791_v12 = vadd.f32 %v6787_v43, %v6763_v35  ;;  %v6730_v7 = vmul.f32 %v6726_v29, %v12282_v41  ;;  %v6729_v10 = vmul.f32 %v6725_v11, %v8473_v48  ;;  %v6758_v41 = vmul.f32 %v6754_v8, %v8506_v44  ;;  %v12652_v43 = vld [vmem:[#allocation14_spill] sm:$0xff]  ;;  %v12653_v35 = vld [vmem:[#allocation16_spill] sm:$0xff] }
0x2e8e   :  { %v6838_v9 = vpop.permute.xlu1 %6837  ;;  %v6808_v26 = vadd.f32 %v6804_v33, %v6792_v23  ;;  %v6757_v48 = vmul.f32 %v6753_v0, %v12652_v43  ;;  %v6786_v30 = vmul.f32 %v6782_v22, %v12653_v35  ;;  %v6819_v44 = vsel %vm521_vm4, %v6810_v52, %v11752_v51 }
0x2e8f   :  { %v6814_v24 = vpop.permute.xlu0 %6813  ;;  %v6807_v60 = vadd.f32 %v6803_v18, %v6791_v12  ;;  %v6733_v5 = vadd.f32 %v6729_v10, %v6701_v6 }
0x2e90   :  { %v6818_v17 = vsel %vm521_vm4, %v11752_v51, %v6814_v24 }
0x2e91   :  { %v6761_v29 = vadd.f32 %v6757_v48, %v6733_v5  ;;  %v6826_v19 = vmul.f32 %v11718_v50, %v6818_v17 }
0x2e92   :  { %v6842_v3 = vpop.permute.xlu1 %6841 }
0x2e93   :  { %v6816_v62 = vpop.permute.xlu0 %6815 }
0x2e94   :  { %v6817_v20 = vsel %vm521_vm4, %v6814_v24, %v6816_v62  ;;  %v6820_v49 = vsel %vm521_vm4, %v6816_v62, %v6810_v52  ;;  %v6825_v24 = vmul.f32 %v11718_v50, %v6819_v44 }
0x2e95   :  { %v6827_v14 = vmul.f32 %v11718_v50, %v6817_v20  ;;  %v6828_v32 = vmul.f32 %v11718_v50, %v6820_v49  ;;  %v12654_v49 = vld [vmem:[#allocation7_spill] sm:$0xff]  ;;  %v12655_v50 = vld [vmem:[#allocation8_spill] sm:$0xff] }
0x2e96   :  { %v6866_v63 = vpop.permute.xlu1 %6865  ;;  %v6801_v40 = vmul.f32 %v6797_v15, %v12654_v49  ;;  %v6802_v18 = vmul.f32 %v6798_v47, %v12655_v50 }
0x2e97   :  { %v6831_v53 = vmul.f32 %v6827_v14, %v12564_v31  ;;  %v6832_v42 = vmul.f32 %v6828_v32, %v12565_v4  ;;  %v6840_v61 = vpop.permute.xlu0 %6839  ;;  %v6734_v31 = vadd.f32 %v6730_v7, %v6702_v21  ;;  %v6785_v4 = vmul.f32 %v6781_v55, %v12606_v28 }
0x2e98   :  { %v6846_v45 = vsel %vm566_vm5, %v6840_v61, %v6842_v3  ;;  %v6847_v52 = vsel %vm566_vm5, %v6838_v9, %v6840_v61  ;;  %v6830_v14 = vmul.f32 %v6826_v19, %v12613_v34 }
0x2e99   :  { %v6835_v1 = vadd.f32 %v6831_v53, %v6807_v60  ;;  %v6836_v59 = vadd.f32 %v6832_v42, %v6808_v26  ;;  %v6762_v38 = vadd.f32 %v6758_v41, %v6734_v31  ;;  %v6789_v23 = vadd.f32 %v6785_v4, %v6761_v29  ;;  %v12656_v60 = vld [vmem:[#allocation22_spill] sm:$0xff]  ;;  %v12658_v41 = vld [vmem:[#allocation28_spill] sm:$0xff] }
0x2e9a   :  { %v6870_v54 = vpop.permute.xlu1 %6869  ;;  %v6854_v0 = vmul.f32 %v11726_v46, %v6846_v45 }
0x2e9b   :  { %v6844_v36 = vpop.permute.xlu0 %6843  ;;  %v6790_v13 = vadd.f32 %v6786_v30, %v6762_v38  ;;  %v6805_v32 = vadd.f32 %v6801_v40, %v6789_v23  ;;  %v12661_v30 = vld [vmem:[#allocation31_spill] sm:$0xff] }
0x2e9c   :  { %v6845_v37 = vsel %vm566_vm5, %v6842_v3, %v6844_v36  ;;  %v6848_v28 = vsel %vm566_vm5, %v6844_v36, %v6838_v9  ;;  %v6853_v3 = vmul.f32 %v11726_v46, %v6847_v52  ;;  %v6858_v26 = vmul.f32 %v6854_v0, %v12656_v60  ;;  %v12662_v38 = vld [vmem:[#allocation3_spill] sm:$0xff] }
0x2e9d   :  { %v6855_v11 = vmul.f32 %v11726_v46, %v6845_v37  ;;  %v6856_v51 = vmul.f32 %v11726_v46, %v6848_v28  ;;  %v6806_v7 = vadd.f32 %v6802_v18, %v6790_v13  ;;  %v12663_v37 = vld [vmem:[#allocation34_spill] sm:$0xff]  ;;  %v12664_v13 = vld [vmem:[#allocation9_spill] sm:$0xff] }
0x2e9e   :  { %v6857_v22 = vmul.f32 %v6853_v3, %v12562_v16  ;;  %v12659_v16 = vld [vmem:[#allocation29_spill] sm:$0xff] }
0x2e9f   :  { %v6859_v12 = vmul.f32 %v6855_v11, %v12568_v58  ;;  %v6860_v62 = vmul.f32 %v6856_v51, %v12608_v2  ;;  %v6868_v8 = vpop.permute.xlu0 %6867  ;;  %v6894_v58 = vpop.permute.xlu1 %6893  ;;  %v6829_v2 = vmul.f32 %v6825_v24, %v12612_v25  ;;  %v6834_v21 = vadd.f32 %v6830_v14, %v6806_v7 }
0x2ea0   :  { %v6874_v9 = vsel %vm611_vm6, %v6868_v8, %v6870_v54  ;;  %v6875_v20 = vsel %vm611_vm6, %v6866_v63, %v6868_v8 }
0x2ea1   :  { %v6863_v39 = vadd.f32 %v6859_v12, %v6835_v1  ;;  %v6864_v33 = vadd.f32 %v6860_v62, %v6836_v59  ;;  %v6881_v46 = vmul.f32 %v11720_v57, %v6875_v20  ;;  %v6882_v10 = vmul.f32 %v11720_v57, %v6874_v9  ;;  %v12660_v59 = vld [vmem:[#allocation30_spill] sm:$0xff] }
0x2ea2   :  { %v6833_v61 = vadd.f32 %v6829_v2, %v6805_v32  ;;  %v6862_v5 = vadd.f32 %v6858_v26, %v6834_v21  ;;  %v12665_v62 = vld [vmem:[#allocation10_spill] sm:$0xff] }
0x2ea3   :  { %v6872_v55 = vpop.permute.xlu0 %6871  ;;  %v6885_v6 = vmul.f32 %v6881_v46, %v12657_v56  ;;  %v6886_v43 = vmul.f32 %v6882_v10, %v12658_v41  ;;  %v6898_v48 = vpop.permute.xlu1 %6897 }
0x2ea4   :  { %v6873_v53 = vsel %vm611_vm6, %v6870_v54, %v6872_v55  ;;  %v6876_v42 = vsel %vm611_vm6, %v6872_v55, %v6866_v63  ;;  %v6861_v31 = vadd.f32 %v6857_v22, %v6833_v61 }
0x2ea5   :  { %v6883_v25 = vmul.f32 %v11720_v57, %v6873_v53  ;;  %v6884_v34 = vmul.f32 %v11720_v57, %v6876_v42  ;;  %v6890_v36 = vadd.f32 %v6886_v43, %v6862_v5 }
0x2ea6   :  { %v6889_v54 = vadd.f32 %v6885_v6, %v6861_v31  ;;  %v12666_v6 = vld [vmem:[#allocation38_spill] sm:$0xff] }
0x2ea7   :  { %v6887_v1 = vmul.f32 %v6883_v25, %v12659_v16  ;;  %v6888_v15 = vmul.f32 %v6884_v34, %v12660_v59  ;;  %v6896_v47 = vpop.permute.xlu0 %6895  ;;  %v12668_v16 = vld [vmem:[#allocation4_spill] sm:$0xff] }
0x2ea8   :  { %v6902_v63 = vsel %vm656_vm7, %v6896_v47, %v6898_v48  ;;  %v6903_v57 = vsel %vm656_vm7, %v6894_v58, %v6896_v47  ;;  %v12670_v47 = vld [vmem:[#allocation35_spill] sm:$0xff] }
0x2ea9   :  { %v6891_v4 = vadd.f32 %v6887_v1, %v6863_v39  ;;  %v6892_v35 = vadd.f32 %v6888_v15, %v6864_v33  ;;  %v6909_v44 = vmul.f32 %v12661_v30, %v6903_v57  ;;  %v6910_v17 = vmul.f32 %v12661_v30, %v6902_v63 }
0x2eaa   :  { %v12669_v15 = vmov 1  }
0x2eab   :  { %v6913_v29 = vmul.f32 %v12662_v38, %v6909_v44  ;;  %v6914_v28 = vmul.f32 %v12663_v37, %v6910_v17  ;;  %v6900_v45 = vpop.permute.xlu0 %6899 }
0x2eac   :  { %v6901_v52 = vsel %vm656_vm7, %v6898_v48, %v6900_v45  ;;  %v6904_v11 = vsel %vm656_vm7, %v6900_v45, %v6894_v58  ;;  %v12667_v48 = vmov 23  }
0x2ead   :  { %v6917_v51 = vadd.f32 %v6913_v29, %v6889_v54  ;;  %v6918_v24 = vadd.f32 %v6914_v28, %v6890_v36  ;;  %v6911_v19 = vmul.f32 %v12661_v30, %v6901_v52  ;;  %v6912_v23 = vmul.f32 %v12661_v30, %v6904_v11  ;;  %v5913_v36 = vld [vmem:[%s11981_s21 + $0x8] sm:$0xf] }
0x2eaf   :  { %v6915_v12 = vmul.f32 %v12664_v13, %v6911_v19  ;;  %v6916_v8 = vmul.f32 %v12665_v62, %v6912_v23  ;;  %v6921_v3 = vsel %vm1684_vm9, %v6917_v51, 0.0  ;;  %v6922_v0 = vsel %vm1684_vm9, %v6918_v24, 0.0 }
0x2eb0   :  { %v6931_v9 = vmul.f32 %v6917_v51, %v6917_v51  ;;  %v6932_v20 = vmul.f32 %v6918_v24, %v6918_v24  ;;  %v6923_v27 = vadd.f32 %v6922_v0, %v6921_v3  ;;  %v12672_v3 = vmov 2  }
0x2eb1   :  { %v6919_v49 = vadd.f32 %v6915_v12, %v6891_v4  ;;  %v6920_v40 = vadd.f32 %v6916_v8, %v6892_v35  ;;  %v12671_v12 = vmov 3  }
0x2eb2   :  { %v6935_v50 = vsel %vm1684_vm9, %v6931_v9, 0.0  ;;  %v6936_v18 = vsel %vm1684_vm9, %v6932_v20, 0.0 }
0x2eb3   :  { %v6924_v39 = vsel %vm1684_vm9, %v6919_v49, 0.0  ;;  %v6933_v33 = vmul.f32 %v6919_v49, %v6919_v49  ;;  %v6934_v58 = vmul.f32 %v6920_v40, %v6920_v40  ;;  %v6937_v14 = vadd.f32 %v6936_v18, %v6935_v50 }
0x2eb4   :  { %v6925_v2 = vadd.f32 %v6924_v39, %v6923_v27  ;;  %v6926_v32 = vsel %vm1684_vm9, %v6920_v40, 0.0 }
0x2eb5   :  { %v6938_v7 = vsel %vm1684_vm9, %v6933_v33, 0.0  ;;  %v6940_v55 = vsel %vm1684_vm9, %v6934_v58, 0.0 }
0x2eb6   :  { %v6927_v46 = vadd.f32 %v6926_v32, %v6925_v2  ;;  %v6939_v10 = vadd.f32 %v6938_v7, %v6937_v14 }
0x2eb8   :  { %6928 = vadd.xlane.f32.xlu1 %v6927_v46  ;;  %v6941_v22 = vadd.f32 %v6940_v55, %v6939_v10 }
0x2eba   :  { %6942 = vadd.xlane.f32.xlu0 %v6941_v22 }
0x2f45   :  { %v6929_v60 = vpop.xlane.xlu1 %6928 }
0x2f46   :  { %v6930_v26 = vmul.f32 0.001953125, %v6929_v60 }
0x2f47   :  { %v6943_v53 = vpop.xlane.xlu0 %6942 }
0x2f48   :  { %v6945_v42 = vmul.f32 %v6930_v26, %v6930_v26  ;;  %v6944_v25 = vmul.f32 0.001953125, %v6943_v53 }
0x2f4a   :  { %v6946_v34 = vsub.f32 %v6944_v25, %v6945_v42  ;;  %v12673_v25 = vld [vmem:[#allocation15_spill] sm:$0xff] }
0x2f4c   :  { %v6947_v61 = vmax.f32 %v6946_v34, 0.0 }
0x2f4e   :  { %v6948_v21 = vadd.f32 1e-05, %v6947_v61  ;;  %v12674_v61 = vld [vmem:[#allocation37_spill] sm:$0xff] }
0x2f50   :  { %7853 = vrsqrt.f32 %v6948_v21 }
0x2f5a   :  { %v7854_v56 = vpop.eup %7853 }
0x2f5b   :  { %v6950_v41 = vmul.f32 %v12666_v6, %v7854_v56  ;;  %v12675_v56 = vld [vmem:[#allocation33_spill] sm:$0xff] }
0x2f5d   :  { %6953 = vperm.xlu1 %7553, %v6950_v41   ;;  %v6960_v43 = vmul.f32 %v6950_v41, %v6930_v26  ;;  %v12676_v41 = vld [vmem:[#allocation36_spill] sm:$0xff] }
0x2f5f   :  { %6962 = vrot.lane.b32.xlu0 %v6960_v43, %s7925_s29 }
0x2f61   :  { %7554 = vset.pattern.permute.xlu1 %v12667_v48 }
0x2f7e   :  { %6376 = vadd.xlane.f32.xlu0 %v12668_v16 }
0x2fd1   :  { %v6963_v1 = vpop.permute.xlu0 %6962 }
0x2fd2   :  { %v6965_v59 = vsub.f32 %v12666_v6, %v6963_v1 }
0x2fd4   :  { %6968 = vperm.xlu1 %7554, %v6965_v59  }
0x2fd8   :  { %7556 = vset.pattern.permute.xlu1 %v12669_v15 }
0x2fdc   :  { %v6954_v31 = vpop.permute.xlu1 %6953 }
0x2fdd   :  { %v6956_v5 = vmul.f32 %v6954_v31, %v6917_v51  ;;  %v6957_v63 = vmul.f32 %v6954_v31, %v6918_v24  ;;  %v6958_v57 = vmul.f32 %v6954_v31, %v6919_v49  ;;  %v6959_v4 = vmul.f32 %v6954_v31, %v6920_v40  ;;  %v5914_v24 = vld [vmem:[%s11982_s22] sm:$0xf] }
0x2ff8   :  { %6390 = vadd.xlane.f32.xlu1 %v12670_v47 }
0x300b   :  { %v6377_v38 = vpop.xlane.xlu0 %6376 }
0x300c   :  { %v6378_v29 = vmul.f32 0.001953125, %v6377_v38 }
0x300e   :  { %v6393_v28 = vmul.f32 %v6378_v29, %v6378_v29 }
0x3053   :  { %v6969_v35 = vpop.permute.xlu1 %6968 }
0x3054   :  { %v6971_v30 = vadd.f32 %v6969_v35, %v6956_v5  ;;  %v6972_v44 = vadd.f32 %v6969_v35, %v6957_v63  ;;  %v6973_v17 = vadd.f32 %v6969_v35, %v6958_v57  ;;  %v6974_v54 = vadd.f32 %v6969_v35, %v6959_v4 }
0x3056   :  { %7283 = vmatprep.subr.msk.mxu0 %vm1684_vm9, %v6972_v44  ;;  %7286 = vmatprep.subr.msk.mxu1 %vm1684_vm9, %v6974_v54 }
0x3057   :  { %7284 = vmatpush1.msk.msra.mxu0 %vm1684_vm9, %v6971_v30  ;;  %7287 = vmatpush1.msk.msra.mxu1 %vm1684_vm9, %v6973_v17 }
0x3058   :  { %7285 = vmatmul.mubr.msk.f32.vlgmr.msra.gmra.mrb[34].mxu0 %vm6212_vm14, %v5913_v36  ;;  %7288 = vmatmul.mubr.msk.f32.vlgmr.msra.gmra.mrb[34].mxu1 %vm6212_vm14, %v5913_v36 }
0x3085   :  { %v6391_v37 = vpop.xlane.xlu1 %6390 }
0x3086   :  { %v6392_v45 = vmul.f32 0.001953125, %v6391_v37 }
0x3088   :  { %v6394_v52 = vsub.f32 %v6392_v45, %v6393_v28 }
0x308a   :  { %v6395_v11 = vmax.f32 %v6394_v52, 0.0 }
0x308c   :  { %v6396_v51 = vadd.f32 1e-05, %v6395_v11 }
0x308e   :  { %7855 = vrsqrt.f32 %v6396_v51 }
0x3098   :  { %v7856_v19 = vpop.eup %7855 }
0x3099   :  { %v6398_v23 = vmul.f32 %v7856_v19, %v5914_v24 }
0x309b   :  { %6401 = vperm.xlu0 %7555, %v6398_v23   ;;  %v6408_v13 = vmul.f32 %v6398_v23, %v6378_v29 }
0x309d   :  { %6410 = vrot.lane.b32.xlu1 %v6408_v13, %s7925_s29 }
0x309f   :  { %7559 = vset.pattern.permute.xlu0 %v12671_v12 }
0x310f   :  { %v6411_v62 = vpop.permute.xlu1 %6410 }
0x3110   :  { %v6413_v8 = vsub.f32 %v5914_v24, %v6411_v62 }
0x3112   :  { %6416 = vperm.xlu1 %7556, %v6413_v8  }
0x3116   :  { %7557 = vset.pattern.permute.xlu1 %v12672_v3 }
0x311a   :  { %v6402_v42 = vpop.permute.xlu0 %6401 }
0x311b   :  { %v6404_v34 = vmul.f32 %v6402_v42, %v12673_v25  ;;  %v6405_v21 = vmul.f32 %v6402_v42, %v12674_v61  ;;  %v6406_v6 = vmul.f32 %v6402_v42, %v12675_v56  ;;  %v6407_v43 = vmul.f32 %v6402_v42, %v12676_v41 }
0x312b   :  { %v11902_v0 = vpop.f32.mrb[34].mxu0  ;;  %v11904_v9 = vpop.f32.mrb[34].mxu1 }
0x312c   :  { %v7132_v20 = vsel %vm1684_vm9, %v11902_v0, 0.0  ;;  %v7142_v49 = vmul.f32 %v11902_v0, %v11902_v0  ;;  %v7058_v40 = vpop.f32.mrb[35].mxu0  ;;  %v7144_v27 = vmul.f32 %v11904_v9, %v11904_v9  ;;  %v7129_v50 = vpop.f32.mrb[35].mxu1  ;;  %v7135_v33 = vsel %vm1684_vm9, %v11904_v9, 0.0 }
0x312d   :  { %v7133_v18 = vsel %vm1684_vm9, %v7058_v40, 0.0  ;;  %v7143_v39 = vmul.f32 %v7058_v40, %v7058_v40  ;;  %v7145_v58 = vmul.f32 %v7129_v50, %v7129_v50  ;;  %v7137_v46 = vsel %vm1684_vm9, %v7129_v50, 0.0 }
0x312e   :  { %v7146_v2 = vsel %vm1684_vm9, %v7142_v49, 0.0  ;;  %v7134_v14 = vadd.f32 %v7133_v18, %v7132_v20  ;;  %v7149_v7 = vsel %vm1684_vm9, %v7144_v27, 0.0 }
0x312f   :  { %v7147_v32 = vsel %vm1684_vm9, %v7143_v39, 0.0  ;;  %v7151_v22 = vsel %vm1684_vm9, %v7145_v58, 0.0 }
0x3130   :  { %v7148_v10 = vadd.f32 %v7147_v32, %v7146_v2  ;;  %v7136_v55 = vadd.f32 %v7135_v33, %v7134_v14 }
0x3132   :  { %v7138_v60 = vadd.f32 %v7137_v46, %v7136_v55  ;;  %v7150_v26 = vadd.f32 %v7149_v7, %v7148_v10 }
0x3134   :  { %v7152_v53 = vadd.f32 %v7151_v22, %v7150_v26 }
0x3136   :  { %7139 = vadd.xlane.f32.xlu1 %v7138_v60  ;;  %7153 = vadd.xlane.f32.xlu0 %v7152_v53 }
0x3191   :  { %v6417_v48 = vpop.permute.xlu1 %6416 }
0x3192   :  { %v11924_v16 = vadd.f32 %v6417_v48, %v6404_v34  ;;  %v11926_v1 = vadd.f32 %v6417_v48, %v6405_v21  ;;  %v11928_v59 = vadd.f32 %v6417_v48, %v6406_v6  ;;  %v11930_v15 = vadd.f32 %v6417_v48, %v6407_v43 }
0x3194   :  { %v6423_v29 = vsub.f32 0.0, %v11924_v16  ;;  %v6424_v37 = vsub.f32 0.0, %v11926_v1  ;;  %v6425_v28 = vsub.f32 0.0, %v11928_v59  ;;  %v6426_v52 = vsub.f32 0.0, %v11930_v15 }
0x3196   :  { %v6427_v45 = vmul.f32 1.442695, %v6423_v29  ;;  %v6429_v11 = vmul.f32 1.442695, %v6424_v37  ;;  %v6431_v51 = vmul.f32 1.442695, %v6425_v28 }
0x3197   :  { %v6433_v23 = vmul.f32 1.442695, %v6426_v52 }
0x31c3   :  { %v7140_v47 = vpop.xlane.xlu1 %7139  ;;  %v7154_v31 = vpop.xlane.xlu0 %7153 }
0x31c4   :  { %v7141_v5 = vmul.f32 0.001953125, %v7140_v47  ;;  %v7155_v57 = vmul.f32 0.001953125, %v7154_v31 }
0x31c6   :  { %v7156_v63 = vmul.f32 %v7141_v5, %v7141_v5 }
0x31c8   :  { %v7157_v4 = vsub.f32 %v7155_v57, %v7156_v63 }
0x31ca   :  { %v7158_v35 = vmax.f32 %v7157_v4, 0.0 }
0x31cc   :  { %v7159_v30 = vadd.f32 1e-05, %v7158_v35 }
0x31ce   :  { %7857 = vrsqrt.f32 %v7159_v30 }
0x31cf   :  { %7859 = vpow2.f32 %v6427_v45 }
0x31d0   :  { %7861 = vpow2.f32 %v6429_v11 }
0x31d1   :  { %7863 = vpow2.f32 %v6431_v51 }
0x31d2   :  { %7865 = vpow2.f32 %v6433_v23 }
0x31d8   :  { %v7858_v44 = vpop.eup %7857 }
0x31d9   :  { %v7161_v17 = vmul.f32 %v7858_v44, %v5914_v24 }
0x31db   :  { %7164 = vperm.xlu1 %7557, %v7161_v17   ;;  %v7171_v54 = vmul.f32 %v7161_v17, %v7141_v5 }
0x31dd   :  { %7173 = vrot.lane.b32.xlu0 %v7171_v54, %s7925_s29 }
0x31df   :  { %7558 = vset.pattern.permute.xlu1 %v12671_v12 }
0x324f   :  { %v7174_v36 = vpop.permute.xlu0 %7173 }
0x3250   :  { %v7176_v38 = vsub.f32 %v5914_v24, %v7174_v36 }
0x3252   :  { %7179 = vperm.xlu1 %7558, %v7176_v38  }
0x325a   :  { %v7165_v19 = vpop.permute.xlu1 %7164 }
0x325b   :  { %v7167_v13 = vmul.f32 %v7165_v19, %v11902_v0  ;;  %v7168_v12 = vmul.f32 %v7165_v19, %v7058_v40  ;;  %v7169_v24 = vmul.f32 %v7165_v19, %v11904_v9  ;;  %v7170_v62 = vmul.f32 %v7165_v19, %v7129_v50  ;;  %v7860_v0 = vpop.eup %7859 }
0x325c   :  { %v7862_v40 = vpop.eup %7861  ;;  %v6435_v46 = vadd.f32 1.0, %v7860_v0 }
0x325d   :  { %v7864_v9 = vpop.eup %7863  ;;  %v6436_v10 = vadd.f32 1.0, %v7862_v40 }
0x325e   :  { %v7866_v50 = vpop.eup %7865  ;;  %v6437_v55 = vadd.f32 1.0, %v7864_v9 }
0x325f   :  { %v6438_v22 = vadd.f32 1.0, %v7866_v50 }
0x32d1   :  { %v7180_v8 = vpop.permute.xlu1 %7179 }
0x32d2   :  { %v7182_v3 = vadd.f32 %v7180_v8, %v7167_v13  ;;  %v7183_v20 = vadd.f32 %v7180_v8, %v7168_v12  ;;  %v7184_v49 = vadd.f32 %v7180_v8, %v7169_v24  ;;  %v7185_v27 = vadd.f32 %v7180_v8, %v7170_v62 }
0x32d4   :  { %v7186_v18 = vsub.f32 0.0, %v7182_v3  ;;  %v7187_v39 = vsub.f32 0.0, %v7183_v20  ;;  %v7188_v33 = vsub.f32 0.0, %v7184_v49  ;;  %v7189_v58 = vsub.f32 0.0, %v7185_v27 }
0x32d6   :  { %v7190_v2 = vmul.f32 1.442695, %v7186_v18  ;;  %v7192_v14 = vmul.f32 1.442695, %v7187_v39  ;;  %v7194_v32 = vmul.f32 1.442695, %v7188_v33 }
0x32d7   :  { %v7196_v7 = vmul.f32 1.442695, %v7189_v58 }
0x32d8   :  { %7867 = vpow2.f32 %v7190_v2 }
0x32d9   :  { %7869 = vpow2.f32 %v7192_v14 }
0x32da   :  { %7871 = vpow2.f32 %v7194_v32 }
0x32db   :  { %7873 = vpow2.f32 %v7196_v7 }
0x32dc   :  { %7875 = vrcp.f32 %v6435_v46 }
0x32dd   :  { %7877 = vrcp.f32 %v6436_v10 }
0x32de   :  { %7879 = vrcp.f32 %v6437_v55 }
0x32df   :  { %7881 = vrcp.f32 %v6438_v22 }
0x32e2   :  { %v7868_v60 = vpop.eup %7867 }
0x32e3   :  { %v7870_v26 = vpop.eup %7869  ;;  %v7198_v53 = vadd.f32 1.0, %v7868_v60 }
0x32e4   :  { %v7872_v42 = vpop.eup %7871  ;;  %v7199_v25 = vadd.f32 1.0, %v7870_v26 }
0x32e5   :  { %v7874_v34 = vpop.eup %7873  ;;  %v7200_v61 = vadd.f32 1.0, %v7872_v42  ;;  %7883 = vrcp.f32 %v7198_v53 }
0x32e6   :  { %v7201_v21 = vadd.f32 1.0, %v7874_v34  ;;  %7885 = vrcp.f32 %v7199_v25  ;;  %v7876_v56 = vpop.eup %7875 }
0x32e7   :  { %7887 = vrcp.f32 %v7200_v61  ;;  %v7878_v6 = vpop.eup %7877  ;;  %v6443_v4 = vmul.f32 %v7876_v56, %v11924_v16 }
0x32e8   :  { %7889 = vrcp.f32 %v7201_v21  ;;  %v7880_v41 = vpop.eup %7879  ;;  %v6444_v44 = vmul.f32 %v7878_v6, %v11926_v1 }
0x32e9   :  { %v7882_v43 = vpop.eup %7881  ;;  %v6445_v36 = vmul.f32 %v7880_v41, %v11928_v59 }
0x32ea   :  { %v6446_v37 = vmul.f32 %v7882_v43, %v11930_v15 }
0x32ef   :  { %v7884_v48 = vpop.eup %7883 }
0x32f0   :  { %v7886_v47 = vpop.eup %7885  ;;  %v7206_v31 = vmul.f32 %v7884_v48, %v7182_v3 }
0x32f1   :  { %v7888_v5 = vpop.eup %7887  ;;  %v7207_v63 = vmul.f32 %v7886_v47, %v7183_v20 }
0x32f2   :  { %v7890_v57 = vpop.eup %7889  ;;  %v7208_v35 = vmul.f32 %v7888_v5, %v7184_v49  ;;  %v7214_v30 = vrot.slane %v7206_v31, 4 }
0x32f3   :  { %v7209_v17 = vmul.f32 %v7890_v57, %v7185_v27  ;;  %v7215_v54 = vrot.slane %v7207_v63, 4 }
0x32f4   :  { %v7216_v38 = vrot.slane %v7208_v35, 4  ;;  %v7222_v29 = vsel %vm1684_vm9, %v6443_v4, %v7214_v30 }
0x32f5   :  { %v7217_v28 = vrot.slane %v7209_v17, 4  ;;  %v7223_v45 = vsel %vm1684_vm9, %v6444_v44, %v7215_v54  ;;  %7226 = vst [vmem:[%s11983_s23] sm:$0xff] %v7222_v29 }
0x32f6   :  { %v7224_v16 = vsel %vm1684_vm9, %v6445_v36, %v7216_v38  ;;  %7227 = vst [vmem:[%s11983_s23 + $0x8] sm:$0xff] %v7223_v45 }
0x32f7   :  { %v7225_v1 = vsel %vm1684_vm9, %v6446_v37, %v7217_v28  ;;  %7228 = vst [vmem:[%s11983_s23 + $0x10] sm:$0xff] %v7224_v16 }
0x32f8   :  { %7229 = vst [vmem:[%s11983_s23 + $0x18] sm:$0xff] %v7225_v1 }

</bundles_post_ra>
